<compile_context>
chip_gen: v6e
topology: v6e:2x2x1
jax: 0.10.0
libtpu: 0.0.40
codegen_flags: <defaults>
</compile_context>

<pallas_src>
import functools
import math

import jax
import jax.numpy as jnp
from jax.experimental import pallas as pl
from jax.experimental.pallas import tpu as pltpu


# ----------------------------------------------------------------------------
# Config (small stand-in for the t2m RVQVAE: pose_dim=263, width=512, ...)
# ----------------------------------------------------------------------------
CFG = dict(
    pose_dim=8,
    width=32,
    code_dim=32,
    nb_code=64,
    down_t=2,
    stride_t=2,
    depth=2,
    dilation_growth_rate=3,
    num_quantizers=2,
)


# ----------------------------------------------------------------------------
# Static layer plan (mirrors the RVQVAE encoder / RVQ / decoder structure)
# ----------------------------------------------------------------------------
def _conv_spec(cin, cout, K, dil=1, stride=1, pad=0, up=1,
               pre_relu=False, post_relu=False):
    return dict(cin=cin, cout=cout, K=K, dil=dil, stride=stride, pad=pad, up=up,
                pre_relu=pre_relu, post_relu=post_relu)


def build_plan(cfg):
    w, cd, pd = cfg["width"], cfg["code_dim"], cfg["pose_dim"]
    rate, depth = cfg["dilation_growth_rate"], cfg["depth"]
    st, down_t = cfg["stride_t"], cfg["down_t"]
    ops = []
    # ---- encoder ----
    ops.append(("conv", _conv_spec(pd, w, 3, pad=1, post_relu=True)))
    for _ in range(down_t):
        ops.append(("conv", _conv_spec(w, w, st * 2, stride=st, pad=st // 2)))
        for j in range(depth):
            d = rate ** j
            ops.append(("res", _conv_spec(w, w, 3, dil=d, pad=d, pre_relu=True),
                               _conv_spec(w, w, 1, pre_relu=True)))
    ops.append(("conv", _conv_spec(w, cd, 3, pad=1)))
    # ---- residual VQ ----
    ops.append(("rvq",))
    # ---- decoder ----
    ops.append(("conv", _conv_spec(cd, w, 3, pad=1, post_relu=True)))
    for _ in range(down_t):
        for j in range(depth):
            d = rate ** (depth - 1 - j)            # reverse_dilation=True
            ops.append(("res", _conv_spec(w, w, 3, dil=d, pad=d, pre_relu=True),
                               _conv_spec(w, w, 1, pre_relu=True)))
        # nearest-neighbour x2 upsample fused into this conv (up=2)
        ops.append(("conv", _conv_spec(w, w, 3, pad=1, up=2)))
    ops.append(("conv", _conv_spec(w, w, 3, pad=1, post_relu=True)))
    ops.append(("conv", _conv_spec(w, pd, 3, pad=1)))
    return ops


def _num_convs(plan):
    return sum(1 if op[0] == "conv" else 2 for op in plan if op[0] in ("conv", "res"))


# ----------------------------------------------------------------------------
# In-kernel building blocks (operate on VMEM-resident values)
# ----------------------------------------------------------------------------
def _apply_conv(h, w, b, *, B, Tin, cin, cout, K, dil=1, stride=1, pad=0, up=1,
                pre_relu=False, post_relu=False):
    """One Conv1d (optionally preceded by ReLU and/or a nearest x`up` upsample) on a
    channel-major slab h: (Cin, B*Tin).  Padding / stride / upsample are folded into
    per-tap 0/1 gather matrices; the conv itself is one (Cout, K*Cin) x (K*Cin, B*Tout)
    MXU matmul (im2col with taps stacked on the sublane/contraction axis)."""
    del cin, cout
    if pre_relu:
        h = jnp.maximum(h, 0.0)

    # pointwise (1x1) fast path: just a matmul
    if K == 1 and stride == 1 and pad == 0 and up == 1:
        y = jnp.dot(w, h, preferred_element_type=jnp.float32) + b
        return (jnp.maximum(y, 0.0) if post_relu else y), Tin

    t_eff = up * Tin                                        # virtually upsampled length
    Tout = (t_eff + 2 * pad - dil * (K - 1) - 1) // stride + 1
    R, N = B * Tin, B * Tout

    i = jax.lax.broadcasted_iota(jnp.int32, (R, N), 0)      # input row index
    j = jax.lax.broadcasted_iota(jnp.int32, (R, N), 1)      # output column index
    b_col = jnp.zeros_like(j)
    for m in range(1, B):                                   # per-column batch id (no int div)
        b_col = b_col + jnp.where(j >= m * Tout, 1, 0)
    tj = j - b_col * Tout                                   # output time within the batch block
    ti = i - b_col * Tin                                    # input  time within the batch block

    taps = []
    for k in range(K):
        # tap position in the (virtually upsampled, zero-padded) input
        src = stride * tj + (k * dil - pad)
        # input row ti feeds upsampled positions [up*ti, up*ti + up); out-of-range -> zero pad
        sel = ((up * ti <= src) & (src < up * ti + up) &
               (src >= 0) & (src < t_eff))
        g = jnp.where(sel, 1.0, 0.0).astype(jnp.float32)                    # (B*Tin, B*Tout)
        taps.append(jnp.dot(h, g, preferred_element_type=jnp.float32))      # (Cin,  B*Tout)

    xcol = taps[0] if K == 1 else jnp.concatenate(taps, axis=0)             # (K*Cin, B*Tout)
    y = jnp.dot(w, xcol, preferred_element_type=jnp.float32) + b
    if post_relu:
        y = jnp.maximum(y, 0.0)
    return y, Tout


def _apply_rvq(h, codebook_vals):
    """Residual vector quantization over all quantizers, fully in-VMEM.
    h: (D, N) latents (N = B*Tq).  codebook_vals: list of (cb (C,D), cbT (D,C), c2 (C,1))."""
    D, N = h.shape
    residual = h
    quant = jnp.zeros_like(h)
    loss = jnp.zeros((1, 1), jnp.float32)
    perp = jnp.zeros((1, 1), jnp.float32)
    n_q = len(codebook_vals)
    for cb, cbT, c2 in codebook_vals:
        C = cb.shape[0]
        cx = jnp.dot(cb, residual, preferred_element_type=jnp.float32)       # (C, N)
        # ||x||^2 dropped: constant per column, does not change the argmin
        dist = c2 - 2.0 * cx                                                 # (C, N)
        min_d = jnp.min(dist, axis=0, keepdims=True)                         # (1, N)
        iota = jax.lax.broadcasted_iota(jnp.int32, (C, N), 0).astype(jnp.float32)
        cand = jnp.where(dist <= min_d, iota, jnp.float32(C))
        idx = jnp.min(cand, axis=0, keepdims=True)                           # (1, N) first argmin
        onehot = jnp.where(iota == idx, 1.0, 0.0).astype(jnp.float32)        # (C, N)
        q = jnp.dot(cbT, onehot, preferred_element_type=jnp.float32)         # (D, N)

        diff = residual - q                                                  # commit loss
        l = jnp.sum(jnp.sum(diff * diff, axis=0, keepdims=True), axis=1, keepdims=True)
        loss = loss + l / jnp.float32(N * D)

        probs = jnp.sum(onehot, axis=1, keepdims=True) / jnp.float32(N)      # (C, 1)
        ent = -jnp.sum(probs * jnp.log(probs + 1e-10), axis=0, keepdims=True)
        perp = perp + jnp.exp(ent)

        quant = quant + q
        residual = residual - q
    return quant, loss, perp / jnp.float32(n_q)


# ----------------------------------------------------------------------------
# Fused kernel factory + pallas_call wrapper
# ----------------------------------------------------------------------------
def _make_fused_kernel(plan, B, T, n_q):
    n_conv = _num_convs(plan)

    def kernel(*refs):
        # refs = x, (w, b) * n_conv, (cb, cbT, c2) * n_q, pose_out, scalars_out
        x_ref = refs[0]
        w_refs = refs[1:1 + 2 * n_conv]
        q_refs = refs[1 + 2 * n_conv:1 + 2 * n_conv + 3 * n_q]
        pose_ref = refs[-2]
        scal_ref = refs[-1]

        codebook_vals = [(q_refs[3 * i][...], q_refs[3 * i + 1][...], q_refs[3 * i + 2][...])
                         for i in range(n_q)]

        h = x_ref[...]                       # (pose_dim, B*T)
        t_cur = T
        conv_idx = iter(range(n_conv))

        def wb():
            k = next(conv_idx)
            return w_refs[2 * k][...], w_refs[2 * k + 1][...]

        commit = perp = None
        for op in plan:
            if op[0] == "conv":
                w, b = wb()
                h, t_cur = _apply_conv(h, w, b, B=B, Tin=t_cur, **op[1])
            elif op[0] == "res":
                # ResConv1DBlock: x + conv1x1(relu(conv3_dil(relu(x))))
                w1, b1 = wb()
                w2, b2 = wb()
                t, _ = _apply_conv(h, w1, b1, B=B, Tin=t_cur, **op[1])
                t, _ = _apply_conv(t, w2, b2, B=B, Tin=t_cur, **op[2])
                h = h + t
            else:  # "rvq"
                h, commit, perp = _apply_rvq(h, codebook_vals)

        pose_ref[...] = h
        lane = jax.lax.broadcasted_iota(jnp.int32, (1, 2), 1)
        scal_ref[...] = jnp.where(lane == 0, commit, perp)   # pack the two scalars

    return kernel, n_conv


def motion_prior_forward(motion, params, cfg=CFG):
    """Equivalent of MotionPriorWrapper.forward for the RVQVAE model.

    motion: (B, T, pose_dim) -> (pred_pose (B, T, pose_dim), (commit_loss, perplexity))
    """
    B, T, pd = motion.shape
    assert pd == cfg["pose_dim"]
    assert T % (cfg["stride_t"] ** cfg["down_t"]) == 0

    plan = build_plan(cfg)
    n_q = cfg["num_quantizers"]
    kernel, n_conv = _make_fused_kernel(plan, B, T, n_q)
    assert len(params["convs"]) == n_conv and len(params["codebooks"]) == n_q

    # preprocess: (B, T, D) -> channel-major slab (D, B*T), batch folded into lanes
    x = jnp.transpose(motion.astype(jnp.float32), (2, 0, 1)).reshape(pd, B * T)

    inputs = [x]
    for c in params["convs"]:
        inputs += [c["w"], c["b"]]
    for q in params["codebooks"]:
        inputs += [q["cb"], q["cbT"], q["c2"]]

    vmem = pl.BlockSpec(memory_space=pltpu.MemorySpace.VMEM)
    pose_flat, scal = pl.pallas_call(
        kernel,
        out_shape=(jax.ShapeDtypeStruct((pd, B * T), jnp.float32),
                   jax.ShapeDtypeStruct((1, 2), jnp.float32)),
        in_specs=[vmem] * len(inputs),
        out_specs=(vmem, vmem),
    )(*inputs)

    # postprocess: (D, B*T) -> (B, T, D)
    pred_pose = jnp.transpose(pose_flat.reshape(pd, B, T), (1, 2, 0))
    return pred_pose, (scal[0, 0], scal[0, 1])


# ----------------------------------------------------------------------------
# Deterministic parameter init (all per-call reshapes hoisted here)
# ----------------------------------------------------------------------------
def init_params(key, cfg=CFG):
    plan = build_plan(cfg)
    n_conv = _num_convs(plan)
    keys = jax.random.split(key, n_conv + cfg["num_quantizers"])
    ki = 0
    convs = []

    def make(spec):
        nonlocal ki
        kw, kb = jax.random.split(keys[ki]); ki += 1
        cin, cout, K = spec["cin"], spec["cout"], spec["K"]
        scale = 1.0 / math.sqrt(cin * K)
        w = jax.random.uniform(kw, (cout, cin, K), jnp.float32, -scale, scale)
        b = jax.random.uniform(kb, (cout,), jnp.float32, -scale, scale)
        # pre-pack into the in-kernel im2col layout once: rows tap-major, then cin
        w_flat = jnp.transpose(w, (0, 2, 1)).reshape(cout, K * cin)
        return {"w": w_flat, "b": b.reshape(cout, 1)}

    for op in plan:
        if op[0] == "conv":
            convs.append(make(op[1]))
        elif op[0] == "res":
            convs.append(make(op[1]))
            convs.append(make(op[2]))

    codebooks = []
    for _ in range(cfg["num_quantizers"]):
        cb = 0.1 * jax.random.normal(keys[ki], (cfg["nb_code"], cfg["code_dim"]), jnp.float32)
        ki += 1
        codebooks.append({"cb": cb,
                          "cbT": jnp.transpose(cb),
                          "c2": jnp.sum(cb * cb, axis=1, keepdims=True)})
    return {"convs": convs, "codebooks": codebooks}


# ----------------------------------------------------------------------------
if __name__ == "__main__":
    root = jax.random.PRNGKey(0)
    k_params, k_motion = jax.random.split(root)

    params = init_params(k_params)
    B, T, D = 2, 16, CFG["pose_dim"]
    motion = jax.random.normal(k_motion, (B, T, D), jnp.float32)

    fwd = jax.jit(functools.partial(motion_prior_forward, params=params))
    pred_pose, (commit_loss, perplexity) = fwd(motion)
    jax.block_until_ready((pred_pose, commit_loss, perplexity))

    assert pred_pose.shape == (B, T, D), pred_pose.shape
    assert commit_loss.shape == () and perplexity.shape == ()
    assert bool(jnp.all(jnp.isfinite(pred_pose)))
    assert bool(jnp.isfinite(commit_loss)) and bool(jnp.isfinite(perplexity))
    print("KERNEL_OK")
</pallas_src>

<mosaic_0001>
module attributes {stable_mosaic.version = 11 : i64} {
  func.func @kernel(%arg0: memref<8x32xf32, #tpu.memory_space<vmem>>, %arg1: memref<32x24xf32, #tpu.memory_space<vmem>>, %arg2: memref<32x1xf32, #tpu.memory_space<vmem>>, %arg3: memref<32x128xf32, #tpu.memory_space<vmem>>, %arg4: memref<32x1xf32, #tpu.memory_space<vmem>>, %arg5: memref<32x96xf32, #tpu.memory_space<vmem>>, %arg6: memref<32x1xf32, #tpu.memory_space<vmem>>, %arg7: memref<32x32xf32, #tpu.memory_space<vmem>>, %arg8: memref<32x1xf32, #tpu.memory_space<vmem>>, %arg9: memref<32x96xf32, #tpu.memory_space<vmem>>, %arg10: memref<32x1xf32, #tpu.memory_space<vmem>>, %arg11: memref<32x32xf32, #tpu.memory_space<vmem>>, %arg12: memref<32x1xf32, #tpu.memory_space<vmem>>, %arg13: memref<32x128xf32, #tpu.memory_space<vmem>>, %arg14: memref<32x1xf32, #tpu.memory_space<vmem>>, %arg15: memref<32x96xf32, #tpu.memory_space<vmem>>, %arg16: memref<32x1xf32, #tpu.memory_space<vmem>>, %arg17: memref<32x32xf32, #tpu.memory_space<vmem>>, %arg18: memref<32x1xf32, #tpu.memory_space<vmem>>, %arg19: memref<32x96xf32, #tpu.memory_space<vmem>>, %arg20: memref<32x1xf32, #tpu.memory_space<vmem>>, %arg21: memref<32x32xf32, #tpu.memory_space<vmem>>, %arg22: memref<32x1xf32, #tpu.memory_space<vmem>>, %arg23: memref<32x96xf32, #tpu.memory_space<vmem>>, %arg24: memref<32x1xf32, #tpu.memory_space<vmem>>, %arg25: memref<32x96xf32, #tpu.memory_space<vmem>>, %arg26: memref<32x1xf32, #tpu.memory_space<vmem>>, %arg27: memref<32x96xf32, #tpu.memory_space<vmem>>, %arg28: memref<32x1xf32, #tpu.memory_space<vmem>>, %arg29: memref<32x32xf32, #tpu.memory_space<vmem>>, %arg30: memref<32x1xf32, #tpu.memory_space<vmem>>, %arg31: memref<32x96xf32, #tpu.memory_space<vmem>>, %arg32: memref<32x1xf32, #tpu.memory_space<vmem>>, %arg33: memref<32x32xf32, #tpu.memory_space<vmem>>, %arg34: memref<32x1xf32, #tpu.memory_space<vmem>>, %arg35: memref<32x96xf32, #tpu.memory_space<vmem>>, %arg36: memref<32x1xf32, #tpu.memory_space<vmem>>, %arg37: memref<32x96xf32, #tpu.memory_space<vmem>>, %arg38: memref<32x1xf32, #tpu.memory_space<vmem>>, %arg39: memref<32x32xf32, #tpu.memory_space<vmem>>, %arg40: memref<32x1xf32, #tpu.memory_space<vmem>>, %arg41: memref<32x96xf32, #tpu.memory_space<vmem>>, %arg42: memref<32x1xf32, #tpu.memory_space<vmem>>, %arg43: memref<32x32xf32, #tpu.memory_space<vmem>>, %arg44: memref<32x1xf32, #tpu.memory_space<vmem>>, %arg45: memref<32x96xf32, #tpu.memory_space<vmem>>, %arg46: memref<32x1xf32, #tpu.memory_space<vmem>>, %arg47: memref<32x96xf32, #tpu.memory_space<vmem>>, %arg48: memref<32x1xf32, #tpu.memory_space<vmem>>, %arg49: memref<8x96xf32, #tpu.memory_space<vmem>>, %arg50: memref<8x1xf32, #tpu.memory_space<vmem>>, %arg51: memref<64x32xf32, #tpu.memory_space<vmem>>, %arg52: memref<32x64xf32, #tpu.memory_space<vmem>>, %arg53: memref<64x1xf32, #tpu.memory_space<vmem>>, %arg54: memref<64x32xf32, #tpu.memory_space<vmem>>, %arg55: memref<32x64xf32, #tpu.memory_space<vmem>>, %arg56: memref<64x1xf32, #tpu.memory_space<vmem>>, %arg57: memref<8x32xf32, #tpu.memory_space<vmem>>, %arg58: memref<1x2xf32, #tpu.memory_space<vmem>>) attributes {dimension_semantics = [], scalar_prefetch = 0 : i64, scratch_operands = 0 : i64, tpu.core_type = #tpu.core_type<tc>} {
    %c0 = arith.constant 0 : index
    %c0_0 = arith.constant 0 : index
    %0 = vector.load %arg51[%c0, %c0_0] : memref<64x32xf32, #tpu.memory_space<vmem>>, vector<64x32xf32>
    %c0_1 = arith.constant 0 : index
    %c0_2 = arith.constant 0 : index
    %1 = vector.load %arg52[%c0_1, %c0_2] : memref<32x64xf32, #tpu.memory_space<vmem>>, vector<32x64xf32>
    %c0_3 = arith.constant 0 : index
    %c0_4 = arith.constant 0 : index
    %2 = vector.load %arg53[%c0_3, %c0_4] : memref<64x1xf32, #tpu.memory_space<vmem>>, vector<64x1xf32>
    %c0_5 = arith.constant 0 : index
    %c0_6 = arith.constant 0 : index
    %3 = vector.load %arg54[%c0_5, %c0_6] : memref<64x32xf32, #tpu.memory_space<vmem>>, vector<64x32xf32>
    %c0_7 = arith.constant 0 : index
    %c0_8 = arith.constant 0 : index
    %4 = vector.load %arg55[%c0_7, %c0_8] : memref<32x64xf32, #tpu.memory_space<vmem>>, vector<32x64xf32>
    %c0_9 = arith.constant 0 : index
    %c0_10 = arith.constant 0 : index
    %5 = vector.load %arg56[%c0_9, %c0_10] : memref<64x1xf32, #tpu.memory_space<vmem>>, vector<64x1xf32>
    %c0_11 = arith.constant 0 : index
    %c0_12 = arith.constant 0 : index
    %6 = vector.load %arg0[%c0_11, %c0_12] : memref<8x32xf32, #tpu.memory_space<vmem>>, vector<8x32xf32>
    %c0_13 = arith.constant 0 : index
    %c0_14 = arith.constant 0 : index
    %7 = vector.load %arg1[%c0_13, %c0_14] : memref<32x24xf32, #tpu.memory_space<vmem>>, vector<32x24xf32>
    %c0_15 = arith.constant 0 : index
    %c0_16 = arith.constant 0 : index
    %8 = vector.load %arg2[%c0_15, %c0_16] : memref<32x1xf32, #tpu.memory_space<vmem>>, vector<32x1xf32>
    %9 = tpu.iota {dimensions = array<i32: 0>} : vector<32x32xi32>
    %10 = tpu.iota {dimensions = array<i32: 1>} : vector<32x32xi32>
    %c0_i32 = arith.constant 0 : i32
    %11 = vector.broadcast %c0_i32 : i32 to vector<32x32xi32>
    %c16_i32 = arith.constant 16 : i32
    %12 = vector.broadcast %c16_i32 : i32 to vector<32x32xi32>
    %13 = arith.cmpi sge, %10, %12 : vector<32x32xi32>
    %c1_i32 = arith.constant 1 : i32
    %c0_i32_17 = arith.constant 0 : i32
    %14 = vector.broadcast %c1_i32 : i32 to vector<32x32xi32>
    %15 = vector.broadcast %c0_i32_17 : i32 to vector<32x32xi32>
    %16 = arith.select %13, %14, %15 : vector<32x32xi1>, vector<32x32xi32>
    %17 = arith.addi %11, %16 : vector<32x32xi32>
    %c16_i32_18 = arith.constant 16 : i32
    %18 = vector.broadcast %c16_i32_18 : i32 to vector<32x32xi32>
    %19 = arith.muli %17, %18 : vector<32x32xi32>
    %20 = arith.subi %10, %19 : vector<32x32xi32>
    %c16_i32_19 = arith.constant 16 : i32
    %21 = vector.broadcast %c16_i32_19 : i32 to vector<32x32xi32>
    %22 = arith.muli %17, %21 : vector<32x32xi32>
    %23 = arith.subi %9, %22 : vector<32x32xi32>
    %c1_i32_20 = arith.constant 1 : i32
    %24 = vector.broadcast %c1_i32_20 : i32 to vector<32x32xi32>
    %25 = arith.muli %24, %20 : vector<32x32xi32>
    %c-1_i32 = arith.constant -1 : i32
    %26 = vector.broadcast %c-1_i32 : i32 to vector<32x32xi32>
    %27 = arith.addi %25, %26 : vector<32x32xi32>
    %c1_i32_21 = arith.constant 1 : i32
    %28 = vector.broadcast %c1_i32_21 : i32 to vector<32x32xi32>
    %29 = arith.muli %28, %23 : vector<32x32xi32>
    %30 = arith.cmpi sle, %29, %27 : vector<32x32xi32>
    %c1_i32_22 = arith.constant 1 : i32
    %31 = vector.broadcast %c1_i32_22 : i32 to vector<32x32xi32>
    %32 = arith.muli %31, %23 : vector<32x32xi32>
    %c1_i32_23 = arith.constant 1 : i32
    %33 = vector.broadcast %c1_i32_23 : i32 to vector<32x32xi32>
    %34 = arith.addi %32, %33 : vector<32x32xi32>
    %35 = arith.cmpi slt, %27, %34 : vector<32x32xi32>
    %36 = arith.andi %30, %35 : vector<32x32xi1>
    %c0_i32_24 = arith.constant 0 : i32
    %37 = vector.broadcast %c0_i32_24 : i32 to vector<32x32xi32>
    %38 = arith.cmpi sge, %27, %37 : vector<32x32xi32>
    %39 = arith.andi %36, %38 : vector<32x32xi1>
    %c16_i32_25 = arith.constant 16 : i32
    %40 = vector.broadcast %c16_i32_25 : i32 to vector<32x32xi32>
    %41 = arith.cmpi slt, %27, %40 : vector<32x32xi32>
    %42 = arith.andi %39, %41 : vector<32x32xi1>
    %cst = arith.constant 1.000000e+00 : f32
    %cst_26 = arith.constant 0.000000e+00 : f32
    %43 = vector.broadcast %cst : f32 to vector<32x32xf32>
    %44 = vector.broadcast %cst_26 : f32 to vector<32x32xf32>
    %45 = arith.select %42, %43, %44 : vector<32x32xi1>, vector<32x32xf32>
    %cst_27 = arith.constant dense<0.000000e+00> : vector<8x32xf32>
    %46 = tpu.matmul %6, %45, %cst_27 {dimension_numbers = #tpu.dot_dimension_numbers<[1], [0], [0], [1], [0, 0, 1, 1], [], []>} : vector<8x32xf32>, vector<32x32xf32>, vector<8x32xf32> -> vector<8x32xf32>
    %c1_i32_28 = arith.constant 1 : i32
    %47 = vector.broadcast %c1_i32_28 : i32 to vector<32x32xi32>
    %48 = arith.muli %47, %20 : vector<32x32xi32>
    %c0_i32_29 = arith.constant 0 : i32
    %49 = vector.broadcast %c0_i32_29 : i32 to vector<32x32xi32>
    %50 = arith.addi %48, %49 : vector<32x32xi32>
    %c1_i32_30 = arith.constant 1 : i32
    %51 = vector.broadcast %c1_i32_30 : i32 to vector<32x32xi32>
    %52 = arith.muli %51, %23 : vector<32x32xi32>
    %53 = arith.cmpi sle, %52, %50 : vector<32x32xi32>
    %c1_i32_31 = arith.constant 1 : i32
    %54 = vector.broadcast %c1_i32_31 : i32 to vector<32x32xi32>
    %55 = arith.muli %54, %23 : vector<32x32xi32>
    %c1_i32_32 = arith.constant 1 : i32
    %56 = vector.broadcast %c1_i32_32 : i32 to vector<32x32xi32>
    %57 = arith.addi %55, %56 : vector<32x32xi32>
    %58 = arith.cmpi slt, %50, %57 : vector<32x32xi32>
    %59 = arith.andi %53, %58 : vector<32x32xi1>
    %c0_i32_33 = arith.constant 0 : i32
    %60 = vector.broadcast %c0_i32_33 : i32 to vector<32x32xi32>
    %61 = arith.cmpi sge, %50, %60 : vector<32x32xi32>
    %62 = arith.andi %59, %61 : vector<32x32xi1>
    %c16_i32_34 = arith.constant 16 : i32
    %63 = vector.broadcast %c16_i32_34 : i32 to vector<32x32xi32>
    %64 = arith.cmpi slt, %50, %63 : vector<32x32xi32>
    %65 = arith.andi %62, %64 : vector<32x32xi1>
    %cst_35 = arith.constant 1.000000e+00 : f32
    %cst_36 = arith.constant 0.000000e+00 : f32
    %66 = vector.broadcast %cst_35 : f32 to vector<32x32xf32>
    %67 = vector.broadcast %cst_36 : f32 to vector<32x32xf32>
    %68 = arith.select %65, %66, %67 : vector<32x32xi1>, vector<32x32xf32>
    %cst_37 = arith.constant dense<0.000000e+00> : vector<8x32xf32>
    %69 = tpu.matmul %6, %68, %cst_37 {dimension_numbers = #tpu.dot_dimension_numbers<[1], [0], [0], [1], [0, 0, 1, 1], [], []>} : vector<8x32xf32>, vector<32x32xf32>, vector<8x32xf32> -> vector<8x32xf32>
    %c1_i32_38 = arith.constant 1 : i32
    %70 = vector.broadcast %c1_i32_38 : i32 to vector<32x32xi32>
    %71 = arith.muli %70, %20 : vector<32x32xi32>
    %c1_i32_39 = arith.constant 1 : i32
    %72 = vector.broadcast %c1_i32_39 : i32 to vector<32x32xi32>
    %73 = arith.addi %71, %72 : vector<32x32xi32>
    %c1_i32_40 = arith.constant 1 : i32
    %74 = vector.broadcast %c1_i32_40 : i32 to vector<32x32xi32>
    %75 = arith.muli %74, %23 : vector<32x32xi32>
    %76 = arith.cmpi sle, %75, %73 : vector<32x32xi32>
    %c1_i32_41 = arith.constant 1 : i32
    %77 = vector.broadcast %c1_i32_41 : i32 to vector<32x32xi32>
    %78 = arith.muli %77, %23 : vector<32x32xi32>
    %c1_i32_42 = arith.constant 1 : i32
    %79 = vector.broadcast %c1_i32_42 : i32 to vector<32x32xi32>
    %80 = arith.addi %78, %79 : vector<32x32xi32>
    %81 = arith.cmpi slt, %73, %80 : vector<32x32xi32>
    %82 = arith.andi %76, %81 : vector<32x32xi1>
    %c0_i32_43 = arith.constant 0 : i32
    %83 = vector.broadcast %c0_i32_43 : i32 to vector<32x32xi32>
    %84 = arith.cmpi sge, %73, %83 : vector<32x32xi32>
    %85 = arith.andi %82, %84 : vector<32x32xi1>
    %c16_i32_44 = arith.constant 16 : i32
    %86 = vector.broadcast %c16_i32_44 : i32 to vector<32x32xi32>
    %87 = arith.cmpi slt, %73, %86 : vector<32x32xi32>
    %88 = arith.andi %85, %87 : vector<32x32xi1>
    %cst_45 = arith.constant 1.000000e+00 : f32
    %cst_46 = arith.constant 0.000000e+00 : f32
    %89 = vector.broadcast %cst_45 : f32 to vector<32x32xf32>
    %90 = vector.broadcast %cst_46 : f32 to vector<32x32xf32>
    %91 = arith.select %88, %89, %90 : vector<32x32xi1>, vector<32x32xf32>
    %cst_47 = arith.constant dense<0.000000e+00> : vector<8x32xf32>
    %92 = tpu.matmul %6, %91, %cst_47 {dimension_numbers = #tpu.dot_dimension_numbers<[1], [0], [0], [1], [0, 0, 1, 1], [], []>} : vector<8x32xf32>, vector<32x32xf32>, vector<8x32xf32> -> vector<8x32xf32>
    %93 = tpu.concatenate %46, %69, %92 in 0 : vector<8x32xf32>, vector<8x32xf32>, vector<8x32xf32> -> vector<24x32xf32>
    %cst_48 = arith.constant dense<0.000000e+00> : vector<32x32xf32>
    %94 = tpu.matmul %7, %93, %cst_48 {dimension_numbers = #tpu.dot_dimension_numbers<[1], [0], [0], [1], [0, 0, 1, 1], [], []>} : vector<32x24xf32>, vector<24x32xf32>, vector<32x32xf32> -> vector<32x32xf32>
    %95 = vector.broadcast %8 : vector<32x1xf32> to vector<32x32xf32>
    %96 = arith.addf %94, %95 : vector<32x32xf32>
    %cst_49 = arith.constant 0.000000e+00 : f32
    %97 = vector.broadcast %cst_49 : f32 to vector<32x32xf32>
    %98 = arith.maximumf %96, %97 : vector<32x32xf32>
    %c0_50 = arith.constant 0 : index
    %c0_51 = arith.constant 0 : index
    %99 = vector.load %arg3[%c0_50, %c0_51] : memref<32x128xf32, #tpu.memory_space<vmem>>, vector<32x128xf32>
    %c0_52 = arith.constant 0 : index
    %c0_53 = arith.constant 0 : index
    %100 = vector.load %arg4[%c0_52, %c0_53] : memref<32x1xf32, #tpu.memory_space<vmem>>, vector<32x1xf32>
    %101 = tpu.iota {dimensions = array<i32: 0>} : vector<32x16xi32>
    %102 = tpu.iota {dimensions = array<i32: 1>} : vector<32x16xi32>
    %c0_i32_54 = arith.constant 0 : i32
    %103 = vector.broadcast %c0_i32_54 : i32 to vector<32x16xi32>
    %c8_i32 = arith.constant 8 : i32
    %104 = vector.broadcast %c8_i32 : i32 to vector<32x16xi32>
    %105 = arith.cmpi sge, %102, %104 : vector<32x16xi32>
    %c1_i32_55 = arith.constant 1 : i32
    %c0_i32_56 = arith.constant 0 : i32
    %106 = vector.broadcast %c1_i32_55 : i32 to vector<32x16xi32>
    %107 = vector.broadcast %c0_i32_56 : i32 to vector<32x16xi32>
    %108 = arith.select %105, %106, %107 : vector<32x16xi1>, vector<32x16xi32>
    %109 = arith.addi %103, %108 : vector<32x16xi32>
    %c8_i32_57 = arith.constant 8 : i32
    %110 = vector.broadcast %c8_i32_57 : i32 to vector<32x16xi32>
    %111 = arith.muli %109, %110 : vector<32x16xi32>
    %112 = arith.subi %102, %111 : vector<32x16xi32>
    %c16_i32_58 = arith.constant 16 : i32
    %113 = vector.broadcast %c16_i32_58 : i32 to vector<32x16xi32>
    %114 = arith.muli %109, %113 : vector<32x16xi32>
    %115 = arith.subi %101, %114 : vector<32x16xi32>
    %c2_i32 = arith.constant 2 : i32
    %116 = vector.broadcast %c2_i32 : i32 to vector<32x16xi32>
    %117 = arith.muli %116, %112 : vector<32x16xi32>
    %c-1_i32_59 = arith.constant -1 : i32
    %118 = vector.broadcast %c-1_i32_59 : i32 to vector<32x16xi32>
    %119 = arith.addi %117, %118 : vector<32x16xi32>
    %c1_i32_60 = arith.constant 1 : i32
    %120 = vector.broadcast %c1_i32_60 : i32 to vector<32x16xi32>
    %121 = arith.muli %120, %115 : vector<32x16xi32>
    %122 = arith.cmpi sle, %121, %119 : vector<32x16xi32>
    %c1_i32_61 = arith.constant 1 : i32
    %123 = vector.broadcast %c1_i32_61 : i32 to vector<32x16xi32>
    %124 = arith.muli %123, %115 : vector<32x16xi32>
    %c1_i32_62 = arith.constant 1 : i32
    %125 = vector.broadcast %c1_i32_62 : i32 to vector<32x16xi32>
    %126 = arith.addi %124, %125 : vector<32x16xi32>
    %127 = arith.cmpi slt, %119, %126 : vector<32x16xi32>
    %128 = arith.andi %122, %127 : vector<32x16xi1>
    %c0_i32_63 = arith.constant 0 : i32
    %129 = vector.broadcast %c0_i32_63 : i32 to vector<32x16xi32>
    %130 = arith.cmpi sge, %119, %129 : vector<32x16xi32>
    %131 = arith.andi %128, %130 : vector<32x16xi1>
    %c16_i32_64 = arith.constant 16 : i32
    %132 = vector.broadcast %c16_i32_64 : i32 to vector<32x16xi32>
    %133 = arith.cmpi slt, %119, %132 : vector<32x16xi32>
    %134 = arith.andi %131, %133 : vector<32x16xi1>
    %cst_65 = arith.constant 1.000000e+00 : f32
    %cst_66 = arith.constant 0.000000e+00 : f32
    %135 = vector.broadcast %cst_65 : f32 to vector<32x16xf32>
    %136 = vector.broadcast %cst_66 : f32 to vector<32x16xf32>
    %137 = arith.select %134, %135, %136 : vector<32x16xi1>, vector<32x16xf32>
    %cst_67 = arith.constant dense<0.000000e+00> : vector<32x16xf32>
    %138 = tpu.matmul %98, %137, %cst_67 {dimension_numbers = #tpu.dot_dimension_numbers<[1], [0], [0], [1], [0, 0, 1, 1], [], []>} : vector<32x32xf32>, vector<32x16xf32>, vector<32x16xf32> -> vector<32x16xf32>
    %c2_i32_68 = arith.constant 2 : i32
    %139 = vector.broadcast %c2_i32_68 : i32 to vector<32x16xi32>
    %140 = arith.muli %139, %112 : vector<32x16xi32>
    %c0_i32_69 = arith.constant 0 : i32
    %141 = vector.broadcast %c0_i32_69 : i32 to vector<32x16xi32>
    %142 = arith.addi %140, %141 : vector<32x16xi32>
    %c1_i32_70 = arith.constant 1 : i32
    %143 = vector.broadcast %c1_i32_70 : i32 to vector<32x16xi32>
    %144 = arith.muli %143, %115 : vector<32x16xi32>
    %145 = arith.cmpi sle, %144, %142 : vector<32x16xi32>
    %c1_i32_71 = arith.constant 1 : i32
    %146 = vector.broadcast %c1_i32_71 : i32 to vector<32x16xi32>
    %147 = arith.muli %146, %115 : vector<32x16xi32>
    %c1_i32_72 = arith.constant 1 : i32
    %148 = vector.broadcast %c1_i32_72 : i32 to vector<32x16xi32>
    %149 = arith.addi %147, %148 : vector<32x16xi32>
    %150 = arith.cmpi slt, %142, %149 : vector<32x16xi32>
    %151 = arith.andi %145, %150 : vector<32x16xi1>
    %c0_i32_73 = arith.constant 0 : i32
    %152 = vector.broadcast %c0_i32_73 : i32 to vector<32x16xi32>
    %153 = arith.cmpi sge, %142, %152 : vector<32x16xi32>
    %154 = arith.andi %151, %153 : vector<32x16xi1>
    %c16_i32_74 = arith.constant 16 : i32
    %155 = vector.broadcast %c16_i32_74 : i32 to vector<32x16xi32>
    %156 = arith.cmpi slt, %142, %155 : vector<32x16xi32>
    %157 = arith.andi %154, %156 : vector<32x16xi1>
    %cst_75 = arith.constant 1.000000e+00 : f32
    %cst_76 = arith.constant 0.000000e+00 : f32
    %158 = vector.broadcast %cst_75 : f32 to vector<32x16xf32>
    %159 = vector.broadcast %cst_76 : f32 to vector<32x16xf32>
    %160 = arith.select %157, %158, %159 : vector<32x16xi1>, vector<32x16xf32>
    %cst_77 = arith.constant dense<0.000000e+00> : vector<32x16xf32>
    %161 = tpu.matmul %98, %160, %cst_77 {dimension_numbers = #tpu.dot_dimension_numbers<[1], [0], [0], [1], [0, 0, 1, 1], [], []>} : vector<32x32xf32>, vector<32x16xf32>, vector<32x16xf32> -> vector<32x16xf32>
    %c2_i32_78 = arith.constant 2 : i32
    %162 = vector.broadcast %c2_i32_78 : i32 to vector<32x16xi32>
    %163 = arith.muli %162, %112 : vector<32x16xi32>
    %c1_i32_79 = arith.constant 1 : i32
    %164 = vector.broadcast %c1_i32_79 : i32 to vector<32x16xi32>
    %165 = arith.addi %163, %164 : vector<32x16xi32>
    %c1_i32_80 = arith.constant 1 : i32
    %166 = vector.broadcast %c1_i32_80 : i32 to vector<32x16xi32>
    %167 = arith.muli %166, %115 : vector<32x16xi32>
    %168 = arith.cmpi sle, %167, %165 : vector<32x16xi32>
    %c1_i32_81 = arith.constant 1 : i32
    %169 = vector.broadcast %c1_i32_81 : i32 to vector<32x16xi32>
    %170 = arith.muli %169, %115 : vector<32x16xi32>
    %c1_i32_82 = arith.constant 1 : i32
    %171 = vector.broadcast %c1_i32_82 : i32 to vector<32x16xi32>
    %172 = arith.addi %170, %171 : vector<32x16xi32>
    %173 = arith.cmpi slt, %165, %172 : vector<32x16xi32>
    %174 = arith.andi %168, %173 : vector<32x16xi1>
    %c0_i32_83 = arith.constant 0 : i32
    %175 = vector.broadcast %c0_i32_83 : i32 to vector<32x16xi32>
    %176 = arith.cmpi sge, %165, %175 : vector<32x16xi32>
    %177 = arith.andi %174, %176 : vector<32x16xi1>
    %c16_i32_84 = arith.constant 16 : i32
    %178 = vector.broadcast %c16_i32_84 : i32 to vector<32x16xi32>
    %179 = arith.cmpi slt, %165, %178 : vector<32x16xi32>
    %180 = arith.andi %177, %179 : vector<32x16xi1>
    %cst_85 = arith.constant 1.000000e+00 : f32
    %cst_86 = arith.constant 0.000000e+00 : f32
    %181 = vector.broadcast %cst_85 : f32 to vector<32x16xf32>
    %182 = vector.broadcast %cst_86 : f32 to vector<32x16xf32>
    %183 = arith.select %180, %181, %182 : vector<32x16xi1>, vector<32x16xf32>
    %cst_87 = arith.constant dense<0.000000e+00> : vector<32x16xf32>
    %184 = tpu.matmul %98, %183, %cst_87 {dimension_numbers = #tpu.dot_dimension_numbers<[1], [0], [0], [1], [0, 0, 1, 1], [], []>} : vector<32x32xf32>, vector<32x16xf32>, vector<32x16xf32> -> vector<32x16xf32>
    %c2_i32_88 = arith.constant 2 : i32
    %185 = vector.broadcast %c2_i32_88 : i32 to vector<32x16xi32>
    %186 = arith.muli %185, %112 : vector<32x16xi32>
    %c2_i32_89 = arith.constant 2 : i32
    %187 = vector.broadcast %c2_i32_89 : i32 to vector<32x16xi32>
    %188 = arith.addi %186, %187 : vector<32x16xi32>
    %c1_i32_90 = arith.constant 1 : i32
    %189 = vector.broadcast %c1_i32_90 : i32 to vector<32x16xi32>
    %190 = arith.muli %189, %115 : vector<32x16xi32>
    %191 = arith.cmpi sle, %190, %188 : vector<32x16xi32>
    %c1_i32_91 = arith.constant 1 : i32
    %192 = vector.broadcast %c1_i32_91 : i32 to vector<32x16xi32>
    %193 = arith.muli %192, %115 : vector<32x16xi32>
    %c1_i32_92 = arith.constant 1 : i32
    %194 = vector.broadcast %c1_i32_92 : i32 to vector<32x16xi32>
    %195 = arith.addi %193, %194 : vector<32x16xi32>
    %196 = arith.cmpi slt, %188, %195 : vector<32x16xi32>
    %197 = arith.andi %191, %196 : vector<32x16xi1>
    %c0_i32_93 = arith.constant 0 : i32
    %198 = vector.broadcast %c0_i32_93 : i32 to vector<32x16xi32>
    %199 = arith.cmpi sge, %188, %198 : vector<32x16xi32>
    %200 = arith.andi %197, %199 : vector<32x16xi1>
    %c16_i32_94 = arith.constant 16 : i32
    %201 = vector.broadcast %c16_i32_94 : i32 to vector<32x16xi32>
    %202 = arith.cmpi slt, %188, %201 : vector<32x16xi32>
    %203 = arith.andi %200, %202 : vector<32x16xi1>
    %cst_95 = arith.constant 1.000000e+00 : f32
    %cst_96 = arith.constant 0.000000e+00 : f32
    %204 = vector.broadcast %cst_95 : f32 to vector<32x16xf32>
    %205 = vector.broadcast %cst_96 : f32 to vector<32x16xf32>
    %206 = arith.select %203, %204, %205 : vector<32x16xi1>, vector<32x16xf32>
    %cst_97 = arith.constant dense<0.000000e+00> : vector<32x16xf32>
    %207 = tpu.matmul %98, %206, %cst_97 {dimension_numbers = #tpu.dot_dimension_numbers<[1], [0], [0], [1], [0, 0, 1, 1], [], []>} : vector<32x32xf32>, vector<32x16xf32>, vector<32x16xf32> -> vector<32x16xf32>
    %208 = tpu.concatenate %138, %161, %184, %207 in 0 : vector<32x16xf32>, vector<32x16xf32>, vector<32x16xf32>, vector<32x16xf32> -> vector<128x16xf32>
    %cst_98 = arith.constant dense<0.000000e+00> : vector<32x16xf32>
    %209 = tpu.matmul %99, %208, %cst_98 {dimension_numbers = #tpu.dot_dimension_numbers<[1], [0], [0], [1], [0, 0, 1, 1], [], []>} : vector<32x128xf32>, vector<128x16xf32>, vector<32x16xf32> -> vector<32x16xf32>
    %210 = vector.broadcast %100 : vector<32x1xf32> to vector<32x16xf32>
    %211 = arith.addf %209, %210 : vector<32x16xf32>
    %c0_99 = arith.constant 0 : index
    %c0_100 = arith.constant 0 : index
    %212 = vector.load %arg5[%c0_99, %c0_100] : memref<32x96xf32, #tpu.memory_space<vmem>>, vector<32x96xf32>
    %c0_101 = arith.constant 0 : index
    %c0_102 = arith.constant 0 : index
    %213 = vector.load %arg6[%c0_101, %c0_102] : memref<32x1xf32, #tpu.memory_space<vmem>>, vector<32x1xf32>
    %c0_103 = arith.constant 0 : index
    %c0_104 = arith.constant 0 : index
    %214 = vector.load %arg7[%c0_103, %c0_104] : memref<32x32xf32, #tpu.memory_space<vmem>>, vector<32x32xf32>
    %c0_105 = arith.constant 0 : index
    %c0_106 = arith.constant 0 : index
    %215 = vector.load %arg8[%c0_105, %c0_106] : memref<32x1xf32, #tpu.memory_space<vmem>>, vector<32x1xf32>
    %cst_107 = arith.constant 0.000000e+00 : f32
    %216 = vector.broadcast %cst_107 : f32 to vector<32x16xf32>
    %217 = arith.maximumf %211, %216 : vector<32x16xf32>
    %218 = tpu.iota {dimensions = array<i32: 0>} : vector<16x16xi32>
    %219 = tpu.iota {dimensions = array<i32: 1>} : vector<16x16xi32>
    %c0_i32_108 = arith.constant 0 : i32
    %220 = vector.broadcast %c0_i32_108 : i32 to vector<16x16xi32>
    %c8_i32_109 = arith.constant 8 : i32
    %221 = vector.broadcast %c8_i32_109 : i32 to vector<16x16xi32>
    %222 = arith.cmpi sge, %219, %221 : vector<16x16xi32>
    %c1_i32_110 = arith.constant 1 : i32
    %c0_i32_111 = arith.constant 0 : i32
    %223 = vector.broadcast %c1_i32_110 : i32 to vector<16x16xi32>
    %224 = vector.broadcast %c0_i32_111 : i32 to vector<16x16xi32>
    %225 = arith.select %222, %223, %224 : vector<16x16xi1>, vector<16x16xi32>
    %226 = arith.addi %220, %225 : vector<16x16xi32>
    %c8_i32_112 = arith.constant 8 : i32
    %227 = vector.broadcast %c8_i32_112 : i32 to vector<16x16xi32>
    %228 = arith.muli %226, %227 : vector<16x16xi32>
    %229 = arith.subi %219, %228 : vector<16x16xi32>
    %c8_i32_113 = arith.constant 8 : i32
    %230 = vector.broadcast %c8_i32_113 : i32 to vector<16x16xi32>
    %231 = arith.muli %226, %230 : vector<16x16xi32>
    %232 = arith.subi %218, %231 : vector<16x16xi32>
    %c1_i32_114 = arith.constant 1 : i32
    %233 = vector.broadcast %c1_i32_114 : i32 to vector<16x16xi32>
    %234 = arith.muli %233, %229 : vector<16x16xi32>
    %c-1_i32_115 = arith.constant -1 : i32
    %235 = vector.broadcast %c-1_i32_115 : i32 to vector<16x16xi32>
    %236 = arith.addi %234, %235 : vector<16x16xi32>
    %c1_i32_116 = arith.constant 1 : i32
    %237 = vector.broadcast %c1_i32_116 : i32 to vector<16x16xi32>
    %238 = arith.muli %237, %232 : vector<16x16xi32>
    %239 = arith.cmpi sle, %238, %236 : vector<16x16xi32>
    %c1_i32_117 = arith.constant 1 : i32
    %240 = vector.broadcast %c1_i32_117 : i32 to vector<16x16xi32>
    %241 = arith.muli %240, %232 : vector<16x16xi32>
    %c1_i32_118 = arith.constant 1 : i32
    %242 = vector.broadcast %c1_i32_118 : i32 to vector<16x16xi32>
    %243 = arith.addi %241, %242 : vector<16x16xi32>
    %244 = arith.cmpi slt, %236, %243 : vector<16x16xi32>
    %245 = arith.andi %239, %244 : vector<16x16xi1>
    %c0_i32_119 = arith.constant 0 : i32
    %246 = vector.broadcast %c0_i32_119 : i32 to vector<16x16xi32>
    %247 = arith.cmpi sge, %236, %246 : vector<16x16xi32>
    %248 = arith.andi %245, %247 : vector<16x16xi1>
    %c8_i32_120 = arith.constant 8 : i32
    %249 = vector.broadcast %c8_i32_120 : i32 to vector<16x16xi32>
    %250 = arith.cmpi slt, %236, %249 : vector<16x16xi32>
    %251 = arith.andi %248, %250 : vector<16x16xi1>
    %cst_121 = arith.constant 1.000000e+00 : f32
    %cst_122 = arith.constant 0.000000e+00 : f32
    %252 = vector.broadcast %cst_121 : f32 to vector<16x16xf32>
    %253 = vector.broadcast %cst_122 : f32 to vector<16x16xf32>
    %254 = arith.select %251, %252, %253 : vector<16x16xi1>, vector<16x16xf32>
    %cst_123 = arith.constant dense<0.000000e+00> : vector<32x16xf32>
    %255 = tpu.matmul %217, %254, %cst_123 {dimension_numbers = #tpu.dot_dimension_numbers<[1], [0], [0], [1], [0, 0, 1, 1], [], []>} : vector<32x16xf32>, vector<16x16xf32>, vector<32x16xf32> -> vector<32x16xf32>
    %c1_i32_124 = arith.constant 1 : i32
    %256 = vector.broadcast %c1_i32_124 : i32 to vector<16x16xi32>
    %257 = arith.muli %256, %229 : vector<16x16xi32>
    %c0_i32_125 = arith.constant 0 : i32
    %258 = vector.broadcast %c0_i32_125 : i32 to vector<16x16xi32>
    %259 = arith.addi %257, %258 : vector<16x16xi32>
    %c1_i32_126 = arith.constant 1 : i32
    %260 = vector.broadcast %c1_i32_126 : i32 to vector<16x16xi32>
    %261 = arith.muli %260, %232 : vector<16x16xi32>
    %262 = arith.cmpi sle, %261, %259 : vector<16x16xi32>
    %c1_i32_127 = arith.constant 1 : i32
    %263 = vector.broadcast %c1_i32_127 : i32 to vector<16x16xi32>
    %264 = arith.muli %263, %232 : vector<16x16xi32>
    %c1_i32_128 = arith.constant 1 : i32
    %265 = vector.broadcast %c1_i32_128 : i32 to vector<16x16xi32>
    %266 = arith.addi %264, %265 : vector<16x16xi32>
    %267 = arith.cmpi slt, %259, %266 : vector<16x16xi32>
    %268 = arith.andi %262, %267 : vector<16x16xi1>
    %c0_i32_129 = arith.constant 0 : i32
    %269 = vector.broadcast %c0_i32_129 : i32 to vector<16x16xi32>
    %270 = arith.cmpi sge, %259, %269 : vector<16x16xi32>
    %271 = arith.andi %268, %270 : vector<16x16xi1>
    %c8_i32_130 = arith.constant 8 : i32
    %272 = vector.broadcast %c8_i32_130 : i32 to vector<16x16xi32>
    %273 = arith.cmpi slt, %259, %272 : vector<16x16xi32>
    %274 = arith.andi %271, %273 : vector<16x16xi1>
    %cst_131 = arith.constant 1.000000e+00 : f32
    %cst_132 = arith.constant 0.000000e+00 : f32
    %275 = vector.broadcast %cst_131 : f32 to vector<16x16xf32>
    %276 = vector.broadcast %cst_132 : f32 to vector<16x16xf32>
    %277 = arith.select %274, %275, %276 : vector<16x16xi1>, vector<16x16xf32>
    %cst_133 = arith.constant dense<0.000000e+00> : vector<32x16xf32>
    %278 = tpu.matmul %217, %277, %cst_133 {dimension_numbers = #tpu.dot_dimension_numbers<[1], [0], [0], [1], [0, 0, 1, 1], [], []>} : vector<32x16xf32>, vector<16x16xf32>, vector<32x16xf32> -> vector<32x16xf32>
    %c1_i32_134 = arith.constant 1 : i32
    %279 = vector.broadcast %c1_i32_134 : i32 to vector<16x16xi32>
    %280 = arith.muli %279, %229 : vector<16x16xi32>
    %c1_i32_135 = arith.constant 1 : i32
    %281 = vector.broadcast %c1_i32_135 : i32 to vector<16x16xi32>
    %282 = arith.addi %280, %281 : vector<16x16xi32>
    %c1_i32_136 = arith.constant 1 : i32
    %283 = vector.broadcast %c1_i32_136 : i32 to vector<16x16xi32>
    %284 = arith.muli %283, %232 : vector<16x16xi32>
    %285 = arith.cmpi sle, %284, %282 : vector<16x16xi32>
    %c1_i32_137 = arith.constant 1 : i32
    %286 = vector.broadcast %c1_i32_137 : i32 to vector<16x16xi32>
    %287 = arith.muli %286, %232 : vector<16x16xi32>
    %c1_i32_138 = arith.constant 1 : i32
    %288 = vector.broadcast %c1_i32_138 : i32 to vector<16x16xi32>
    %289 = arith.addi %287, %288 : vector<16x16xi32>
    %290 = arith.cmpi slt, %282, %289 : vector<16x16xi32>
    %291 = arith.andi %285, %290 : vector<16x16xi1>
    %c0_i32_139 = arith.constant 0 : i32
    %292 = vector.broadcast %c0_i32_139 : i32 to vector<16x16xi32>
    %293 = arith.cmpi sge, %282, %292 : vector<16x16xi32>
    %294 = arith.andi %291, %293 : vector<16x16xi1>
    %c8_i32_140 = arith.constant 8 : i32
    %295 = vector.broadcast %c8_i32_140 : i32 to vector<16x16xi32>
    %296 = arith.cmpi slt, %282, %295 : vector<16x16xi32>
    %297 = arith.andi %294, %296 : vector<16x16xi1>
    %cst_141 = arith.constant 1.000000e+00 : f32
    %cst_142 = arith.constant 0.000000e+00 : f32
    %298 = vector.broadcast %cst_141 : f32 to vector<16x16xf32>
    %299 = vector.broadcast %cst_142 : f32 to vector<16x16xf32>
    %300 = arith.select %297, %298, %299 : vector<16x16xi1>, vector<16x16xf32>
    %cst_143 = arith.constant dense<0.000000e+00> : vector<32x16xf32>
    %301 = tpu.matmul %217, %300, %cst_143 {dimension_numbers = #tpu.dot_dimension_numbers<[1], [0], [0], [1], [0, 0, 1, 1], [], []>} : vector<32x16xf32>, vector<16x16xf32>, vector<32x16xf32> -> vector<32x16xf32>
    %302 = tpu.concatenate %255, %278, %301 in 0 : vector<32x16xf32>, vector<32x16xf32>, vector<32x16xf32> -> vector<96x16xf32>
    %cst_144 = arith.constant dense<0.000000e+00> : vector<32x16xf32>
    %303 = tpu.matmul %212, %302, %cst_144 {dimension_numbers = #tpu.dot_dimension_numbers<[1], [0], [0], [1], [0, 0, 1, 1], [], []>} : vector<32x96xf32>, vector<96x16xf32>, vector<32x16xf32> -> vector<32x16xf32>
    %304 = vector.broadcast %213 : vector<32x1xf32> to vector<32x16xf32>
    %305 = arith.addf %303, %304 : vector<32x16xf32>
    %cst_145 = arith.constant 0.000000e+00 : f32
    %306 = vector.broadcast %cst_145 : f32 to vector<32x16xf32>
    %307 = arith.maximumf %305, %306 : vector<32x16xf32>
    %cst_146 = arith.constant dense<0.000000e+00> : vector<32x16xf32>
    %308 = tpu.matmul %214, %307, %cst_146 {dimension_numbers = #tpu.dot_dimension_numbers<[1], [0], [0], [1], [0, 0, 1, 1], [], []>} : vector<32x32xf32>, vector<32x16xf32>, vector<32x16xf32> -> vector<32x16xf32>
    %309 = vector.broadcast %215 : vector<32x1xf32> to vector<32x16xf32>
    %310 = arith.addf %308, %309 : vector<32x16xf32>
    %311 = arith.addf %211, %310 : vector<32x16xf32>
    %c0_147 = arith.constant 0 : index
    %c0_148 = arith.constant 0 : index
    %312 = vector.load %arg9[%c0_147, %c0_148] : memref<32x96xf32, #tpu.memory_space<vmem>>, vector<32x96xf32>
    %c0_149 = arith.constant 0 : index
    %c0_150 = arith.constant 0 : index
    %313 = vector.load %arg10[%c0_149, %c0_150] : memref<32x1xf32, #tpu.memory_space<vmem>>, vector<32x1xf32>
    %c0_151 = arith.constant 0 : index
    %c0_152 = arith.constant 0 : index
    %314 = vector.load %arg11[%c0_151, %c0_152] : memref<32x32xf32, #tpu.memory_space<vmem>>, vector<32x32xf32>
    %c0_153 = arith.constant 0 : index
    %c0_154 = arith.constant 0 : index
    %315 = vector.load %arg12[%c0_153, %c0_154] : memref<32x1xf32, #tpu.memory_space<vmem>>, vector<32x1xf32>
    %cst_155 = arith.constant 0.000000e+00 : f32
    %316 = vector.broadcast %cst_155 : f32 to vector<32x16xf32>
    %317 = arith.maximumf %311, %316 : vector<32x16xf32>
    %318 = tpu.iota {dimensions = array<i32: 0>} : vector<16x16xi32>
    %319 = tpu.iota {dimensions = array<i32: 1>} : vector<16x16xi32>
    %c0_i32_156 = arith.constant 0 : i32
    %320 = vector.broadcast %c0_i32_156 : i32 to vector<16x16xi32>
    %c8_i32_157 = arith.constant 8 : i32
    %321 = vector.broadcast %c8_i32_157 : i32 to vector<16x16xi32>
    %322 = arith.cmpi sge, %319, %321 : vector<16x16xi32>
    %c1_i32_158 = arith.constant 1 : i32
    %c0_i32_159 = arith.constant 0 : i32
    %323 = vector.broadcast %c1_i32_158 : i32 to vector<16x16xi32>
    %324 = vector.broadcast %c0_i32_159 : i32 to vector<16x16xi32>
    %325 = arith.select %322, %323, %324 : vector<16x16xi1>, vector<16x16xi32>
    %326 = arith.addi %320, %325 : vector<16x16xi32>
    %c8_i32_160 = arith.constant 8 : i32
    %327 = vector.broadcast %c8_i32_160 : i32 to vector<16x16xi32>
    %328 = arith.muli %326, %327 : vector<16x16xi32>
    %329 = arith.subi %319, %328 : vector<16x16xi32>
    %c8_i32_161 = arith.constant 8 : i32
    %330 = vector.broadcast %c8_i32_161 : i32 to vector<16x16xi32>
    %331 = arith.muli %326, %330 : vector<16x16xi32>
    %332 = arith.subi %318, %331 : vector<16x16xi32>
    %c1_i32_162 = arith.constant 1 : i32
    %333 = vector.broadcast %c1_i32_162 : i32 to vector<16x16xi32>
    %334 = arith.muli %333, %329 : vector<16x16xi32>
    %c-3_i32 = arith.constant -3 : i32
    %335 = vector.broadcast %c-3_i32 : i32 to vector<16x16xi32>
    %336 = arith.addi %334, %335 : vector<16x16xi32>
    %c1_i32_163 = arith.constant 1 : i32
    %337 = vector.broadcast %c1_i32_163 : i32 to vector<16x16xi32>
    %338 = arith.muli %337, %332 : vector<16x16xi32>
    %339 = arith.cmpi sle, %338, %336 : vector<16x16xi32>
    %c1_i32_164 = arith.constant 1 : i32
    %340 = vector.broadcast %c1_i32_164 : i32 to vector<16x16xi32>
    %341 = arith.muli %340, %332 : vector<16x16xi32>
    %c1_i32_165 = arith.constant 1 : i32
    %342 = vector.broadcast %c1_i32_165 : i32 to vector<16x16xi32>
    %343 = arith.addi %341, %342 : vector<16x16xi32>
    %344 = arith.cmpi slt, %336, %343 : vector<16x16xi32>
    %345 = arith.andi %339, %344 : vector<16x16xi1>
    %c0_i32_166 = arith.constant 0 : i32
    %346 = vector.broadcast %c0_i32_166 : i32 to vector<16x16xi32>
    %347 = arith.cmpi sge, %336, %346 : vector<16x16xi32>
    %348 = arith.andi %345, %347 : vector<16x16xi1>
    %c8_i32_167 = arith.constant 8 : i32
    %349 = vector.broadcast %c8_i32_167 : i32 to vector<16x16xi32>
    %350 = arith.cmpi slt, %336, %349 : vector<16x16xi32>
    %351 = arith.andi %348, %350 : vector<16x16xi1>
    %cst_168 = arith.constant 1.000000e+00 : f32
    %cst_169 = arith.constant 0.000000e+00 : f32
    %352 = vector.broadcast %cst_168 : f32 to vector<16x16xf32>
    %353 = vector.broadcast %cst_169 : f32 to vector<16x16xf32>
    %354 = arith.select %351, %352, %353 : vector<16x16xi1>, vector<16x16xf32>
    %cst_170 = arith.constant dense<0.000000e+00> : vector<32x16xf32>
    %355 = tpu.matmul %317, %354, %cst_170 {dimension_numbers = #tpu.dot_dimension_numbers<[1], [0], [0], [1], [0, 0, 1, 1], [], []>} : vector<32x16xf32>, vector<16x16xf32>, vector<32x16xf32> -> vector<32x16xf32>
    %c1_i32_171 = arith.constant 1 : i32
    %356 = vector.broadcast %c1_i32_171 : i32 to vector<16x16xi32>
    %357 = arith.muli %356, %329 : vector<16x16xi32>
    %c0_i32_172 = arith.constant 0 : i32
    %358 = vector.broadcast %c0_i32_172 : i32 to vector<16x16xi32>
    %359 = arith.addi %357, %358 : vector<16x16xi32>
    %c1_i32_173 = arith.constant 1 : i32
    %360 = vector.broadcast %c1_i32_173 : i32 to vector<16x16xi32>
    %361 = arith.muli %360, %332 : vector<16x16xi32>
    %362 = arith.cmpi sle, %361, %359 : vector<16x16xi32>
    %c1_i32_174 = arith.constant 1 : i32
    %363 = vector.broadcast %c1_i32_174 : i32 to vector<16x16xi32>
    %364 = arith.muli %363, %332 : vector<16x16xi32>
    %c1_i32_175 = arith.constant 1 : i32
    %365 = vector.broadcast %c1_i32_175 : i32 to vector<16x16xi32>
    %366 = arith.addi %364, %365 : vector<16x16xi32>
    %367 = arith.cmpi slt, %359, %366 : vector<16x16xi32>
    %368 = arith.andi %362, %367 : vector<16x16xi1>
    %c0_i32_176 = arith.constant 0 : i32
    %369 = vector.broadcast %c0_i32_176 : i32 to vector<16x16xi32>
    %370 = arith.cmpi sge, %359, %369 : vector<16x16xi32>
    %371 = arith.andi %368, %370 : vector<16x16xi1>
    %c8_i32_177 = arith.constant 8 : i32
    %372 = vector.broadcast %c8_i32_177 : i32 to vector<16x16xi32>
    %373 = arith.cmpi slt, %359, %372 : vector<16x16xi32>
    %374 = arith.andi %371, %373 : vector<16x16xi1>
    %cst_178 = arith.constant 1.000000e+00 : f32
    %cst_179 = arith.constant 0.000000e+00 : f32
    %375 = vector.broadcast %cst_178 : f32 to vector<16x16xf32>
    %376 = vector.broadcast %cst_179 : f32 to vector<16x16xf32>
    %377 = arith.select %374, %375, %376 : vector<16x16xi1>, vector<16x16xf32>
    %cst_180 = arith.constant dense<0.000000e+00> : vector<32x16xf32>
    %378 = tpu.matmul %317, %377, %cst_180 {dimension_numbers = #tpu.dot_dimension_numbers<[1], [0], [0], [1], [0, 0, 1, 1], [], []>} : vector<32x16xf32>, vector<16x16xf32>, vector<32x16xf32> -> vector<32x16xf32>
    %c1_i32_181 = arith.constant 1 : i32
    %379 = vector.broadcast %c1_i32_181 : i32 to vector<16x16xi32>
    %380 = arith.muli %379, %329 : vector<16x16xi32>
    %c3_i32 = arith.constant 3 : i32
    %381 = vector.broadcast %c3_i32 : i32 to vector<16x16xi32>
    %382 = arith.addi %380, %381 : vector<16x16xi32>
    %c1_i32_182 = arith.constant 1 : i32
    %383 = vector.broadcast %c1_i32_182 : i32 to vector<16x16xi32>
    %384 = arith.muli %383, %332 : vector<16x16xi32>
    %385 = arith.cmpi sle, %384, %382 : vector<16x16xi32>
    %c1_i32_183 = arith.constant 1 : i32
    %386 = vector.broadcast %c1_i32_183 : i32 to vector<16x16xi32>
    %387 = arith.muli %386, %332 : vector<16x16xi32>
    %c1_i32_184 = arith.constant 1 : i32
    %388 = vector.broadcast %c1_i32_184 : i32 to vector<16x16xi32>
    %389 = arith.addi %387, %388 : vector<16x16xi32>
    %390 = arith.cmpi slt, %382, %389 : vector<16x16xi32>
    %391 = arith.andi %385, %390 : vector<16x16xi1>
    %c0_i32_185 = arith.constant 0 : i32
    %392 = vector.broadcast %c0_i32_185 : i32 to vector<16x16xi32>
    %393 = arith.cmpi sge, %382, %392 : vector<16x16xi32>
    %394 = arith.andi %391, %393 : vector<16x16xi1>
    %c8_i32_186 = arith.constant 8 : i32
    %395 = vector.broadcast %c8_i32_186 : i32 to vector<16x16xi32>
    %396 = arith.cmpi slt, %382, %395 : vector<16x16xi32>
    %397 = arith.andi %394, %396 : vector<16x16xi1>
    %cst_187 = arith.constant 1.000000e+00 : f32
    %cst_188 = arith.constant 0.000000e+00 : f32
    %398 = vector.broadcast %cst_187 : f32 to vector<16x16xf32>
    %399 = vector.broadcast %cst_188 : f32 to vector<16x16xf32>
    %400 = arith.select %397, %398, %399 : vector<16x16xi1>, vector<16x16xf32>
    %cst_189 = arith.constant dense<0.000000e+00> : vector<32x16xf32>
    %401 = tpu.matmul %317, %400, %cst_189 {dimension_numbers = #tpu.dot_dimension_numbers<[1], [0], [0], [1], [0, 0, 1, 1], [], []>} : vector<32x16xf32>, vector<16x16xf32>, vector<32x16xf32> -> vector<32x16xf32>
    %402 = tpu.concatenate %355, %378, %401 in 0 : vector<32x16xf32>, vector<32x16xf32>, vector<32x16xf32> -> vector<96x16xf32>
    %cst_190 = arith.constant dense<0.000000e+00> : vector<32x16xf32>
    %403 = tpu.matmul %312, %402, %cst_190 {dimension_numbers = #tpu.dot_dimension_numbers<[1], [0], [0], [1], [0, 0, 1, 1], [], []>} : vector<32x96xf32>, vector<96x16xf32>, vector<32x16xf32> -> vector<32x16xf32>
    %404 = vector.broadcast %313 : vector<32x1xf32> to vector<32x16xf32>
    %405 = arith.addf %403, %404 : vector<32x16xf32>
    %cst_191 = arith.constant 0.000000e+00 : f32
    %406 = vector.broadcast %cst_191 : f32 to vector<32x16xf32>
    %407 = arith.maximumf %405, %406 : vector<32x16xf32>
    %cst_192 = arith.constant dense<0.000000e+00> : vector<32x16xf32>
    %408 = tpu.matmul %314, %407, %cst_192 {dimension_numbers = #tpu.dot_dimension_numbers<[1], [0], [0], [1], [0, 0, 1, 1], [], []>} : vector<32x32xf32>, vector<32x16xf32>, vector<32x16xf32> -> vector<32x16xf32>
    %409 = vector.broadcast %315 : vector<32x1xf32> to vector<32x16xf32>
    %410 = arith.addf %408, %409 : vector<32x16xf32>
    %411 = arith.addf %311, %410 : vector<32x16xf32>
    %c0_193 = arith.constant 0 : index
    %c0_194 = arith.constant 0 : index
    %412 = vector.load %arg13[%c0_193, %c0_194] : memref<32x128xf32, #tpu.memory_space<vmem>>, vector<32x128xf32>
    %c0_195 = arith.constant 0 : index
    %c0_196 = arith.constant 0 : index
    %413 = vector.load %arg14[%c0_195, %c0_196] : memref<32x1xf32, #tpu.memory_space<vmem>>, vector<32x1xf32>
    %414 = tpu.iota {dimensions = array<i32: 0>} : vector<16x8xi32>
    %415 = tpu.iota {dimensions = array<i32: 1>} : vector<16x8xi32>
    %c0_i32_197 = arith.constant 0 : i32
    %416 = vector.broadcast %c0_i32_197 : i32 to vector<16x8xi32>
    %c4_i32 = arith.constant 4 : i32
    %417 = vector.broadcast %c4_i32 : i32 to vector<16x8xi32>
    %418 = arith.cmpi sge, %415, %417 : vector<16x8xi32>
    %c1_i32_198 = arith.constant 1 : i32
    %c0_i32_199 = arith.constant 0 : i32
    %419 = vector.broadcast %c1_i32_198 : i32 to vector<16x8xi32>
    %420 = vector.broadcast %c0_i32_199 : i32 to vector<16x8xi32>
    %421 = arith.select %418, %419, %420 : vector<16x8xi1>, vector<16x8xi32>
    %422 = arith.addi %416, %421 : vector<16x8xi32>
    %c4_i32_200 = arith.constant 4 : i32
    %423 = vector.broadcast %c4_i32_200 : i32 to vector<16x8xi32>
    %424 = arith.muli %422, %423 : vector<16x8xi32>
    %425 = arith.subi %415, %424 : vector<16x8xi32>
    %c8_i32_201 = arith.constant 8 : i32
    %426 = vector.broadcast %c8_i32_201 : i32 to vector<16x8xi32>
    %427 = arith.muli %422, %426 : vector<16x8xi32>
    %428 = arith.subi %414, %427 : vector<16x8xi32>
    %c2_i32_202 = arith.constant 2 : i32
    %429 = vector.broadcast %c2_i32_202 : i32 to vector<16x8xi32>
    %430 = arith.muli %429, %425 : vector<16x8xi32>
    %c-1_i32_203 = arith.constant -1 : i32
    %431 = vector.broadcast %c-1_i32_203 : i32 to vector<16x8xi32>
    %432 = arith.addi %430, %431 : vector<16x8xi32>
    %c1_i32_204 = arith.constant 1 : i32
    %433 = vector.broadcast %c1_i32_204 : i32 to vector<16x8xi32>
    %434 = arith.muli %433, %428 : vector<16x8xi32>
    %435 = arith.cmpi sle, %434, %432 : vector<16x8xi32>
    %c1_i32_205 = arith.constant 1 : i32
    %436 = vector.broadcast %c1_i32_205 : i32 to vector<16x8xi32>
    %437 = arith.muli %436, %428 : vector<16x8xi32>
    %c1_i32_206 = arith.constant 1 : i32
    %438 = vector.broadcast %c1_i32_206 : i32 to vector<16x8xi32>
    %439 = arith.addi %437, %438 : vector<16x8xi32>
    %440 = arith.cmpi slt, %432, %439 : vector<16x8xi32>
    %441 = arith.andi %435, %440 : vector<16x8xi1>
    %c0_i32_207 = arith.constant 0 : i32
    %442 = vector.broadcast %c0_i32_207 : i32 to vector<16x8xi32>
    %443 = arith.cmpi sge, %432, %442 : vector<16x8xi32>
    %444 = arith.andi %441, %443 : vector<16x8xi1>
    %c8_i32_208 = arith.constant 8 : i32
    %445 = vector.broadcast %c8_i32_208 : i32 to vector<16x8xi32>
    %446 = arith.cmpi slt, %432, %445 : vector<16x8xi32>
    %447 = arith.andi %444, %446 : vector<16x8xi1>
    %cst_209 = arith.constant 1.000000e+00 : f32
    %cst_210 = arith.constant 0.000000e+00 : f32
    %448 = vector.broadcast %cst_209 : f32 to vector<16x8xf32>
    %449 = vector.broadcast %cst_210 : f32 to vector<16x8xf32>
    %450 = arith.select %447, %448, %449 : vector<16x8xi1>, vector<16x8xf32>
    %cst_211 = arith.constant dense<0.000000e+00> : vector<32x8xf32>
    %451 = tpu.matmul %411, %450, %cst_211 {dimension_numbers = #tpu.dot_dimension_numbers<[1], [0], [0], [1], [0, 0, 1, 1], [], []>} : vector<32x16xf32>, vector<16x8xf32>, vector<32x8xf32> -> vector<32x8xf32>
    %c2_i32_212 = arith.constant 2 : i32
    %452 = vector.broadcast %c2_i32_212 : i32 to vector<16x8xi32>
    %453 = arith.muli %452, %425 : vector<16x8xi32>
    %c0_i32_213 = arith.constant 0 : i32
    %454 = vector.broadcast %c0_i32_213 : i32 to vector<16x8xi32>
    %455 = arith.addi %453, %454 : vector<16x8xi32>
    %c1_i32_214 = arith.constant 1 : i32
    %456 = vector.broadcast %c1_i32_214 : i32 to vector<16x8xi32>
    %457 = arith.muli %456, %428 : vector<16x8xi32>
    %458 = arith.cmpi sle, %457, %455 : vector<16x8xi32>
    %c1_i32_215 = arith.constant 1 : i32
    %459 = vector.broadcast %c1_i32_215 : i32 to vector<16x8xi32>
    %460 = arith.muli %459, %428 : vector<16x8xi32>
    %c1_i32_216 = arith.constant 1 : i32
    %461 = vector.broadcast %c1_i32_216 : i32 to vector<16x8xi32>
    %462 = arith.addi %460, %461 : vector<16x8xi32>
    %463 = arith.cmpi slt, %455, %462 : vector<16x8xi32>
    %464 = arith.andi %458, %463 : vector<16x8xi1>
    %c0_i32_217 = arith.constant 0 : i32
    %465 = vector.broadcast %c0_i32_217 : i32 to vector<16x8xi32>
    %466 = arith.cmpi sge, %455, %465 : vector<16x8xi32>
    %467 = arith.andi %464, %466 : vector<16x8xi1>
    %c8_i32_218 = arith.constant 8 : i32
    %468 = vector.broadcast %c8_i32_218 : i32 to vector<16x8xi32>
    %469 = arith.cmpi slt, %455, %468 : vector<16x8xi32>
    %470 = arith.andi %467, %469 : vector<16x8xi1>
    %cst_219 = arith.constant 1.000000e+00 : f32
    %cst_220 = arith.constant 0.000000e+00 : f32
    %471 = vector.broadcast %cst_219 : f32 to vector<16x8xf32>
    %472 = vector.broadcast %cst_220 : f32 to vector<16x8xf32>
    %473 = arith.select %470, %471, %472 : vector<16x8xi1>, vector<16x8xf32>
    %cst_221 = arith.constant dense<0.000000e+00> : vector<32x8xf32>
    %474 = tpu.matmul %411, %473, %cst_221 {dimension_numbers = #tpu.dot_dimension_numbers<[1], [0], [0], [1], [0, 0, 1, 1], [], []>} : vector<32x16xf32>, vector<16x8xf32>, vector<32x8xf32> -> vector<32x8xf32>
    %c2_i32_222 = arith.constant 2 : i32
    %475 = vector.broadcast %c2_i32_222 : i32 to vector<16x8xi32>
    %476 = arith.muli %475, %425 : vector<16x8xi32>
    %c1_i32_223 = arith.constant 1 : i32
    %477 = vector.broadcast %c1_i32_223 : i32 to vector<16x8xi32>
    %478 = arith.addi %476, %477 : vector<16x8xi32>
    %c1_i32_224 = arith.constant 1 : i32
    %479 = vector.broadcast %c1_i32_224 : i32 to vector<16x8xi32>
    %480 = arith.muli %479, %428 : vector<16x8xi32>
    %481 = arith.cmpi sle, %480, %478 : vector<16x8xi32>
    %c1_i32_225 = arith.constant 1 : i32
    %482 = vector.broadcast %c1_i32_225 : i32 to vector<16x8xi32>
    %483 = arith.muli %482, %428 : vector<16x8xi32>
    %c1_i32_226 = arith.constant 1 : i32
    %484 = vector.broadcast %c1_i32_226 : i32 to vector<16x8xi32>
    %485 = arith.addi %483, %484 : vector<16x8xi32>
    %486 = arith.cmpi slt, %478, %485 : vector<16x8xi32>
    %487 = arith.andi %481, %486 : vector<16x8xi1>
    %c0_i32_227 = arith.constant 0 : i32
    %488 = vector.broadcast %c0_i32_227 : i32 to vector<16x8xi32>
    %489 = arith.cmpi sge, %478, %488 : vector<16x8xi32>
    %490 = arith.andi %487, %489 : vector<16x8xi1>
    %c8_i32_228 = arith.constant 8 : i32
    %491 = vector.broadcast %c8_i32_228 : i32 to vector<16x8xi32>
    %492 = arith.cmpi slt, %478, %491 : vector<16x8xi32>
    %493 = arith.andi %490, %492 : vector<16x8xi1>
    %cst_229 = arith.constant 1.000000e+00 : f32
    %cst_230 = arith.constant 0.000000e+00 : f32
    %494 = vector.broadcast %cst_229 : f32 to vector<16x8xf32>
    %495 = vector.broadcast %cst_230 : f32 to vector<16x8xf32>
    %496 = arith.select %493, %494, %495 : vector<16x8xi1>, vector<16x8xf32>
    %cst_231 = arith.constant dense<0.000000e+00> : vector<32x8xf32>
    %497 = tpu.matmul %411, %496, %cst_231 {dimension_numbers = #tpu.dot_dimension_numbers<[1], [0], [0], [1], [0, 0, 1, 1], [], []>} : vector<32x16xf32>, vector<16x8xf32>, vector<32x8xf32> -> vector<32x8xf32>
    %c2_i32_232 = arith.constant 2 : i32
    %498 = vector.broadcast %c2_i32_232 : i32 to vector<16x8xi32>
    %499 = arith.muli %498, %425 : vector<16x8xi32>
    %c2_i32_233 = arith.constant 2 : i32
    %500 = vector.broadcast %c2_i32_233 : i32 to vector<16x8xi32>
    %501 = arith.addi %499, %500 : vector<16x8xi32>
    %c1_i32_234 = arith.constant 1 : i32
    %502 = vector.broadcast %c1_i32_234 : i32 to vector<16x8xi32>
    %503 = arith.muli %502, %428 : vector<16x8xi32>
    %504 = arith.cmpi sle, %503, %501 : vector<16x8xi32>
    %c1_i32_235 = arith.constant 1 : i32
    %505 = vector.broadcast %c1_i32_235 : i32 to vector<16x8xi32>
    %506 = arith.muli %505, %428 : vector<16x8xi32>
    %c1_i32_236 = arith.constant 1 : i32
    %507 = vector.broadcast %c1_i32_236 : i32 to vector<16x8xi32>
    %508 = arith.addi %506, %507 : vector<16x8xi32>
    %509 = arith.cmpi slt, %501, %508 : vector<16x8xi32>
    %510 = arith.andi %504, %509 : vector<16x8xi1>
    %c0_i32_237 = arith.constant 0 : i32
    %511 = vector.broadcast %c0_i32_237 : i32 to vector<16x8xi32>
    %512 = arith.cmpi sge, %501, %511 : vector<16x8xi32>
    %513 = arith.andi %510, %512 : vector<16x8xi1>
    %c8_i32_238 = arith.constant 8 : i32
    %514 = vector.broadcast %c8_i32_238 : i32 to vector<16x8xi32>
    %515 = arith.cmpi slt, %501, %514 : vector<16x8xi32>
    %516 = arith.andi %513, %515 : vector<16x8xi1>
    %cst_239 = arith.constant 1.000000e+00 : f32
    %cst_240 = arith.constant 0.000000e+00 : f32
    %517 = vector.broadcast %cst_239 : f32 to vector<16x8xf32>
    %518 = vector.broadcast %cst_240 : f32 to vector<16x8xf32>
    %519 = arith.select %516, %517, %518 : vector<16x8xi1>, vector<16x8xf32>
    %cst_241 = arith.constant dense<0.000000e+00> : vector<32x8xf32>
    %520 = tpu.matmul %411, %519, %cst_241 {dimension_numbers = #tpu.dot_dimension_numbers<[1], [0], [0], [1], [0, 0, 1, 1], [], []>} : vector<32x16xf32>, vector<16x8xf32>, vector<32x8xf32> -> vector<32x8xf32>
    %521 = tpu.concatenate %451, %474, %497, %520 in 0 : vector<32x8xf32>, vector<32x8xf32>, vector<32x8xf32>, vector<32x8xf32> -> vector<128x8xf32>
    %cst_242 = arith.constant dense<0.000000e+00> : vector<32x8xf32>
    %522 = tpu.matmul %412, %521, %cst_242 {dimension_numbers = #tpu.dot_dimension_numbers<[1], [0], [0], [1], [0, 0, 1, 1], [], []>} : vector<32x128xf32>, vector<128x8xf32>, vector<32x8xf32> -> vector<32x8xf32>
    %523 = vector.broadcast %413 : vector<32x1xf32> to vector<32x8xf32>
    %524 = arith.addf %522, %523 : vector<32x8xf32>
    %c0_243 = arith.constant 0 : index
    %c0_244 = arith.constant 0 : index
    %525 = vector.load %arg15[%c0_243, %c0_244] : memref<32x96xf32, #tpu.memory_space<vmem>>, vector<32x96xf32>
    %c0_245 = arith.constant 0 : index
    %c0_246 = arith.constant 0 : index
    %526 = vector.load %arg16[%c0_245, %c0_246] : memref<32x1xf32, #tpu.memory_space<vmem>>, vector<32x1xf32>
    %c0_247 = arith.constant 0 : index
    %c0_248 = arith.constant 0 : index
    %527 = vector.load %arg17[%c0_247, %c0_248] : memref<32x32xf32, #tpu.memory_space<vmem>>, vector<32x32xf32>
    %c0_249 = arith.constant 0 : index
    %c0_250 = arith.constant 0 : index
    %528 = vector.load %arg18[%c0_249, %c0_250] : memref<32x1xf32, #tpu.memory_space<vmem>>, vector<32x1xf32>
    %cst_251 = arith.constant 0.000000e+00 : f32
    %529 = vector.broadcast %cst_251 : f32 to vector<32x8xf32>
    %530 = arith.maximumf %524, %529 : vector<32x8xf32>
    %531 = tpu.iota {dimensions = array<i32: 0>} : vector<8x8xi32>
    %532 = tpu.iota {dimensions = array<i32: 1>} : vector<8x8xi32>
    %c0_i32_252 = arith.constant 0 : i32
    %533 = vector.broadcast %c0_i32_252 : i32 to vector<8x8xi32>
    %c4_i32_253 = arith.constant 4 : i32
    %534 = vector.broadcast %c4_i32_253 : i32 to vector<8x8xi32>
    %535 = arith.cmpi sge, %532, %534 : vector<8x8xi32>
    %c1_i32_254 = arith.constant 1 : i32
    %c0_i32_255 = arith.constant 0 : i32
    %536 = vector.broadcast %c1_i32_254 : i32 to vector<8x8xi32>
    %537 = vector.broadcast %c0_i32_255 : i32 to vector<8x8xi32>
    %538 = arith.select %535, %536, %537 : vector<8x8xi1>, vector<8x8xi32>
    %539 = arith.addi %533, %538 : vector<8x8xi32>
    %c4_i32_256 = arith.constant 4 : i32
    %540 = vector.broadcast %c4_i32_256 : i32 to vector<8x8xi32>
    %541 = arith.muli %539, %540 : vector<8x8xi32>
    %542 = arith.subi %532, %541 : vector<8x8xi32>
    %c4_i32_257 = arith.constant 4 : i32
    %543 = vector.broadcast %c4_i32_257 : i32 to vector<8x8xi32>
    %544 = arith.muli %539, %543 : vector<8x8xi32>
    %545 = arith.subi %531, %544 : vector<8x8xi32>
    %c1_i32_258 = arith.constant 1 : i32
    %546 = vector.broadcast %c1_i32_258 : i32 to vector<8x8xi32>
    %547 = arith.muli %546, %542 : vector<8x8xi32>
    %c-1_i32_259 = arith.constant -1 : i32
    %548 = vector.broadcast %c-1_i32_259 : i32 to vector<8x8xi32>
    %549 = arith.addi %547, %548 : vector<8x8xi32>
    %c1_i32_260 = arith.constant 1 : i32
    %550 = vector.broadcast %c1_i32_260 : i32 to vector<8x8xi32>
    %551 = arith.muli %550, %545 : vector<8x8xi32>
    %552 = arith.cmpi sle, %551, %549 : vector<8x8xi32>
    %c1_i32_261 = arith.constant 1 : i32
    %553 = vector.broadcast %c1_i32_261 : i32 to vector<8x8xi32>
    %554 = arith.muli %553, %545 : vector<8x8xi32>
    %c1_i32_262 = arith.constant 1 : i32
    %555 = vector.broadcast %c1_i32_262 : i32 to vector<8x8xi32>
    %556 = arith.addi %554, %555 : vector<8x8xi32>
    %557 = arith.cmpi slt, %549, %556 : vector<8x8xi32>
    %558 = arith.andi %552, %557 : vector<8x8xi1>
    %c0_i32_263 = arith.constant 0 : i32
    %559 = vector.broadcast %c0_i32_263 : i32 to vector<8x8xi32>
    %560 = arith.cmpi sge, %549, %559 : vector<8x8xi32>
    %561 = arith.andi %558, %560 : vector<8x8xi1>
    %c4_i32_264 = arith.constant 4 : i32
    %562 = vector.broadcast %c4_i32_264 : i32 to vector<8x8xi32>
    %563 = arith.cmpi slt, %549, %562 : vector<8x8xi32>
    %564 = arith.andi %561, %563 : vector<8x8xi1>
    %cst_265 = arith.constant 1.000000e+00 : f32
    %cst_266 = arith.constant 0.000000e+00 : f32
    %565 = vector.broadcast %cst_265 : f32 to vector<8x8xf32>
    %566 = vector.broadcast %cst_266 : f32 to vector<8x8xf32>
    %567 = arith.select %564, %565, %566 : vector<8x8xi1>, vector<8x8xf32>
    %cst_267 = arith.constant dense<0.000000e+00> : vector<32x8xf32>
    %568 = tpu.matmul %530, %567, %cst_267 {dimension_numbers = #tpu.dot_dimension_numbers<[1], [0], [0], [1], [0, 0, 1, 1], [], []>} : vector<32x8xf32>, vector<8x8xf32>, vector<32x8xf32> -> vector<32x8xf32>
    %c1_i32_268 = arith.constant 1 : i32
    %569 = vector.broadcast %c1_i32_268 : i32 to vector<8x8xi32>
    %570 = arith.muli %569, %542 : vector<8x8xi32>
    %c0_i32_269 = arith.constant 0 : i32
    %571 = vector.broadcast %c0_i32_269 : i32 to vector<8x8xi32>
    %572 = arith.addi %570, %571 : vector<8x8xi32>
    %c1_i32_270 = arith.constant 1 : i32
    %573 = vector.broadcast %c1_i32_270 : i32 to vector<8x8xi32>
    %574 = arith.muli %573, %545 : vector<8x8xi32>
    %575 = arith.cmpi sle, %574, %572 : vector<8x8xi32>
    %c1_i32_271 = arith.constant 1 : i32
    %576 = vector.broadcast %c1_i32_271 : i32 to vector<8x8xi32>
    %577 = arith.muli %576, %545 : vector<8x8xi32>
    %c1_i32_272 = arith.constant 1 : i32
    %578 = vector.broadcast %c1_i32_272 : i32 to vector<8x8xi32>
    %579 = arith.addi %577, %578 : vector<8x8xi32>
    %580 = arith.cmpi slt, %572, %579 : vector<8x8xi32>
    %581 = arith.andi %575, %580 : vector<8x8xi1>
    %c0_i32_273 = arith.constant 0 : i32
    %582 = vector.broadcast %c0_i32_273 : i32 to vector<8x8xi32>
    %583 = arith.cmpi sge, %572, %582 : vector<8x8xi32>
    %584 = arith.andi %581, %583 : vector<8x8xi1>
    %c4_i32_274 = arith.constant 4 : i32
    %585 = vector.broadcast %c4_i32_274 : i32 to vector<8x8xi32>
    %586 = arith.cmpi slt, %572, %585 : vector<8x8xi32>
    %587 = arith.andi %584, %586 : vector<8x8xi1>
    %cst_275 = arith.constant 1.000000e+00 : f32
    %cst_276 = arith.constant 0.000000e+00 : f32
    %588 = vector.broadcast %cst_275 : f32 to vector<8x8xf32>
    %589 = vector.broadcast %cst_276 : f32 to vector<8x8xf32>
    %590 = arith.select %587, %588, %589 : vector<8x8xi1>, vector<8x8xf32>
    %cst_277 = arith.constant dense<0.000000e+00> : vector<32x8xf32>
    %591 = tpu.matmul %530, %590, %cst_277 {dimension_numbers = #tpu.dot_dimension_numbers<[1], [0], [0], [1], [0, 0, 1, 1], [], []>} : vector<32x8xf32>, vector<8x8xf32>, vector<32x8xf32> -> vector<32x8xf32>
    %c1_i32_278 = arith.constant 1 : i32
    %592 = vector.broadcast %c1_i32_278 : i32 to vector<8x8xi32>
    %593 = arith.muli %592, %542 : vector<8x8xi32>
    %c1_i32_279 = arith.constant 1 : i32
    %594 = vector.broadcast %c1_i32_279 : i32 to vector<8x8xi32>
    %595 = arith.addi %593, %594 : vector<8x8xi32>
    %c1_i32_280 = arith.constant 1 : i32
    %596 = vector.broadcast %c1_i32_280 : i32 to vector<8x8xi32>
    %597 = arith.muli %596, %545 : vector<8x8xi32>
    %598 = arith.cmpi sle, %597, %595 : vector<8x8xi32>
    %c1_i32_281 = arith.constant 1 : i32
    %599 = vector.broadcast %c1_i32_281 : i32 to vector<8x8xi32>
    %600 = arith.muli %599, %545 : vector<8x8xi32>
    %c1_i32_282 = arith.constant 1 : i32
    %601 = vector.broadcast %c1_i32_282 : i32 to vector<8x8xi32>
    %602 = arith.addi %600, %601 : vector<8x8xi32>
    %603 = arith.cmpi slt, %595, %602 : vector<8x8xi32>
    %604 = arith.andi %598, %603 : vector<8x8xi1>
    %c0_i32_283 = arith.constant 0 : i32
    %605 = vector.broadcast %c0_i32_283 : i32 to vector<8x8xi32>
    %606 = arith.cmpi sge, %595, %605 : vector<8x8xi32>
    %607 = arith.andi %604, %606 : vector<8x8xi1>
    %c4_i32_284 = arith.constant 4 : i32
    %608 = vector.broadcast %c4_i32_284 : i32 to vector<8x8xi32>
    %609 = arith.cmpi slt, %595, %608 : vector<8x8xi32>
    %610 = arith.andi %607, %609 : vector<8x8xi1>
    %cst_285 = arith.constant 1.000000e+00 : f32
    %cst_286 = arith.constant 0.000000e+00 : f32
    %611 = vector.broadcast %cst_285 : f32 to vector<8x8xf32>
    %612 = vector.broadcast %cst_286 : f32 to vector<8x8xf32>
    %613 = arith.select %610, %611, %612 : vector<8x8xi1>, vector<8x8xf32>
    %cst_287 = arith.constant dense<0.000000e+00> : vector<32x8xf32>
    %614 = tpu.matmul %530, %613, %cst_287 {dimension_numbers = #tpu.dot_dimension_numbers<[1], [0], [0], [1], [0, 0, 1, 1], [], []>} : vector<32x8xf32>, vector<8x8xf32>, vector<32x8xf32> -> vector<32x8xf32>
    %615 = tpu.concatenate %568, %591, %614 in 0 : vector<32x8xf32>, vector<32x8xf32>, vector<32x8xf32> -> vector<96x8xf32>
    %cst_288 = arith.constant dense<0.000000e+00> : vector<32x8xf32>
    %616 = tpu.matmul %525, %615, %cst_288 {dimension_numbers = #tpu.dot_dimension_numbers<[1], [0], [0], [1], [0, 0, 1, 1], [], []>} : vector<32x96xf32>, vector<96x8xf32>, vector<32x8xf32> -> vector<32x8xf32>
    %617 = vector.broadcast %526 : vector<32x1xf32> to vector<32x8xf32>
    %618 = arith.addf %616, %617 : vector<32x8xf32>
    %cst_289 = arith.constant 0.000000e+00 : f32
    %619 = vector.broadcast %cst_289 : f32 to vector<32x8xf32>
    %620 = arith.maximumf %618, %619 : vector<32x8xf32>
    %cst_290 = arith.constant dense<0.000000e+00> : vector<32x8xf32>
    %621 = tpu.matmul %527, %620, %cst_290 {dimension_numbers = #tpu.dot_dimension_numbers<[1], [0], [0], [1], [0, 0, 1, 1], [], []>} : vector<32x32xf32>, vector<32x8xf32>, vector<32x8xf32> -> vector<32x8xf32>
    %622 = vector.broadcast %528 : vector<32x1xf32> to vector<32x8xf32>
    %623 = arith.addf %621, %622 : vector<32x8xf32>
    %624 = arith.addf %524, %623 : vector<32x8xf32>
    %c0_291 = arith.constant 0 : index
    %c0_292 = arith.constant 0 : index
    %625 = vector.load %arg19[%c0_291, %c0_292] : memref<32x96xf32, #tpu.memory_space<vmem>>, vector<32x96xf32>
    %c0_293 = arith.constant 0 : index
    %c0_294 = arith.constant 0 : index
    %626 = vector.load %arg20[%c0_293, %c0_294] : memref<32x1xf32, #tpu.memory_space<vmem>>, vector<32x1xf32>
    %c0_295 = arith.constant 0 : index
    %c0_296 = arith.constant 0 : index
    %627 = vector.load %arg21[%c0_295, %c0_296] : memref<32x32xf32, #tpu.memory_space<vmem>>, vector<32x32xf32>
    %c0_297 = arith.constant 0 : index
    %c0_298 = arith.constant 0 : index
    %628 = vector.load %arg22[%c0_297, %c0_298] : memref<32x1xf32, #tpu.memory_space<vmem>>, vector<32x1xf32>
    %cst_299 = arith.constant 0.000000e+00 : f32
    %629 = vector.broadcast %cst_299 : f32 to vector<32x8xf32>
    %630 = arith.maximumf %624, %629 : vector<32x8xf32>
    %631 = tpu.iota {dimensions = array<i32: 0>} : vector<8x8xi32>
    %632 = tpu.iota {dimensions = array<i32: 1>} : vector<8x8xi32>
    %c0_i32_300 = arith.constant 0 : i32
    %633 = vector.broadcast %c0_i32_300 : i32 to vector<8x8xi32>
    %c4_i32_301 = arith.constant 4 : i32
    %634 = vector.broadcast %c4_i32_301 : i32 to vector<8x8xi32>
    %635 = arith.cmpi sge, %632, %634 : vector<8x8xi32>
    %c1_i32_302 = arith.constant 1 : i32
    %c0_i32_303 = arith.constant 0 : i32
    %636 = vector.broadcast %c1_i32_302 : i32 to vector<8x8xi32>
    %637 = vector.broadcast %c0_i32_303 : i32 to vector<8x8xi32>
    %638 = arith.select %635, %636, %637 : vector<8x8xi1>, vector<8x8xi32>
    %639 = arith.addi %633, %638 : vector<8x8xi32>
    %c4_i32_304 = arith.constant 4 : i32
    %640 = vector.broadcast %c4_i32_304 : i32 to vector<8x8xi32>
    %641 = arith.muli %639, %640 : vector<8x8xi32>
    %642 = arith.subi %632, %641 : vector<8x8xi32>
    %c4_i32_305 = arith.constant 4 : i32
    %643 = vector.broadcast %c4_i32_305 : i32 to vector<8x8xi32>
    %644 = arith.muli %639, %643 : vector<8x8xi32>
    %645 = arith.subi %631, %644 : vector<8x8xi32>
    %c1_i32_306 = arith.constant 1 : i32
    %646 = vector.broadcast %c1_i32_306 : i32 to vector<8x8xi32>
    %647 = arith.muli %646, %642 : vector<8x8xi32>
    %c-3_i32_307 = arith.constant -3 : i32
    %648 = vector.broadcast %c-3_i32_307 : i32 to vector<8x8xi32>
    %649 = arith.addi %647, %648 : vector<8x8xi32>
    %c1_i32_308 = arith.constant 1 : i32
    %650 = vector.broadcast %c1_i32_308 : i32 to vector<8x8xi32>
    %651 = arith.muli %650, %645 : vector<8x8xi32>
    %652 = arith.cmpi sle, %651, %649 : vector<8x8xi32>
    %c1_i32_309 = arith.constant 1 : i32
    %653 = vector.broadcast %c1_i32_309 : i32 to vector<8x8xi32>
    %654 = arith.muli %653, %645 : vector<8x8xi32>
    %c1_i32_310 = arith.constant 1 : i32
    %655 = vector.broadcast %c1_i32_310 : i32 to vector<8x8xi32>
    %656 = arith.addi %654, %655 : vector<8x8xi32>
    %657 = arith.cmpi slt, %649, %656 : vector<8x8xi32>
    %658 = arith.andi %652, %657 : vector<8x8xi1>
    %c0_i32_311 = arith.constant 0 : i32
    %659 = vector.broadcast %c0_i32_311 : i32 to vector<8x8xi32>
    %660 = arith.cmpi sge, %649, %659 : vector<8x8xi32>
    %661 = arith.andi %658, %660 : vector<8x8xi1>
    %c4_i32_312 = arith.constant 4 : i32
    %662 = vector.broadcast %c4_i32_312 : i32 to vector<8x8xi32>
    %663 = arith.cmpi slt, %649, %662 : vector<8x8xi32>
    %664 = arith.andi %661, %663 : vector<8x8xi1>
    %cst_313 = arith.constant 1.000000e+00 : f32
    %cst_314 = arith.constant 0.000000e+00 : f32
    %665 = vector.broadcast %cst_313 : f32 to vector<8x8xf32>
    %666 = vector.broadcast %cst_314 : f32 to vector<8x8xf32>
    %667 = arith.select %664, %665, %666 : vector<8x8xi1>, vector<8x8xf32>
    %cst_315 = arith.constant dense<0.000000e+00> : vector<32x8xf32>
    %668 = tpu.matmul %630, %667, %cst_315 {dimension_numbers = #tpu.dot_dimension_numbers<[1], [0], [0], [1], [0, 0, 1, 1], [], []>} : vector<32x8xf32>, vector<8x8xf32>, vector<32x8xf32> -> vector<32x8xf32>
    %c1_i32_316 = arith.constant 1 : i32
    %669 = vector.broadcast %c1_i32_316 : i32 to vector<8x8xi32>
    %670 = arith.muli %669, %642 : vector<8x8xi32>
    %c0_i32_317 = arith.constant 0 : i32
    %671 = vector.broadcast %c0_i32_317 : i32 to vector<8x8xi32>
    %672 = arith.addi %670, %671 : vector<8x8xi32>
    %c1_i32_318 = arith.constant 1 : i32
    %673 = vector.broadcast %c1_i32_318 : i32 to vector<8x8xi32>
    %674 = arith.muli %673, %645 : vector<8x8xi32>
    %675 = arith.cmpi sle, %674, %672 : vector<8x8xi32>
    %c1_i32_319 = arith.constant 1 : i32
    %676 = vector.broadcast %c1_i32_319 : i32 to vector<8x8xi32>
    %677 = arith.muli %676, %645 : vector<8x8xi32>
    %c1_i32_320 = arith.constant 1 : i32
    %678 = vector.broadcast %c1_i32_320 : i32 to vector<8x8xi32>
    %679 = arith.addi %677, %678 : vector<8x8xi32>
    %680 = arith.cmpi slt, %672, %679 : vector<8x8xi32>
    %681 = arith.andi %675, %680 : vector<8x8xi1>
    %c0_i32_321 = arith.constant 0 : i32
    %682 = vector.broadcast %c0_i32_321 : i32 to vector<8x8xi32>
    %683 = arith.cmpi sge, %672, %682 : vector<8x8xi32>
    %684 = arith.andi %681, %683 : vector<8x8xi1>
    %c4_i32_322 = arith.constant 4 : i32
    %685 = vector.broadcast %c4_i32_322 : i32 to vector<8x8xi32>
    %686 = arith.cmpi slt, %672, %685 : vector<8x8xi32>
    %687 = arith.andi %684, %686 : vector<8x8xi1>
    %cst_323 = arith.constant 1.000000e+00 : f32
    %cst_324 = arith.constant 0.000000e+00 : f32
    %688 = vector.broadcast %cst_323 : f32 to vector<8x8xf32>
    %689 = vector.broadcast %cst_324 : f32 to vector<8x8xf32>
    %690 = arith.select %687, %688, %689 : vector<8x8xi1>, vector<8x8xf32>
    %cst_325 = arith.constant dense<0.000000e+00> : vector<32x8xf32>
    %691 = tpu.matmul %630, %690, %cst_325 {dimension_numbers = #tpu.dot_dimension_numbers<[1], [0], [0], [1], [0, 0, 1, 1], [], []>} : vector<32x8xf32>, vector<8x8xf32>, vector<32x8xf32> -> vector<32x8xf32>
    %c1_i32_326 = arith.constant 1 : i32
    %692 = vector.broadcast %c1_i32_326 : i32 to vector<8x8xi32>
    %693 = arith.muli %692, %642 : vector<8x8xi32>
    %c3_i32_327 = arith.constant 3 : i32
    %694 = vector.broadcast %c3_i32_327 : i32 to vector<8x8xi32>
    %695 = arith.addi %693, %694 : vector<8x8xi32>
    %c1_i32_328 = arith.constant 1 : i32
    %696 = vector.broadcast %c1_i32_328 : i32 to vector<8x8xi32>
    %697 = arith.muli %696, %645 : vector<8x8xi32>
    %698 = arith.cmpi sle, %697, %695 : vector<8x8xi32>
    %c1_i32_329 = arith.constant 1 : i32
    %699 = vector.broadcast %c1_i32_329 : i32 to vector<8x8xi32>
    %700 = arith.muli %699, %645 : vector<8x8xi32>
    %c1_i32_330 = arith.constant 1 : i32
    %701 = vector.broadcast %c1_i32_330 : i32 to vector<8x8xi32>
    %702 = arith.addi %700, %701 : vector<8x8xi32>
    %703 = arith.cmpi slt, %695, %702 : vector<8x8xi32>
    %704 = arith.andi %698, %703 : vector<8x8xi1>
    %c0_i32_331 = arith.constant 0 : i32
    %705 = vector.broadcast %c0_i32_331 : i32 to vector<8x8xi32>
    %706 = arith.cmpi sge, %695, %705 : vector<8x8xi32>
    %707 = arith.andi %704, %706 : vector<8x8xi1>
    %c4_i32_332 = arith.constant 4 : i32
    %708 = vector.broadcast %c4_i32_332 : i32 to vector<8x8xi32>
    %709 = arith.cmpi slt, %695, %708 : vector<8x8xi32>
    %710 = arith.andi %707, %709 : vector<8x8xi1>
    %cst_333 = arith.constant 1.000000e+00 : f32
    %cst_334 = arith.constant 0.000000e+00 : f32
    %711 = vector.broadcast %cst_333 : f32 to vector<8x8xf32>
    %712 = vector.broadcast %cst_334 : f32 to vector<8x8xf32>
    %713 = arith.select %710, %711, %712 : vector<8x8xi1>, vector<8x8xf32>
    %cst_335 = arith.constant dense<0.000000e+00> : vector<32x8xf32>
    %714 = tpu.matmul %630, %713, %cst_335 {dimension_numbers = #tpu.dot_dimension_numbers<[1], [0], [0], [1], [0, 0, 1, 1], [], []>} : vector<32x8xf32>, vector<8x8xf32>, vector<32x8xf32> -> vector<32x8xf32>
    %715 = tpu.concatenate %668, %691, %714 in 0 : vector<32x8xf32>, vector<32x8xf32>, vector<32x8xf32> -> vector<96x8xf32>
    %cst_336 = arith.constant dense<0.000000e+00> : vector<32x8xf32>
    %716 = tpu.matmul %625, %715, %cst_336 {dimension_numbers = #tpu.dot_dimension_numbers<[1], [0], [0], [1], [0, 0, 1, 1], [], []>} : vector<32x96xf32>, vector<96x8xf32>, vector<32x8xf32> -> vector<32x8xf32>
    %717 = vector.broadcast %626 : vector<32x1xf32> to vector<32x8xf32>
    %718 = arith.addf %716, %717 : vector<32x8xf32>
    %cst_337 = arith.constant 0.000000e+00 : f32
    %719 = vector.broadcast %cst_337 : f32 to vector<32x8xf32>
    %720 = arith.maximumf %718, %719 : vector<32x8xf32>
    %cst_338 = arith.constant dense<0.000000e+00> : vector<32x8xf32>
    %721 = tpu.matmul %627, %720, %cst_338 {dimension_numbers = #tpu.dot_dimension_numbers<[1], [0], [0], [1], [0, 0, 1, 1], [], []>} : vector<32x32xf32>, vector<32x8xf32>, vector<32x8xf32> -> vector<32x8xf32>
    %722 = vector.broadcast %628 : vector<32x1xf32> to vector<32x8xf32>
    %723 = arith.addf %721, %722 : vector<32x8xf32>
    %724 = arith.addf %624, %723 : vector<32x8xf32>
    %c0_339 = arith.constant 0 : index
    %c0_340 = arith.constant 0 : index
    %725 = vector.load %arg23[%c0_339, %c0_340] : memref<32x96xf32, #tpu.memory_space<vmem>>, vector<32x96xf32>
    %c0_341 = arith.constant 0 : index
    %c0_342 = arith.constant 0 : index
    %726 = vector.load %arg24[%c0_341, %c0_342] : memref<32x1xf32, #tpu.memory_space<vmem>>, vector<32x1xf32>
    %727 = tpu.iota {dimensions = array<i32: 0>} : vector<8x8xi32>
    %728 = tpu.iota {dimensions = array<i32: 1>} : vector<8x8xi32>
    %c0_i32_343 = arith.constant 0 : i32
    %729 = vector.broadcast %c0_i32_343 : i32 to vector<8x8xi32>
    %c4_i32_344 = arith.constant 4 : i32
    %730 = vector.broadcast %c4_i32_344 : i32 to vector<8x8xi32>
    %731 = arith.cmpi sge, %728, %730 : vector<8x8xi32>
    %c1_i32_345 = arith.constant 1 : i32
    %c0_i32_346 = arith.constant 0 : i32
    %732 = vector.broadcast %c1_i32_345 : i32 to vector<8x8xi32>
    %733 = vector.broadcast %c0_i32_346 : i32 to vector<8x8xi32>
    %734 = arith.select %731, %732, %733 : vector<8x8xi1>, vector<8x8xi32>
    %735 = arith.addi %729, %734 : vector<8x8xi32>
    %c4_i32_347 = arith.constant 4 : i32
    %736 = vector.broadcast %c4_i32_347 : i32 to vector<8x8xi32>
    %737 = arith.muli %735, %736 : vector<8x8xi32>
    %738 = arith.subi %728, %737 : vector<8x8xi32>
    %c4_i32_348 = arith.constant 4 : i32
    %739 = vector.broadcast %c4_i32_348 : i32 to vector<8x8xi32>
    %740 = arith.muli %735, %739 : vector<8x8xi32>
    %741 = arith.subi %727, %740 : vector<8x8xi32>
    %c1_i32_349 = arith.constant 1 : i32
    %742 = vector.broadcast %c1_i32_349 : i32 to vector<8x8xi32>
    %743 = arith.muli %742, %738 : vector<8x8xi32>
    %c-1_i32_350 = arith.constant -1 : i32
    %744 = vector.broadcast %c-1_i32_350 : i32 to vector<8x8xi32>
    %745 = arith.addi %743, %744 : vector<8x8xi32>
    %c1_i32_351 = arith.constant 1 : i32
    %746 = vector.broadcast %c1_i32_351 : i32 to vector<8x8xi32>
    %747 = arith.muli %746, %741 : vector<8x8xi32>
    %748 = arith.cmpi sle, %747, %745 : vector<8x8xi32>
    %c1_i32_352 = arith.constant 1 : i32
    %749 = vector.broadcast %c1_i32_352 : i32 to vector<8x8xi32>
    %750 = arith.muli %749, %741 : vector<8x8xi32>
    %c1_i32_353 = arith.constant 1 : i32
    %751 = vector.broadcast %c1_i32_353 : i32 to vector<8x8xi32>
    %752 = arith.addi %750, %751 : vector<8x8xi32>
    %753 = arith.cmpi slt, %745, %752 : vector<8x8xi32>
    %754 = arith.andi %748, %753 : vector<8x8xi1>
    %c0_i32_354 = arith.constant 0 : i32
    %755 = vector.broadcast %c0_i32_354 : i32 to vector<8x8xi32>
    %756 = arith.cmpi sge, %745, %755 : vector<8x8xi32>
    %757 = arith.andi %754, %756 : vector<8x8xi1>
    %c4_i32_355 = arith.constant 4 : i32
    %758 = vector.broadcast %c4_i32_355 : i32 to vector<8x8xi32>
    %759 = arith.cmpi slt, %745, %758 : vector<8x8xi32>
    %760 = arith.andi %757, %759 : vector<8x8xi1>
    %cst_356 = arith.constant 1.000000e+00 : f32
    %cst_357 = arith.constant 0.000000e+00 : f32
    %761 = vector.broadcast %cst_356 : f32 to vector<8x8xf32>
    %762 = vector.broadcast %cst_357 : f32 to vector<8x8xf32>
    %763 = arith.select %760, %761, %762 : vector<8x8xi1>, vector<8x8xf32>
    %cst_358 = arith.constant dense<0.000000e+00> : vector<32x8xf32>
    %764 = tpu.matmul %724, %763, %cst_358 {dimension_numbers = #tpu.dot_dimension_numbers<[1], [0], [0], [1], [0, 0, 1, 1], [], []>} : vector<32x8xf32>, vector<8x8xf32>, vector<32x8xf32> -> vector<32x8xf32>
    %c1_i32_359 = arith.constant 1 : i32
    %765 = vector.broadcast %c1_i32_359 : i32 to vector<8x8xi32>
    %766 = arith.muli %765, %738 : vector<8x8xi32>
    %c0_i32_360 = arith.constant 0 : i32
    %767 = vector.broadcast %c0_i32_360 : i32 to vector<8x8xi32>
    %768 = arith.addi %766, %767 : vector<8x8xi32>
    %c1_i32_361 = arith.constant 1 : i32
    %769 = vector.broadcast %c1_i32_361 : i32 to vector<8x8xi32>
    %770 = arith.muli %769, %741 : vector<8x8xi32>
    %771 = arith.cmpi sle, %770, %768 : vector<8x8xi32>
    %c1_i32_362 = arith.constant 1 : i32
    %772 = vector.broadcast %c1_i32_362 : i32 to vector<8x8xi32>
    %773 = arith.muli %772, %741 : vector<8x8xi32>
    %c1_i32_363 = arith.constant 1 : i32
    %774 = vector.broadcast %c1_i32_363 : i32 to vector<8x8xi32>
    %775 = arith.addi %773, %774 : vector<8x8xi32>
    %776 = arith.cmpi slt, %768, %775 : vector<8x8xi32>
    %777 = arith.andi %771, %776 : vector<8x8xi1>
    %c0_i32_364 = arith.constant 0 : i32
    %778 = vector.broadcast %c0_i32_364 : i32 to vector<8x8xi32>
    %779 = arith.cmpi sge, %768, %778 : vector<8x8xi32>
    %780 = arith.andi %777, %779 : vector<8x8xi1>
    %c4_i32_365 = arith.constant 4 : i32
    %781 = vector.broadcast %c4_i32_365 : i32 to vector<8x8xi32>
    %782 = arith.cmpi slt, %768, %781 : vector<8x8xi32>
    %783 = arith.andi %780, %782 : vector<8x8xi1>
    %cst_366 = arith.constant 1.000000e+00 : f32
    %cst_367 = arith.constant 0.000000e+00 : f32
    %784 = vector.broadcast %cst_366 : f32 to vector<8x8xf32>
    %785 = vector.broadcast %cst_367 : f32 to vector<8x8xf32>
    %786 = arith.select %783, %784, %785 : vector<8x8xi1>, vector<8x8xf32>
    %cst_368 = arith.constant dense<0.000000e+00> : vector<32x8xf32>
    %787 = tpu.matmul %724, %786, %cst_368 {dimension_numbers = #tpu.dot_dimension_numbers<[1], [0], [0], [1], [0, 0, 1, 1], [], []>} : vector<32x8xf32>, vector<8x8xf32>, vector<32x8xf32> -> vector<32x8xf32>
    %c1_i32_369 = arith.constant 1 : i32
    %788 = vector.broadcast %c1_i32_369 : i32 to vector<8x8xi32>
    %789 = arith.muli %788, %738 : vector<8x8xi32>
    %c1_i32_370 = arith.constant 1 : i32
    %790 = vector.broadcast %c1_i32_370 : i32 to vector<8x8xi32>
    %791 = arith.addi %789, %790 : vector<8x8xi32>
    %c1_i32_371 = arith.constant 1 : i32
    %792 = vector.broadcast %c1_i32_371 : i32 to vector<8x8xi32>
    %793 = arith.muli %792, %741 : vector<8x8xi32>
    %794 = arith.cmpi sle, %793, %791 : vector<8x8xi32>
    %c1_i32_372 = arith.constant 1 : i32
    %795 = vector.broadcast %c1_i32_372 : i32 to vector<8x8xi32>
    %796 = arith.muli %795, %741 : vector<8x8xi32>
    %c1_i32_373 = arith.constant 1 : i32
    %797 = vector.broadcast %c1_i32_373 : i32 to vector<8x8xi32>
    %798 = arith.addi %796, %797 : vector<8x8xi32>
    %799 = arith.cmpi slt, %791, %798 : vector<8x8xi32>
    %800 = arith.andi %794, %799 : vector<8x8xi1>
    %c0_i32_374 = arith.constant 0 : i32
    %801 = vector.broadcast %c0_i32_374 : i32 to vector<8x8xi32>
    %802 = arith.cmpi sge, %791, %801 : vector<8x8xi32>
    %803 = arith.andi %800, %802 : vector<8x8xi1>
    %c4_i32_375 = arith.constant 4 : i32
    %804 = vector.broadcast %c4_i32_375 : i32 to vector<8x8xi32>
    %805 = arith.cmpi slt, %791, %804 : vector<8x8xi32>
    %806 = arith.andi %803, %805 : vector<8x8xi1>
    %cst_376 = arith.constant 1.000000e+00 : f32
    %cst_377 = arith.constant 0.000000e+00 : f32
    %807 = vector.broadcast %cst_376 : f32 to vector<8x8xf32>
    %808 = vector.broadcast %cst_377 : f32 to vector<8x8xf32>
    %809 = arith.select %806, %807, %808 : vector<8x8xi1>, vector<8x8xf32>
    %cst_378 = arith.constant dense<0.000000e+00> : vector<32x8xf32>
    %810 = tpu.matmul %724, %809, %cst_378 {dimension_numbers = #tpu.dot_dimension_numbers<[1], [0], [0], [1], [0, 0, 1, 1], [], []>} : vector<32x8xf32>, vector<8x8xf32>, vector<32x8xf32> -> vector<32x8xf32>
    %811 = tpu.concatenate %764, %787, %810 in 0 : vector<32x8xf32>, vector<32x8xf32>, vector<32x8xf32> -> vector<96x8xf32>
    %cst_379 = arith.constant dense<0.000000e+00> : vector<32x8xf32>
    %812 = tpu.matmul %725, %811, %cst_379 {dimension_numbers = #tpu.dot_dimension_numbers<[1], [0], [0], [1], [0, 0, 1, 1], [], []>} : vector<32x96xf32>, vector<96x8xf32>, vector<32x8xf32> -> vector<32x8xf32>
    %813 = vector.broadcast %726 : vector<32x1xf32> to vector<32x8xf32>
    %814 = arith.addf %812, %813 : vector<32x8xf32>
    %cst_380 = arith.constant 0.000000e+00 : f32
    %815 = vector.broadcast %cst_380 : f32 to vector<32x8xf32>
    %cst_381 = arith.constant 0.000000e+00 : f32
    %816 = vector.broadcast %cst_381 : f32 to vector<1x1xf32>
    %cst_382 = arith.constant 0.000000e+00 : f32
    %817 = vector.broadcast %cst_382 : f32 to vector<1x1xf32>
    %cst_383 = arith.constant dense<0.000000e+00> : vector<64x8xf32>
    %818 = tpu.matmul %0, %814, %cst_383 {dimension_numbers = #tpu.dot_dimension_numbers<[1], [0], [0], [1], [0, 0, 1, 1], [], []>} : vector<64x32xf32>, vector<32x8xf32>, vector<64x8xf32> -> vector<64x8xf32>
    %cst_384 = arith.constant 2.000000e+00 : f32
    %819 = vector.broadcast %cst_384 : f32 to vector<64x8xf32>
    %820 = arith.mulf %819, %818 : vector<64x8xf32>
    %821 = vector.broadcast %2 : vector<64x1xf32> to vector<64x8xf32>
    %822 = arith.subf %821, %820 : vector<64x8xf32>
    %cst_385 = arith.constant dense<0x7F800000> : vector<8xf32>
    %823 = vector.multi_reduction <minimumf>, %822, %cst_385 [0] : vector<64x8xf32> to vector<8xf32>
    %824 = vector.shape_cast %823 : vector<8xf32> to vector<1x8xf32>
    %825 = tpu.iota {dimensions = array<i32: 0>} : vector<64x8xi32>
    %826 = arith.sitofp %825 : vector<64x8xi32> to vector<64x8xf32>
    %827 = vector.broadcast %824 : vector<1x8xf32> to vector<64x8xf32>
    %828 = arith.cmpf ole, %822, %827 : vector<64x8xf32>
    %cst_386 = arith.constant 6.400000e+01 : f32
    %829 = vector.broadcast %cst_386 : f32 to vector<64x8xf32>
    %830 = arith.select %828, %826, %829 : vector<64x8xi1>, vector<64x8xf32>
    %cst_387 = arith.constant dense<0x7F800000> : vector<8xf32>
    %831 = vector.multi_reduction <minimumf>, %830, %cst_387 [0] : vector<64x8xf32> to vector<8xf32>
    %832 = vector.shape_cast %831 : vector<8xf32> to vector<1x8xf32>
    %833 = vector.broadcast %832 : vector<1x8xf32> to vector<64x8xf32>
    %834 = arith.cmpf oeq, %826, %833 : vector<64x8xf32>
    %cst_388 = arith.constant 1.000000e+00 : f32
    %cst_389 = arith.constant 0.000000e+00 : f32
    %835 = vector.broadcast %cst_388 : f32 to vector<64x8xf32>
    %836 = vector.broadcast %cst_389 : f32 to vector<64x8xf32>
    %837 = arith.select %834, %835, %836 : vector<64x8xi1>, vector<64x8xf32>
    %cst_390 = arith.constant dense<0.000000e+00> : vector<32x8xf32>
    %838 = tpu.matmul %1, %837, %cst_390 {dimension_numbers = #tpu.dot_dimension_numbers<[1], [0], [0], [1], [0, 0, 1, 1], [], []>} : vector<32x64xf32>, vector<64x8xf32>, vector<32x8xf32> -> vector<32x8xf32>
    %839 = arith.subf %814, %838 : vector<32x8xf32>
    %840 = arith.mulf %839, %839 : vector<32x8xf32>
    %cst_391 = arith.constant dense<0.000000e+00> : vector<8xf32>
    %841 = vector.multi_reduction <add>, %840, %cst_391 [0] : vector<32x8xf32> to vector<8xf32>
    %842 = vector.shape_cast %841 : vector<8xf32> to vector<1x8xf32>
    %cst_392 = arith.constant dense<0.000000e+00> : vector<1xf32>
    %843 = vector.multi_reduction <add>, %842, %cst_392 [1] : vector<1x8xf32> to vector<1xf32>
    %844 = vector.shape_cast %843 : vector<1xf32> to vector<1x1xf32>
    %cst_393 = arith.constant 2.560000e+02 : f32
    %845 = vector.broadcast %cst_393 : f32 to vector<1x1xf32>
    %846 = arith.divf %844, %845 : vector<1x1xf32>
    %847 = arith.addf %816, %846 : vector<1x1xf32>
    %cst_394 = arith.constant dense<0.000000e+00> : vector<64xf32>
    %848 = vector.multi_reduction <add>, %837, %cst_394 [1] : vector<64x8xf32> to vector<64xf32>
    %849 = vector.shape_cast %848 : vector<64xf32> to vector<64x1xf32>
    %cst_395 = arith.constant 8.000000e+00 : f32
    %850 = vector.broadcast %cst_395 : f32 to vector<64x1xf32>
    %851 = arith.divf %849, %850 : vector<64x1xf32>
    %cst_396 = arith.constant 1.000000e-10 : f32
    %852 = vector.broadcast %cst_396 : f32 to vector<64x1xf32>
    %853 = arith.addf %851, %852 : vector<64x1xf32>
    %854 = math.log %853 : vector<64x1xf32>
    %855 = arith.mulf %851, %854 : vector<64x1xf32>
    %cst_397 = arith.constant dense<0.000000e+00> : vector<1xf32>
    %856 = vector.multi_reduction <add>, %855, %cst_397 [0] : vector<64x1xf32> to vector<1xf32>
    %857 = vector.shape_cast %856 : vector<1xf32> to vector<1x1xf32>
    %cst_398 = arith.constant 0.000000e+00 : f32
    %858 = vector.broadcast %cst_398 : f32 to vector<1x1xf32>
    %859 = arith.subf %858, %857 : vector<1x1xf32>
    %860 = math.exp %859 : vector<1x1xf32>
    %861 = arith.addf %817, %860 : vector<1x1xf32>
    %862 = arith.addf %815, %838 : vector<32x8xf32>
    %863 = arith.subf %814, %838 : vector<32x8xf32>
    %cst_399 = arith.constant dense<0.000000e+00> : vector<64x8xf32>
    %864 = tpu.matmul %3, %863, %cst_399 {dimension_numbers = #tpu.dot_dimension_numbers<[1], [0], [0], [1], [0, 0, 1, 1], [], []>} : vector<64x32xf32>, vector<32x8xf32>, vector<64x8xf32> -> vector<64x8xf32>
    %cst_400 = arith.constant 2.000000e+00 : f32
    %865 = vector.broadcast %cst_400 : f32 to vector<64x8xf32>
    %866 = arith.mulf %865, %864 : vector<64x8xf32>
    %867 = vector.broadcast %5 : vector<64x1xf32> to vector<64x8xf32>
    %868 = arith.subf %867, %866 : vector<64x8xf32>
    %cst_401 = arith.constant dense<0x7F800000> : vector<8xf32>
    %869 = vector.multi_reduction <minimumf>, %868, %cst_401 [0] : vector<64x8xf32> to vector<8xf32>
    %870 = vector.shape_cast %869 : vector<8xf32> to vector<1x8xf32>
    %871 = tpu.iota {dimensions = array<i32: 0>} : vector<64x8xi32>
    %872 = arith.sitofp %871 : vector<64x8xi32> to vector<64x8xf32>
    %873 = vector.broadcast %870 : vector<1x8xf32> to vector<64x8xf32>
    %874 = arith.cmpf ole, %868, %873 : vector<64x8xf32>
    %cst_402 = arith.constant 6.400000e+01 : f32
    %875 = vector.broadcast %cst_402 : f32 to vector<64x8xf32>
    %876 = arith.select %874, %872, %875 : vector<64x8xi1>, vector<64x8xf32>
    %cst_403 = arith.constant dense<0x7F800000> : vector<8xf32>
    %877 = vector.multi_reduction <minimumf>, %876, %cst_403 [0] : vector<64x8xf32> to vector<8xf32>
    %878 = vector.shape_cast %877 : vector<8xf32> to vector<1x8xf32>
    %879 = vector.broadcast %878 : vector<1x8xf32> to vector<64x8xf32>
    %880 = arith.cmpf oeq, %872, %879 : vector<64x8xf32>
    %cst_404 = arith.constant 1.000000e+00 : f32
    %cst_405 = arith.constant 0.000000e+00 : f32
    %881 = vector.broadcast %cst_404 : f32 to vector<64x8xf32>
    %882 = vector.broadcast %cst_405 : f32 to vector<64x8xf32>
    %883 = arith.select %880, %881, %882 : vector<64x8xi1>, vector<64x8xf32>
    %cst_406 = arith.constant dense<0.000000e+00> : vector<32x8xf32>
    %884 = tpu.matmul %4, %883, %cst_406 {dimension_numbers = #tpu.dot_dimension_numbers<[1], [0], [0], [1], [0, 0, 1, 1], [], []>} : vector<32x64xf32>, vector<64x8xf32>, vector<32x8xf32> -> vector<32x8xf32>
    %885 = arith.subf %863, %884 : vector<32x8xf32>
    %886 = arith.mulf %885, %885 : vector<32x8xf32>
    %cst_407 = arith.constant dense<0.000000e+00> : vector<8xf32>
    %887 = vector.multi_reduction <add>, %886, %cst_407 [0] : vector<32x8xf32> to vector<8xf32>
    %888 = vector.shape_cast %887 : vector<8xf32> to vector<1x8xf32>
    %cst_408 = arith.constant dense<0.000000e+00> : vector<1xf32>
    %889 = vector.multi_reduction <add>, %888, %cst_408 [1] : vector<1x8xf32> to vector<1xf32>
    %890 = vector.shape_cast %889 : vector<1xf32> to vector<1x1xf32>
    %cst_409 = arith.constant 2.560000e+02 : f32
    %891 = vector.broadcast %cst_409 : f32 to vector<1x1xf32>
    %892 = arith.divf %890, %891 : vector<1x1xf32>
    %893 = arith.addf %847, %892 : vector<1x1xf32>
    %cst_410 = arith.constant dense<0.000000e+00> : vector<64xf32>
    %894 = vector.multi_reduction <add>, %883, %cst_410 [1] : vector<64x8xf32> to vector<64xf32>
    %895 = vector.shape_cast %894 : vector<64xf32> to vector<64x1xf32>
    %cst_411 = arith.constant 8.000000e+00 : f32
    %896 = vector.broadcast %cst_411 : f32 to vector<64x1xf32>
    %897 = arith.divf %895, %896 : vector<64x1xf32>
    %cst_412 = arith.constant 1.000000e-10 : f32
    %898 = vector.broadcast %cst_412 : f32 to vector<64x1xf32>
    %899 = arith.addf %897, %898 : vector<64x1xf32>
    %900 = math.log %899 : vector<64x1xf32>
    %901 = arith.mulf %897, %900 : vector<64x1xf32>
    %cst_413 = arith.constant dense<0.000000e+00> : vector<1xf32>
    %902 = vector.multi_reduction <add>, %901, %cst_413 [0] : vector<64x1xf32> to vector<1xf32>
    %903 = vector.shape_cast %902 : vector<1xf32> to vector<1x1xf32>
    %cst_414 = arith.constant 0.000000e+00 : f32
    %904 = vector.broadcast %cst_414 : f32 to vector<1x1xf32>
    %905 = arith.subf %904, %903 : vector<1x1xf32>
    %906 = math.exp %905 : vector<1x1xf32>
    %907 = arith.addf %861, %906 : vector<1x1xf32>
    %908 = arith.addf %862, %884 : vector<32x8xf32>
    %cst_415 = arith.constant 2.000000e+00 : f32
    %909 = vector.broadcast %cst_415 : f32 to vector<1x1xf32>
    %910 = arith.divf %907, %909 : vector<1x1xf32>
    %c0_416 = arith.constant 0 : index
    %c0_417 = arith.constant 0 : index
    %911 = vector.load %arg25[%c0_416, %c0_417] : memref<32x96xf32, #tpu.memory_space<vmem>>, vector<32x96xf32>
    %c0_418 = arith.constant 0 : index
    %c0_419 = arith.constant 0 : index
    %912 = vector.load %arg26[%c0_418, %c0_419] : memref<32x1xf32, #tpu.memory_space<vmem>>, vector<32x1xf32>
    %913 = tpu.iota {dimensions = array<i32: 0>} : vector<8x8xi32>
    %914 = tpu.iota {dimensions = array<i32: 1>} : vector<8x8xi32>
    %c0_i32_420 = arith.constant 0 : i32
    %915 = vector.broadcast %c0_i32_420 : i32 to vector<8x8xi32>
    %c4_i32_421 = arith.constant 4 : i32
    %916 = vector.broadcast %c4_i32_421 : i32 to vector<8x8xi32>
    %917 = arith.cmpi sge, %914, %916 : vector<8x8xi32>
    %c1_i32_422 = arith.constant 1 : i32
    %c0_i32_423 = arith.constant 0 : i32
    %918 = vector.broadcast %c1_i32_422 : i32 to vector<8x8xi32>
    %919 = vector.broadcast %c0_i32_423 : i32 to vector<8x8xi32>
    %920 = arith.select %917, %918, %919 : vector<8x8xi1>, vector<8x8xi32>
    %921 = arith.addi %915, %920 : vector<8x8xi32>
    %c4_i32_424 = arith.constant 4 : i32
    %922 = vector.broadcast %c4_i32_424 : i32 to vector<8x8xi32>
    %923 = arith.muli %921, %922 : vector<8x8xi32>
    %924 = arith.subi %914, %923 : vector<8x8xi32>
    %c4_i32_425 = arith.constant 4 : i32
    %925 = vector.broadcast %c4_i32_425 : i32 to vector<8x8xi32>
    %926 = arith.muli %921, %925 : vector<8x8xi32>
    %927 = arith.subi %913, %926 : vector<8x8xi32>
    %c1_i32_426 = arith.constant 1 : i32
    %928 = vector.broadcast %c1_i32_426 : i32 to vector<8x8xi32>
    %929 = arith.muli %928, %924 : vector<8x8xi32>
    %c-1_i32_427 = arith.constant -1 : i32
    %930 = vector.broadcast %c-1_i32_427 : i32 to vector<8x8xi32>
    %931 = arith.addi %929, %930 : vector<8x8xi32>
    %c1_i32_428 = arith.constant 1 : i32
    %932 = vector.broadcast %c1_i32_428 : i32 to vector<8x8xi32>
    %933 = arith.muli %932, %927 : vector<8x8xi32>
    %934 = arith.cmpi sle, %933, %931 : vector<8x8xi32>
    %c1_i32_429 = arith.constant 1 : i32
    %935 = vector.broadcast %c1_i32_429 : i32 to vector<8x8xi32>
    %936 = arith.muli %935, %927 : vector<8x8xi32>
    %c1_i32_430 = arith.constant 1 : i32
    %937 = vector.broadcast %c1_i32_430 : i32 to vector<8x8xi32>
    %938 = arith.addi %936, %937 : vector<8x8xi32>
    %939 = arith.cmpi slt, %931, %938 : vector<8x8xi32>
    %940 = arith.andi %934, %939 : vector<8x8xi1>
    %c0_i32_431 = arith.constant 0 : i32
    %941 = vector.broadcast %c0_i32_431 : i32 to vector<8x8xi32>
    %942 = arith.cmpi sge, %931, %941 : vector<8x8xi32>
    %943 = arith.andi %940, %942 : vector<8x8xi1>
    %c4_i32_432 = arith.constant 4 : i32
    %944 = vector.broadcast %c4_i32_432 : i32 to vector<8x8xi32>
    %945 = arith.cmpi slt, %931, %944 : vector<8x8xi32>
    %946 = arith.andi %943, %945 : vector<8x8xi1>
    %cst_433 = arith.constant 1.000000e+00 : f32
    %cst_434 = arith.constant 0.000000e+00 : f32
    %947 = vector.broadcast %cst_433 : f32 to vector<8x8xf32>
    %948 = vector.broadcast %cst_434 : f32 to vector<8x8xf32>
    %949 = arith.select %946, %947, %948 : vector<8x8xi1>, vector<8x8xf32>
    %cst_435 = arith.constant dense<0.000000e+00> : vector<32x8xf32>
    %950 = tpu.matmul %908, %949, %cst_435 {dimension_numbers = #tpu.dot_dimension_numbers<[1], [0], [0], [1], [0, 0, 1, 1], [], []>} : vector<32x8xf32>, vector<8x8xf32>, vector<32x8xf32> -> vector<32x8xf32>
    %c1_i32_436 = arith.constant 1 : i32
    %951 = vector.broadcast %c1_i32_436 : i32 to vector<8x8xi32>
    %952 = arith.muli %951, %924 : vector<8x8xi32>
    %c0_i32_437 = arith.constant 0 : i32
    %953 = vector.broadcast %c0_i32_437 : i32 to vector<8x8xi32>
    %954 = arith.addi %952, %953 : vector<8x8xi32>
    %c1_i32_438 = arith.constant 1 : i32
    %955 = vector.broadcast %c1_i32_438 : i32 to vector<8x8xi32>
    %956 = arith.muli %955, %927 : vector<8x8xi32>
    %957 = arith.cmpi sle, %956, %954 : vector<8x8xi32>
    %c1_i32_439 = arith.constant 1 : i32
    %958 = vector.broadcast %c1_i32_439 : i32 to vector<8x8xi32>
    %959 = arith.muli %958, %927 : vector<8x8xi32>
    %c1_i32_440 = arith.constant 1 : i32
    %960 = vector.broadcast %c1_i32_440 : i32 to vector<8x8xi32>
    %961 = arith.addi %959, %960 : vector<8x8xi32>
    %962 = arith.cmpi slt, %954, %961 : vector<8x8xi32>
    %963 = arith.andi %957, %962 : vector<8x8xi1>
    %c0_i32_441 = arith.constant 0 : i32
    %964 = vector.broadcast %c0_i32_441 : i32 to vector<8x8xi32>
    %965 = arith.cmpi sge, %954, %964 : vector<8x8xi32>
    %966 = arith.andi %963, %965 : vector<8x8xi1>
    %c4_i32_442 = arith.constant 4 : i32
    %967 = vector.broadcast %c4_i32_442 : i32 to vector<8x8xi32>
    %968 = arith.cmpi slt, %954, %967 : vector<8x8xi32>
    %969 = arith.andi %966, %968 : vector<8x8xi1>
    %cst_443 = arith.constant 1.000000e+00 : f32
    %cst_444 = arith.constant 0.000000e+00 : f32
    %970 = vector.broadcast %cst_443 : f32 to vector<8x8xf32>
    %971 = vector.broadcast %cst_444 : f32 to vector<8x8xf32>
    %972 = arith.select %969, %970, %971 : vector<8x8xi1>, vector<8x8xf32>
    %cst_445 = arith.constant dense<0.000000e+00> : vector<32x8xf32>
    %973 = tpu.matmul %908, %972, %cst_445 {dimension_numbers = #tpu.dot_dimension_numbers<[1], [0], [0], [1], [0, 0, 1, 1], [], []>} : vector<32x8xf32>, vector<8x8xf32>, vector<32x8xf32> -> vector<32x8xf32>
    %c1_i32_446 = arith.constant 1 : i32
    %974 = vector.broadcast %c1_i32_446 : i32 to vector<8x8xi32>
    %975 = arith.muli %974, %924 : vector<8x8xi32>
    %c1_i32_447 = arith.constant 1 : i32
    %976 = vector.broadcast %c1_i32_447 : i32 to vector<8x8xi32>
    %977 = arith.addi %975, %976 : vector<8x8xi32>
    %c1_i32_448 = arith.constant 1 : i32
    %978 = vector.broadcast %c1_i32_448 : i32 to vector<8x8xi32>
    %979 = arith.muli %978, %927 : vector<8x8xi32>
    %980 = arith.cmpi sle, %979, %977 : vector<8x8xi32>
    %c1_i32_449 = arith.constant 1 : i32
    %981 = vector.broadcast %c1_i32_449 : i32 to vector<8x8xi32>
    %982 = arith.muli %981, %927 : vector<8x8xi32>
    %c1_i32_450 = arith.constant 1 : i32
    %983 = vector.broadcast %c1_i32_450 : i32 to vector<8x8xi32>
    %984 = arith.addi %982, %983 : vector<8x8xi32>
    %985 = arith.cmpi slt, %977, %984 : vector<8x8xi32>
    %986 = arith.andi %980, %985 : vector<8x8xi1>
    %c0_i32_451 = arith.constant 0 : i32
    %987 = vector.broadcast %c0_i32_451 : i32 to vector<8x8xi32>
    %988 = arith.cmpi sge, %977, %987 : vector<8x8xi32>
    %989 = arith.andi %986, %988 : vector<8x8xi1>
    %c4_i32_452 = arith.constant 4 : i32
    %990 = vector.broadcast %c4_i32_452 : i32 to vector<8x8xi32>
    %991 = arith.cmpi slt, %977, %990 : vector<8x8xi32>
    %992 = arith.andi %989, %991 : vector<8x8xi1>
    %cst_453 = arith.constant 1.000000e+00 : f32
    %cst_454 = arith.constant 0.000000e+00 : f32
    %993 = vector.broadcast %cst_453 : f32 to vector<8x8xf32>
    %994 = vector.broadcast %cst_454 : f32 to vector<8x8xf32>
    %995 = arith.select %992, %993, %994 : vector<8x8xi1>, vector<8x8xf32>
    %cst_455 = arith.constant dense<0.000000e+00> : vector<32x8xf32>
    %996 = tpu.matmul %908, %995, %cst_455 {dimension_numbers = #tpu.dot_dimension_numbers<[1], [0], [0], [1], [0, 0, 1, 1], [], []>} : vector<32x8xf32>, vector<8x8xf32>, vector<32x8xf32> -> vector<32x8xf32>
    %997 = tpu.concatenate %950, %973, %996 in 0 : vector<32x8xf32>, vector<32x8xf32>, vector<32x8xf32> -> vector<96x8xf32>
    %cst_456 = arith.constant dense<0.000000e+00> : vector<32x8xf32>
    %998 = tpu.matmul %911, %997, %cst_456 {dimension_numbers = #tpu.dot_dimension_numbers<[1], [0], [0], [1], [0, 0, 1, 1], [], []>} : vector<32x96xf32>, vector<96x8xf32>, vector<32x8xf32> -> vector<32x8xf32>
    %999 = vector.broadcast %912 : vector<32x1xf32> to vector<32x8xf32>
    %1000 = arith.addf %998, %999 : vector<32x8xf32>
    %cst_457 = arith.constant 0.000000e+00 : f32
    %1001 = vector.broadcast %cst_457 : f32 to vector<32x8xf32>
    %1002 = arith.maximumf %1000, %1001 : vector<32x8xf32>
    %c0_458 = arith.constant 0 : index
    %c0_459 = arith.constant 0 : index
    %1003 = vector.load %arg27[%c0_458, %c0_459] : memref<32x96xf32, #tpu.memory_space<vmem>>, vector<32x96xf32>
    %c0_460 = arith.constant 0 : index
    %c0_461 = arith.constant 0 : index
    %1004 = vector.load %arg28[%c0_460, %c0_461] : memref<32x1xf32, #tpu.memory_space<vmem>>, vector<32x1xf32>
    %c0_462 = arith.constant 0 : index
    %c0_463 = arith.constant 0 : index
    %1005 = vector.load %arg29[%c0_462, %c0_463] : memref<32x32xf32, #tpu.memory_space<vmem>>, vector<32x32xf32>
    %c0_464 = arith.constant 0 : index
    %c0_465 = arith.constant 0 : index
    %1006 = vector.load %arg30[%c0_464, %c0_465] : memref<32x1xf32, #tpu.memory_space<vmem>>, vector<32x1xf32>
    %cst_466 = arith.constant 0.000000e+00 : f32
    %1007 = vector.broadcast %cst_466 : f32 to vector<32x8xf32>
    %1008 = arith.maximumf %1002, %1007 : vector<32x8xf32>
    %1009 = tpu.iota {dimensions = array<i32: 0>} : vector<8x8xi32>
    %1010 = tpu.iota {dimensions = array<i32: 1>} : vector<8x8xi32>
    %c0_i32_467 = arith.constant 0 : i32
    %1011 = vector.broadcast %c0_i32_467 : i32 to vector<8x8xi32>
    %c4_i32_468 = arith.constant 4 : i32
    %1012 = vector.broadcast %c4_i32_468 : i32 to vector<8x8xi32>
    %1013 = arith.cmpi sge, %1010, %1012 : vector<8x8xi32>
    %c1_i32_469 = arith.constant 1 : i32
    %c0_i32_470 = arith.constant 0 : i32
    %1014 = vector.broadcast %c1_i32_469 : i32 to vector<8x8xi32>
    %1015 = vector.broadcast %c0_i32_470 : i32 to vector<8x8xi32>
    %1016 = arith.select %1013, %1014, %1015 : vector<8x8xi1>, vector<8x8xi32>
    %1017 = arith.addi %1011, %1016 : vector<8x8xi32>
    %c4_i32_471 = arith.constant 4 : i32
    %1018 = vector.broadcast %c4_i32_471 : i32 to vector<8x8xi32>
    %1019 = arith.muli %1017, %1018 : vector<8x8xi32>
    %1020 = arith.subi %1010, %1019 : vector<8x8xi32>
    %c4_i32_472 = arith.constant 4 : i32
    %1021 = vector.broadcast %c4_i32_472 : i32 to vector<8x8xi32>
    %1022 = arith.muli %1017, %1021 : vector<8x8xi32>
    %1023 = arith.subi %1009, %1022 : vector<8x8xi32>
    %c1_i32_473 = arith.constant 1 : i32
    %1024 = vector.broadcast %c1_i32_473 : i32 to vector<8x8xi32>
    %1025 = arith.muli %1024, %1020 : vector<8x8xi32>
    %c-3_i32_474 = arith.constant -3 : i32
    %1026 = vector.broadcast %c-3_i32_474 : i32 to vector<8x8xi32>
    %1027 = arith.addi %1025, %1026 : vector<8x8xi32>
    %c1_i32_475 = arith.constant 1 : i32
    %1028 = vector.broadcast %c1_i32_475 : i32 to vector<8x8xi32>
    %1029 = arith.muli %1028, %1023 : vector<8x8xi32>
    %1030 = arith.cmpi sle, %1029, %1027 : vector<8x8xi32>
    %c1_i32_476 = arith.constant 1 : i32
    %1031 = vector.broadcast %c1_i32_476 : i32 to vector<8x8xi32>
    %1032 = arith.muli %1031, %1023 : vector<8x8xi32>
    %c1_i32_477 = arith.constant 1 : i32
    %1033 = vector.broadcast %c1_i32_477 : i32 to vector<8x8xi32>
    %1034 = arith.addi %1032, %1033 : vector<8x8xi32>
    %1035 = arith.cmpi slt, %1027, %1034 : vector<8x8xi32>
    %1036 = arith.andi %1030, %1035 : vector<8x8xi1>
    %c0_i32_478 = arith.constant 0 : i32
    %1037 = vector.broadcast %c0_i32_478 : i32 to vector<8x8xi32>
    %1038 = arith.cmpi sge, %1027, %1037 : vector<8x8xi32>
    %1039 = arith.andi %1036, %1038 : vector<8x8xi1>
    %c4_i32_479 = arith.constant 4 : i32
    %1040 = vector.broadcast %c4_i32_479 : i32 to vector<8x8xi32>
    %1041 = arith.cmpi slt, %1027, %1040 : vector<8x8xi32>
    %1042 = arith.andi %1039, %1041 : vector<8x8xi1>
    %cst_480 = arith.constant 1.000000e+00 : f32
    %cst_481 = arith.constant 0.000000e+00 : f32
    %1043 = vector.broadcast %cst_480 : f32 to vector<8x8xf32>
    %1044 = vector.broadcast %cst_481 : f32 to vector<8x8xf32>
    %1045 = arith.select %1042, %1043, %1044 : vector<8x8xi1>, vector<8x8xf32>
    %cst_482 = arith.constant dense<0.000000e+00> : vector<32x8xf32>
    %1046 = tpu.matmul %1008, %1045, %cst_482 {dimension_numbers = #tpu.dot_dimension_numbers<[1], [0], [0], [1], [0, 0, 1, 1], [], []>} : vector<32x8xf32>, vector<8x8xf32>, vector<32x8xf32> -> vector<32x8xf32>
    %c1_i32_483 = arith.constant 1 : i32
    %1047 = vector.broadcast %c1_i32_483 : i32 to vector<8x8xi32>
    %1048 = arith.muli %1047, %1020 : vector<8x8xi32>
    %c0_i32_484 = arith.constant 0 : i32
    %1049 = vector.broadcast %c0_i32_484 : i32 to vector<8x8xi32>
    %1050 = arith.addi %1048, %1049 : vector<8x8xi32>
    %c1_i32_485 = arith.constant 1 : i32
    %1051 = vector.broadcast %c1_i32_485 : i32 to vector<8x8xi32>
    %1052 = arith.muli %1051, %1023 : vector<8x8xi32>
    %1053 = arith.cmpi sle, %1052, %1050 : vector<8x8xi32>
    %c1_i32_486 = arith.constant 1 : i32
    %1054 = vector.broadcast %c1_i32_486 : i32 to vector<8x8xi32>
    %1055 = arith.muli %1054, %1023 : vector<8x8xi32>
    %c1_i32_487 = arith.constant 1 : i32
    %1056 = vector.broadcast %c1_i32_487 : i32 to vector<8x8xi32>
    %1057 = arith.addi %1055, %1056 : vector<8x8xi32>
    %1058 = arith.cmpi slt, %1050, %1057 : vector<8x8xi32>
    %1059 = arith.andi %1053, %1058 : vector<8x8xi1>
    %c0_i32_488 = arith.constant 0 : i32
    %1060 = vector.broadcast %c0_i32_488 : i32 to vector<8x8xi32>
    %1061 = arith.cmpi sge, %1050, %1060 : vector<8x8xi32>
    %1062 = arith.andi %1059, %1061 : vector<8x8xi1>
    %c4_i32_489 = arith.constant 4 : i32
    %1063 = vector.broadcast %c4_i32_489 : i32 to vector<8x8xi32>
    %1064 = arith.cmpi slt, %1050, %1063 : vector<8x8xi32>
    %1065 = arith.andi %1062, %1064 : vector<8x8xi1>
    %cst_490 = arith.constant 1.000000e+00 : f32
    %cst_491 = arith.constant 0.000000e+00 : f32
    %1066 = vector.broadcast %cst_490 : f32 to vector<8x8xf32>
    %1067 = vector.broadcast %cst_491 : f32 to vector<8x8xf32>
    %1068 = arith.select %1065, %1066, %1067 : vector<8x8xi1>, vector<8x8xf32>
    %cst_492 = arith.constant dense<0.000000e+00> : vector<32x8xf32>
    %1069 = tpu.matmul %1008, %1068, %cst_492 {dimension_numbers = #tpu.dot_dimension_numbers<[1], [0], [0], [1], [0, 0, 1, 1], [], []>} : vector<32x8xf32>, vector<8x8xf32>, vector<32x8xf32> -> vector<32x8xf32>
    %c1_i32_493 = arith.constant 1 : i32
    %1070 = vector.broadcast %c1_i32_493 : i32 to vector<8x8xi32>
    %1071 = arith.muli %1070, %1020 : vector<8x8xi32>
    %c3_i32_494 = arith.constant 3 : i32
    %1072 = vector.broadcast %c3_i32_494 : i32 to vector<8x8xi32>
    %1073 = arith.addi %1071, %1072 : vector<8x8xi32>
    %c1_i32_495 = arith.constant 1 : i32
    %1074 = vector.broadcast %c1_i32_495 : i32 to vector<8x8xi32>
    %1075 = arith.muli %1074, %1023 : vector<8x8xi32>
    %1076 = arith.cmpi sle, %1075, %1073 : vector<8x8xi32>
    %c1_i32_496 = arith.constant 1 : i32
    %1077 = vector.broadcast %c1_i32_496 : i32 to vector<8x8xi32>
    %1078 = arith.muli %1077, %1023 : vector<8x8xi32>
    %c1_i32_497 = arith.constant 1 : i32
    %1079 = vector.broadcast %c1_i32_497 : i32 to vector<8x8xi32>
    %1080 = arith.addi %1078, %1079 : vector<8x8xi32>
    %1081 = arith.cmpi slt, %1073, %1080 : vector<8x8xi32>
    %1082 = arith.andi %1076, %1081 : vector<8x8xi1>
    %c0_i32_498 = arith.constant 0 : i32
    %1083 = vector.broadcast %c0_i32_498 : i32 to vector<8x8xi32>
    %1084 = arith.cmpi sge, %1073, %1083 : vector<8x8xi32>
    %1085 = arith.andi %1082, %1084 : vector<8x8xi1>
    %c4_i32_499 = arith.constant 4 : i32
    %1086 = vector.broadcast %c4_i32_499 : i32 to vector<8x8xi32>
    %1087 = arith.cmpi slt, %1073, %1086 : vector<8x8xi32>
    %1088 = arith.andi %1085, %1087 : vector<8x8xi1>
    %cst_500 = arith.constant 1.000000e+00 : f32
    %cst_501 = arith.constant 0.000000e+00 : f32
    %1089 = vector.broadcast %cst_500 : f32 to vector<8x8xf32>
    %1090 = vector.broadcast %cst_501 : f32 to vector<8x8xf32>
    %1091 = arith.select %1088, %1089, %1090 : vector<8x8xi1>, vector<8x8xf32>
    %cst_502 = arith.constant dense<0.000000e+00> : vector<32x8xf32>
    %1092 = tpu.matmul %1008, %1091, %cst_502 {dimension_numbers = #tpu.dot_dimension_numbers<[1], [0], [0], [1], [0, 0, 1, 1], [], []>} : vector<32x8xf32>, vector<8x8xf32>, vector<32x8xf32> -> vector<32x8xf32>
    %1093 = tpu.concatenate %1046, %1069, %1092 in 0 : vector<32x8xf32>, vector<32x8xf32>, vector<32x8xf32> -> vector<96x8xf32>
    %cst_503 = arith.constant dense<0.000000e+00> : vector<32x8xf32>
    %1094 = tpu.matmul %1003, %1093, %cst_503 {dimension_numbers = #tpu.dot_dimension_numbers<[1], [0], [0], [1], [0, 0, 1, 1], [], []>} : vector<32x96xf32>, vector<96x8xf32>, vector<32x8xf32> -> vector<32x8xf32>
    %1095 = vector.broadcast %1004 : vector<32x1xf32> to vector<32x8xf32>
    %1096 = arith.addf %1094, %1095 : vector<32x8xf32>
    %cst_504 = arith.constant 0.000000e+00 : f32
    %1097 = vector.broadcast %cst_504 : f32 to vector<32x8xf32>
    %1098 = arith.maximumf %1096, %1097 : vector<32x8xf32>
    %cst_505 = arith.constant dense<0.000000e+00> : vector<32x8xf32>
    %1099 = tpu.matmul %1005, %1098, %cst_505 {dimension_numbers = #tpu.dot_dimension_numbers<[1], [0], [0], [1], [0, 0, 1, 1], [], []>} : vector<32x32xf32>, vector<32x8xf32>, vector<32x8xf32> -> vector<32x8xf32>
    %1100 = vector.broadcast %1006 : vector<32x1xf32> to vector<32x8xf32>
    %1101 = arith.addf %1099, %1100 : vector<32x8xf32>
    %1102 = arith.addf %1002, %1101 : vector<32x8xf32>
    %c0_506 = arith.constant 0 : index
    %c0_507 = arith.constant 0 : index
    %1103 = vector.load %arg31[%c0_506, %c0_507] : memref<32x96xf32, #tpu.memory_space<vmem>>, vector<32x96xf32>
    %c0_508 = arith.constant 0 : index
    %c0_509 = arith.constant 0 : index
    %1104 = vector.load %arg32[%c0_508, %c0_509] : memref<32x1xf32, #tpu.memory_space<vmem>>, vector<32x1xf32>
    %c0_510 = arith.constant 0 : index
    %c0_511 = arith.constant 0 : index
    %1105 = vector.load %arg33[%c0_510, %c0_511] : memref<32x32xf32, #tpu.memory_space<vmem>>, vector<32x32xf32>
    %c0_512 = arith.constant 0 : index
    %c0_513 = arith.constant 0 : index
    %1106 = vector.load %arg34[%c0_512, %c0_513] : memref<32x1xf32, #tpu.memory_space<vmem>>, vector<32x1xf32>
    %cst_514 = arith.constant 0.000000e+00 : f32
    %1107 = vector.broadcast %cst_514 : f32 to vector<32x8xf32>
    %1108 = arith.maximumf %1102, %1107 : vector<32x8xf32>
    %1109 = tpu.iota {dimensions = array<i32: 0>} : vector<8x8xi32>
    %1110 = tpu.iota {dimensions = array<i32: 1>} : vector<8x8xi32>
    %c0_i32_515 = arith.constant 0 : i32
    %1111 = vector.broadcast %c0_i32_515 : i32 to vector<8x8xi32>
    %c4_i32_516 = arith.constant 4 : i32
    %1112 = vector.broadcast %c4_i32_516 : i32 to vector<8x8xi32>
    %1113 = arith.cmpi sge, %1110, %1112 : vector<8x8xi32>
    %c1_i32_517 = arith.constant 1 : i32
    %c0_i32_518 = arith.constant 0 : i32
    %1114 = vector.broadcast %c1_i32_517 : i32 to vector<8x8xi32>
    %1115 = vector.broadcast %c0_i32_518 : i32 to vector<8x8xi32>
    %1116 = arith.select %1113, %1114, %1115 : vector<8x8xi1>, vector<8x8xi32>
    %1117 = arith.addi %1111, %1116 : vector<8x8xi32>
    %c4_i32_519 = arith.constant 4 : i32
    %1118 = vector.broadcast %c4_i32_519 : i32 to vector<8x8xi32>
    %1119 = arith.muli %1117, %1118 : vector<8x8xi32>
    %1120 = arith.subi %1110, %1119 : vector<8x8xi32>
    %c4_i32_520 = arith.constant 4 : i32
    %1121 = vector.broadcast %c4_i32_520 : i32 to vector<8x8xi32>
    %1122 = arith.muli %1117, %1121 : vector<8x8xi32>
    %1123 = arith.subi %1109, %1122 : vector<8x8xi32>
    %c1_i32_521 = arith.constant 1 : i32
    %1124 = vector.broadcast %c1_i32_521 : i32 to vector<8x8xi32>
    %1125 = arith.muli %1124, %1120 : vector<8x8xi32>
    %c-1_i32_522 = arith.constant -1 : i32
    %1126 = vector.broadcast %c-1_i32_522 : i32 to vector<8x8xi32>
    %1127 = arith.addi %1125, %1126 : vector<8x8xi32>
    %c1_i32_523 = arith.constant 1 : i32
    %1128 = vector.broadcast %c1_i32_523 : i32 to vector<8x8xi32>
    %1129 = arith.muli %1128, %1123 : vector<8x8xi32>
    %1130 = arith.cmpi sle, %1129, %1127 : vector<8x8xi32>
    %c1_i32_524 = arith.constant 1 : i32
    %1131 = vector.broadcast %c1_i32_524 : i32 to vector<8x8xi32>
    %1132 = arith.muli %1131, %1123 : vector<8x8xi32>
    %c1_i32_525 = arith.constant 1 : i32
    %1133 = vector.broadcast %c1_i32_525 : i32 to vector<8x8xi32>
    %1134 = arith.addi %1132, %1133 : vector<8x8xi32>
    %1135 = arith.cmpi slt, %1127, %1134 : vector<8x8xi32>
    %1136 = arith.andi %1130, %1135 : vector<8x8xi1>
    %c0_i32_526 = arith.constant 0 : i32
    %1137 = vector.broadcast %c0_i32_526 : i32 to vector<8x8xi32>
    %1138 = arith.cmpi sge, %1127, %1137 : vector<8x8xi32>
    %1139 = arith.andi %1136, %1138 : vector<8x8xi1>
    %c4_i32_527 = arith.constant 4 : i32
    %1140 = vector.broadcast %c4_i32_527 : i32 to vector<8x8xi32>
    %1141 = arith.cmpi slt, %1127, %1140 : vector<8x8xi32>
    %1142 = arith.andi %1139, %1141 : vector<8x8xi1>
    %cst_528 = arith.constant 1.000000e+00 : f32
    %cst_529 = arith.constant 0.000000e+00 : f32
    %1143 = vector.broadcast %cst_528 : f32 to vector<8x8xf32>
    %1144 = vector.broadcast %cst_529 : f32 to vector<8x8xf32>
    %1145 = arith.select %1142, %1143, %1144 : vector<8x8xi1>, vector<8x8xf32>
    %cst_530 = arith.constant dense<0.000000e+00> : vector<32x8xf32>
    %1146 = tpu.matmul %1108, %1145, %cst_530 {dimension_numbers = #tpu.dot_dimension_numbers<[1], [0], [0], [1], [0, 0, 1, 1], [], []>} : vector<32x8xf32>, vector<8x8xf32>, vector<32x8xf32> -> vector<32x8xf32>
    %c1_i32_531 = arith.constant 1 : i32
    %1147 = vector.broadcast %c1_i32_531 : i32 to vector<8x8xi32>
    %1148 = arith.muli %1147, %1120 : vector<8x8xi32>
    %c0_i32_532 = arith.constant 0 : i32
    %1149 = vector.broadcast %c0_i32_532 : i32 to vector<8x8xi32>
    %1150 = arith.addi %1148, %1149 : vector<8x8xi32>
    %c1_i32_533 = arith.constant 1 : i32
    %1151 = vector.broadcast %c1_i32_533 : i32 to vector<8x8xi32>
    %1152 = arith.muli %1151, %1123 : vector<8x8xi32>
    %1153 = arith.cmpi sle, %1152, %1150 : vector<8x8xi32>
    %c1_i32_534 = arith.constant 1 : i32
    %1154 = vector.broadcast %c1_i32_534 : i32 to vector<8x8xi32>
    %1155 = arith.muli %1154, %1123 : vector<8x8xi32>
    %c1_i32_535 = arith.constant 1 : i32
    %1156 = vector.broadcast %c1_i32_535 : i32 to vector<8x8xi32>
    %1157 = arith.addi %1155, %1156 : vector<8x8xi32>
    %1158 = arith.cmpi slt, %1150, %1157 : vector<8x8xi32>
    %1159 = arith.andi %1153, %1158 : vector<8x8xi1>
    %c0_i32_536 = arith.constant 0 : i32
    %1160 = vector.broadcast %c0_i32_536 : i32 to vector<8x8xi32>
    %1161 = arith.cmpi sge, %1150, %1160 : vector<8x8xi32>
    %1162 = arith.andi %1159, %1161 : vector<8x8xi1>
    %c4_i32_537 = arith.constant 4 : i32
    %1163 = vector.broadcast %c4_i32_537 : i32 to vector<8x8xi32>
    %1164 = arith.cmpi slt, %1150, %1163 : vector<8x8xi32>
    %1165 = arith.andi %1162, %1164 : vector<8x8xi1>
    %cst_538 = arith.constant 1.000000e+00 : f32
    %cst_539 = arith.constant 0.000000e+00 : f32
    %1166 = vector.broadcast %cst_538 : f32 to vector<8x8xf32>
    %1167 = vector.broadcast %cst_539 : f32 to vector<8x8xf32>
    %1168 = arith.select %1165, %1166, %1167 : vector<8x8xi1>, vector<8x8xf32>
    %cst_540 = arith.constant dense<0.000000e+00> : vector<32x8xf32>
    %1169 = tpu.matmul %1108, %1168, %cst_540 {dimension_numbers = #tpu.dot_dimension_numbers<[1], [0], [0], [1], [0, 0, 1, 1], [], []>} : vector<32x8xf32>, vector<8x8xf32>, vector<32x8xf32> -> vector<32x8xf32>
    %c1_i32_541 = arith.constant 1 : i32
    %1170 = vector.broadcast %c1_i32_541 : i32 to vector<8x8xi32>
    %1171 = arith.muli %1170, %1120 : vector<8x8xi32>
    %c1_i32_542 = arith.constant 1 : i32
    %1172 = vector.broadcast %c1_i32_542 : i32 to vector<8x8xi32>
    %1173 = arith.addi %1171, %1172 : vector<8x8xi32>
    %c1_i32_543 = arith.constant 1 : i32
    %1174 = vector.broadcast %c1_i32_543 : i32 to vector<8x8xi32>
    %1175 = arith.muli %1174, %1123 : vector<8x8xi32>
    %1176 = arith.cmpi sle, %1175, %1173 : vector<8x8xi32>
    %c1_i32_544 = arith.constant 1 : i32
    %1177 = vector.broadcast %c1_i32_544 : i32 to vector<8x8xi32>
    %1178 = arith.muli %1177, %1123 : vector<8x8xi32>
    %c1_i32_545 = arith.constant 1 : i32
    %1179 = vector.broadcast %c1_i32_545 : i32 to vector<8x8xi32>
    %1180 = arith.addi %1178, %1179 : vector<8x8xi32>
    %1181 = arith.cmpi slt, %1173, %1180 : vector<8x8xi32>
    %1182 = arith.andi %1176, %1181 : vector<8x8xi1>
    %c0_i32_546 = arith.constant 0 : i32
    %1183 = vector.broadcast %c0_i32_546 : i32 to vector<8x8xi32>
    %1184 = arith.cmpi sge, %1173, %1183 : vector<8x8xi32>
    %1185 = arith.andi %1182, %1184 : vector<8x8xi1>
    %c4_i32_547 = arith.constant 4 : i32
    %1186 = vector.broadcast %c4_i32_547 : i32 to vector<8x8xi32>
    %1187 = arith.cmpi slt, %1173, %1186 : vector<8x8xi32>
    %1188 = arith.andi %1185, %1187 : vector<8x8xi1>
    %cst_548 = arith.constant 1.000000e+00 : f32
    %cst_549 = arith.constant 0.000000e+00 : f32
    %1189 = vector.broadcast %cst_548 : f32 to vector<8x8xf32>
    %1190 = vector.broadcast %cst_549 : f32 to vector<8x8xf32>
    %1191 = arith.select %1188, %1189, %1190 : vector<8x8xi1>, vector<8x8xf32>
    %cst_550 = arith.constant dense<0.000000e+00> : vector<32x8xf32>
    %1192 = tpu.matmul %1108, %1191, %cst_550 {dimension_numbers = #tpu.dot_dimension_numbers<[1], [0], [0], [1], [0, 0, 1, 1], [], []>} : vector<32x8xf32>, vector<8x8xf32>, vector<32x8xf32> -> vector<32x8xf32>
    %1193 = tpu.concatenate %1146, %1169, %1192 in 0 : vector<32x8xf32>, vector<32x8xf32>, vector<32x8xf32> -> vector<96x8xf32>
    %cst_551 = arith.constant dense<0.000000e+00> : vector<32x8xf32>
    %1194 = tpu.matmul %1103, %1193, %cst_551 {dimension_numbers = #tpu.dot_dimension_numbers<[1], [0], [0], [1], [0, 0, 1, 1], [], []>} : vector<32x96xf32>, vector<96x8xf32>, vector<32x8xf32> -> vector<32x8xf32>
    %1195 = vector.broadcast %1104 : vector<32x1xf32> to vector<32x8xf32>
    %1196 = arith.addf %1194, %1195 : vector<32x8xf32>
    %cst_552 = arith.constant 0.000000e+00 : f32
    %1197 = vector.broadcast %cst_552 : f32 to vector<32x8xf32>
    %1198 = arith.maximumf %1196, %1197 : vector<32x8xf32>
    %cst_553 = arith.constant dense<0.000000e+00> : vector<32x8xf32>
    %1199 = tpu.matmul %1105, %1198, %cst_553 {dimension_numbers = #tpu.dot_dimension_numbers<[1], [0], [0], [1], [0, 0, 1, 1], [], []>} : vector<32x32xf32>, vector<32x8xf32>, vector<32x8xf32> -> vector<32x8xf32>
    %1200 = vector.broadcast %1106 : vector<32x1xf32> to vector<32x8xf32>
    %1201 = arith.addf %1199, %1200 : vector<32x8xf32>
    %1202 = arith.addf %1102, %1201 : vector<32x8xf32>
    %c0_554 = arith.constant 0 : index
    %c0_555 = arith.constant 0 : index
    %1203 = vector.load %arg35[%c0_554, %c0_555] : memref<32x96xf32, #tpu.memory_space<vmem>>, vector<32x96xf32>
    %c0_556 = arith.constant 0 : index
    %c0_557 = arith.constant 0 : index
    %1204 = vector.load %arg36[%c0_556, %c0_557] : memref<32x1xf32, #tpu.memory_space<vmem>>, vector<32x1xf32>
    %1205 = tpu.iota {dimensions = array<i32: 0>} : vector<8x16xi32>
    %1206 = tpu.iota {dimensions = array<i32: 1>} : vector<8x16xi32>
    %c0_i32_558 = arith.constant 0 : i32
    %1207 = vector.broadcast %c0_i32_558 : i32 to vector<8x16xi32>
    %c8_i32_559 = arith.constant 8 : i32
    %1208 = vector.broadcast %c8_i32_559 : i32 to vector<8x16xi32>
    %1209 = arith.cmpi sge, %1206, %1208 : vector<8x16xi32>
    %c1_i32_560 = arith.constant 1 : i32
    %c0_i32_561 = arith.constant 0 : i32
    %1210 = vector.broadcast %c1_i32_560 : i32 to vector<8x16xi32>
    %1211 = vector.broadcast %c0_i32_561 : i32 to vector<8x16xi32>
    %1212 = arith.select %1209, %1210, %1211 : vector<8x16xi1>, vector<8x16xi32>
    %1213 = arith.addi %1207, %1212 : vector<8x16xi32>
    %c8_i32_562 = arith.constant 8 : i32
    %1214 = vector.broadcast %c8_i32_562 : i32 to vector<8x16xi32>
    %1215 = arith.muli %1213, %1214 : vector<8x16xi32>
    %1216 = arith.subi %1206, %1215 : vector<8x16xi32>
    %c4_i32_563 = arith.constant 4 : i32
    %1217 = vector.broadcast %c4_i32_563 : i32 to vector<8x16xi32>
    %1218 = arith.muli %1213, %1217 : vector<8x16xi32>
    %1219 = arith.subi %1205, %1218 : vector<8x16xi32>
    %c1_i32_564 = arith.constant 1 : i32
    %1220 = vector.broadcast %c1_i32_564 : i32 to vector<8x16xi32>
    %1221 = arith.muli %1220, %1216 : vector<8x16xi32>
    %c-1_i32_565 = arith.constant -1 : i32
    %1222 = vector.broadcast %c-1_i32_565 : i32 to vector<8x16xi32>
    %1223 = arith.addi %1221, %1222 : vector<8x16xi32>
    %c2_i32_566 = arith.constant 2 : i32
    %1224 = vector.broadcast %c2_i32_566 : i32 to vector<8x16xi32>
    %1225 = arith.muli %1224, %1219 : vector<8x16xi32>
    %1226 = arith.cmpi sle, %1225, %1223 : vector<8x16xi32>
    %c2_i32_567 = arith.constant 2 : i32
    %1227 = vector.broadcast %c2_i32_567 : i32 to vector<8x16xi32>
    %1228 = arith.muli %1227, %1219 : vector<8x16xi32>
    %c2_i32_568 = arith.constant 2 : i32
    %1229 = vector.broadcast %c2_i32_568 : i32 to vector<8x16xi32>
    %1230 = arith.addi %1228, %1229 : vector<8x16xi32>
    %1231 = arith.cmpi slt, %1223, %1230 : vector<8x16xi32>
    %1232 = arith.andi %1226, %1231 : vector<8x16xi1>
    %c0_i32_569 = arith.constant 0 : i32
    %1233 = vector.broadcast %c0_i32_569 : i32 to vector<8x16xi32>
    %1234 = arith.cmpi sge, %1223, %1233 : vector<8x16xi32>
    %1235 = arith.andi %1232, %1234 : vector<8x16xi1>
    %c8_i32_570 = arith.constant 8 : i32
    %1236 = vector.broadcast %c8_i32_570 : i32 to vector<8x16xi32>
    %1237 = arith.cmpi slt, %1223, %1236 : vector<8x16xi32>
    %1238 = arith.andi %1235, %1237 : vector<8x16xi1>
    %cst_571 = arith.constant 1.000000e+00 : f32
    %cst_572 = arith.constant 0.000000e+00 : f32
    %1239 = vector.broadcast %cst_571 : f32 to vector<8x16xf32>
    %1240 = vector.broadcast %cst_572 : f32 to vector<8x16xf32>
    %1241 = arith.select %1238, %1239, %1240 : vector<8x16xi1>, vector<8x16xf32>
    %cst_573 = arith.constant dense<0.000000e+00> : vector<32x16xf32>
    %1242 = tpu.matmul %1202, %1241, %cst_573 {dimension_numbers = #tpu.dot_dimension_numbers<[1], [0], [0], [1], [0, 0, 1, 1], [], []>} : vector<32x8xf32>, vector<8x16xf32>, vector<32x16xf32> -> vector<32x16xf32>
    %c1_i32_574 = arith.constant 1 : i32
    %1243 = vector.broadcast %c1_i32_574 : i32 to vector<8x16xi32>
    %1244 = arith.muli %1243, %1216 : vector<8x16xi32>
    %c0_i32_575 = arith.constant 0 : i32
    %1245 = vector.broadcast %c0_i32_575 : i32 to vector<8x16xi32>
    %1246 = arith.addi %1244, %1245 : vector<8x16xi32>
    %c2_i32_576 = arith.constant 2 : i32
    %1247 = vector.broadcast %c2_i32_576 : i32 to vector<8x16xi32>
    %1248 = arith.muli %1247, %1219 : vector<8x16xi32>
    %1249 = arith.cmpi sle, %1248, %1246 : vector<8x16xi32>
    %c2_i32_577 = arith.constant 2 : i32
    %1250 = vector.broadcast %c2_i32_577 : i32 to vector<8x16xi32>
    %1251 = arith.muli %1250, %1219 : vector<8x16xi32>
    %c2_i32_578 = arith.constant 2 : i32
    %1252 = vector.broadcast %c2_i32_578 : i32 to vector<8x16xi32>
    %1253 = arith.addi %1251, %1252 : vector<8x16xi32>
    %1254 = arith.cmpi slt, %1246, %1253 : vector<8x16xi32>
    %1255 = arith.andi %1249, %1254 : vector<8x16xi1>
    %c0_i32_579 = arith.constant 0 : i32
    %1256 = vector.broadcast %c0_i32_579 : i32 to vector<8x16xi32>
    %1257 = arith.cmpi sge, %1246, %1256 : vector<8x16xi32>
    %1258 = arith.andi %1255, %1257 : vector<8x16xi1>
    %c8_i32_580 = arith.constant 8 : i32
    %1259 = vector.broadcast %c8_i32_580 : i32 to vector<8x16xi32>
    %1260 = arith.cmpi slt, %1246, %1259 : vector<8x16xi32>
    %1261 = arith.andi %1258, %1260 : vector<8x16xi1>
    %cst_581 = arith.constant 1.000000e+00 : f32
    %cst_582 = arith.constant 0.000000e+00 : f32
    %1262 = vector.broadcast %cst_581 : f32 to vector<8x16xf32>
    %1263 = vector.broadcast %cst_582 : f32 to vector<8x16xf32>
    %1264 = arith.select %1261, %1262, %1263 : vector<8x16xi1>, vector<8x16xf32>
    %cst_583 = arith.constant dense<0.000000e+00> : vector<32x16xf32>
    %1265 = tpu.matmul %1202, %1264, %cst_583 {dimension_numbers = #tpu.dot_dimension_numbers<[1], [0], [0], [1], [0, 0, 1, 1], [], []>} : vector<32x8xf32>, vector<8x16xf32>, vector<32x16xf32> -> vector<32x16xf32>
    %c1_i32_584 = arith.constant 1 : i32
    %1266 = vector.broadcast %c1_i32_584 : i32 to vector<8x16xi32>
    %1267 = arith.muli %1266, %1216 : vector<8x16xi32>
    %c1_i32_585 = arith.constant 1 : i32
    %1268 = vector.broadcast %c1_i32_585 : i32 to vector<8x16xi32>
    %1269 = arith.addi %1267, %1268 : vector<8x16xi32>
    %c2_i32_586 = arith.constant 2 : i32
    %1270 = vector.broadcast %c2_i32_586 : i32 to vector<8x16xi32>
    %1271 = arith.muli %1270, %1219 : vector<8x16xi32>
    %1272 = arith.cmpi sle, %1271, %1269 : vector<8x16xi32>
    %c2_i32_587 = arith.constant 2 : i32
    %1273 = vector.broadcast %c2_i32_587 : i32 to vector<8x16xi32>
    %1274 = arith.muli %1273, %1219 : vector<8x16xi32>
    %c2_i32_588 = arith.constant 2 : i32
    %1275 = vector.broadcast %c2_i32_588 : i32 to vector<8x16xi32>
    %1276 = arith.addi %1274, %1275 : vector<8x16xi32>
    %1277 = arith.cmpi slt, %1269, %1276 : vector<8x16xi32>
    %1278 = arith.andi %1272, %1277 : vector<8x16xi1>
    %c0_i32_589 = arith.constant 0 : i32
    %1279 = vector.broadcast %c0_i32_589 : i32 to vector<8x16xi32>
    %1280 = arith.cmpi sge, %1269, %1279 : vector<8x16xi32>
    %1281 = arith.andi %1278, %1280 : vector<8x16xi1>
    %c8_i32_590 = arith.constant 8 : i32
    %1282 = vector.broadcast %c8_i32_590 : i32 to vector<8x16xi32>
    %1283 = arith.cmpi slt, %1269, %1282 : vector<8x16xi32>
    %1284 = arith.andi %1281, %1283 : vector<8x16xi1>
    %cst_591 = arith.constant 1.000000e+00 : f32
    %cst_592 = arith.constant 0.000000e+00 : f32
    %1285 = vector.broadcast %cst_591 : f32 to vector<8x16xf32>
    %1286 = vector.broadcast %cst_592 : f32 to vector<8x16xf32>
    %1287 = arith.select %1284, %1285, %1286 : vector<8x16xi1>, vector<8x16xf32>
    %cst_593 = arith.constant dense<0.000000e+00> : vector<32x16xf32>
    %1288 = tpu.matmul %1202, %1287, %cst_593 {dimension_numbers = #tpu.dot_dimension_numbers<[1], [0], [0], [1], [0, 0, 1, 1], [], []>} : vector<32x8xf32>, vector<8x16xf32>, vector<32x16xf32> -> vector<32x16xf32>
    %1289 = tpu.concatenate %1242, %1265, %1288 in 0 : vector<32x16xf32>, vector<32x16xf32>, vector<32x16xf32> -> vector<96x16xf32>
    %cst_594 = arith.constant dense<0.000000e+00> : vector<32x16xf32>
    %1290 = tpu.matmul %1203, %1289, %cst_594 {dimension_numbers = #tpu.dot_dimension_numbers<[1], [0], [0], [1], [0, 0, 1, 1], [], []>} : vector<32x96xf32>, vector<96x16xf32>, vector<32x16xf32> -> vector<32x16xf32>
    %1291 = vector.broadcast %1204 : vector<32x1xf32> to vector<32x16xf32>
    %1292 = arith.addf %1290, %1291 : vector<32x16xf32>
    %c0_595 = arith.constant 0 : index
    %c0_596 = arith.constant 0 : index
    %1293 = vector.load %arg37[%c0_595, %c0_596] : memref<32x96xf32, #tpu.memory_space<vmem>>, vector<32x96xf32>
    %c0_597 = arith.constant 0 : index
    %c0_598 = arith.constant 0 : index
    %1294 = vector.load %arg38[%c0_597, %c0_598] : memref<32x1xf32, #tpu.memory_space<vmem>>, vector<32x1xf32>
    %c0_599 = arith.constant 0 : index
    %c0_600 = arith.constant 0 : index
    %1295 = vector.load %arg39[%c0_599, %c0_600] : memref<32x32xf32, #tpu.memory_space<vmem>>, vector<32x32xf32>
    %c0_601 = arith.constant 0 : index
    %c0_602 = arith.constant 0 : index
    %1296 = vector.load %arg40[%c0_601, %c0_602] : memref<32x1xf32, #tpu.memory_space<vmem>>, vector<32x1xf32>
    %cst_603 = arith.constant 0.000000e+00 : f32
    %1297 = vector.broadcast %cst_603 : f32 to vector<32x16xf32>
    %1298 = arith.maximumf %1292, %1297 : vector<32x16xf32>
    %1299 = tpu.iota {dimensions = array<i32: 0>} : vector<16x16xi32>
    %1300 = tpu.iota {dimensions = array<i32: 1>} : vector<16x16xi32>
    %c0_i32_604 = arith.constant 0 : i32
    %1301 = vector.broadcast %c0_i32_604 : i32 to vector<16x16xi32>
    %c8_i32_605 = arith.constant 8 : i32
    %1302 = vector.broadcast %c8_i32_605 : i32 to vector<16x16xi32>
    %1303 = arith.cmpi sge, %1300, %1302 : vector<16x16xi32>
    %c1_i32_606 = arith.constant 1 : i32
    %c0_i32_607 = arith.constant 0 : i32
    %1304 = vector.broadcast %c1_i32_606 : i32 to vector<16x16xi32>
    %1305 = vector.broadcast %c0_i32_607 : i32 to vector<16x16xi32>
    %1306 = arith.select %1303, %1304, %1305 : vector<16x16xi1>, vector<16x16xi32>
    %1307 = arith.addi %1301, %1306 : vector<16x16xi32>
    %c8_i32_608 = arith.constant 8 : i32
    %1308 = vector.broadcast %c8_i32_608 : i32 to vector<16x16xi32>
    %1309 = arith.muli %1307, %1308 : vector<16x16xi32>
    %1310 = arith.subi %1300, %1309 : vector<16x16xi32>
    %c8_i32_609 = arith.constant 8 : i32
    %1311 = vector.broadcast %c8_i32_609 : i32 to vector<16x16xi32>
    %1312 = arith.muli %1307, %1311 : vector<16x16xi32>
    %1313 = arith.subi %1299, %1312 : vector<16x16xi32>
    %c1_i32_610 = arith.constant 1 : i32
    %1314 = vector.broadcast %c1_i32_610 : i32 to vector<16x16xi32>
    %1315 = arith.muli %1314, %1310 : vector<16x16xi32>
    %c-3_i32_611 = arith.constant -3 : i32
    %1316 = vector.broadcast %c-3_i32_611 : i32 to vector<16x16xi32>
    %1317 = arith.addi %1315, %1316 : vector<16x16xi32>
    %c1_i32_612 = arith.constant 1 : i32
    %1318 = vector.broadcast %c1_i32_612 : i32 to vector<16x16xi32>
    %1319 = arith.muli %1318, %1313 : vector<16x16xi32>
    %1320 = arith.cmpi sle, %1319, %1317 : vector<16x16xi32>
    %c1_i32_613 = arith.constant 1 : i32
    %1321 = vector.broadcast %c1_i32_613 : i32 to vector<16x16xi32>
    %1322 = arith.muli %1321, %1313 : vector<16x16xi32>
    %c1_i32_614 = arith.constant 1 : i32
    %1323 = vector.broadcast %c1_i32_614 : i32 to vector<16x16xi32>
    %1324 = arith.addi %1322, %1323 : vector<16x16xi32>
    %1325 = arith.cmpi slt, %1317, %1324 : vector<16x16xi32>
    %1326 = arith.andi %1320, %1325 : vector<16x16xi1>
    %c0_i32_615 = arith.constant 0 : i32
    %1327 = vector.broadcast %c0_i32_615 : i32 to vector<16x16xi32>
    %1328 = arith.cmpi sge, %1317, %1327 : vector<16x16xi32>
    %1329 = arith.andi %1326, %1328 : vector<16x16xi1>
    %c8_i32_616 = arith.constant 8 : i32
    %1330 = vector.broadcast %c8_i32_616 : i32 to vector<16x16xi32>
    %1331 = arith.cmpi slt, %1317, %1330 : vector<16x16xi32>
    %1332 = arith.andi %1329, %1331 : vector<16x16xi1>
    %cst_617 = arith.constant 1.000000e+00 : f32
    %cst_618 = arith.constant 0.000000e+00 : f32
    %1333 = vector.broadcast %cst_617 : f32 to vector<16x16xf32>
    %1334 = vector.broadcast %cst_618 : f32 to vector<16x16xf32>
    %1335 = arith.select %1332, %1333, %1334 : vector<16x16xi1>, vector<16x16xf32>
    %cst_619 = arith.constant dense<0.000000e+00> : vector<32x16xf32>
    %1336 = tpu.matmul %1298, %1335, %cst_619 {dimension_numbers = #tpu.dot_dimension_numbers<[1], [0], [0], [1], [0, 0, 1, 1], [], []>} : vector<32x16xf32>, vector<16x16xf32>, vector<32x16xf32> -> vector<32x16xf32>
    %c1_i32_620 = arith.constant 1 : i32
    %1337 = vector.broadcast %c1_i32_620 : i32 to vector<16x16xi32>
    %1338 = arith.muli %1337, %1310 : vector<16x16xi32>
    %c0_i32_621 = arith.constant 0 : i32
    %1339 = vector.broadcast %c0_i32_621 : i32 to vector<16x16xi32>
    %1340 = arith.addi %1338, %1339 : vector<16x16xi32>
    %c1_i32_622 = arith.constant 1 : i32
    %1341 = vector.broadcast %c1_i32_622 : i32 to vector<16x16xi32>
    %1342 = arith.muli %1341, %1313 : vector<16x16xi32>
    %1343 = arith.cmpi sle, %1342, %1340 : vector<16x16xi32>
    %c1_i32_623 = arith.constant 1 : i32
    %1344 = vector.broadcast %c1_i32_623 : i32 to vector<16x16xi32>
    %1345 = arith.muli %1344, %1313 : vector<16x16xi32>
    %c1_i32_624 = arith.constant 1 : i32
    %1346 = vector.broadcast %c1_i32_624 : i32 to vector<16x16xi32>
    %1347 = arith.addi %1345, %1346 : vector<16x16xi32>
    %1348 = arith.cmpi slt, %1340, %1347 : vector<16x16xi32>
    %1349 = arith.andi %1343, %1348 : vector<16x16xi1>
    %c0_i32_625 = arith.constant 0 : i32
    %1350 = vector.broadcast %c0_i32_625 : i32 to vector<16x16xi32>
    %1351 = arith.cmpi sge, %1340, %1350 : vector<16x16xi32>
    %1352 = arith.andi %1349, %1351 : vector<16x16xi1>
    %c8_i32_626 = arith.constant 8 : i32
    %1353 = vector.broadcast %c8_i32_626 : i32 to vector<16x16xi32>
    %1354 = arith.cmpi slt, %1340, %1353 : vector<16x16xi32>
    %1355 = arith.andi %1352, %1354 : vector<16x16xi1>
    %cst_627 = arith.constant 1.000000e+00 : f32
    %cst_628 = arith.constant 0.000000e+00 : f32
    %1356 = vector.broadcast %cst_627 : f32 to vector<16x16xf32>
    %1357 = vector.broadcast %cst_628 : f32 to vector<16x16xf32>
    %1358 = arith.select %1355, %1356, %1357 : vector<16x16xi1>, vector<16x16xf32>
    %cst_629 = arith.constant dense<0.000000e+00> : vector<32x16xf32>
    %1359 = tpu.matmul %1298, %1358, %cst_629 {dimension_numbers = #tpu.dot_dimension_numbers<[1], [0], [0], [1], [0, 0, 1, 1], [], []>} : vector<32x16xf32>, vector<16x16xf32>, vector<32x16xf32> -> vector<32x16xf32>
    %c1_i32_630 = arith.constant 1 : i32
    %1360 = vector.broadcast %c1_i32_630 : i32 to vector<16x16xi32>
    %1361 = arith.muli %1360, %1310 : vector<16x16xi32>
    %c3_i32_631 = arith.constant 3 : i32
    %1362 = vector.broadcast %c3_i32_631 : i32 to vector<16x16xi32>
    %1363 = arith.addi %1361, %1362 : vector<16x16xi32>
    %c1_i32_632 = arith.constant 1 : i32
    %1364 = vector.broadcast %c1_i32_632 : i32 to vector<16x16xi32>
    %1365 = arith.muli %1364, %1313 : vector<16x16xi32>
    %1366 = arith.cmpi sle, %1365, %1363 : vector<16x16xi32>
    %c1_i32_633 = arith.constant 1 : i32
    %1367 = vector.broadcast %c1_i32_633 : i32 to vector<16x16xi32>
    %1368 = arith.muli %1367, %1313 : vector<16x16xi32>
    %c1_i32_634 = arith.constant 1 : i32
    %1369 = vector.broadcast %c1_i32_634 : i32 to vector<16x16xi32>
    %1370 = arith.addi %1368, %1369 : vector<16x16xi32>
    %1371 = arith.cmpi slt, %1363, %1370 : vector<16x16xi32>
    %1372 = arith.andi %1366, %1371 : vector<16x16xi1>
    %c0_i32_635 = arith.constant 0 : i32
    %1373 = vector.broadcast %c0_i32_635 : i32 to vector<16x16xi32>
    %1374 = arith.cmpi sge, %1363, %1373 : vector<16x16xi32>
    %1375 = arith.andi %1372, %1374 : vector<16x16xi1>
    %c8_i32_636 = arith.constant 8 : i32
    %1376 = vector.broadcast %c8_i32_636 : i32 to vector<16x16xi32>
    %1377 = arith.cmpi slt, %1363, %1376 : vector<16x16xi32>
    %1378 = arith.andi %1375, %1377 : vector<16x16xi1>
    %cst_637 = arith.constant 1.000000e+00 : f32
    %cst_638 = arith.constant 0.000000e+00 : f32
    %1379 = vector.broadcast %cst_637 : f32 to vector<16x16xf32>
    %1380 = vector.broadcast %cst_638 : f32 to vector<16x16xf32>
    %1381 = arith.select %1378, %1379, %1380 : vector<16x16xi1>, vector<16x16xf32>
    %cst_639 = arith.constant dense<0.000000e+00> : vector<32x16xf32>
    %1382 = tpu.matmul %1298, %1381, %cst_639 {dimension_numbers = #tpu.dot_dimension_numbers<[1], [0], [0], [1], [0, 0, 1, 1], [], []>} : vector<32x16xf32>, vector<16x16xf32>, vector<32x16xf32> -> vector<32x16xf32>
    %1383 = tpu.concatenate %1336, %1359, %1382 in 0 : vector<32x16xf32>, vector<32x16xf32>, vector<32x16xf32> -> vector<96x16xf32>
    %cst_640 = arith.constant dense<0.000000e+00> : vector<32x16xf32>
    %1384 = tpu.matmul %1293, %1383, %cst_640 {dimension_numbers = #tpu.dot_dimension_numbers<[1], [0], [0], [1], [0, 0, 1, 1], [], []>} : vector<32x96xf32>, vector<96x16xf32>, vector<32x16xf32> -> vector<32x16xf32>
    %1385 = vector.broadcast %1294 : vector<32x1xf32> to vector<32x16xf32>
    %1386 = arith.addf %1384, %1385 : vector<32x16xf32>
    %cst_641 = arith.constant 0.000000e+00 : f32
    %1387 = vector.broadcast %cst_641 : f32 to vector<32x16xf32>
    %1388 = arith.maximumf %1386, %1387 : vector<32x16xf32>
    %cst_642 = arith.constant dense<0.000000e+00> : vector<32x16xf32>
    %1389 = tpu.matmul %1295, %1388, %cst_642 {dimension_numbers = #tpu.dot_dimension_numbers<[1], [0], [0], [1], [0, 0, 1, 1], [], []>} : vector<32x32xf32>, vector<32x16xf32>, vector<32x16xf32> -> vector<32x16xf32>
    %1390 = vector.broadcast %1296 : vector<32x1xf32> to vector<32x16xf32>
    %1391 = arith.addf %1389, %1390 : vector<32x16xf32>
    %1392 = arith.addf %1292, %1391 : vector<32x16xf32>
    %c0_643 = arith.constant 0 : index
    %c0_644 = arith.constant 0 : index
    %1393 = vector.load %arg41[%c0_643, %c0_644] : memref<32x96xf32, #tpu.memory_space<vmem>>, vector<32x96xf32>
    %c0_645 = arith.constant 0 : index
    %c0_646 = arith.constant 0 : index
    %1394 = vector.load %arg42[%c0_645, %c0_646] : memref<32x1xf32, #tpu.memory_space<vmem>>, vector<32x1xf32>
    %c0_647 = arith.constant 0 : index
    %c0_648 = arith.constant 0 : index
    %1395 = vector.load %arg43[%c0_647, %c0_648] : memref<32x32xf32, #tpu.memory_space<vmem>>, vector<32x32xf32>
    %c0_649 = arith.constant 0 : index
    %c0_650 = arith.constant 0 : index
    %1396 = vector.load %arg44[%c0_649, %c0_650] : memref<32x1xf32, #tpu.memory_space<vmem>>, vector<32x1xf32>
    %cst_651 = arith.constant 0.000000e+00 : f32
    %1397 = vector.broadcast %cst_651 : f32 to vector<32x16xf32>
    %1398 = arith.maximumf %1392, %1397 : vector<32x16xf32>
    %1399 = tpu.iota {dimensions = array<i32: 0>} : vector<16x16xi32>
    %1400 = tpu.iota {dimensions = array<i32: 1>} : vector<16x16xi32>
    %c0_i32_652 = arith.constant 0 : i32
    %1401 = vector.broadcast %c0_i32_652 : i32 to vector<16x16xi32>
    %c8_i32_653 = arith.constant 8 : i32
    %1402 = vector.broadcast %c8_i32_653 : i32 to vector<16x16xi32>
    %1403 = arith.cmpi sge, %1400, %1402 : vector<16x16xi32>
    %c1_i32_654 = arith.constant 1 : i32
    %c0_i32_655 = arith.constant 0 : i32
    %1404 = vector.broadcast %c1_i32_654 : i32 to vector<16x16xi32>
    %1405 = vector.broadcast %c0_i32_655 : i32 to vector<16x16xi32>
    %1406 = arith.select %1403, %1404, %1405 : vector<16x16xi1>, vector<16x16xi32>
    %1407 = arith.addi %1401, %1406 : vector<16x16xi32>
    %c8_i32_656 = arith.constant 8 : i32
    %1408 = vector.broadcast %c8_i32_656 : i32 to vector<16x16xi32>
    %1409 = arith.muli %1407, %1408 : vector<16x16xi32>
    %1410 = arith.subi %1400, %1409 : vector<16x16xi32>
    %c8_i32_657 = arith.constant 8 : i32
    %1411 = vector.broadcast %c8_i32_657 : i32 to vector<16x16xi32>
    %1412 = arith.muli %1407, %1411 : vector<16x16xi32>
    %1413 = arith.subi %1399, %1412 : vector<16x16xi32>
    %c1_i32_658 = arith.constant 1 : i32
    %1414 = vector.broadcast %c1_i32_658 : i32 to vector<16x16xi32>
    %1415 = arith.muli %1414, %1410 : vector<16x16xi32>
    %c-1_i32_659 = arith.constant -1 : i32
    %1416 = vector.broadcast %c-1_i32_659 : i32 to vector<16x16xi32>
    %1417 = arith.addi %1415, %1416 : vector<16x16xi32>
    %c1_i32_660 = arith.constant 1 : i32
    %1418 = vector.broadcast %c1_i32_660 : i32 to vector<16x16xi32>
    %1419 = arith.muli %1418, %1413 : vector<16x16xi32>
    %1420 = arith.cmpi sle, %1419, %1417 : vector<16x16xi32>
    %c1_i32_661 = arith.constant 1 : i32
    %1421 = vector.broadcast %c1_i32_661 : i32 to vector<16x16xi32>
    %1422 = arith.muli %1421, %1413 : vector<16x16xi32>
    %c1_i32_662 = arith.constant 1 : i32
    %1423 = vector.broadcast %c1_i32_662 : i32 to vector<16x16xi32>
    %1424 = arith.addi %1422, %1423 : vector<16x16xi32>
    %1425 = arith.cmpi slt, %1417, %1424 : vector<16x16xi32>
    %1426 = arith.andi %1420, %1425 : vector<16x16xi1>
    %c0_i32_663 = arith.constant 0 : i32
    %1427 = vector.broadcast %c0_i32_663 : i32 to vector<16x16xi32>
    %1428 = arith.cmpi sge, %1417, %1427 : vector<16x16xi32>
    %1429 = arith.andi %1426, %1428 : vector<16x16xi1>
    %c8_i32_664 = arith.constant 8 : i32
    %1430 = vector.broadcast %c8_i32_664 : i32 to vector<16x16xi32>
    %1431 = arith.cmpi slt, %1417, %1430 : vector<16x16xi32>
    %1432 = arith.andi %1429, %1431 : vector<16x16xi1>
    %cst_665 = arith.constant 1.000000e+00 : f32
    %cst_666 = arith.constant 0.000000e+00 : f32
    %1433 = vector.broadcast %cst_665 : f32 to vector<16x16xf32>
    %1434 = vector.broadcast %cst_666 : f32 to vector<16x16xf32>
    %1435 = arith.select %1432, %1433, %1434 : vector<16x16xi1>, vector<16x16xf32>
    %cst_667 = arith.constant dense<0.000000e+00> : vector<32x16xf32>
    %1436 = tpu.matmul %1398, %1435, %cst_667 {dimension_numbers = #tpu.dot_dimension_numbers<[1], [0], [0], [1], [0, 0, 1, 1], [], []>} : vector<32x16xf32>, vector<16x16xf32>, vector<32x16xf32> -> vector<32x16xf32>
    %c1_i32_668 = arith.constant 1 : i32
    %1437 = vector.broadcast %c1_i32_668 : i32 to vector<16x16xi32>
    %1438 = arith.muli %1437, %1410 : vector<16x16xi32>
    %c0_i32_669 = arith.constant 0 : i32
    %1439 = vector.broadcast %c0_i32_669 : i32 to vector<16x16xi32>
    %1440 = arith.addi %1438, %1439 : vector<16x16xi32>
    %c1_i32_670 = arith.constant 1 : i32
    %1441 = vector.broadcast %c1_i32_670 : i32 to vector<16x16xi32>
    %1442 = arith.muli %1441, %1413 : vector<16x16xi32>
    %1443 = arith.cmpi sle, %1442, %1440 : vector<16x16xi32>
    %c1_i32_671 = arith.constant 1 : i32
    %1444 = vector.broadcast %c1_i32_671 : i32 to vector<16x16xi32>
    %1445 = arith.muli %1444, %1413 : vector<16x16xi32>
    %c1_i32_672 = arith.constant 1 : i32
    %1446 = vector.broadcast %c1_i32_672 : i32 to vector<16x16xi32>
    %1447 = arith.addi %1445, %1446 : vector<16x16xi32>
    %1448 = arith.cmpi slt, %1440, %1447 : vector<16x16xi32>
    %1449 = arith.andi %1443, %1448 : vector<16x16xi1>
    %c0_i32_673 = arith.constant 0 : i32
    %1450 = vector.broadcast %c0_i32_673 : i32 to vector<16x16xi32>
    %1451 = arith.cmpi sge, %1440, %1450 : vector<16x16xi32>
    %1452 = arith.andi %1449, %1451 : vector<16x16xi1>
    %c8_i32_674 = arith.constant 8 : i32
    %1453 = vector.broadcast %c8_i32_674 : i32 to vector<16x16xi32>
    %1454 = arith.cmpi slt, %1440, %1453 : vector<16x16xi32>
    %1455 = arith.andi %1452, %1454 : vector<16x16xi1>
    %cst_675 = arith.constant 1.000000e+00 : f32
    %cst_676 = arith.constant 0.000000e+00 : f32
    %1456 = vector.broadcast %cst_675 : f32 to vector<16x16xf32>
    %1457 = vector.broadcast %cst_676 : f32 to vector<16x16xf32>
    %1458 = arith.select %1455, %1456, %1457 : vector<16x16xi1>, vector<16x16xf32>
    %cst_677 = arith.constant dense<0.000000e+00> : vector<32x16xf32>
    %1459 = tpu.matmul %1398, %1458, %cst_677 {dimension_numbers = #tpu.dot_dimension_numbers<[1], [0], [0], [1], [0, 0, 1, 1], [], []>} : vector<32x16xf32>, vector<16x16xf32>, vector<32x16xf32> -> vector<32x16xf32>
    %c1_i32_678 = arith.constant 1 : i32
    %1460 = vector.broadcast %c1_i32_678 : i32 to vector<16x16xi32>
    %1461 = arith.muli %1460, %1410 : vector<16x16xi32>
    %c1_i32_679 = arith.constant 1 : i32
    %1462 = vector.broadcast %c1_i32_679 : i32 to vector<16x16xi32>
    %1463 = arith.addi %1461, %1462 : vector<16x16xi32>
    %c1_i32_680 = arith.constant 1 : i32
    %1464 = vector.broadcast %c1_i32_680 : i32 to vector<16x16xi32>
    %1465 = arith.muli %1464, %1413 : vector<16x16xi32>
    %1466 = arith.cmpi sle, %1465, %1463 : vector<16x16xi32>
    %c1_i32_681 = arith.constant 1 : i32
    %1467 = vector.broadcast %c1_i32_681 : i32 to vector<16x16xi32>
    %1468 = arith.muli %1467, %1413 : vector<16x16xi32>
    %c1_i32_682 = arith.constant 1 : i32
    %1469 = vector.broadcast %c1_i32_682 : i32 to vector<16x16xi32>
    %1470 = arith.addi %1468, %1469 : vector<16x16xi32>
    %1471 = arith.cmpi slt, %1463, %1470 : vector<16x16xi32>
    %1472 = arith.andi %1466, %1471 : vector<16x16xi1>
    %c0_i32_683 = arith.constant 0 : i32
    %1473 = vector.broadcast %c0_i32_683 : i32 to vector<16x16xi32>
    %1474 = arith.cmpi sge, %1463, %1473 : vector<16x16xi32>
    %1475 = arith.andi %1472, %1474 : vector<16x16xi1>
    %c8_i32_684 = arith.constant 8 : i32
    %1476 = vector.broadcast %c8_i32_684 : i32 to vector<16x16xi32>
    %1477 = arith.cmpi slt, %1463, %1476 : vector<16x16xi32>
    %1478 = arith.andi %1475, %1477 : vector<16x16xi1>
    %cst_685 = arith.constant 1.000000e+00 : f32
    %cst_686 = arith.constant 0.000000e+00 : f32
    %1479 = vector.broadcast %cst_685 : f32 to vector<16x16xf32>
    %1480 = vector.broadcast %cst_686 : f32 to vector<16x16xf32>
    %1481 = arith.select %1478, %1479, %1480 : vector<16x16xi1>, vector<16x16xf32>
    %cst_687 = arith.constant dense<0.000000e+00> : vector<32x16xf32>
    %1482 = tpu.matmul %1398, %1481, %cst_687 {dimension_numbers = #tpu.dot_dimension_numbers<[1], [0], [0], [1], [0, 0, 1, 1], [], []>} : vector<32x16xf32>, vector<16x16xf32>, vector<32x16xf32> -> vector<32x16xf32>
    %1483 = tpu.concatenate %1436, %1459, %1482 in 0 : vector<32x16xf32>, vector<32x16xf32>, vector<32x16xf32> -> vector<96x16xf32>
    %cst_688 = arith.constant dense<0.000000e+00> : vector<32x16xf32>
    %1484 = tpu.matmul %1393, %1483, %cst_688 {dimension_numbers = #tpu.dot_dimension_numbers<[1], [0], [0], [1], [0, 0, 1, 1], [], []>} : vector<32x96xf32>, vector<96x16xf32>, vector<32x16xf32> -> vector<32x16xf32>
    %1485 = vector.broadcast %1394 : vector<32x1xf32> to vector<32x16xf32>
    %1486 = arith.addf %1484, %1485 : vector<32x16xf32>
    %cst_689 = arith.constant 0.000000e+00 : f32
    %1487 = vector.broadcast %cst_689 : f32 to vector<32x16xf32>
    %1488 = arith.maximumf %1486, %1487 : vector<32x16xf32>
    %cst_690 = arith.constant dense<0.000000e+00> : vector<32x16xf32>
    %1489 = tpu.matmul %1395, %1488, %cst_690 {dimension_numbers = #tpu.dot_dimension_numbers<[1], [0], [0], [1], [0, 0, 1, 1], [], []>} : vector<32x32xf32>, vector<32x16xf32>, vector<32x16xf32> -> vector<32x16xf32>
    %1490 = vector.broadcast %1396 : vector<32x1xf32> to vector<32x16xf32>
    %1491 = arith.addf %1489, %1490 : vector<32x16xf32>
    %1492 = arith.addf %1392, %1491 : vector<32x16xf32>
    %c0_691 = arith.constant 0 : index
    %c0_692 = arith.constant 0 : index
    %1493 = vector.load %arg45[%c0_691, %c0_692] : memref<32x96xf32, #tpu.memory_space<vmem>>, vector<32x96xf32>
    %c0_693 = arith.constant 0 : index
    %c0_694 = arith.constant 0 : index
    %1494 = vector.load %arg46[%c0_693, %c0_694] : memref<32x1xf32, #tpu.memory_space<vmem>>, vector<32x1xf32>
    %1495 = tpu.iota {dimensions = array<i32: 0>} : vector<16x32xi32>
    %1496 = tpu.iota {dimensions = array<i32: 1>} : vector<16x32xi32>
    %c0_i32_695 = arith.constant 0 : i32
    %1497 = vector.broadcast %c0_i32_695 : i32 to vector<16x32xi32>
    %c16_i32_696 = arith.constant 16 : i32
    %1498 = vector.broadcast %c16_i32_696 : i32 to vector<16x32xi32>
    %1499 = arith.cmpi sge, %1496, %1498 : vector<16x32xi32>
    %c1_i32_697 = arith.constant 1 : i32
    %c0_i32_698 = arith.constant 0 : i32
    %1500 = vector.broadcast %c1_i32_697 : i32 to vector<16x32xi32>
    %1501 = vector.broadcast %c0_i32_698 : i32 to vector<16x32xi32>
    %1502 = arith.select %1499, %1500, %1501 : vector<16x32xi1>, vector<16x32xi32>
    %1503 = arith.addi %1497, %1502 : vector<16x32xi32>
    %c16_i32_699 = arith.constant 16 : i32
    %1504 = vector.broadcast %c16_i32_699 : i32 to vector<16x32xi32>
    %1505 = arith.muli %1503, %1504 : vector<16x32xi32>
    %1506 = arith.subi %1496, %1505 : vector<16x32xi32>
    %c8_i32_700 = arith.constant 8 : i32
    %1507 = vector.broadcast %c8_i32_700 : i32 to vector<16x32xi32>
    %1508 = arith.muli %1503, %1507 : vector<16x32xi32>
    %1509 = arith.subi %1495, %1508 : vector<16x32xi32>
    %c1_i32_701 = arith.constant 1 : i32
    %1510 = vector.broadcast %c1_i32_701 : i32 to vector<16x32xi32>
    %1511 = arith.muli %1510, %1506 : vector<16x32xi32>
    %c-1_i32_702 = arith.constant -1 : i32
    %1512 = vector.broadcast %c-1_i32_702 : i32 to vector<16x32xi32>
    %1513 = arith.addi %1511, %1512 : vector<16x32xi32>
    %c2_i32_703 = arith.constant 2 : i32
    %1514 = vector.broadcast %c2_i32_703 : i32 to vector<16x32xi32>
    %1515 = arith.muli %1514, %1509 : vector<16x32xi32>
    %1516 = arith.cmpi sle, %1515, %1513 : vector<16x32xi32>
    %c2_i32_704 = arith.constant 2 : i32
    %1517 = vector.broadcast %c2_i32_704 : i32 to vector<16x32xi32>
    %1518 = arith.muli %1517, %1509 : vector<16x32xi32>
    %c2_i32_705 = arith.constant 2 : i32
    %1519 = vector.broadcast %c2_i32_705 : i32 to vector<16x32xi32>
    %1520 = arith.addi %1518, %1519 : vector<16x32xi32>
    %1521 = arith.cmpi slt, %1513, %1520 : vector<16x32xi32>
    %1522 = arith.andi %1516, %1521 : vector<16x32xi1>
    %c0_i32_706 = arith.constant 0 : i32
    %1523 = vector.broadcast %c0_i32_706 : i32 to vector<16x32xi32>
    %1524 = arith.cmpi sge, %1513, %1523 : vector<16x32xi32>
    %1525 = arith.andi %1522, %1524 : vector<16x32xi1>
    %c16_i32_707 = arith.constant 16 : i32
    %1526 = vector.broadcast %c16_i32_707 : i32 to vector<16x32xi32>
    %1527 = arith.cmpi slt, %1513, %1526 : vector<16x32xi32>
    %1528 = arith.andi %1525, %1527 : vector<16x32xi1>
    %cst_708 = arith.constant 1.000000e+00 : f32
    %cst_709 = arith.constant 0.000000e+00 : f32
    %1529 = vector.broadcast %cst_708 : f32 to vector<16x32xf32>
    %1530 = vector.broadcast %cst_709 : f32 to vector<16x32xf32>
    %1531 = arith.select %1528, %1529, %1530 : vector<16x32xi1>, vector<16x32xf32>
    %cst_710 = arith.constant dense<0.000000e+00> : vector<32x32xf32>
    %1532 = tpu.matmul %1492, %1531, %cst_710 {dimension_numbers = #tpu.dot_dimension_numbers<[1], [0], [0], [1], [0, 0, 1, 1], [], []>} : vector<32x16xf32>, vector<16x32xf32>, vector<32x32xf32> -> vector<32x32xf32>
    %c1_i32_711 = arith.constant 1 : i32
    %1533 = vector.broadcast %c1_i32_711 : i32 to vector<16x32xi32>
    %1534 = arith.muli %1533, %1506 : vector<16x32xi32>
    %c0_i32_712 = arith.constant 0 : i32
    %1535 = vector.broadcast %c0_i32_712 : i32 to vector<16x32xi32>
    %1536 = arith.addi %1534, %1535 : vector<16x32xi32>
    %c2_i32_713 = arith.constant 2 : i32
    %1537 = vector.broadcast %c2_i32_713 : i32 to vector<16x32xi32>
    %1538 = arith.muli %1537, %1509 : vector<16x32xi32>
    %1539 = arith.cmpi sle, %1538, %1536 : vector<16x32xi32>
    %c2_i32_714 = arith.constant 2 : i32
    %1540 = vector.broadcast %c2_i32_714 : i32 to vector<16x32xi32>
    %1541 = arith.muli %1540, %1509 : vector<16x32xi32>
    %c2_i32_715 = arith.constant 2 : i32
    %1542 = vector.broadcast %c2_i32_715 : i32 to vector<16x32xi32>
    %1543 = arith.addi %1541, %1542 : vector<16x32xi32>
    %1544 = arith.cmpi slt, %1536, %1543 : vector<16x32xi32>
    %1545 = arith.andi %1539, %1544 : vector<16x32xi1>
    %c0_i32_716 = arith.constant 0 : i32
    %1546 = vector.broadcast %c0_i32_716 : i32 to vector<16x32xi32>
    %1547 = arith.cmpi sge, %1536, %1546 : vector<16x32xi32>
    %1548 = arith.andi %1545, %1547 : vector<16x32xi1>
    %c16_i32_717 = arith.constant 16 : i32
    %1549 = vector.broadcast %c16_i32_717 : i32 to vector<16x32xi32>
    %1550 = arith.cmpi slt, %1536, %1549 : vector<16x32xi32>
    %1551 = arith.andi %1548, %1550 : vector<16x32xi1>
    %cst_718 = arith.constant 1.000000e+00 : f32
    %cst_719 = arith.constant 0.000000e+00 : f32
    %1552 = vector.broadcast %cst_718 : f32 to vector<16x32xf32>
    %1553 = vector.broadcast %cst_719 : f32 to vector<16x32xf32>
    %1554 = arith.select %1551, %1552, %1553 : vector<16x32xi1>, vector<16x32xf32>
    %cst_720 = arith.constant dense<0.000000e+00> : vector<32x32xf32>
    %1555 = tpu.matmul %1492, %1554, %cst_720 {dimension_numbers = #tpu.dot_dimension_numbers<[1], [0], [0], [1], [0, 0, 1, 1], [], []>} : vector<32x16xf32>, vector<16x32xf32>, vector<32x32xf32> -> vector<32x32xf32>
    %c1_i32_721 = arith.constant 1 : i32
    %1556 = vector.broadcast %c1_i32_721 : i32 to vector<16x32xi32>
    %1557 = arith.muli %1556, %1506 : vector<16x32xi32>
    %c1_i32_722 = arith.constant 1 : i32
    %1558 = vector.broadcast %c1_i32_722 : i32 to vector<16x32xi32>
    %1559 = arith.addi %1557, %1558 : vector<16x32xi32>
    %c2_i32_723 = arith.constant 2 : i32
    %1560 = vector.broadcast %c2_i32_723 : i32 to vector<16x32xi32>
    %1561 = arith.muli %1560, %1509 : vector<16x32xi32>
    %1562 = arith.cmpi sle, %1561, %1559 : vector<16x32xi32>
    %c2_i32_724 = arith.constant 2 : i32
    %1563 = vector.broadcast %c2_i32_724 : i32 to vector<16x32xi32>
    %1564 = arith.muli %1563, %1509 : vector<16x32xi32>
    %c2_i32_725 = arith.constant 2 : i32
    %1565 = vector.broadcast %c2_i32_725 : i32 to vector<16x32xi32>
    %1566 = arith.addi %1564, %1565 : vector<16x32xi32>
    %1567 = arith.cmpi slt, %1559, %1566 : vector<16x32xi32>
    %1568 = arith.andi %1562, %1567 : vector<16x32xi1>
    %c0_i32_726 = arith.constant 0 : i32
    %1569 = vector.broadcast %c0_i32_726 : i32 to vector<16x32xi32>
    %1570 = arith.cmpi sge, %1559, %1569 : vector<16x32xi32>
    %1571 = arith.andi %1568, %1570 : vector<16x32xi1>
    %c16_i32_727 = arith.constant 16 : i32
    %1572 = vector.broadcast %c16_i32_727 : i32 to vector<16x32xi32>
    %1573 = arith.cmpi slt, %1559, %1572 : vector<16x32xi32>
    %1574 = arith.andi %1571, %1573 : vector<16x32xi1>
    %cst_728 = arith.constant 1.000000e+00 : f32
    %cst_729 = arith.constant 0.000000e+00 : f32
    %1575 = vector.broadcast %cst_728 : f32 to vector<16x32xf32>
    %1576 = vector.broadcast %cst_729 : f32 to vector<16x32xf32>
    %1577 = arith.select %1574, %1575, %1576 : vector<16x32xi1>, vector<16x32xf32>
    %cst_730 = arith.constant dense<0.000000e+00> : vector<32x32xf32>
    %1578 = tpu.matmul %1492, %1577, %cst_730 {dimension_numbers = #tpu.dot_dimension_numbers<[1], [0], [0], [1], [0, 0, 1, 1], [], []>} : vector<32x16xf32>, vector<16x32xf32>, vector<32x32xf32> -> vector<32x32xf32>
    %1579 = tpu.concatenate %1532, %1555, %1578 in 0 : vector<32x32xf32>, vector<32x32xf32>, vector<32x32xf32> -> vector<96x32xf32>
    %cst_731 = arith.constant dense<0.000000e+00> : vector<32x32xf32>
    %1580 = tpu.matmul %1493, %1579, %cst_731 {dimension_numbers = #tpu.dot_dimension_numbers<[1], [0], [0], [1], [0, 0, 1, 1], [], []>} : vector<32x96xf32>, vector<96x32xf32>, vector<32x32xf32> -> vector<32x32xf32>
    %1581 = vector.broadcast %1494 : vector<32x1xf32> to vector<32x32xf32>
    %1582 = arith.addf %1580, %1581 : vector<32x32xf32>
    %c0_732 = arith.constant 0 : index
    %c0_733 = arith.constant 0 : index
    %1583 = vector.load %arg47[%c0_732, %c0_733] : memref<32x96xf32, #tpu.memory_space<vmem>>, vector<32x96xf32>
    %c0_734 = arith.constant 0 : index
    %c0_735 = arith.constant 0 : index
    %1584 = vector.load %arg48[%c0_734, %c0_735] : memref<32x1xf32, #tpu.memory_space<vmem>>, vector<32x1xf32>
    %1585 = tpu.iota {dimensions = array<i32: 0>} : vector<32x32xi32>
    %1586 = tpu.iota {dimensions = array<i32: 1>} : vector<32x32xi32>
    %c0_i32_736 = arith.constant 0 : i32
    %1587 = vector.broadcast %c0_i32_736 : i32 to vector<32x32xi32>
    %c16_i32_737 = arith.constant 16 : i32
    %1588 = vector.broadcast %c16_i32_737 : i32 to vector<32x32xi32>
    %1589 = arith.cmpi sge, %1586, %1588 : vector<32x32xi32>
    %c1_i32_738 = arith.constant 1 : i32
    %c0_i32_739 = arith.constant 0 : i32
    %1590 = vector.broadcast %c1_i32_738 : i32 to vector<32x32xi32>
    %1591 = vector.broadcast %c0_i32_739 : i32 to vector<32x32xi32>
    %1592 = arith.select %1589, %1590, %1591 : vector<32x32xi1>, vector<32x32xi32>
    %1593 = arith.addi %1587, %1592 : vector<32x32xi32>
    %c16_i32_740 = arith.constant 16 : i32
    %1594 = vector.broadcast %c16_i32_740 : i32 to vector<32x32xi32>
    %1595 = arith.muli %1593, %1594 : vector<32x32xi32>
    %1596 = arith.subi %1586, %1595 : vector<32x32xi32>
    %c16_i32_741 = arith.constant 16 : i32
    %1597 = vector.broadcast %c16_i32_741 : i32 to vector<32x32xi32>
    %1598 = arith.muli %1593, %1597 : vector<32x32xi32>
    %1599 = arith.subi %1585, %1598 : vector<32x32xi32>
    %c1_i32_742 = arith.constant 1 : i32
    %1600 = vector.broadcast %c1_i32_742 : i32 to vector<32x32xi32>
    %1601 = arith.muli %1600, %1596 : vector<32x32xi32>
    %c-1_i32_743 = arith.constant -1 : i32
    %1602 = vector.broadcast %c-1_i32_743 : i32 to vector<32x32xi32>
    %1603 = arith.addi %1601, %1602 : vector<32x32xi32>
    %c1_i32_744 = arith.constant 1 : i32
    %1604 = vector.broadcast %c1_i32_744 : i32 to vector<32x32xi32>
    %1605 = arith.muli %1604, %1599 : vector<32x32xi32>
    %1606 = arith.cmpi sle, %1605, %1603 : vector<32x32xi32>
    %c1_i32_745 = arith.constant 1 : i32
    %1607 = vector.broadcast %c1_i32_745 : i32 to vector<32x32xi32>
    %1608 = arith.muli %1607, %1599 : vector<32x32xi32>
    %c1_i32_746 = arith.constant 1 : i32
    %1609 = vector.broadcast %c1_i32_746 : i32 to vector<32x32xi32>
    %1610 = arith.addi %1608, %1609 : vector<32x32xi32>
    %1611 = arith.cmpi slt, %1603, %1610 : vector<32x32xi32>
    %1612 = arith.andi %1606, %1611 : vector<32x32xi1>
    %c0_i32_747 = arith.constant 0 : i32
    %1613 = vector.broadcast %c0_i32_747 : i32 to vector<32x32xi32>
    %1614 = arith.cmpi sge, %1603, %1613 : vector<32x32xi32>
    %1615 = arith.andi %1612, %1614 : vector<32x32xi1>
    %c16_i32_748 = arith.constant 16 : i32
    %1616 = vector.broadcast %c16_i32_748 : i32 to vector<32x32xi32>
    %1617 = arith.cmpi slt, %1603, %1616 : vector<32x32xi32>
    %1618 = arith.andi %1615, %1617 : vector<32x32xi1>
    %cst_749 = arith.constant 1.000000e+00 : f32
    %cst_750 = arith.constant 0.000000e+00 : f32
    %1619 = vector.broadcast %cst_749 : f32 to vector<32x32xf32>
    %1620 = vector.broadcast %cst_750 : f32 to vector<32x32xf32>
    %1621 = arith.select %1618, %1619, %1620 : vector<32x32xi1>, vector<32x32xf32>
    %cst_751 = arith.constant dense<0.000000e+00> : vector<32x32xf32>
    %1622 = tpu.matmul %1582, %1621, %cst_751 {dimension_numbers = #tpu.dot_dimension_numbers<[1], [0], [0], [1], [0, 0, 1, 1], [], []>} : vector<32x32xf32>, vector<32x32xf32>, vector<32x32xf32> -> vector<32x32xf32>
    %c1_i32_752 = arith.constant 1 : i32
    %1623 = vector.broadcast %c1_i32_752 : i32 to vector<32x32xi32>
    %1624 = arith.muli %1623, %1596 : vector<32x32xi32>
    %c0_i32_753 = arith.constant 0 : i32
    %1625 = vector.broadcast %c0_i32_753 : i32 to vector<32x32xi32>
    %1626 = arith.addi %1624, %1625 : vector<32x32xi32>
    %c1_i32_754 = arith.constant 1 : i32
    %1627 = vector.broadcast %c1_i32_754 : i32 to vector<32x32xi32>
    %1628 = arith.muli %1627, %1599 : vector<32x32xi32>
    %1629 = arith.cmpi sle, %1628, %1626 : vector<32x32xi32>
    %c1_i32_755 = arith.constant 1 : i32
    %1630 = vector.broadcast %c1_i32_755 : i32 to vector<32x32xi32>
    %1631 = arith.muli %1630, %1599 : vector<32x32xi32>
    %c1_i32_756 = arith.constant 1 : i32
    %1632 = vector.broadcast %c1_i32_756 : i32 to vector<32x32xi32>
    %1633 = arith.addi %1631, %1632 : vector<32x32xi32>
    %1634 = arith.cmpi slt, %1626, %1633 : vector<32x32xi32>
    %1635 = arith.andi %1629, %1634 : vector<32x32xi1>
    %c0_i32_757 = arith.constant 0 : i32
    %1636 = vector.broadcast %c0_i32_757 : i32 to vector<32x32xi32>
    %1637 = arith.cmpi sge, %1626, %1636 : vector<32x32xi32>
    %1638 = arith.andi %1635, %1637 : vector<32x32xi1>
    %c16_i32_758 = arith.constant 16 : i32
    %1639 = vector.broadcast %c16_i32_758 : i32 to vector<32x32xi32>
    %1640 = arith.cmpi slt, %1626, %1639 : vector<32x32xi32>
    %1641 = arith.andi %1638, %1640 : vector<32x32xi1>
    %cst_759 = arith.constant 1.000000e+00 : f32
    %cst_760 = arith.constant 0.000000e+00 : f32
    %1642 = vector.broadcast %cst_759 : f32 to vector<32x32xf32>
    %1643 = vector.broadcast %cst_760 : f32 to vector<32x32xf32>
    %1644 = arith.select %1641, %1642, %1643 : vector<32x32xi1>, vector<32x32xf32>
    %cst_761 = arith.constant dense<0.000000e+00> : vector<32x32xf32>
    %1645 = tpu.matmul %1582, %1644, %cst_761 {dimension_numbers = #tpu.dot_dimension_numbers<[1], [0], [0], [1], [0, 0, 1, 1], [], []>} : vector<32x32xf32>, vector<32x32xf32>, vector<32x32xf32> -> vector<32x32xf32>
    %c1_i32_762 = arith.constant 1 : i32
    %1646 = vector.broadcast %c1_i32_762 : i32 to vector<32x32xi32>
    %1647 = arith.muli %1646, %1596 : vector<32x32xi32>
    %c1_i32_763 = arith.constant 1 : i32
    %1648 = vector.broadcast %c1_i32_763 : i32 to vector<32x32xi32>
    %1649 = arith.addi %1647, %1648 : vector<32x32xi32>
    %c1_i32_764 = arith.constant 1 : i32
    %1650 = vector.broadcast %c1_i32_764 : i32 to vector<32x32xi32>
    %1651 = arith.muli %1650, %1599 : vector<32x32xi32>
    %1652 = arith.cmpi sle, %1651, %1649 : vector<32x32xi32>
    %c1_i32_765 = arith.constant 1 : i32
    %1653 = vector.broadcast %c1_i32_765 : i32 to vector<32x32xi32>
    %1654 = arith.muli %1653, %1599 : vector<32x32xi32>
    %c1_i32_766 = arith.constant 1 : i32
    %1655 = vector.broadcast %c1_i32_766 : i32 to vector<32x32xi32>
    %1656 = arith.addi %1654, %1655 : vector<32x32xi32>
    %1657 = arith.cmpi slt, %1649, %1656 : vector<32x32xi32>
    %1658 = arith.andi %1652, %1657 : vector<32x32xi1>
    %c0_i32_767 = arith.constant 0 : i32
    %1659 = vector.broadcast %c0_i32_767 : i32 to vector<32x32xi32>
    %1660 = arith.cmpi sge, %1649, %1659 : vector<32x32xi32>
    %1661 = arith.andi %1658, %1660 : vector<32x32xi1>
    %c16_i32_768 = arith.constant 16 : i32
    %1662 = vector.broadcast %c16_i32_768 : i32 to vector<32x32xi32>
    %1663 = arith.cmpi slt, %1649, %1662 : vector<32x32xi32>
    %1664 = arith.andi %1661, %1663 : vector<32x32xi1>
    %cst_769 = arith.constant 1.000000e+00 : f32
    %cst_770 = arith.constant 0.000000e+00 : f32
    %1665 = vector.broadcast %cst_769 : f32 to vector<32x32xf32>
    %1666 = vector.broadcast %cst_770 : f32 to vector<32x32xf32>
    %1667 = arith.select %1664, %1665, %1666 : vector<32x32xi1>, vector<32x32xf32>
    %cst_771 = arith.constant dense<0.000000e+00> : vector<32x32xf32>
    %1668 = tpu.matmul %1582, %1667, %cst_771 {dimension_numbers = #tpu.dot_dimension_numbers<[1], [0], [0], [1], [0, 0, 1, 1], [], []>} : vector<32x32xf32>, vector<32x32xf32>, vector<32x32xf32> -> vector<32x32xf32>
    %1669 = tpu.concatenate %1622, %1645, %1668 in 0 : vector<32x32xf32>, vector<32x32xf32>, vector<32x32xf32> -> vector<96x32xf32>
    %cst_772 = arith.constant dense<0.000000e+00> : vector<32x32xf32>
    %1670 = tpu.matmul %1583, %1669, %cst_772 {dimension_numbers = #tpu.dot_dimension_numbers<[1], [0], [0], [1], [0, 0, 1, 1], [], []>} : vector<32x96xf32>, vector<96x32xf32>, vector<32x32xf32> -> vector<32x32xf32>
    %1671 = vector.broadcast %1584 : vector<32x1xf32> to vector<32x32xf32>
    %1672 = arith.addf %1670, %1671 : vector<32x32xf32>
    %cst_773 = arith.constant 0.000000e+00 : f32
    %1673 = vector.broadcast %cst_773 : f32 to vector<32x32xf32>
    %1674 = arith.maximumf %1672, %1673 : vector<32x32xf32>
    %c0_774 = arith.constant 0 : index
    %c0_775 = arith.constant 0 : index
    %1675 = vector.load %arg49[%c0_774, %c0_775] : memref<8x96xf32, #tpu.memory_space<vmem>>, vector<8x96xf32>
    %c0_776 = arith.constant 0 : index
    %c0_777 = arith.constant 0 : index
    %1676 = vector.load %arg50[%c0_776, %c0_777] : memref<8x1xf32, #tpu.memory_space<vmem>>, vector<8x1xf32>
    %1677 = tpu.iota {dimensions = array<i32: 0>} : vector<32x32xi32>
    %1678 = tpu.iota {dimensions = array<i32: 1>} : vector<32x32xi32>
    %c0_i32_778 = arith.constant 0 : i32
    %1679 = vector.broadcast %c0_i32_778 : i32 to vector<32x32xi32>
    %c16_i32_779 = arith.constant 16 : i32
    %1680 = vector.broadcast %c16_i32_779 : i32 to vector<32x32xi32>
    %1681 = arith.cmpi sge, %1678, %1680 : vector<32x32xi32>
    %c1_i32_780 = arith.constant 1 : i32
    %c0_i32_781 = arith.constant 0 : i32
    %1682 = vector.broadcast %c1_i32_780 : i32 to vector<32x32xi32>
    %1683 = vector.broadcast %c0_i32_781 : i32 to vector<32x32xi32>
    %1684 = arith.select %1681, %1682, %1683 : vector<32x32xi1>, vector<32x32xi32>
    %1685 = arith.addi %1679, %1684 : vector<32x32xi32>
    %c16_i32_782 = arith.constant 16 : i32
    %1686 = vector.broadcast %c16_i32_782 : i32 to vector<32x32xi32>
    %1687 = arith.muli %1685, %1686 : vector<32x32xi32>
    %1688 = arith.subi %1678, %1687 : vector<32x32xi32>
    %c16_i32_783 = arith.constant 16 : i32
    %1689 = vector.broadcast %c16_i32_783 : i32 to vector<32x32xi32>
    %1690 = arith.muli %1685, %1689 : vector<32x32xi32>
    %1691 = arith.subi %1677, %1690 : vector<32x32xi32>
    %c1_i32_784 = arith.constant 1 : i32
    %1692 = vector.broadcast %c1_i32_784 : i32 to vector<32x32xi32>
    %1693 = arith.muli %1692, %1688 : vector<32x32xi32>
    %c-1_i32_785 = arith.constant -1 : i32
    %1694 = vector.broadcast %c-1_i32_785 : i32 to vector<32x32xi32>
    %1695 = arith.addi %1693, %1694 : vector<32x32xi32>
    %c1_i32_786 = arith.constant 1 : i32
    %1696 = vector.broadcast %c1_i32_786 : i32 to vector<32x32xi32>
    %1697 = arith.muli %1696, %1691 : vector<32x32xi32>
    %1698 = arith.cmpi sle, %1697, %1695 : vector<32x32xi32>
    %c1_i32_787 = arith.constant 1 : i32
    %1699 = vector.broadcast %c1_i32_787 : i32 to vector<32x32xi32>
    %1700 = arith.muli %1699, %1691 : vector<32x32xi32>
    %c1_i32_788 = arith.constant 1 : i32
    %1701 = vector.broadcast %c1_i32_788 : i32 to vector<32x32xi32>
    %1702 = arith.addi %1700, %1701 : vector<32x32xi32>
    %1703 = arith.cmpi slt, %1695, %1702 : vector<32x32xi32>
    %1704 = arith.andi %1698, %1703 : vector<32x32xi1>
    %c0_i32_789 = arith.constant 0 : i32
    %1705 = vector.broadcast %c0_i32_789 : i32 to vector<32x32xi32>
    %1706 = arith.cmpi sge, %1695, %1705 : vector<32x32xi32>
    %1707 = arith.andi %1704, %1706 : vector<32x32xi1>
    %c16_i32_790 = arith.constant 16 : i32
    %1708 = vector.broadcast %c16_i32_790 : i32 to vector<32x32xi32>
    %1709 = arith.cmpi slt, %1695, %1708 : vector<32x32xi32>
    %1710 = arith.andi %1707, %1709 : vector<32x32xi1>
    %cst_791 = arith.constant 1.000000e+00 : f32
    %cst_792 = arith.constant 0.000000e+00 : f32
    %1711 = vector.broadcast %cst_791 : f32 to vector<32x32xf32>
    %1712 = vector.broadcast %cst_792 : f32 to vector<32x32xf32>
    %1713 = arith.select %1710, %1711, %1712 : vector<32x32xi1>, vector<32x32xf32>
    %cst_793 = arith.constant dense<0.000000e+00> : vector<32x32xf32>
    %1714 = tpu.matmul %1674, %1713, %cst_793 {dimension_numbers = #tpu.dot_dimension_numbers<[1], [0], [0], [1], [0, 0, 1, 1], [], []>} : vector<32x32xf32>, vector<32x32xf32>, vector<32x32xf32> -> vector<32x32xf32>
    %c1_i32_794 = arith.constant 1 : i32
    %1715 = vector.broadcast %c1_i32_794 : i32 to vector<32x32xi32>
    %1716 = arith.muli %1715, %1688 : vector<32x32xi32>
    %c0_i32_795 = arith.constant 0 : i32
    %1717 = vector.broadcast %c0_i32_795 : i32 to vector<32x32xi32>
    %1718 = arith.addi %1716, %1717 : vector<32x32xi32>
    %c1_i32_796 = arith.constant 1 : i32
    %1719 = vector.broadcast %c1_i32_796 : i32 to vector<32x32xi32>
    %1720 = arith.muli %1719, %1691 : vector<32x32xi32>
    %1721 = arith.cmpi sle, %1720, %1718 : vector<32x32xi32>
    %c1_i32_797 = arith.constant 1 : i32
    %1722 = vector.broadcast %c1_i32_797 : i32 to vector<32x32xi32>
    %1723 = arith.muli %1722, %1691 : vector<32x32xi32>
    %c1_i32_798 = arith.constant 1 : i32
    %1724 = vector.broadcast %c1_i32_798 : i32 to vector<32x32xi32>
    %1725 = arith.addi %1723, %1724 : vector<32x32xi32>
    %1726 = arith.cmpi slt, %1718, %1725 : vector<32x32xi32>
    %1727 = arith.andi %1721, %1726 : vector<32x32xi1>
    %c0_i32_799 = arith.constant 0 : i32
    %1728 = vector.broadcast %c0_i32_799 : i32 to vector<32x32xi32>
    %1729 = arith.cmpi sge, %1718, %1728 : vector<32x32xi32>
    %1730 = arith.andi %1727, %1729 : vector<32x32xi1>
    %c16_i32_800 = arith.constant 16 : i32
    %1731 = vector.broadcast %c16_i32_800 : i32 to vector<32x32xi32>
    %1732 = arith.cmpi slt, %1718, %1731 : vector<32x32xi32>
    %1733 = arith.andi %1730, %1732 : vector<32x32xi1>
    %cst_801 = arith.constant 1.000000e+00 : f32
    %cst_802 = arith.constant 0.000000e+00 : f32
    %1734 = vector.broadcast %cst_801 : f32 to vector<32x32xf32>
    %1735 = vector.broadcast %cst_802 : f32 to vector<32x32xf32>
    %1736 = arith.select %1733, %1734, %1735 : vector<32x32xi1>, vector<32x32xf32>
    %cst_803 = arith.constant dense<0.000000e+00> : vector<32x32xf32>
    %1737 = tpu.matmul %1674, %1736, %cst_803 {dimension_numbers = #tpu.dot_dimension_numbers<[1], [0], [0], [1], [0, 0, 1, 1], [], []>} : vector<32x32xf32>, vector<32x32xf32>, vector<32x32xf32> -> vector<32x32xf32>
    %c1_i32_804 = arith.constant 1 : i32
    %1738 = vector.broadcast %c1_i32_804 : i32 to vector<32x32xi32>
    %1739 = arith.muli %1738, %1688 : vector<32x32xi32>
    %c1_i32_805 = arith.constant 1 : i32
    %1740 = vector.broadcast %c1_i32_805 : i32 to vector<32x32xi32>
    %1741 = arith.addi %1739, %1740 : vector<32x32xi32>
    %c1_i32_806 = arith.constant 1 : i32
    %1742 = vector.broadcast %c1_i32_806 : i32 to vector<32x32xi32>
    %1743 = arith.muli %1742, %1691 : vector<32x32xi32>
    %1744 = arith.cmpi sle, %1743, %1741 : vector<32x32xi32>
    %c1_i32_807 = arith.constant 1 : i32
    %1745 = vector.broadcast %c1_i32_807 : i32 to vector<32x32xi32>
    %1746 = arith.muli %1745, %1691 : vector<32x32xi32>
    %c1_i32_808 = arith.constant 1 : i32
    %1747 = vector.broadcast %c1_i32_808 : i32 to vector<32x32xi32>
    %1748 = arith.addi %1746, %1747 : vector<32x32xi32>
    %1749 = arith.cmpi slt, %1741, %1748 : vector<32x32xi32>
    %1750 = arith.andi %1744, %1749 : vector<32x32xi1>
    %c0_i32_809 = arith.constant 0 : i32
    %1751 = vector.broadcast %c0_i32_809 : i32 to vector<32x32xi32>
    %1752 = arith.cmpi sge, %1741, %1751 : vector<32x32xi32>
    %1753 = arith.andi %1750, %1752 : vector<32x32xi1>
    %c16_i32_810 = arith.constant 16 : i32
    %1754 = vector.broadcast %c16_i32_810 : i32 to vector<32x32xi32>
    %1755 = arith.cmpi slt, %1741, %1754 : vector<32x32xi32>
    %1756 = arith.andi %1753, %1755 : vector<32x32xi1>
    %cst_811 = arith.constant 1.000000e+00 : f32
    %cst_812 = arith.constant 0.000000e+00 : f32
    %1757 = vector.broadcast %cst_811 : f32 to vector<32x32xf32>
    %1758 = vector.broadcast %cst_812 : f32 to vector<32x32xf32>
    %1759 = arith.select %1756, %1757, %1758 : vector<32x32xi1>, vector<32x32xf32>
    %cst_813 = arith.constant dense<0.000000e+00> : vector<32x32xf32>
    %1760 = tpu.matmul %1674, %1759, %cst_813 {dimension_numbers = #tpu.dot_dimension_numbers<[1], [0], [0], [1], [0, 0, 1, 1], [], []>} : vector<32x32xf32>, vector<32x32xf32>, vector<32x32xf32> -> vector<32x32xf32>
    %1761 = tpu.concatenate %1714, %1737, %1760 in 0 : vector<32x32xf32>, vector<32x32xf32>, vector<32x32xf32> -> vector<96x32xf32>
    %cst_814 = arith.constant dense<0.000000e+00> : vector<8x32xf32>
    %1762 = tpu.matmul %1675, %1761, %cst_814 {dimension_numbers = #tpu.dot_dimension_numbers<[1], [0], [0], [1], [0, 0, 1, 1], [], []>} : vector<8x96xf32>, vector<96x32xf32>, vector<8x32xf32> -> vector<8x32xf32>
    %1763 = vector.broadcast %1676 : vector<8x1xf32> to vector<8x32xf32>
    %1764 = arith.addf %1762, %1763 : vector<8x32xf32>
    %c0_815 = arith.constant 0 : index
    %c0_816 = arith.constant 0 : index
    %1765 = vector.load %arg57[%c0_815, %c0_816] : memref<8x32xf32, #tpu.memory_space<vmem>>, vector<8x32xf32>
    tpu.vector_store %arg57[%c0_815, %c0_816], %1764 {strides = array<i32>} : memref<8x32xf32, #tpu.memory_space<vmem>>, vector<8x32xf32>,
    %1766 = tpu.iota {dimensions = array<i32: 1>} : vector<1x2xi32>
    %c0_i32_817 = arith.constant 0 : i32
    %1767 = vector.broadcast %c0_i32_817 : i32 to vector<1x2xi32>
    %1768 = arith.cmpi eq, %1766, %1767 : vector<1x2xi32>
    %1769 = vector.shape_cast %893 : vector<1x1xf32> to vector<1x1xf32>
    %1770 = vector.broadcast %1769 : vector<1x1xf32> to vector<1x2xf32>
    %1771 = vector.shape_cast %910 : vector<1x1xf32> to vector<1x1xf32>
    %1772 = vector.broadcast %1771 : vector<1x1xf32> to vector<1x2xf32>
    %1773 = arith.select %1768, %1770, %1772 : vector<1x2xi1>, vector<1x2xf32>
    %c0_818 = arith.constant 0 : index
    %c0_819 = arith.constant 0 : index
    %1774 = vector.load %arg58[%c0_818, %c0_819] : memref<1x2xf32, #tpu.memory_space<vmem>>, vector<1x2xf32>
    tpu.vector_store %arg58[%c0_818, %c0_819], %1773 {strides = array<i32>} : memref<1x2xf32, #tpu.memory_space<vmem>>, vector<1x2xf32>,
    return
  }
}

</mosaic_0001>

<bundles_post_ra>
// kernel: motion_prior_forward.1
= control target key start
LH: loop header
LB: loop body
LE: loop exit
PB: predicated region body
PF: predicated region fallthrough
CT: control target
= control target key end

     0   :  { %s13987_s6 = smov 1   ;;  %s13988_s10 = smov 2   ;;  %s16970_s0 = inlined_call_operand.smem [shape: u32[59], index: -1, kind: input, shape index: {}] }
   0x1   :  { %s14112_s5 = sld [smem:[%s16970_s0]]   ;;  %s13989_s14 = smov 3  }
   0x2   :  { %s14117_s9 = sld [smem:[%s16970_s0 + %s13987_s6]]   ;;  %s13990_s18 = smov 4  }
   0x3   :  { %s14122_s13 = sld [smem:[%s16970_s0 + %s13988_s10]]   ;;  %s13991_s22 = smov 5  }
   0x4   :  { %s14127_s17 = sld [smem:[%s16970_s0 + %s13989_s14]]   ;;  %s13992_s26 = smov 6  }
   0x5   :  { %s14132_s21 = sld [smem:[%s16970_s0 + %s13990_s18]]   ;;  %s13993_s30 = smov 7  }
   0x6   :  { %s14137_s25 = sld [smem:[%s16970_s0 + %s13991_s22]]   ;;  %s13994_s4 = smov 8  }
   0x7   :  { %17114 = sst [smem:[#allocation109_spill]] %s14112_s5  ;;  %s13995_s10 = smov 9  }
   0x8   :  { %17115 = sst [smem:[#allocation110_spill]] %s14117_s9  ;;  %s13996_s15 = smov 10  }
   0x9   :  { %17116 = sst [smem:[#allocation111_spill]] %s14122_s13  ;;  %s13997_s20 = smov 11  }
   0xa   :  { %17117 = sst [smem:[#allocation112_spill]] %s14127_s17  ;;  %s13999_s1 = smov 13  }
   0xb   :  { %s14142_s29 = sld [smem:[%s16970_s0 + %s13992_s26]]   ;;  %s13998_s26 = smov 12  }
   0xc   :  { %17118 = sst [smem:[#allocation113_spill]] %s14137_s25  ;;  %s14000_s7 = smov 14  }
   0xd   :  { %s14147_s3 = sld [smem:[%s16970_s0 + %s13993_s30]]   ;;  %s14002_s22 = smov 16  }
   0xe   :  { %s14152_s8 = sld [smem:[%s16970_s0 + %s13994_s4]]   ;;  %s14003_s28 = smov 17  }
   0xf   :  { %s14157_s14 = sld [smem:[%s16970_s0 + %s13995_s10]]  }
  0x10   :  { %s14162_s19 = sld [smem:[%s16970_s0 + %s13996_s15]]   ;;  %s14001_s15 = smov 15  }
  0x11   :  { %s14167_s24 = sld [smem:[%s16970_s0 + %s13997_s20]]  }
  0x12   :  { %s14172_s30 = sld [smem:[%s16970_s0 + %s13998_s26]]  }
  0x13   :  { %17119 = sst [smem:[#allocation114_spill]] %s14147_s3 }
  0x14   :  { %s14177_s6 = sld [smem:[%s16970_s0 + %s13999_s1]]  }
  0x15   :  { %17120 = sst [smem:[#allocation115_spill]] %s14157_s14 }
  0x16   :  { %s14182_s12 = sld [smem:[%s16970_s0 + %s14000_s7]]   ;;  %s14004_s7 = smov 18  }
  0x17   :  { %17121 = sst [smem:[#allocation116_spill]] %s14167_s24 }
  0x18   :  { %s14187_s20 = sld [smem:[%s16970_s0 + %s14001_s15]]   ;;  %s14005_s15 = smov 19  }
  0x19   :  { %s14192_s27 = sld [smem:[%s16970_s0 + %s14002_s22]]   ;;  %s14006_s22 = smov 20  }
  0x1a   :  { %17122 = sst [smem:[#allocation117_spill]] %s14177_s6 }
  0x1b   :  { %s14197_s4 = sld [smem:[%s16970_s0 + %s14003_s28]]   ;;  %s14007_s28 = smov 21  }
  0x1c   :  { %s14202_s9 = sld [smem:[%s16970_s0 + %s14004_s7]]   ;;  %s14008_s7 = smov 22  }
  0x1d   :  { %s14207_s5 = sld [smem:[%s16970_s0 + %s14005_s15]]   ;;  %s14009_s15 = smov 23  }
  0x1e   :  { %17123 = sst [smem:[#allocation118_spill]] %s14187_s20 }
  0x1f   :  { %s14212_s13 = sld [smem:[%s16970_s0 + %s14006_s22]]   ;;  %s14010_s22 = smov 24  }
  0x20   :  { %s14222_s20 = sld [smem:[%s16970_s0 + %s14008_s7]]   ;;  %s14012_s7 = smov 26  }
  0x21   :  { %17124 = sst [smem:[#allocation119_spill]] %s14197_s4 }
  0x22   :  { %s14217_s4 = sld [smem:[%s16970_s0 + %s14007_s28]]   ;;  %s14011_s28 = smov 25  }
  0x23   :  { %17125 = sst [smem:[#allocation120_spill]] %s14207_s5 }
  0x24   :  { %s14227_s5 = sld [smem:[%s16970_s0 + %s14009_s15]]   ;;  %s14013_s15 = smov 27  }
  0x25   :  { %s14232_s6 = sld [smem:[%s16970_s0 + %s14010_s22]]   ;;  %s14014_s22 = smov 28  }
  0x26   :  { %s14242_s24 = sld [smem:[%s16970_s0 + %s14012_s7]]   ;;  %s14016_s7 = smov 30  }
  0x27   :  { %s14252_s14 = sld [smem:[%s16970_s0 + %s14014_s22]]   ;;  %s14018_s22 = smov 32  }
  0x28   :  { %17126 = sst [smem:[#allocation121_spill]] %s14217_s4 }
  0x29   :  { %s14237_s4 = sld [smem:[%s16970_s0 + %s14011_s28]]   ;;  %s14015_s28 = smov 29  }
  0x2a   :  { %17127 = sst [smem:[#allocation122_spill]] %s14227_s5 }
  0x2b   :  { %s14247_s5 = sld [smem:[%s16970_s0 + %s14013_s15]]   ;;  %s14017_s15 = smov 31  }
  0x2c   :  { %s14262_s3 = sld [smem:[%s16970_s0 + %s14016_s7]]   ;;  %s14020_s7 = smov 34  }
  0x2d   :  { %s14272_s25 = sld [smem:[%s16970_s0 + %s14018_s22]]   ;;  %s14022_s22 = smov 36  }
  0x2e   :  { %s14282_s17 = sld [smem:[%s16970_s0 + %s14020_s7]]   ;;  %s14024_s7 = smov 38  }
  0x2f   :  { %17128 = sst [smem:[#allocation123_spill]] %s14237_s4 }
  0x30   :  { %s14257_s4 = sld [smem:[%s16970_s0 + %s14015_s28]]   ;;  %s14019_s28 = smov 33  }
  0x31   :  { %17129 = sst [smem:[#allocation124_spill]] %s14247_s5 }
  0x32   :  { %s14267_s5 = sld [smem:[%s16970_s0 + %s14017_s15]]   ;;  %s14021_s15 = smov 35  }
  0x33   :  { %17132 = sst [smem:[#allocation127_spill]] %s14272_s25 }
  0x34   :  { %17134 = sst [smem:[#allocation129_spill]] %s14282_s17 }
  0x35   :  { %s14292_s25 = sld [smem:[%s16970_s0 + %s14022_s22]]   ;;  %s14026_s22 = smov 40  }
  0x36   :  { %17130 = sst [smem:[#allocation125_spill]] %s14257_s4 }
  0x37   :  { %s14277_s4 = sld [smem:[%s16970_s0 + %s14019_s28]]   ;;  %s14023_s28 = smov 37  }
  0x38   :  { %17131 = sst [smem:[#allocation126_spill]] %s14267_s5 }
  0x39   :  { %s14287_s5 = sld [smem:[%s16970_s0 + %s14021_s15]]   ;;  %s14025_s15 = smov 39  }
  0x3a   :  { %s14302_s17 = sld [smem:[%s16970_s0 + %s14024_s7]]   ;;  %s14028_s7 = smov 42  }
  0x3b   :  { %17136 = sst [smem:[#allocation131_spill]] %s14292_s25 }
  0x3c   :  { %s14312_s25 = sld [smem:[%s16970_s0 + %s14026_s22]]   ;;  %s14030_s22 = smov 44  }
  0x3d   :  { %17133 = sst [smem:[#allocation128_spill]] %s14277_s4 }
  0x3e   :  { %s14297_s4 = sld [smem:[%s16970_s0 + %s14023_s28]]   ;;  %s14027_s28 = smov 41  }
  0x3f   :  { %17135 = sst [smem:[#allocation130_spill]] %s14287_s5 }
  0x40   :  { %17138 = sst [smem:[#allocation133_spill]] %s14302_s17 }
  0x41   :  { %s14307_s5 = sld [smem:[%s16970_s0 + %s14025_s15]]   ;;  %s14029_s15 = smov 43  }
  0x42   :  { %17140 = sst [smem:[#allocation135_spill]] %s14312_s25 }
  0x43   :  { %s14322_s17 = sld [smem:[%s16970_s0 + %s14028_s7]]   ;;  %s14032_s7 = smov 46  }
  0x44   :  { %17137 = sst [smem:[#allocation132_spill]] %s14297_s4 }
  0x45   :  { %s14317_s4 = sld [smem:[%s16970_s0 + %s14027_s28]]   ;;  %s14031_s28 = smov 45  }
  0x46   :  { %s14332_s25 = sld [smem:[%s16970_s0 + %s14030_s22]]   ;;  %s14034_s22 = smov 48  }
  0x47   :  { %17139 = sst [smem:[#allocation134_spill]] %s14307_s5 }
  0x48   :  { %s14327_s5 = sld [smem:[%s16970_s0 + %s14029_s15]]   ;;  %s14033_s15 = smov 47  }
  0x49   :  { %17142 = sst [smem:[#allocation137_spill]] %s14322_s17 }
  0x4a   :  { %s14342_s17 = sld [smem:[%s16970_s0 + %s14032_s7]]   ;;  %s14036_s7 = smov 50  }
  0x4b   :  { %17141 = sst [smem:[#allocation136_spill]] %s14317_s4 }
  0x4c   :  { %17144 = sst [smem:[#allocation139_spill]] %s14332_s25 }
  0x4d   :  { %s14337_s4 = sld [smem:[%s16970_s0 + %s14031_s28]]   ;;  %s14035_s28 = smov 49  }
  0x4e   :  { %17143 = sst [smem:[#allocation138_spill]] %s14327_s5 }
  0x4f   :  { %s14347_s5 = sld [smem:[%s16970_s0 + %s14033_s15]]   ;;  %s14037_s15 = smov 51  }
  0x50   :  { %17146 = sst [smem:[#allocation141_spill]] %s14342_s17 }
  0x51   :  { %s14352_s25 = sld [smem:[%s16970_s0 + %s14034_s22]]   ;;  %s14038_s22 = smov 52  }
  0x52   :  { %s14362_s17 = sld [smem:[%s16970_s0 + %s14036_s7]]   ;;  %s14040_s7 = smov 54  }
  0x53   :  { %17145 = sst [smem:[#allocation140_spill]] %s14337_s4 }
  0x54   :  { %s14357_s4 = sld [smem:[%s16970_s0 + %s14035_s28]]   ;;  %s14039_s28 = smov 53  }
  0x55   :  { %17147 = sst [smem:[#allocation142_spill]] %s14347_s5 }
  0x56   :  { %s14367_s5 = sld [smem:[%s16970_s0 + %s14037_s15]]   ;;  %s14041_s15 = smov 55  }
  0x57   :  { %17148 = sst [smem:[#allocation143_spill]] %s14352_s25 }
  0x58   :  { %17150 = sst [smem:[#allocation145_spill]] %s14362_s17 }
  0x59   :  { %s14372_s25 = sld [smem:[%s16970_s0 + %s14038_s22]]   ;;  %s14042_s22 = smov 56  }
  0x5a   :  { %17149 = sst [smem:[#allocation144_spill]] %s14357_s4 }
  0x5b   :  { %s14377_s4 = sld [smem:[%s16970_s0 + %s14039_s28]]   ;;  %s14043_s28 = smov 57  }
  0x5c   :  { %17151 = sst [smem:[#allocation146_spill]] %s14367_s5 }
  0x5d   :  { %s14382_s17 = sld [smem:[%s16970_s0 + %s14040_s7]]   ;;  %s14044_s7 = smov 58  }
  0x5e   :  { %s14387_s5 = sld [smem:[%s16970_s0 + %s14041_s15]]  }
  0x5f   :  { %17152 = sst [smem:[#allocation147_spill]] %s14372_s25 }
  0x60   :  { %s14392_s25 = sld [smem:[%s16970_s0 + %s14042_s22]]  }
  0x61   :  { %17153 = sst [smem:[#allocation148_spill]] %s14377_s4 }
  0x62   :  { %s14397_s4 = sld [smem:[%s16970_s0 + %s14043_s28]]  }
  0x63   :  { %17154 = sst [smem:[#allocation149_spill]] %s14382_s17 }
  0x64   :  { %s14402_s17 = sld [smem:[%s16970_s0 + %s14044_s7]]  }
  0x65   :  { %123 = vsyncpa [#allocation3], 0 }
  0x66   :  { %124 = vsyncpa [#allocation5], 0 }
  0x67   :  { %125 = vsyncpa [#allocation8], 0 }
  0x68   :  { %126 = vsyncpa [#allocation11], 0 }
  0x69   :  { %127 = vsyncpa [#allocation14], 0 }
  0x6a   :  { %128 = vsyncpa [#allocation17], 0 }
  0x6b   :  { %129 = vsyncpa [#allocation20], 0 }
  0x6c   :  { %130 = vsyncpa [#allocation23], 0 }
  0x6d   :  { %131 = vsyncpa [#allocation26], 0 }
  0x6e   :  { %132 = vsyncpa [#allocation29], 0 }
  0x6f   :  { %133 = vsyncpa [#allocation32], 0 }
  0x70   :  { %134 = vsyncpa [#allocation35], 0 }
  0x71   :  { %135 = vsyncpa [#allocation38], 0 }
  0x72   :  { %136 = vsyncpa [#allocation41], 0 }
  0x73   :  { %137 = vsyncpa [#allocation44], 0 }
  0x74   :  { %138 = vsyncpa [#allocation47], 0 }
  0x75   :  { %139 = vsyncpa [#allocation50], 0 }
  0x76   :  { %140 = vsyncpa [#allocation53], 0 }
  0x77   :  { %141 = vsyncpa [#allocation56], 0 }
  0x78   :  { %142 = vsyncpa [#allocation59], 0 }
  0x79   :  { %143 = vsyncpa [#allocation62], 0 }
  0x7a   :  { %144 = vsyncpa [#allocation65], 0 }
  0x7b   :  { %145 = vsyncpa [#allocation68], 0 }
  0x7c   :  { %146 = vsyncpa [#allocation71], 0 }
  0x7d   :  { %147 = vsyncpa [#allocation74], 0 }
  0x7e   :  { %148 = vsyncpa [#allocation77], 0 }
  0x7f   :  { %149 = vsyncpa [#allocation80], 0  ;;  %s14045_s0 = smov [#allocation4]   ;;  %s14046_s16 = smov [#allocation7]  }
  0x80   :  { %s173_s15 = sshll.u32 %s14045_s0, 4  ;;  %s197_s18 = sshll.u32 %s14046_s16, 4  ;;  %s174_s15 = int_to_ptr.vmem [resolvable:$true] %s173_s15  ;;  %s198_s18 = int_to_ptr.vmem [resolvable:$true] %s197_s18 }
  0x81   :  { %s12881_s22 = scalar_lea.vmem %s174_s15, 512  ;;  %p12886_p1 = scmp.lt.s32.totalorder %s174_s15, %s174_s15 }
  0x82   :  { %p12882_p0 = scmp.ne.s32.totalorder %s174_s15, %s12881_s22  ;;  %p12887_p2 = scmp.lt.s32.totalorder %s12881_s22, %s12881_s22 }
  0x84   :  { %p12888_p3 = por %p12887_p2, %p12886_p1 }
  0x86   :  { %p12889_p4 = pnand %p12888_p3, %p12882_p0 }
  0x88   :  { %12892 = shalt.err (!%p12889_p4)
}
  0x89   :  { %s14047_s23 = smov 128   ;;  %s14048_s26 = smov 8  }
  0x8a   :  { %179 = dma.hbm_to_vmem [thread:$0]  %s14132_s21, 512, %s174_s15, [#allocation5], %s14047_s23, %s14047_s23, %s14048_s26  }
  0x8b   :  { %s12901_s28 = scalar_lea.vmem %s198_s18, 512  ;;  %p12906_p6 = scmp.lt.s32.totalorder %s198_s18, %s198_s18 }
  0x8c   :  { %p12902_p5 = scmp.ne.s32.totalorder %s198_s18, %s12901_s28  ;;  %p12907_p7 = scmp.lt.s32.totalorder %s12901_s28, %s12901_s28 }
  0x8e   :  { %p12908_p8 = por %p12907_p7, %p12906_p6 }
  0x90   :  { %p12909_p9 = pnand %p12908_p8, %p12902_p5 }
  0x92   :  { %12912 = shalt.err (!%p12909_p9)
}
  0x93   :  { %203 = dma.hbm_to_vmem [thread:$0]  %s14142_s29, 512, %s198_s18, [#allocation8], %s14047_s23, %s14047_s23, %s14048_s26  }
  0x94   :  { %s14049_s1 = smov [#allocation10]   ;;  %s14050_s7 = smov [#allocation13]  }
  0x95   :  { %s221_s2 = sshll.u32 %s14049_s1, 4  ;;  %s245_s10 = sshll.u32 %s14050_s7, 4  ;;  %s222_s2 = int_to_ptr.vmem [resolvable:$true] %s221_s2  ;;  %s246_s10 = int_to_ptr.vmem [resolvable:$true] %s245_s10 }
  0x96   :  { %s12921_s11 = scalar_lea.vmem %s222_s2, 512  ;;  %p12926_p11 = scmp.lt.s32.totalorder %s222_s2, %s222_s2 }
  0x97   :  { %p12922_p10 = scmp.ne.s32.totalorder %s222_s2, %s12921_s11  ;;  %p12927_p12 = scmp.lt.s32.totalorder %s12921_s11, %s12921_s11 }
  0x99   :  { %p12928_p13 = por %p12927_p12, %p12926_p11 }
  0x9b   :  { %p12929_p0 = pnand %p12928_p13, %p12922_p10 }
  0x9d   :  { %12932 = shalt.err (!%p12929_p0)
}
  0x9e   :  { %227 = dma.hbm_to_vmem [thread:$0]  %s14152_s8, 512, %s222_s2, [#allocation11], %s14047_s23, %s14047_s23, %s14048_s26  }
  0x9f   :  { %s12941_s21 = scalar_lea.vmem %s246_s10, 512  ;;  %p12946_p2 = scmp.lt.s32.totalorder %s246_s10, %s246_s10 }
  0xa0   :  { %p12942_p1 = scmp.ne.s32.totalorder %s246_s10, %s12941_s21  ;;  %p12947_p3 = scmp.lt.s32.totalorder %s12941_s21, %s12941_s21 }
  0xa2   :  { %p12948_p4 = por %p12947_p3, %p12946_p2 }
  0xa4   :  { %p12949_p5 = pnand %p12948_p4, %p12942_p1 }
  0xa6   :  { %12952 = shalt.err (!%p12949_p5)
}
  0xa7   :  { %251 = dma.hbm_to_vmem [thread:$0]  %s14162_s19, 512, %s246_s10, [#allocation14], %s14047_s23, %s14047_s23, %s14048_s26  }
  0xa8   :  { %s14051_s29 = smov [#allocation16]   ;;  %s14052_s15 = smov [#allocation19]  }
  0xa9   :  { %s269_s0 = sshll.u32 %s14051_s29, 4  ;;  %s293_s16 = sshll.u32 %s14052_s15, 4  ;;  %s270_s0 = int_to_ptr.vmem [resolvable:$true] %s269_s0  ;;  %s294_s16 = int_to_ptr.vmem [resolvable:$true] %s293_s16 }
  0xaa   :  { %s12961_s18 = scalar_lea.vmem %s270_s0, 512  ;;  %p12966_p7 = scmp.lt.s32.totalorder %s270_s0, %s270_s0 }
  0xab   :  { %p12962_p6 = scmp.ne.s32.totalorder %s270_s0, %s12961_s18  ;;  %p12967_p8 = scmp.lt.s32.totalorder %s12961_s18, %s12961_s18 }
  0xad   :  { %p12968_p9 = por %p12967_p8, %p12966_p7 }
  0xaf   :  { %p12969_p10 = pnand %p12968_p9, %p12962_p6 }
  0xb1   :  { %12972 = shalt.err (!%p12969_p10)
}
  0xb2   :  { %275 = dma.hbm_to_vmem [thread:$0]  %s14172_s30, 512, %s270_s0, [#allocation17], %s14047_s23, %s14047_s23, %s14048_s26  }
  0xb3   :  { %s12981_s8 = scalar_lea.vmem %s294_s16, 512  ;;  %p12986_p12 = scmp.lt.s32.totalorder %s294_s16, %s294_s16 }
  0xb4   :  { %p12982_p11 = scmp.ne.s32.totalorder %s294_s16, %s12981_s8  ;;  %p12987_p13 = scmp.lt.s32.totalorder %s12981_s8, %s12981_s8 }
  0xb6   :  { %p12988_p0 = por %p12987_p13, %p12986_p12 }
  0xb8   :  { %p12989_p1 = pnand %p12988_p0, %p12982_p11 }
  0xba   :  { %12992 = shalt.err (!%p12989_p1)
}
  0xbb   :  { %299 = dma.hbm_to_vmem [thread:$0]  %s14182_s12, 512, %s294_s16, [#allocation20], %s14047_s23, %s14047_s23, %s14048_s26  }
  0xbc   :  { %s14053_s19 = smov [#allocation22]   ;;  %s14054_s28 = smov [#allocation25]  }
  0xbd   :  { %s317_s22 = sshll.u32 %s14053_s19, 4  ;;  %s341_s1 = sshll.u32 %s14054_s28, 4  ;;  %s318_s22 = int_to_ptr.vmem [resolvable:$true] %s317_s22  ;;  %s342_s1 = int_to_ptr.vmem [resolvable:$true] %s341_s1 }
  0xbe   :  { %s13001_s2 = scalar_lea.vmem %s318_s22, 512  ;;  %p13006_p3 = scmp.lt.s32.totalorder %s318_s22, %s318_s22 }
  0xbf   :  { %p13002_p2 = scmp.ne.s32.totalorder %s318_s22, %s13001_s2  ;;  %p13007_p4 = scmp.lt.s32.totalorder %s13001_s2, %s13001_s2 }
  0xc1   :  { %p13008_p5 = por %p13007_p4, %p13006_p3 }
  0xc3   :  { %p13009_p6 = pnand %p13008_p5, %p13002_p2 }
  0xc5   :  { %13012 = shalt.err (!%p13009_p6)
}
  0xc6   :  { %323 = dma.hbm_to_vmem [thread:$0]  %s14192_s27, 512, %s318_s22, [#allocation23], %s14047_s23, %s14047_s23, %s14048_s26  }
  0xc7   :  { %s13021_s30 = scalar_lea.vmem %s342_s1, 512  ;;  %p13026_p8 = scmp.lt.s32.totalorder %s342_s1, %s342_s1 }
  0xc8   :  { %p13022_p7 = scmp.ne.s32.totalorder %s342_s1, %s13021_s30  ;;  %p13027_p9 = scmp.lt.s32.totalorder %s13021_s30, %s13021_s30 }
  0xca   :  { %p13028_p10 = por %p13027_p9, %p13026_p8 }
  0xcc   :  { %p13029_p11 = pnand %p13028_p10, %p13022_p7 }
  0xce   :  { %13032 = shalt.err (!%p13029_p11)
}
  0xcf   :  { %347 = dma.hbm_to_vmem [thread:$0]  %s14202_s9, 512, %s342_s1, [#allocation26], %s14047_s23, %s14047_s23, %s14048_s26  }
  0xd0   :  { %s14055_s12 = smov [#allocation28]   ;;  %s14056_s10 = smov [#allocation31]  }
  0xd1   :  { %s365_s7 = sshll.u32 %s14055_s12, 4  ;;  %s389_s11 = sshll.u32 %s14056_s10, 4  ;;  %s366_s7 = int_to_ptr.vmem [resolvable:$true] %s365_s7  ;;  %s390_s11 = int_to_ptr.vmem [resolvable:$true] %s389_s11 }
  0xd2   :  { %s13041_s21 = scalar_lea.vmem %s366_s7, 512  ;;  %p13046_p13 = scmp.lt.s32.totalorder %s366_s7, %s366_s7 }
  0xd3   :  { %p13042_p12 = scmp.ne.s32.totalorder %s366_s7, %s13041_s21  ;;  %p13047_p0 = scmp.lt.s32.totalorder %s13041_s21, %s13041_s21 }
  0xd5   :  { %p13048_p1 = por %p13047_p0, %p13046_p13 }
  0xd7   :  { %p13049_p2 = pnand %p13048_p1, %p13042_p12 }
  0xd9   :  { %13052 = shalt.err (!%p13049_p2)
}
  0xda   :  { %371 = dma.hbm_to_vmem [thread:$0]  %s14212_s13, 512, %s366_s7, [#allocation29], %s14047_s23, %s14047_s23, %s14048_s26  }
  0xdb   :  { %s13061_s27 = scalar_lea.vmem %s390_s11, 512  ;;  %p13066_p4 = scmp.lt.s32.totalorder %s390_s11, %s390_s11 }
  0xdc   :  { %p13062_p3 = scmp.ne.s32.totalorder %s390_s11, %s13061_s27  ;;  %p13067_p5 = scmp.lt.s32.totalorder %s13061_s27, %s13061_s27 }
  0xde   :  { %p13068_p6 = por %p13067_p5, %p13066_p4 }
  0xe0   :  { %p13069_p7 = pnand %p13068_p6, %p13062_p3 }
  0xe2   :  { %13072 = shalt.err (!%p13069_p7)
}
  0xe3   :  { %395 = dma.hbm_to_vmem [thread:$0]  %s14222_s20, 512, %s390_s11, [#allocation32], %s14047_s23, %s14047_s23, %s14048_s26  }
  0xe4   :  { %s14057_s9 = smov [#allocation34]   ;;  %s14058_s0 = smov [#allocation37]  }
  0xe5   :  { %s413_s29 = sshll.u32 %s14057_s9, 4  ;;  %s437_s15 = sshll.u32 %s14058_s0, 4  ;;  %s414_s29 = int_to_ptr.vmem [resolvable:$true] %s413_s29  ;;  %s438_s15 = int_to_ptr.vmem [resolvable:$true] %s437_s15 }
  0xe6   :  { %s13081_s16 = scalar_lea.vmem %s414_s29, 512  ;;  %p13086_p9 = scmp.lt.s32.totalorder %s414_s29, %s414_s29 }
  0xe7   :  { %p13082_p8 = scmp.ne.s32.totalorder %s414_s29, %s13081_s16  ;;  %p13087_p10 = scmp.lt.s32.totalorder %s13081_s16, %s13081_s16 }
  0xe9   :  { %p13088_p11 = por %p13087_p10, %p13086_p9 }
  0xeb   :  { %p13089_p12 = pnand %p13088_p11, %p13082_p8 }
  0xed   :  { %13092 = shalt.err (!%p13089_p12)
}
  0xee   :  { %419 = dma.hbm_to_vmem [thread:$0]  %s14232_s6, 512, %s414_s29, [#allocation35], %s14047_s23, %s14047_s23, %s14048_s26  }
  0xef   :  { %s13101_s13 = scalar_lea.vmem %s438_s15, 512  ;;  %p13106_p0 = scmp.lt.s32.totalorder %s438_s15, %s438_s15 }
  0xf0   :  { %p13102_p13 = scmp.ne.s32.totalorder %s438_s15, %s13101_s13  ;;  %p13107_p1 = scmp.lt.s32.totalorder %s13101_s13, %s13101_s13 }
  0xf2   :  { %p13108_p2 = por %p13107_p1, %p13106_p0 }
  0xf4   :  { %p13109_p3 = pnand %p13108_p2, %p13102_p13 }
  0xf6   :  { %13112 = shalt.err (!%p13109_p3)
}
  0xf7   :  { %443 = dma.hbm_to_vmem [thread:$0]  %s14242_s24, 512, %s438_s15, [#allocation38], %s14047_s23, %s14047_s23, %s14048_s26  }
  0xf8   :  { %s14059_s20 = smov [#allocation40]   ;;  %s14060_s8 = smov [#allocation43]  }
  0xf9   :  { %s461_s18 = sshll.u32 %s14059_s20, 4  ;;  %s485_s19 = sshll.u32 %s14060_s8, 4  ;;  %s462_s18 = int_to_ptr.vmem [resolvable:$true] %s461_s18  ;;  %s486_s19 = int_to_ptr.vmem [resolvable:$true] %s485_s19 }
  0xfa   :  { %s13121_s22 = scalar_lea.vmem %s462_s18, 512  ;;  %p13126_p5 = scmp.lt.s32.totalorder %s462_s18, %s462_s18 }
  0xfb   :  { %p13122_p4 = scmp.ne.s32.totalorder %s462_s18, %s13121_s22  ;;  %p13127_p6 = scmp.lt.s32.totalorder %s13121_s22, %s13121_s22 }
  0xfd   :  { %p13128_p7 = por %p13127_p6, %p13126_p5 }
  0xff   :  { %p13129_p8 = pnand %p13128_p7, %p13122_p4 }
 0x101   :  { %13132 = shalt.err (!%p13129_p8)
}
 0x102   :  { %467 = dma.hbm_to_vmem [thread:$0]  %s14252_s14, 512, %s462_s18, [#allocation41], %s14047_s23, %s14047_s23, %s14048_s26  }
 0x103   :  { %s13141_s6 = scalar_lea.vmem %s486_s19, 512  ;;  %p13146_p10 = scmp.lt.s32.totalorder %s486_s19, %s486_s19 }
 0x104   :  { %p13142_p9 = scmp.ne.s32.totalorder %s486_s19, %s13141_s6  ;;  %p13147_p11 = scmp.lt.s32.totalorder %s13141_s6, %s13141_s6 }
 0x106   :  { %p13148_p12 = por %p13147_p11, %p13146_p10 }
 0x108   :  { %p13149_p13 = pnand %p13148_p12, %p13142_p9 }
 0x10a   :  { %13152 = shalt.err (!%p13149_p13)
}
 0x10b   :  { %491 = dma.hbm_to_vmem [thread:$0]  %s14262_s3, 512, %s486_s19, [#allocation44], %s14047_s23, %s14047_s23, %s14048_s26  }
 0x10c   :  { %s14061_s24 = smov [#allocation46]   ;;  %s14062_s1 = smov [#allocation49]  }
 0x10d   :  { %s509_s28 = sshll.u32 %s14061_s24, 4  ;;  %s533_s2 = sshll.u32 %s14062_s1, 4  ;;  %s510_s28 = int_to_ptr.vmem [resolvable:$true] %s509_s28  ;;  %s534_s2 = int_to_ptr.vmem [resolvable:$true] %s533_s2 }
 0x10e   :  { %s13161_s30 = scalar_lea.vmem %s510_s28, 512  ;;  %p13166_p1 = scmp.lt.s32.totalorder %s510_s28, %s510_s28 }
 0x10f   :  { %p13162_p0 = scmp.ne.s32.totalorder %s510_s28, %s13161_s30  ;;  %p13167_p2 = scmp.lt.s32.totalorder %s13161_s30, %s13161_s30 }
 0x111   :  { %p13168_p3 = por %p13167_p2, %p13166_p1 }
 0x113   :  { %p13169_p4 = pnand %p13168_p3, %p13162_p0 }
 0x115   :  { %13172 = shalt.err (!%p13169_p4)
}
 0x116   :  { %s17155_s14 = sld [smem:[#allocation127_spill]]  ;;  %s13181_s12 = scalar_lea.vmem %s534_s2, 512 }
 0x117   :  { %p13182_p5 = scmp.ne.s32.totalorder %s534_s2, %s13181_s12  ;;  %p13186_p6 = scmp.lt.s32.totalorder %s534_s2, %s534_s2 }
 0x118   :  { %p13187_p7 = scmp.lt.s32.totalorder %s13181_s12, %s13181_s12 }
 0x11a   :  { %p13188_p8 = por %p13187_p7, %p13186_p6 }
 0x11c   :  { %515 = dma.hbm_to_vmem [thread:$0]  %s17155_s14, 512, %s510_s28, [#allocation47], %s14047_s23, %s14047_s23, %s14048_s26  }
 0x11d   :  { %p13189_p9 = pnand %p13188_p8, %p13182_p5 }
 0x11f   :  { %13192 = shalt.err (!%p13189_p9)
}
 0x120   :  { %s17156_s3 = sld [smem:[#allocation129_spill]]  ;;  %s14063_s7 = smov [#allocation52]  }
 0x121   :  { %s557_s10 = sshll.u32 %s14063_s7, 4  ;;  %s14064_s11 = smov [#allocation55]   ;;  %s558_s10 = int_to_ptr.vmem [resolvable:$true] %s557_s10 }
 0x122   :  { %s581_s21 = sshll.u32 %s14064_s11, 4  ;;  %s13201_s27 = scalar_lea.vmem %s558_s10, 512  ;;  %s582_s21 = int_to_ptr.vmem [resolvable:$true] %s581_s21 }
 0x123   :  { %p13202_p10 = scmp.ne.s32.totalorder %s558_s10, %s13201_s27  ;;  %p13206_p11 = scmp.lt.s32.totalorder %s558_s10, %s558_s10 }
 0x124   :  { %p13207_p12 = scmp.lt.s32.totalorder %s13201_s27, %s13201_s27 }
 0x126   :  { %539 = dma.hbm_to_vmem [thread:$0]  %s17156_s3, 512, %s534_s2, [#allocation50], %s14047_s23, %s14047_s23, %s14048_s26  }
 0x127   :  { %p13208_p13 = por %p13207_p12, %p13206_p11 }
 0x129   :  { %p13209_p0 = pnand %p13208_p13, %p13202_p10 }
 0x12b   :  { %13212 = shalt.err (!%p13209_p0)
}
 0x12c   :  { %s17157_s9 = sld [smem:[#allocation131_spill]]  ;;  %s13221_s29 = scalar_lea.vmem %s582_s21, 512 }
 0x12d   :  { %p13222_p1 = scmp.ne.s32.totalorder %s582_s21, %s13221_s29  ;;  %p13226_p2 = scmp.lt.s32.totalorder %s582_s21, %s582_s21 }
 0x12e   :  { %p13227_p3 = scmp.lt.s32.totalorder %s13221_s29, %s13221_s29 }
 0x130   :  { %p13228_p4 = por %p13227_p3, %p13226_p2 }
 0x132   :  { %563 = dma.hbm_to_vmem [thread:$0]  %s17157_s9, 512, %s558_s10, [#allocation53], %s14047_s23, %s14047_s23, %s14048_s26  }
 0x133   :  { %p13229_p5 = pnand %p13228_p4, %p13222_p1 }
 0x135   :  { %13232 = shalt.err (!%p13229_p5)
}
 0x136   :  { %s17158_s0 = sld [smem:[#allocation133_spill]]  ;;  %s14065_s15 = smov [#allocation58]  }
 0x137   :  { %s605_s16 = sshll.u32 %s14065_s15, 4  ;;  %s14066_s13 = smov [#allocation61]   ;;  %s606_s16 = int_to_ptr.vmem [resolvable:$true] %s605_s16 }
 0x138   :  { %s629_s20 = sshll.u32 %s14066_s13, 4  ;;  %s13241_s18 = scalar_lea.vmem %s606_s16, 512  ;;  %s630_s20 = int_to_ptr.vmem [resolvable:$true] %s629_s20 }
 0x139   :  { %p13242_p6 = scmp.ne.s32.totalorder %s606_s16, %s13241_s18  ;;  %p13246_p7 = scmp.lt.s32.totalorder %s606_s16, %s606_s16 }
 0x13a   :  { %p13247_p8 = scmp.lt.s32.totalorder %s13241_s18, %s13241_s18 }
 0x13c   :  { %587 = dma.hbm_to_vmem [thread:$0]  %s17158_s0, 512, %s582_s21, [#allocation56], %s14047_s23, %s14047_s23, %s14048_s26  }
 0x13d   :  { %p13248_p9 = por %p13247_p8, %p13246_p7 }
 0x13f   :  { %p13249_p10 = pnand %p13248_p9, %p13242_p6 }
 0x141   :  { %13252 = shalt.err (!%p13249_p10)
}
 0x142   :  { %s17159_s8 = sld [smem:[#allocation135_spill]]  ;;  %s13261_s19 = scalar_lea.vmem %s630_s20, 512 }
 0x143   :  { %p13262_p11 = scmp.ne.s32.totalorder %s630_s20, %s13261_s19  ;;  %p13266_p12 = scmp.lt.s32.totalorder %s630_s20, %s630_s20 }
 0x144   :  { %p13267_p13 = scmp.lt.s32.totalorder %s13261_s19, %s13261_s19 }
 0x146   :  { %p13268_p0 = por %p13267_p13, %p13266_p12 }
 0x148   :  { %611 = dma.hbm_to_vmem [thread:$0]  %s17159_s8, 512, %s606_s16, [#allocation59], %s14047_s23, %s14047_s23, %s14048_s26  }
 0x149   :  { %p13269_p1 = pnand %p13268_p0, %p13262_p11 }
 0x14b   :  { %13272 = shalt.err (!%p13269_p1)
}
 0x14c   :  { %s17160_s22 = sld [smem:[#allocation137_spill]]  ;;  %s14067_s6 = smov [#allocation64]  }
 0x14d   :  { %s653_s24 = sshll.u32 %s14067_s6, 4  ;;  %s14068_s28 = smov [#allocation67]   ;;  %s654_s24 = int_to_ptr.vmem [resolvable:$true] %s653_s24 }
 0x14e   :  { %s677_s1 = sshll.u32 %s14068_s28, 4  ;;  %s13281_s2 = scalar_lea.vmem %s654_s24, 512  ;;  %s678_s1 = int_to_ptr.vmem [resolvable:$true] %s677_s1 }
 0x14f   :  { %p13282_p2 = scmp.ne.s32.totalorder %s654_s24, %s13281_s2  ;;  %p13286_p3 = scmp.lt.s32.totalorder %s654_s24, %s654_s24 }
 0x150   :  { %p13287_p4 = scmp.lt.s32.totalorder %s13281_s2, %s13281_s2 }
 0x152   :  { %635 = dma.hbm_to_vmem [thread:$0]  %s17160_s22, 512, %s630_s20, [#allocation62], %s14047_s23, %s14047_s23, %s14048_s26  }
 0x153   :  { %p13288_p5 = por %p13287_p4, %p13286_p3 }
 0x155   :  { %p13289_p6 = pnand %p13288_p5, %p13282_p2 }
 0x157   :  { %13292 = shalt.err (!%p13289_p6)
}
 0x158   :  { %s17161_s30 = sld [smem:[#allocation139_spill]]  ;;  %s13301_s14 = scalar_lea.vmem %s678_s1, 512 }
 0x159   :  { %p13302_p7 = scmp.ne.s32.totalorder %s678_s1, %s13301_s14  ;;  %p13306_p8 = scmp.lt.s32.totalorder %s678_s1, %s678_s1 }
 0x15a   :  { %p13307_p9 = scmp.lt.s32.totalorder %s13301_s14, %s13301_s14 }
 0x15c   :  { %p13308_p10 = por %p13307_p9, %p13306_p8 }
 0x15e   :  { %659 = dma.hbm_to_vmem [thread:$0]  %s17161_s30, 512, %s654_s24, [#allocation65], %s14047_s23, %s14047_s23, %s14048_s26  }
 0x15f   :  { %p13309_p11 = pnand %p13308_p10, %p13302_p7 }
 0x161   :  { %13312 = shalt.err (!%p13309_p11)
}
 0x162   :  { %s17162_s12 = sld [smem:[#allocation141_spill]]  ;;  %s14069_s3 = smov [#allocation70]  }
 0x163   :  { %s701_s7 = sshll.u32 %s14069_s3, 4  ;;  %s14070_s10 = smov [#allocation73]   ;;  %s702_s7 = int_to_ptr.vmem [resolvable:$true] %s701_s7 }
 0x164   :  { %s724_s11 = sshll.u32 %s14070_s10, 4  ;;  %s13321_s21 = scalar_lea.vmem %s702_s7, 512  ;;  %s725_s11 = int_to_ptr.vmem [resolvable:$true] %s724_s11 }
 0x165   :  { %p13322_p12 = scmp.ne.s32.totalorder %s702_s7, %s13321_s21  ;;  %p13326_p13 = scmp.lt.s32.totalorder %s702_s7, %s702_s7 }
 0x166   :  { %p13327_p0 = scmp.lt.s32.totalorder %s13321_s21, %s13321_s21 }
 0x168   :  { %683 = dma.hbm_to_vmem [thread:$0]  %s17162_s12, 512, %s678_s1, [#allocation68], %s14047_s23, %s14047_s23, %s14048_s26  }
 0x169   :  { %p13328_p1 = por %p13327_p0, %p13326_p13 }
 0x16b   :  { %p13329_p2 = pnand %p13328_p1, %p13322_p12 }
 0x16d   :  { %13332 = shalt.err (!%p13329_p2)
}
 0x16e   :  { %s17163_s27 = sld [smem:[#allocation143_spill]]  ;;  %s13341_s9 = scalar_lea.vmem %s725_s11, 128 }
 0x16f   :  { %p13342_p3 = scmp.ne.s32.totalorder %s725_s11, %s13341_s9  ;;  %p13346_p4 = scmp.lt.s32.totalorder %s725_s11, %s725_s11 }
 0x170   :  { %p13347_p5 = scmp.lt.s32.totalorder %s13341_s9, %s13341_s9 }
 0x172   :  { %p13348_p6 = por %p13347_p5, %p13346_p4 }
 0x174   :  { %707 = dma.hbm_to_vmem [thread:$0]  %s17163_s27, 512, %s702_s7, [#allocation71], %s14047_s23, %s14047_s23, %s14048_s26  }
 0x175   :  { %p13349_p7 = pnand %p13348_p6, %p13342_p3 }
 0x177   :  { %13352 = shalt.err (!%p13349_p7)
}
 0x178   :  { %s17164_s29 = sld [smem:[#allocation145_spill]]  ;;  %s14071_s0 = smov [#allocation76]  }
 0x179   :  { %s747_s15 = sshll.u32 %s14071_s0, 4  ;;  %s14072_s16 = smov [#allocation79]   ;;  %s748_s15 = int_to_ptr.vmem [resolvable:$true] %s747_s15 }
 0x17a   :  { %s771_s13 = sshll.u32 %s14072_s16, 4  ;;  %s13361_s20 = scalar_lea.vmem %s748_s15, 1024  ;;  %s772_s13 = int_to_ptr.vmem [resolvable:$true] %s771_s13 }
 0x17b   :  { %p13362_p8 = scmp.ne.s32.totalorder %s748_s15, %s13361_s20  ;;  %p13366_p9 = scmp.lt.s32.totalorder %s748_s15, %s748_s15 }
 0x17c   :  { %p13367_p10 = scmp.lt.s32.totalorder %s13361_s20, %s13361_s20 }
 0x17e   :  { %727 = dma.hbm_to_vmem [thread:$0]  %s17164_s29, 128, %s725_s11, [#allocation74]  }
 0x17f   :  { %p13368_p11 = por %p13367_p10, %p13366_p9 }
 0x181   :  { %p13369_p12 = pnand %p13368_p11, %p13362_p8 }
 0x183   :  { %13372 = shalt.err (!%p13369_p12)
}
 0x184   :  { %s17165_s18 = sld [smem:[#allocation148_spill]]  ;;  %s13381_s8 = scalar_lea.vmem %s772_s13, 512 }
 0x185   :  { %p13382_p13 = scmp.ne.s32.totalorder %s772_s13, %s13381_s8  ;;  %p13386_p0 = scmp.lt.s32.totalorder %s772_s13, %s772_s13 }
 0x186   :  { %p13387_p1 = scmp.lt.s32.totalorder %s13381_s8, %s13381_s8 }
 0x188   :  { %p13388_p2 = por %p13387_p1, %p13386_p0 }
 0x18a   :  { %753 = dma.hbm_to_vmem [thread:$0]  %s17165_s18, 1024, %s748_s15, [#allocation77], %s14047_s23, %s14047_s23, %s14048_s26  }
 0x18b   :  { %p13389_p3 = pnand %p13388_p2, %p13382_p13 }
 0x18d   :  { %13392 = shalt.err (!%p13389_p3)
}
 0x18e   :  { %777 = dma.hbm_to_vmem [thread:$0]  %s14387_s5, 512, %s772_s13, [#allocation80], %s14047_s23, %s14047_s23, %s14048_s26  }
 0x18f   :  { %s14073_s19 = smov [#allocation2]   ;;  %s14074_s6 = smov [#allocation6]  }
 0x190   :  { %s161_s22 = sshll.u32 %s14073_s19, 4  ;;  %s185_s24 = sshll.u32 %s14074_s6, 4  ;;  %s162_s22 = int_to_ptr.vmem [resolvable:$true] %s161_s22  ;;  %s186_s24 = int_to_ptr.vmem [resolvable:$true] %s185_s24 }
 0x191   :  { %s13401_s28 = scalar_lea.vmem %s162_s22, 512  ;;  %p13406_p5 = scmp.lt.s32.totalorder %s162_s22, %s162_s22 }
 0x192   :  { %p13402_p4 = scmp.ne.s32.totalorder %s162_s22, %s13401_s28  ;;  %p13407_p6 = scmp.lt.s32.totalorder %s13401_s28, %s13401_s28 }
 0x194   :  { %p13408_p7 = por %p13407_p6, %p13406_p5 }
 0x196   :  { %p13409_p8 = pnand %p13408_p7, %p13402_p4 }
 0x198   :  { %13412 = shalt.err (!%p13409_p8)
}
 0x199   :  { %s17166_s1 = sld [smem:[#allocation112_spill]]  ;;  %s13421_s2 = scalar_lea.vmem %s186_s24, 512 }
 0x19a   :  { %p13422_p9 = scmp.ne.s32.totalorder %s186_s24, %s13421_s2  ;;  %p13426_p10 = scmp.lt.s32.totalorder %s186_s24, %s186_s24 }
 0x19b   :  { %p13427_p11 = scmp.lt.s32.totalorder %s13421_s2, %s13421_s2 }
 0x19d   :  { %p13428_p12 = por %p13427_p11, %p13426_p10 }
 0x19f   :  { %167 = dma.hbm_to_vmem [thread:$0]  %s17166_s1, 512, %s162_s22, [#allocation3], %s14047_s23, %s14047_s23, %s14048_s26  }
 0x1a0   :  { %p13429_p13 = pnand %p13428_p12, %p13422_p9 }
 0x1a2   :  { %13432 = shalt.err (!%p13429_p13)
}
 0x1a3   :  { %s17167_s5 = sld [smem:[#allocation113_spill]]  ;;  %s14075_s30 = smov [#allocation9]  }
 0x1a4   :  { %s209_s14 = sshll.u32 %s14075_s30, 4  ;;  %s14076_s12 = smov [#allocation12]   ;;  %s210_s14 = int_to_ptr.vmem [resolvable:$true] %s209_s14 }
 0x1a5   :  { %s233_s3 = sshll.u32 %s14076_s12, 4  ;;  %s13441_s7 = scalar_lea.vmem %s210_s14, 512  ;;  %s234_s3 = int_to_ptr.vmem [resolvable:$true] %s233_s3 }
 0x1a6   :  { %p13442_p0 = scmp.ne.s32.totalorder %s210_s14, %s13441_s7  ;;  %p13446_p1 = scmp.lt.s32.totalorder %s210_s14, %s210_s14 }
 0x1a7   :  { %p13447_p2 = scmp.lt.s32.totalorder %s13441_s7, %s13441_s7 }
 0x1a9   :  { %191 = dma.hbm_to_vmem [thread:$0]  %s17167_s5, 512, %s186_s24, [#allocation5], %s14047_s23, %s14047_s23, %s14048_s26  }
 0x1aa   :  { %p13448_p3 = por %p13447_p2, %p13446_p1 }
 0x1ac   :  { %p13449_p4 = pnand %p13448_p3, %p13442_p0 }
 0x1ae   :  { %13452 = shalt.err (!%p13449_p4)
}
 0x1af   :  { %s17168_s10 = sld [smem:[#allocation114_spill]]  ;;  %s13461_s11 = scalar_lea.vmem %s234_s3, 512 }
 0x1b0   :  { %p13462_p5 = scmp.ne.s32.totalorder %s234_s3, %s13461_s11  ;;  %p13466_p6 = scmp.lt.s32.totalorder %s234_s3, %s234_s3 }
 0x1b1   :  { %p13467_p7 = scmp.lt.s32.totalorder %s13461_s11, %s13461_s11 }
 0x1b3   :  { %p13468_p8 = por %p13467_p7, %p13466_p6 }
 0x1b5   :  { %215 = dma.hbm_to_vmem [thread:$0]  %s17168_s10, 512, %s210_s14, [#allocation8], %s14047_s23, %s14047_s23, %s14048_s26  }
 0x1b6   :  { %p13469_p9 = pnand %p13468_p8, %p13462_p5 }
 0x1b8   :  { %13472 = shalt.err (!%p13469_p9)
}
 0x1b9   :  { %s17169_s21 = sld [smem:[#allocation115_spill]]  ;;  %s14077_s27 = smov [#allocation15]  }
 0x1ba   :  { %s257_s9 = sshll.u32 %s14077_s27, 4  ;;  %s14078_s29 = smov [#allocation18]   ;;  %s258_s9 = int_to_ptr.vmem [resolvable:$true] %s257_s9 }
 0x1bb   :  { %s281_s0 = sshll.u32 %s14078_s29, 4  ;;  %s13481_s15 = scalar_lea.vmem %s258_s9, 512  ;;  %s282_s0 = int_to_ptr.vmem [resolvable:$true] %s281_s0 }
 0x1bc   :  { %p13482_p10 = scmp.ne.s32.totalorder %s258_s9, %s13481_s15  ;;  %p13486_p11 = scmp.lt.s32.totalorder %s258_s9, %s258_s9 }
 0x1bd   :  { %p13487_p12 = scmp.lt.s32.totalorder %s13481_s15, %s13481_s15 }
 0x1bf   :  { %239 = dma.hbm_to_vmem [thread:$0]  %s17169_s21, 512, %s234_s3, [#allocation11], %s14047_s23, %s14047_s23, %s14048_s26  }
 0x1c0   :  { %p13488_p13 = por %p13487_p12, %p13486_p11 }
 0x1c2   :  { %p13489_p0 = pnand %p13488_p13, %p13482_p10 }
 0x1c4   :  { %13492 = shalt.err (!%p13489_p0)
}
 0x1c5   :  { %s17170_s16 = sld [smem:[#allocation116_spill]]  ;;  %s13501_s13 = scalar_lea.vmem %s282_s0, 512 }
 0x1c6   :  { %p13502_p1 = scmp.ne.s32.totalorder %s282_s0, %s13501_s13  ;;  %p13506_p2 = scmp.lt.s32.totalorder %s282_s0, %s282_s0 }
 0x1c7   :  { %p13507_p3 = scmp.lt.s32.totalorder %s13501_s13, %s13501_s13 }
 0x1c9   :  { %p13508_p4 = por %p13507_p3, %p13506_p2 }
 0x1cb   :  { %263 = dma.hbm_to_vmem [thread:$0]  %s17170_s16, 512, %s258_s9, [#allocation14], %s14047_s23, %s14047_s23, %s14048_s26  }
 0x1cc   :  { %p13509_p5 = pnand %p13508_p4, %p13502_p1 }
 0x1ce   :  { %13512 = shalt.err (!%p13509_p5)
}
 0x1cf   :  { %s17171_s20 = sld [smem:[#allocation117_spill]]  ;;  %s14079_s18 = smov [#allocation21]  }
 0x1d0   :  { %s305_s8 = sshll.u32 %s14079_s18, 4  ;;  %s14080_s19 = smov [#allocation24]   ;;  %s306_s8 = int_to_ptr.vmem [resolvable:$true] %s305_s8 }
 0x1d1   :  { %s329_s22 = sshll.u32 %s14080_s19, 4  ;;  %s13521_s6 = scalar_lea.vmem %s306_s8, 512  ;;  %s330_s22 = int_to_ptr.vmem [resolvable:$true] %s329_s22 }
 0x1d2   :  { %p13522_p6 = scmp.ne.s32.totalorder %s306_s8, %s13521_s6  ;;  %p13526_p7 = scmp.lt.s32.totalorder %s306_s8, %s306_s8 }
 0x1d3   :  { %p13527_p8 = scmp.lt.s32.totalorder %s13521_s6, %s13521_s6 }
 0x1d5   :  { %287 = dma.hbm_to_vmem [thread:$0]  %s17171_s20, 512, %s282_s0, [#allocation17], %s14047_s23, %s14047_s23, %s14048_s26  }
 0x1d6   :  { %p13528_p9 = por %p13527_p8, %p13526_p7 }
 0x1d8   :  { %p13529_p10 = pnand %p13528_p9, %p13522_p6 }
 0x1da   :  { %13532 = shalt.err (!%p13529_p10)
}
 0x1db   :  { %s17172_s24 = sld [smem:[#allocation118_spill]]  ;;  %s13541_s28 = scalar_lea.vmem %s330_s22, 512 }
 0x1dc   :  { %p13542_p11 = scmp.ne.s32.totalorder %s330_s22, %s13541_s28  ;;  %p13546_p12 = scmp.lt.s32.totalorder %s330_s22, %s330_s22 }
 0x1dd   :  { %p13547_p13 = scmp.lt.s32.totalorder %s13541_s28, %s13541_s28 }
 0x1df   :  { %p13548_p0 = por %p13547_p13, %p13546_p12 }
 0x1e1   :  { %311 = dma.hbm_to_vmem [thread:$0]  %s17172_s24, 512, %s306_s8, [#allocation20], %s14047_s23, %s14047_s23, %s14048_s26  }
 0x1e2   :  { %p13549_p1 = pnand %p13548_p0, %p13542_p11 }
 0x1e4   :  { %13552 = shalt.err (!%p13549_p1)
}
 0x1e5   :  { %s17173_s1 = sld [smem:[#allocation119_spill]]  ;;  %s14081_s2 = smov [#allocation27]  }
 0x1e6   :  { %s353_s5 = sshll.u32 %s14081_s2, 4  ;;  %s14082_s30 = smov [#allocation30]   ;;  %s354_s5 = int_to_ptr.vmem [resolvable:$true] %s353_s5 }
 0x1e7   :  { %s377_s14 = sshll.u32 %s14082_s30, 4  ;;  %s13561_s12 = scalar_lea.vmem %s354_s5, 512  ;;  %s378_s14 = int_to_ptr.vmem [resolvable:$true] %s377_s14 }
 0x1e8   :  { %p13562_p2 = scmp.ne.s32.totalorder %s354_s5, %s13561_s12  ;;  %p13566_p3 = scmp.lt.s32.totalorder %s354_s5, %s354_s5 }
 0x1e9   :  { %p13567_p4 = scmp.lt.s32.totalorder %s13561_s12, %s13561_s12 }
 0x1eb   :  { %335 = dma.hbm_to_vmem [thread:$0]  %s17173_s1, 512, %s330_s22, [#allocation23], %s14047_s23, %s14047_s23, %s14048_s26  }
 0x1ec   :  { %p13568_p5 = por %p13567_p4, %p13566_p3 }
 0x1ee   :  { %p13569_p6 = pnand %p13568_p5, %p13562_p2 }
 0x1f0   :  { %13572 = shalt.err (!%p13569_p6)
}
 0x1f1   :  { %s17174_s3 = sld [smem:[#allocation120_spill]]  ;;  %s13581_s7 = scalar_lea.vmem %s378_s14, 512 }
 0x1f2   :  { %p13582_p7 = scmp.ne.s32.totalorder %s378_s14, %s13581_s7  ;;  %p13586_p8 = scmp.lt.s32.totalorder %s378_s14, %s378_s14 }
 0x1f3   :  { %p13587_p9 = scmp.lt.s32.totalorder %s13581_s7, %s13581_s7 }
 0x1f5   :  { %p13588_p10 = por %p13587_p9, %p13586_p8 }
 0x1f7   :  { %359 = dma.hbm_to_vmem [thread:$0]  %s17174_s3, 512, %s354_s5, [#allocation26], %s14047_s23, %s14047_s23, %s14048_s26  }
 0x1f8   :  { %p13589_p11 = pnand %p13588_p10, %p13582_p7 }
 0x1fa   :  { %13592 = shalt.err (!%p13589_p11)
}
 0x1fb   :  { %s17175_s10 = sld [smem:[#allocation121_spill]]  ;;  %s14083_s11 = smov [#allocation33]  }
 0x1fc   :  { %s401_s21 = sshll.u32 %s14083_s11, 4  ;;  %s14084_s27 = smov [#allocation36]   ;;  %s402_s21 = int_to_ptr.vmem [resolvable:$true] %s401_s21 }
 0x1fd   :  { %s425_s9 = sshll.u32 %s14084_s27, 4  ;;  %s13601_s29 = scalar_lea.vmem %s402_s21, 512  ;;  %s426_s9 = int_to_ptr.vmem [resolvable:$true] %s425_s9 }
 0x1fe   :  { %p13602_p12 = scmp.ne.s32.totalorder %s402_s21, %s13601_s29  ;;  %p13606_p13 = scmp.lt.s32.totalorder %s402_s21, %s402_s21 }
 0x1ff   :  { %p13607_p0 = scmp.lt.s32.totalorder %s13601_s29, %s13601_s29 }
 0x201   :  { %383 = dma.hbm_to_vmem [thread:$0]  %s17175_s10, 512, %s378_s14, [#allocation29], %s14047_s23, %s14047_s23, %s14048_s26  }
 0x202   :  { %p13608_p1 = por %p13607_p0, %p13606_p13 }
 0x204   :  { %p13609_p2 = pnand %p13608_p1, %p13602_p12 }
 0x206   :  { %13612 = shalt.err (!%p13609_p2)
}
 0x207   :  { %s17176_s0 = sld [smem:[#allocation122_spill]]  ;;  %s13621_s15 = scalar_lea.vmem %s426_s9, 512 }
 0x208   :  { %p13622_p3 = scmp.ne.s32.totalorder %s426_s9, %s13621_s15  ;;  %p13626_p4 = scmp.lt.s32.totalorder %s426_s9, %s426_s9 }
 0x209   :  { %p13627_p5 = scmp.lt.s32.totalorder %s13621_s15, %s13621_s15 }
 0x20b   :  { %p13628_p6 = por %p13627_p5, %p13626_p4 }
 0x20d   :  { %407 = dma.hbm_to_vmem [thread:$0]  %s17176_s0, 512, %s402_s21, [#allocation32], %s14047_s23, %s14047_s23, %s14048_s26  }
 0x20e   :  { %p13629_p7 = pnand %p13628_p6, %p13622_p3 }
 0x210   :  { %13632 = shalt.err (!%p13629_p7)
}
 0x211   :  { %s17177_s16 = sld [smem:[#allocation123_spill]]  ;;  %s14085_s13 = smov [#allocation39]  }
 0x212   :  { %s449_s20 = sshll.u32 %s14085_s13, 4  ;;  %s14086_s18 = smov [#allocation42]   ;;  %s450_s20 = int_to_ptr.vmem [resolvable:$true] %s449_s20 }
 0x213   :  { %s473_s8 = sshll.u32 %s14086_s18, 4  ;;  %s13641_s19 = scalar_lea.vmem %s450_s20, 512  ;;  %s474_s8 = int_to_ptr.vmem [resolvable:$true] %s473_s8 }
 0x214   :  { %p13642_p8 = scmp.ne.s32.totalorder %s450_s20, %s13641_s19  ;;  %p13646_p9 = scmp.lt.s32.totalorder %s450_s20, %s450_s20 }
 0x215   :  { %p13647_p10 = scmp.lt.s32.totalorder %s13641_s19, %s13641_s19 }
 0x217   :  { %431 = dma.hbm_to_vmem [thread:$0]  %s17177_s16, 512, %s426_s9, [#allocation35], %s14047_s23, %s14047_s23, %s14048_s26  }
 0x218   :  { %p13648_p11 = por %p13647_p10, %p13646_p9 }
 0x21a   :  { %p13649_p12 = pnand %p13648_p11, %p13642_p8 }
 0x21c   :  { %13652 = shalt.err (!%p13649_p12)
}
 0x21d   :  { %s17178_s22 = sld [smem:[#allocation124_spill]]  ;;  %s13661_s6 = scalar_lea.vmem %s474_s8, 512 }
 0x21e   :  { %p13662_p13 = scmp.ne.s32.totalorder %s474_s8, %s13661_s6  ;;  %p13666_p0 = scmp.lt.s32.totalorder %s474_s8, %s474_s8 }
 0x21f   :  { %p13667_p1 = scmp.lt.s32.totalorder %s13661_s6, %s13661_s6 }
 0x221   :  { %p13668_p2 = por %p13667_p1, %p13666_p0 }
 0x223   :  { %455 = dma.hbm_to_vmem [thread:$0]  %s17178_s22, 512, %s450_s20, [#allocation38], %s14047_s23, %s14047_s23, %s14048_s26  }
 0x224   :  { %p13669_p3 = pnand %p13668_p2, %p13662_p13 }
 0x226   :  { %13672 = shalt.err (!%p13669_p3)
}
 0x227   :  { %s17179_s24 = sld [smem:[#allocation125_spill]]  ;;  %s14087_s28 = smov [#allocation45]  }
 0x228   :  { %s497_s1 = sshll.u32 %s14087_s28, 4  ;;  %s14088_s2 = smov [#allocation48]   ;;  %s498_s1 = int_to_ptr.vmem [resolvable:$true] %s497_s1 }
 0x229   :  { %s521_s5 = sshll.u32 %s14088_s2, 4  ;;  %s13681_s30 = scalar_lea.vmem %s498_s1, 512  ;;  %s522_s5 = int_to_ptr.vmem [resolvable:$true] %s521_s5 }
 0x22a   :  { %p13682_p4 = scmp.ne.s32.totalorder %s498_s1, %s13681_s30  ;;  %p13686_p5 = scmp.lt.s32.totalorder %s498_s1, %s498_s1 }
 0x22b   :  { %p13687_p6 = scmp.lt.s32.totalorder %s13681_s30, %s13681_s30 }
 0x22d   :  { %479 = dma.hbm_to_vmem [thread:$0]  %s17179_s24, 512, %s474_s8, [#allocation41], %s14047_s23, %s14047_s23, %s14048_s26  }
 0x22e   :  { %p13688_p7 = por %p13687_p6, %p13686_p5 }
 0x230   :  { %p13689_p8 = pnand %p13688_p7, %p13682_p4 }
 0x232   :  { %13692 = shalt.err (!%p13689_p8)
}
 0x233   :  { %s17180_s14 = sld [smem:[#allocation126_spill]]  ;;  %s13701_s12 = scalar_lea.vmem %s522_s5, 512 }
 0x234   :  { %p13702_p9 = scmp.ne.s32.totalorder %s522_s5, %s13701_s12  ;;  %p13706_p10 = scmp.lt.s32.totalorder %s522_s5, %s522_s5 }
 0x235   :  { %p13707_p11 = scmp.lt.s32.totalorder %s13701_s12, %s13701_s12 }
 0x237   :  { %p13708_p12 = por %p13707_p11, %p13706_p10 }
 0x239   :  { %503 = dma.hbm_to_vmem [thread:$0]  %s17180_s14, 512, %s498_s1, [#allocation44], %s14047_s23, %s14047_s23, %s14048_s26  }
 0x23a   :  { %p13709_p13 = pnand %p13708_p12, %p13702_p9 }
 0x23c   :  { %13712 = shalt.err (!%p13709_p13)
}
 0x23d   :  { %s17181_s3 = sld [smem:[#allocation128_spill]]  ;;  %s14089_s7 = smov [#allocation51]  }
 0x23e   :  { %s545_s10 = sshll.u32 %s14089_s7, 4  ;;  %s14090_s11 = smov [#allocation54]   ;;  %s546_s10 = int_to_ptr.vmem [resolvable:$true] %s545_s10 }
 0x23f   :  { %s569_s21 = sshll.u32 %s14090_s11, 4  ;;  %s13721_s27 = scalar_lea.vmem %s546_s10, 512  ;;  %s570_s21 = int_to_ptr.vmem [resolvable:$true] %s569_s21 }
 0x240   :  { %p13722_p0 = scmp.ne.s32.totalorder %s546_s10, %s13721_s27  ;;  %p13726_p1 = scmp.lt.s32.totalorder %s546_s10, %s546_s10 }
 0x241   :  { %p13727_p2 = scmp.lt.s32.totalorder %s13721_s27, %s13721_s27 }
 0x243   :  { %527 = dma.hbm_to_vmem [thread:$0]  %s17181_s3, 512, %s522_s5, [#allocation47], %s14047_s23, %s14047_s23, %s14048_s26  }
 0x244   :  { %p13728_p3 = por %p13727_p2, %p13726_p1 }
 0x246   :  { %p13729_p4 = pnand %p13728_p3, %p13722_p0 }
 0x248   :  { %13732 = shalt.err (!%p13729_p4)
}
 0x249   :  { %s17182_s9 = sld [smem:[#allocation130_spill]]  ;;  %s13741_s29 = scalar_lea.vmem %s570_s21, 512 }
 0x24a   :  { %p13742_p5 = scmp.ne.s32.totalorder %s570_s21, %s13741_s29  ;;  %p13746_p6 = scmp.lt.s32.totalorder %s570_s21, %s570_s21 }
 0x24b   :  { %p13747_p7 = scmp.lt.s32.totalorder %s13741_s29, %s13741_s29 }
 0x24d   :  { %p13748_p8 = por %p13747_p7, %p13746_p6 }
 0x24f   :  { %551 = dma.hbm_to_vmem [thread:$0]  %s17182_s9, 512, %s546_s10, [#allocation50], %s14047_s23, %s14047_s23, %s14048_s26  }
 0x250   :  { %p13749_p9 = pnand %p13748_p8, %p13742_p5 }
 0x252   :  { %13752 = shalt.err (!%p13749_p9)
}
 0x253   :  { %s17183_s0 = sld [smem:[#allocation132_spill]]  ;;  %s14091_s15 = smov [#allocation57]  }
 0x254   :  { %s593_s16 = sshll.u32 %s14091_s15, 4  ;;  %s14092_s13 = smov [#allocation60]   ;;  %s594_s16 = int_to_ptr.vmem [resolvable:$true] %s593_s16 }
 0x255   :  { %s617_s20 = sshll.u32 %s14092_s13, 4  ;;  %s13761_s18 = scalar_lea.vmem %s594_s16, 512  ;;  %s618_s20 = int_to_ptr.vmem [resolvable:$true] %s617_s20 }
 0x256   :  { %p13762_p10 = scmp.ne.s32.totalorder %s594_s16, %s13761_s18  ;;  %p13766_p11 = scmp.lt.s32.totalorder %s594_s16, %s594_s16 }
 0x257   :  { %p13767_p12 = scmp.lt.s32.totalorder %s13761_s18, %s13761_s18 }
 0x259   :  { %575 = dma.hbm_to_vmem [thread:$0]  %s17183_s0, 512, %s570_s21, [#allocation53], %s14047_s23, %s14047_s23, %s14048_s26  }
 0x25a   :  { %p13768_p13 = por %p13767_p12, %p13766_p11 }
 0x25c   :  { %p13769_p0 = pnand %p13768_p13, %p13762_p10 }
 0x25e   :  { %13772 = shalt.err (!%p13769_p0)
}
 0x25f   :  { %s17184_s8 = sld [smem:[#allocation134_spill]]  ;;  %s13781_s19 = scalar_lea.vmem %s618_s20, 512 }
 0x260   :  { %p13782_p1 = scmp.ne.s32.totalorder %s618_s20, %s13781_s19  ;;  %p13786_p2 = scmp.lt.s32.totalorder %s618_s20, %s618_s20 }
 0x261   :  { %p13787_p3 = scmp.lt.s32.totalorder %s13781_s19, %s13781_s19 }
 0x263   :  { %p13788_p4 = por %p13787_p3, %p13786_p2 }
 0x265   :  { %599 = dma.hbm_to_vmem [thread:$0]  %s17184_s8, 512, %s594_s16, [#allocation56], %s14047_s23, %s14047_s23, %s14048_s26  }
 0x266   :  { %p13789_p5 = pnand %p13788_p4, %p13782_p1 }
 0x268   :  { %13792 = shalt.err (!%p13789_p5)
}
 0x269   :  { %s17185_s22 = sld [smem:[#allocation136_spill]]  ;;  %s14093_s6 = smov [#allocation63]  }
 0x26a   :  { %s641_s24 = sshll.u32 %s14093_s6, 4  ;;  %s14094_s28 = smov [#allocation66]   ;;  %s642_s24 = int_to_ptr.vmem [resolvable:$true] %s641_s24 }
 0x26b   :  { %s665_s1 = sshll.u32 %s14094_s28, 4  ;;  %s13801_s2 = scalar_lea.vmem %s642_s24, 512  ;;  %s666_s1 = int_to_ptr.vmem [resolvable:$true] %s665_s1 }
 0x26c   :  { %p13802_p6 = scmp.ne.s32.totalorder %s642_s24, %s13801_s2  ;;  %p13806_p7 = scmp.lt.s32.totalorder %s642_s24, %s642_s24 }
 0x26d   :  { %p13807_p8 = scmp.lt.s32.totalorder %s13801_s2, %s13801_s2 }
 0x26f   :  { %623 = dma.hbm_to_vmem [thread:$0]  %s17185_s22, 512, %s618_s20, [#allocation59], %s14047_s23, %s14047_s23, %s14048_s26  }
 0x270   :  { %p13808_p9 = por %p13807_p8, %p13806_p7 }
 0x272   :  { %p13809_p10 = pnand %p13808_p9, %p13802_p6 }
 0x274   :  { %13812 = shalt.err (!%p13809_p10)
}
 0x275   :  { %s17186_s5 = sld [smem:[#allocation138_spill]]  ;;  %s13821_s30 = scalar_lea.vmem %s666_s1, 512 }
 0x276   :  { %p13822_p11 = scmp.ne.s32.totalorder %s666_s1, %s13821_s30  ;;  %p13826_p12 = scmp.lt.s32.totalorder %s666_s1, %s666_s1 }
 0x277   :  { %p13827_p13 = scmp.lt.s32.totalorder %s13821_s30, %s13821_s30 }
 0x279   :  { %p13828_p0 = por %p13827_p13, %p13826_p12 }
 0x27b   :  { %647 = dma.hbm_to_vmem [thread:$0]  %s17186_s5, 512, %s642_s24, [#allocation62], %s14047_s23, %s14047_s23, %s14048_s26  }
 0x27c   :  { %p13829_p1 = pnand %p13828_p0, %p13822_p11 }
 0x27e   :  { %13832 = shalt.err (!%p13829_p1)
}
 0x27f   :  { %s17187_s14 = sld [smem:[#allocation140_spill]]  ;;  %s14095_s12 = smov [#allocation69]  }
 0x280   :  { %s689_s3 = sshll.u32 %s14095_s12, 4  ;;  %s14096_s7 = smov [#allocation72]   ;;  %s690_s3 = int_to_ptr.vmem [resolvable:$true] %s689_s3 }
 0x281   :  { %s714_s10 = sshll.u32 %s14096_s7, 4  ;;  %s13841_s11 = scalar_lea.vmem %s690_s3, 512  ;;  %s715_s10 = int_to_ptr.vmem [resolvable:$true] %s714_s10 }
 0x282   :  { %p13842_p2 = scmp.ne.s32.totalorder %s690_s3, %s13841_s11  ;;  %p13846_p3 = scmp.lt.s32.totalorder %s690_s3, %s690_s3 }
 0x283   :  { %p13847_p4 = scmp.lt.s32.totalorder %s13841_s11, %s13841_s11 }
 0x285   :  { %671 = dma.hbm_to_vmem [thread:$0]  %s17187_s14, 512, %s666_s1, [#allocation65], %s14047_s23, %s14047_s23, %s14048_s26  }
 0x286   :  { %p13848_p5 = por %p13847_p4, %p13846_p3 }
 0x288   :  { %p13849_p6 = pnand %p13848_p5, %p13842_p2 }
 0x28a   :  { %13852 = shalt.err (!%p13849_p6)
}
 0x28b   :  { %s17188_s21 = sld [smem:[#allocation142_spill]]  ;;  %s13861_s27 = scalar_lea.vmem %s715_s10, 128 }
 0x28c   :  { %p13862_p7 = scmp.ne.s32.totalorder %s715_s10, %s13861_s27  ;;  %p13866_p8 = scmp.lt.s32.totalorder %s715_s10, %s715_s10 }
 0x28d   :  { %p13867_p9 = scmp.lt.s32.totalorder %s13861_s27, %s13861_s27 }
 0x28f   :  { %p13868_p10 = por %p13867_p9, %p13866_p8 }
 0x291   :  { %695 = dma.hbm_to_vmem [thread:$0]  %s17188_s21, 512, %s690_s3, [#allocation68], %s14047_s23, %s14047_s23, %s14048_s26  }
 0x292   :  { %p13869_p11 = pnand %p13868_p10, %p13862_p7 }
 0x294   :  { %13872 = shalt.err (!%p13869_p11)
}
 0x295   :  { %s17189_s9 = sld [smem:[#allocation144_spill]]  ;;  %s14097_s29 = smov [#allocation75]  }
 0x296   :  { %s735_s0 = sshll.u32 %s14097_s29, 4  ;;  %s14098_s15 = smov [#allocation78]   ;;  %s736_s0 = int_to_ptr.vmem [resolvable:$true] %s735_s0 }
 0x297   :  { %s759_s16 = sshll.u32 %s14098_s15, 4  ;;  %s13881_s13 = scalar_lea.vmem %s736_s0, 512  ;;  %s760_s16 = int_to_ptr.vmem [resolvable:$true] %s759_s16 }
 0x298   :  { %p13882_p12 = scmp.ne.s32.totalorder %s736_s0, %s13881_s13  ;;  %p13886_p13 = scmp.lt.s32.totalorder %s736_s0, %s736_s0 }
 0x299   :  { %p13887_p0 = scmp.lt.s32.totalorder %s13881_s13, %s13881_s13 }
 0x29b   :  { %717 = dma.hbm_to_vmem [thread:$0]  %s17189_s9, 128, %s715_s10, [#allocation71]  }
 0x29c   :  { %p13888_p1 = por %p13887_p0, %p13886_p13 }
 0x29e   :  { %p13889_p2 = pnand %p13888_p1, %p13882_p12 }
 0x2a0   :  { %13892 = shalt.err (!%p13889_p2)
}
 0x2a1   :  { %s17190_s20 = sld [smem:[#allocation147_spill]]  ;;  %s13901_s18 = scalar_lea.vmem %s760_s16, 1024 }
 0x2a2   :  { %p13902_p3 = scmp.ne.s32.totalorder %s760_s16, %s13901_s18  ;;  %p13906_p4 = scmp.lt.s32.totalorder %s760_s16, %s760_s16 }
 0x2a3   :  { %p13907_p5 = scmp.lt.s32.totalorder %s13901_s18, %s13901_s18 }
 0x2a5   :  { %p13908_p6 = por %p13907_p5, %p13906_p4 }
 0x2a7   :  { %741 = dma.hbm_to_vmem [thread:$0]  %s17190_s20, 512, %s736_s0, [#allocation74], %s14047_s23, %s14047_s23, %s14048_s26  }
 0x2a8   :  { %p13909_p7 = pnand %p13908_p6, %p13902_p3 }
 0x2aa   :  { %13912 = shalt.err (!%p13909_p7)
}
 0x2ab   :  { %s17191_s8 = sld [smem:[#allocation149_spill]]  ;;  %s14099_s19 = smov [#allocation81]  }
 0x2ac   :  { %s783_s22 = sshll.u32 %s14099_s19, 4  ;;  %s784_s22 = int_to_ptr.vmem [resolvable:$true] %s783_s22 }
 0x2ad   :  { %s13921_s6 = scalar_lea.vmem %s784_s22, 1024  ;;  %p13926_p9 = scmp.lt.s32.totalorder %s784_s22, %s784_s22 }
 0x2ae   :  { %p13922_p8 = scmp.ne.s32.totalorder %s784_s22, %s13921_s6  ;;  %p13927_p10 = scmp.lt.s32.totalorder %s13921_s6, %s13921_s6 }
 0x2b0   :  { %p13928_p11 = por %p13927_p10, %p13926_p9 }
 0x2b1   :  { %765 = dma.hbm_to_vmem [thread:$0]  %s17191_s8, 1024, %s760_s16, [#allocation77], %s14047_s23, %s14047_s23, %s14048_s26  }
 0x2b2   :  { %p13929_p12 = pnand %p13928_p11, %p13922_p8 }
 0x2b4   :  { %13932 = shalt.err (!%p13929_p12)
}
 0x2b5   :  { %789 = dma.hbm_to_vmem [thread:$0]  %s14392_s25, 1024, %s784_s22, [#allocation80], %s14047_s23, %s14047_s23, %s14048_s26  }
 0x2b6   :  { %13933 = dma.done.wait [#allocation3], 512  }
 0x2b7   :  { %13934 = vsyncadd [#allocation3], 4294966784 }
 0x2b8   :  { %13935 = dma.done.wait [#allocation5], 1024  }
 0x2b9   :  { %13936 = vsyncadd [#allocation5], 4294966272 }
 0x2ba   :  { %13937 = dma.done.wait [#allocation8], 1024  }
 0x2bb   :  { %13938 = vsyncadd [#allocation8], 4294966272 }
 0x2bc   :  { %13939 = dma.done.wait [#allocation11], 1024  }
 0x2bd   :  { %13940 = vsyncadd [#allocation11], 4294966272 }
 0x2be   :  { %13941 = dma.done.wait [#allocation14], 1024  }
 0x2bf   :  { %13942 = vsyncadd [#allocation14], 4294966272 }
 0x2c0   :  { %13943 = dma.done.wait [#allocation17], 1024  }
 0x2c1   :  { %13944 = vsyncadd [#allocation17], 4294966272 }
 0x2c2   :  { %13945 = dma.done.wait [#allocation20], 1024  }
 0x2c3   :  { %13946 = vsyncadd [#allocation20], 4294966272 }
 0x2c4   :  { %13947 = dma.done.wait [#allocation23], 1024  }
 0x2c5   :  { %13948 = vsyncadd [#allocation23], 4294966272 }
 0x2c6   :  { %13949 = dma.done.wait [#allocation26], 1024  }
 0x2c7   :  { %13950 = vsyncadd [#allocation26], 4294966272 }
 0x2c8   :  { %13951 = dma.done.wait [#allocation29], 1024  }
 0x2c9   :  { %13952 = vsyncadd [#allocation29], 4294966272 }
 0x2ca   :  { %13953 = dma.done.wait [#allocation32], 1024  }
 0x2cb   :  { %13954 = vsyncadd [#allocation32], 4294966272 }
 0x2cc   :  { %13955 = dma.done.wait [#allocation35], 1024  }
 0x2cd   :  { %13956 = vsyncadd [#allocation35], 4294966272 }
 0x2ce   :  { %13957 = dma.done.wait [#allocation38], 1024  }
 0x2cf   :  { %13958 = vsyncadd [#allocation38], 4294966272 }
 0x2d0   :  { %13959 = dma.done.wait [#allocation41], 1024  }
 0x2d1   :  { %13960 = vsyncadd [#allocation41], 4294966272 }
 0x2d2   :  { %13961 = dma.done.wait [#allocation44], 1024  }
 0x2d3   :  { %13962 = vsyncadd [#allocation44], 4294966272 }
 0x2d4   :  { %13963 = dma.done.wait [#allocation47], 1024  }
 0x2d5   :  { %13964 = vsyncadd [#allocation47], 4294966272 }
 0x2d6   :  { %13965 = dma.done.wait [#allocation50], 1024  }
 0x2d7   :  { %13966 = vsyncadd [#allocation50], 4294966272 }
 0x2d8   :  { %13967 = dma.done.wait [#allocation53], 1024  }
 0x2d9   :  { %13968 = vsyncadd [#allocation53], 4294966272 }
 0x2da   :  { %13969 = dma.done.wait [#allocation56], 1024  }
 0x2db   :  { %13970 = vsyncadd [#allocation56], 4294966272 }
 0x2dc   :  { %13971 = dma.done.wait [#allocation59], 1024  }
 0x2dd   :  { %13972 = vsyncadd [#allocation59], 4294966272 }
 0x2de   :  { %13973 = dma.done.wait [#allocation62], 1024  }
 0x2df   :  { %13974 = vsyncadd [#allocation62], 4294966272 }
 0x2e0   :  { %13975 = dma.done.wait [#allocation65], 1024  }
 0x2e1   :  { %13976 = vsyncadd [#allocation65], 4294966272 }
 0x2e2   :  { %13977 = dma.done.wait [#allocation68], 1024  }
 0x2e3   :  { %13978 = vsyncadd [#allocation68], 4294966272 }
 0x2e4   :  { %13979 = dma.done.wait [#allocation71], 640  }
 0x2e5   :  { %13980 = vsyncadd [#allocation71], 4294966656 }
 0x2e6   :  { %13981 = dma.done.wait [#allocation74], 640  }
 0x2e7   :  { %13982 = vsyncadd [#allocation74], 4294966656 }
 0x2e8   :  { %13983 = dma.done.wait [#allocation77], 2048  }
 0x2e9   :  { %13984 = vsyncadd [#allocation77], 4294965248 }
 0x2ea   :  { %13985 = dma.done.wait [#allocation80], 1536  }
 0x2eb   :  { %13986 = vsyncadd [#allocation80], 4294965760  ;;  %v998_v0 = vlaneseq  ;;  %v17047_v1 = vmov 0.0   ;;  %s17192_s25 = sld [smem:[#allocation111_spill]]  ;;  %vm16977_vm0 = vmmov 0   ;;  %v14102_v4 = vmov 0  }
 0x2ec   :  { %11478 = vmatprep.subr.mxu0 %v17047_v1  ;;  %11489 = vmatprep.subr.mxu1 %v17047_v1  ;;  %v1437_v23 = vld [vmem:[#allocation4] sm:$0xff]  ;;  %v17198_v24 = vmov 0  ;;  %v1438_v26 = vld [vmem:[#allocation4 + $0x8] sm:$0xff]  ;;  %v17050_v27 = vmov 1.0   ;;  %v1439_v28 = vld [vmem:[#allocation4 + $0x10] sm:$0xff]  ;;  %v17201_v29 = vmov 0 }
 0x2ed   :  { %v14612_v2 = vshrl.u32 %v998_v0, 7  ;;  %v14614_v3 = vand.u32 127, %v998_v0  ;;  %11486 = vmatprep.mubr.msk.f32.mxu0 %vm16977_vm0, %v17047_v1  ;;  %11497 = vmatprep.mubr.msk.f32.mxu1 %vm16977_vm0, %v17047_v1  ;;  %s17204_s23 = sld [smem:[#allocation109_spill]]  ;;  %v1440_v30 = vld [vmem:[#allocation4 + $0x18] sm:$0xff]  ;;  %v17205_v31 = vmov 0  ;;  %v17209_v35 = vmov 0 }
 0x2ee   :  { %12835 = vset.pattern.permute.xlu0 %v14102_v4  ;;  %12836 = vset.pattern.permute.xlu1 %v14102_v4  ;;  %v2026_v33 = vld [vmem:[#allocation7 + $0x18] sm:$0xff]  ;;  %v2025_v36 = vld [vmem:[#allocation7 + $0x10] sm:$0xff]  ;;  %v2024_v37 = vld [vmem:[#allocation7 + $0x8] sm:$0xff]  ;;  %v17212_v38 = vmov 0  ;;  %v17215_v41 = vmov 0  ;;  %v17218_v43 = vmov 0 }
 0x2ef   :  { %17193 = vst [vmem:[#allocation150_spill] sm:$0xff] %v14612_v2  ;;  %v14623_v5 = vadd.s32 24, %v14612_v2  ;;  %vm1005_vm1 = vcmp.ge.s32.totalorder %v14614_v3, 16  ;;  %v14627_v6 = vadd.s32 16, %v14612_v2  ;;  %v14630_v7 = vadd.s32 8, %v14612_v2  ;;  %v2023_v39 = vld [vmem:[#allocation7] sm:$0xff] }
 0x2f0   :  { %v14633_v8 = vsel %vm1005_vm1, 1, %v14102_v4  ;;  %v2031_v40 = vld [vmem:[#allocation10] sm:$0xff]  ;;  %v2032_v42 = vld [vmem:[#allocation10 + $0x8] sm:$0xff]  ;;  %v2033_v44 = vld [vmem:[#allocation10 + $0x10] sm:$0xff]  ;;  %v17222_v45 = vmov 0  ;;  %v17227_v48 = vmov 0 }
 0x2f1   :  { %17194 = vst [vmem:[#allocation151_spill] sm:$0xff] %v14630_v7  ;;  %17195 = vst [vmem:[#allocation152_spill] sm:$0xff] %v14633_v8  ;;  %v1007_v9 = vmul.u32 16, %v14633_v8  ;;  %v994_v10 = vld [vmem:[%s17192_s25] sm:$0xff]  ;;  %v996_v11 = vld [vmem:[%s17192_s25 + $0x10] sm:$0xff]  ;;  %v17232_v51 = vmov 0 }
 0x2f2   :  { %1313 = vperm.xlu0 %12835, %v994_v10   ;;  %1323 = vperm.xlu1 %12836, %v996_v11   ;;  %v995_v16 = vld [vmem:[%s17192_s25 + $0x8] sm:$0xff]  ;;  %v997_v20 = vld [vmem:[%s17192_s25 + $0x18] sm:$0xff]  ;;  %v2604_v49 = vld [vmem:[#allocation13 + $0x10] sm:$0xff]  ;;  %v17237_v53 = vmov 0  ;;  %v17243_v55 = vmov 0  ;;  %s17247_s26 = sld [smem:[#allocation110_spill]] }
 0x2f3   :  { %v14639_v12 = vsub.s32 %v14614_v3, %v1007_v9  ;;  %v14642_v13 = vsub.s32 %v14623_v5, %v1007_v9  ;;  %v14645_v14 = vsub.s32 %v14627_v6, %v1007_v9  ;;  %v14648_v15 = vsub.s32 %v14630_v7, %v1007_v9  ;;  %v14734_v34 = vld [vmem:[%s17204_s23] sm:$0xff]  ;;  %v2034_v46 = vld [vmem:[#allocation10 + $0x18] sm:$0xff]  ;;  %v2603_v50 = vld [vmem:[#allocation13 + $0x8] sm:$0xff]  ;;  %s17441_s24 = sld [smem:[#allocation146_spill]] }
 0x2f4   :  { %v14665_v22 = vsub.s32 %v14612_v2, %v1007_v9  ;;  %v2605_v47 = vld [vmem:[#allocation13 + $0x18] sm:$0xff]  ;;  %v2602_v52 = vld [vmem:[#allocation13] sm:$0xff]  ;;  %v2611_v56 = vld [vmem:[#allocation16 + $0x8] sm:$0xff] }
 0x2f5   :  { %17196 = vst [vmem:[#allocation153_spill] sm:$0xff] %v14639_v12  ;;  %v14652_v17 = vadd.s32 4294967295, %v14639_v12  ;;  %v14655_v18 = vadd.s32 1, %v14642_v13  ;;  %v14658_v19 = vadd.s32 1, %v14645_v14  ;;  %v14662_v21 = vadd.s32 1, %v14648_v15  ;;  %v2610_v54 = vld [vmem:[#allocation16] sm:$0xff] }
 0x2f6   :  { %1318 = vperm.xlu0 %12835, %v995_v16   ;;  %1328 = vperm.xlu1 %12836, %v997_v20   ;;  %v14686_v25 = vadd.s32 1, %v14665_v22  ;;  %v14721_v32 = vadd.s32 1, %v14639_v12  ;;  %v2612_v57 = vld [vmem:[#allocation16 + $0x10] sm:$0xff]  ;;  %v2613_v58 = vld [vmem:[#allocation16 + $0x18] sm:$0xff]  ;;  %v3161_v59 = vld [vmem:[#allocation19] sm:$0xff] }
 0x2f7   :  { %17197 = vst [vmem:[#allocation154_spill] sm:$0xff] %v14652_v17  ;;  %vm1017_vm2 = vcmp.le.s32.totalorder %v14642_v13, %v14652_v17  ;;  %vm1025_vm3 = vcmp.lt.s32.totalorder %v14652_v17, %v14655_v18  ;;  %vm16975_vm4 = vcmp.ge.s32.totalorder %v14652_v17, 0  ;;  %vm16974_vm5 = vcmp.lt.s32.totalorder %v14652_v17, 16  ;;  %v3162_v60 = vld [vmem:[#allocation19 + $0x8] sm:$0xff]  ;;  %v3163_v61 = vld [vmem:[#allocation19 + $0x10] sm:$0xff]  ;;  %v3164_v62 = vld [vmem:[#allocation19 + $0x18] sm:$0xff] }
 0x2f8   :  { %vm1029_vm6 = vmand %vm1017_vm2, %vm1025_vm3  ;;  %vm1016_vm7 = vcmp.le.s32.totalorder %v14645_v14, %v14652_v17  ;;  %vm1024_vm8 = vcmp.lt.s32.totalorder %v14652_v17, %v14658_v19  ;;  %vm1015_vm12 = vcmp.le.s32.totalorder %v14648_v15, %v14652_v17  ;;  %vm1023_vm13 = vcmp.lt.s32.totalorder %v14652_v17, %v14662_v21  ;;  %17208 = vst [vmem:[#allocation158_spill] sm:$0xff] %v14721_v32  ;;  %v3698_v63 = vld [vmem:[#allocation22 + $0x18] sm:$0xff]  ;;  %v3697_v0 = vld [vmem:[#allocation22 + $0x10] sm:$0xff] }
 0x2f9   :  { %vm1034_vm9 = vmand %vm1029_vm6, %vm16975_vm4  ;;  %vm1014_vm2 = vcmp.le.s32.totalorder %v14665_v22, %v14652_v17  ;;  %vm1022_vm3 = vcmp.lt.s32.totalorder %v14652_v17, %v14686_v25  ;;  %v3696_v9 = vld [vmem:[#allocation22 + $0x8] sm:$0xff]  ;;  %v3695_v10 = vld [vmem:[#allocation22] sm:$0xff] }
 0x2fa   :  { %vm14681_vm10 = vmand %vm1034_vm9, %vm16974_vm5  ;;  %1916 = vperm.xlu0 %12835, %v1437_v23   ;;  %1921 = vperm.xlu1 %12836, %v1438_v26   ;;  %vm1121_vm9 = vcmp.le.s32.totalorder %v14642_v13, %v14639_v12  ;;  %v3703_v11 = vld [vmem:[#allocation25] sm:$0xff]  ;;  %v4256_v16 = vld [vmem:[#allocation28 + $0x18] sm:$0xff] }
 0x2fb   :  { %v17199_v24 = vsel %vm14681_vm10, 4294967295, %v17198_v24  ;;  %11479 = vmatpush3.msk.msra.mxu0 %vm14681_vm10, %v17050_v27  ;;  %vm1028_vm11 = vmand %vm1016_vm7, %vm1024_vm8  ;;  %v4253_v20 = vld [vmem:[#allocation28] sm:$0xff]  ;;  %v4263_v23 = vld [vmem:[#allocation31 + $0x10] sm:$0xff] }
 0x2fc   :  { %17200 = vst [vmem:[#allocation155_spill] sm:$0xff] %v17199_v24  ;;  %11480 = vmatprep.subr.mxu0 %v17047_v1  ;;  %vm1033_vm14 = vmand %vm1028_vm11, %vm16975_vm4  ;;  %vm1125_vm11 = vcmp.lt.s32.totalorder %v14639_v12, %v14655_v18  ;;  %v4803_v26 = vld [vmem:[#allocation34 + $0x18] sm:$0xff] }
 0x2fd   :  { %vm14700_vm15 = vmand %vm1033_vm14, %vm16974_vm5  ;;  %vm16979_vm14 = vcmp.ge.s32.totalorder %v14639_v12, 0 }
 0x2fe   :  { %v17202_v29 = vsel %vm14700_vm15, 4294967295, %v17201_v29  ;;  %11481 = vmatpush3.msk.msra.mxu0 %vm14700_vm15, %v17050_v27  ;;  %vm1027_vm1 = vmand %vm1015_vm12, %vm1023_vm13  ;;  %1926 = vperm.xlu0 %12835, %v1439_v28   ;;  %vm16976_vm13 = vcmask 261120   ;;  %v4802_v28 = vld [vmem:[#allocation34 + $0x10] sm:$0xff] }
 0x2ff   :  { %17203 = vst [vmem:[#allocation156_spill] sm:$0xff] %v17202_v29  ;;  %11482 = vmatprep.subr.mxu0 %v17047_v1  ;;  %vm1032_vm6 = vmand %vm1027_vm1, %vm16975_vm4  ;;  %1931 = vperm.xlu1 %12836, %v1440_v30   ;;  %v4801_v30 = vld [vmem:[#allocation34 + $0x8] sm:$0xff] }
 0x300   :  { %vm14716_vm7 = vmand %vm1032_vm6, %vm16974_vm5  ;;  %vm1218_vm6 = vcmp.le.s32.totalorder %v14642_v13, %v14721_v32  ;;  %v3704_v13 = vld [vmem:[#allocation25 + $0x8] sm:$0xff] }
 0x301   :  { %v17206_v31 = vsel %vm14716_vm7, 4294967295, %v17205_v31  ;;  %11483 = vmatpush3.msk.msra.mxu0 %vm14716_vm7, %v17050_v27  ;;  %vm1026_vm8 = vmand %vm1014_vm2, %vm1022_vm3  ;;  %vm16980_vm2 = vcmp.lt.s32.totalorder %v14639_v12, 16 }
 0x302   :  { %17207 = vst [vmem:[#allocation157_spill] sm:$0xff] %v17206_v31  ;;  %11484 = vmatprep.subr.mxu0 %v17047_v1  ;;  %vm1031_vm12 = vmand %vm1026_vm8, %vm16975_vm4  ;;  %2372 = vperm.xlu0 %12835, %v2026_v33   ;;  %vm1222_vm8 = vcmp.lt.s32.totalorder %v14721_v32, %v14655_v18  ;;  %v4255_v18 = vld [vmem:[#allocation28 + $0x10] sm:$0xff]  ;;  %v4800_v33 = vld [vmem:[#allocation34] sm:$0xff] }
 0x303   :  { %vm14739_vm1 = vmand %vm1031_vm12, %vm16974_vm5  ;;  %vm16981_vm5 = vcmp.ge.s32.totalorder %v14721_v32, 0  ;;  %2367 = vperm.xlu1 %12836, %v2025_v36   ;;  %v962_v36 = vld [vmem:[#allocation76 + $0x8] sm:$0xff] }
 0x304   :  { %v17210_v35 = vsel %vm14739_vm1, 4294967295, %v17209_v35  ;;  %11485 = vmatpush3.msk.msra.mxu0 %vm14739_vm1, %v17050_v27  ;;  %vm1129_vm3 = vmand %vm1121_vm9, %vm1125_vm11  ;;  %vm16978_vm11 = vcmp.lt.s32.totalorder %v14721_v32, 16 }
 0x305   :  { %17211 = vst [vmem:[#allocation159_spill] sm:$0xff] %v17210_v35  ;;  %11487 = vmatmul.mubr.msk.f32.vlgmr.msra.gmra.mxu0 %vm16976_vm13, %v14734_v34  ;;  %11500 = vmatprep.subr.mxu0 %v17047_v1  ;;  %vm1134_vm12 = vmand %vm1129_vm3, %vm16979_vm14  ;;  %vm1120_vm3 = vcmp.le.s32.totalorder %v14645_v14, %v14639_v12 }
 0x306   :  { %vm14759_vm9 = vmand %vm1134_vm12, %vm16980_vm2  ;;  %11508 = vmatprep.mubr.msk.f32.mxu0 %vm16977_vm0, %v17047_v1  ;;  %vm1124_vm12 = vcmp.lt.s32.totalorder %v14639_v12, %v14658_v19  ;;  %2362 = vperm.xlu0 %12835, %v2024_v37   ;;  %v963_v37 = vld [vmem:[#allocation76 + $0x10] sm:$0xff] }
 0x307   :  { %v17213_v38 = vsel %vm14759_vm9, 4294967295, %v17212_v38  ;;  %11490 = vmatpush3.msk.msra.mxu1 %vm14759_vm9, %v17050_v27  ;;  %vm1226_vm4 = vmand %vm1218_vm6, %vm1222_vm8  ;;  %vm1217_vm8 = vcmp.le.s32.totalorder %v14645_v14, %v14721_v32  ;;  %2357 = vperm.xlu1 %12836, %v2023_v39   ;;  %v3705_v14 = vld [vmem:[#allocation25 + $0x10] sm:$0xff]  ;;  %v964_v39 = vld [vmem:[#allocation76 + $0x18] sm:$0xff] }
 0x308   :  { %17214 = vst [vmem:[#allocation160_spill] sm:$0xff] %v17213_v38  ;;  %vm1231_vm13 = vmand %vm1226_vm4, %vm16981_vm5  ;;  %11491 = vmatprep.subr.mxu1 %v17047_v1  ;;  %vm1221_vm4 = vcmp.lt.s32.totalorder %v14721_v32, %v14658_v19  ;;  %v4254_v19 = vld [vmem:[#allocation28 + $0x8] sm:$0xff] }
 0x309   :  { %vm14778_vm0 = vmand %vm1231_vm13, %vm16978_vm11 }
 0x30a   :  { %v17216_v41 = vsel %vm14778_vm0, 4294967295, %v17215_v41  ;;  %11501 = vmatpush3.msk.msra.mxu0 %vm14778_vm0, %v17050_v27  ;;  %vm1128_vm6 = vmand %vm1120_vm3, %vm1124_vm12  ;;  %2479 = vperm.xlu0 %12835, %v2031_v40   ;;  %vm1119_vm12 = vcmp.le.s32.totalorder %v14648_v15, %v14639_v12  ;;  %v965_v40 = vld [vmem:[#allocation76 + $0x20] sm:$0xff] }
 0x30b   :  { %17217 = vst [vmem:[#allocation161_spill] sm:$0xff] %v17216_v41  ;;  %11502 = vmatprep.subr.mxu0 %v17047_v1  ;;  %vm1133_vm13 = vmand %vm1128_vm6, %vm16979_vm14  ;;  %vm1123_vm6 = vcmp.lt.s32.totalorder %v14639_v12, %v14662_v21  ;;  %2484 = vperm.xlu1 %12836, %v2032_v42   ;;  %v966_v42 = vld [vmem:[#allocation76 + $0x28] sm:$0xff] }
 0x30c   :  { %vm14794_vm11 = vmand %vm1133_vm13, %vm16980_vm2  ;;  %vm17221_vm13 = vcmp.lt.s32.totalorder %v14721_v32, 16 }
 0x30d   :  { %v17219_v43 = vsel %vm14794_vm11, 4294967295, %v17218_v43  ;;  %11492 = vmatpush3.msk.msra.mxu1 %vm14794_vm11, %v17050_v27  ;;  %vm1225_vm3 = vmand %vm1217_vm8, %vm1221_vm4  ;;  %vm1216_vm4 = vcmp.le.s32.totalorder %v14648_v15, %v14721_v32  ;;  %vm17241_vm11 = vcmask 261120   ;;  %v3706_v15 = vld [vmem:[#allocation25 + $0x18] sm:$0xff] }
 0x30e   :  { %17220 = vst [vmem:[#allocation162_spill] sm:$0xff] %v17219_v43  ;;  %vm1230_vm14 = vmand %vm1225_vm3, %vm16981_vm5  ;;  %11493 = vmatprep.subr.mxu1 %v17047_v1  ;;  %2489 = vperm.xlu0 %12835, %v2033_v44   ;;  %vm1220_vm3 = vcmp.lt.s32.totalorder %v14721_v32, %v14662_v21  ;;  %vm17226_vm5 = vcmp.lt.s32.totalorder %v14639_v12, 16  ;;  %v4261_v21 = vld [vmem:[#allocation31] sm:$0xff] }
 0x30f   :  { %vm14810_vm2 = vmand %vm1230_vm14, %vm17221_vm13  ;;  %vm17225_vm14 = vcmp.ge.s32.totalorder %v14639_v12, 0  ;;  %2494 = vperm.xlu1 %12836, %v2034_v46   ;;  %v967_v44 = vld [vmem:[#allocation76 + $0x30] sm:$0xff]  ;;  %v968_v46 = vld [vmem:[#allocation76 + $0x38] sm:$0xff] }
 0x310   :  { %v17223_v45 = vsel %vm14810_vm2, 4294967295, %v17222_v45  ;;  %11503 = vmatpush3.msk.msra.mxu0 %vm14810_vm2, %v17050_v27  ;;  %vm1127_vm8 = vmand %vm1119_vm12, %vm1123_vm6  ;;  %vm1118_vm6 = vcmp.le.s32.totalorder %v14665_v22, %v14639_v12  ;;  %vm1122_vm2 = vcmp.lt.s32.totalorder %v14639_v12, %v14686_v25 }
 0x311   :  { %17224 = vst [vmem:[#allocation163_spill] sm:$0xff] %v17223_v45  ;;  %11504 = vmatprep.subr.mxu0 %v17047_v1  ;;  %vm1132_vm13 = vmand %vm1127_vm8, %vm17225_vm14  ;;  %vm17230_vm8 = vcmp.ge.s32.totalorder %v14721_v32, 0  ;;  %vm17231_vm14 = vcmp.lt.s32.totalorder %v14721_v32, 16 }
 0x312   :  { %vm14826_vm0 = vmand %vm1132_vm13, %vm17226_vm5  ;;  %2932 = vperm.xlu0 %12835, %v2605_v47   ;;  %v981_v47 = vld [vmem:[#allocation81] sm:$0xff] }
 0x313   :  { %v17228_v48 = vsel %vm14826_vm0, 4294967295, %v17227_v48  ;;  %11494 = vmatpush3.msk.msra.mxu1 %vm14826_vm0, %v17050_v27  ;;  %vm1224_vm12 = vmand %vm1216_vm4, %vm1220_vm3  ;;  %vm1215_vm3 = vcmp.le.s32.totalorder %v14665_v22, %v14721_v32  ;;  %2927 = vperm.xlu1 %12836, %v2604_v49   ;;  %v4262_v22 = vld [vmem:[#allocation31 + $0x8] sm:$0xff]  ;;  %v990_v49 = vld [vmem:[%s17247_s26] sm:$0xff] }
 0x314   :  { %17229 = vst [vmem:[#allocation164_spill] sm:$0xff] %v17228_v48  ;;  %vm1229_vm5 = vmand %vm1224_vm12, %vm17230_vm8  ;;  %11495 = vmatprep.subr.mxu1 %v17047_v1  ;;  %vm1219_vm12 = vcmp.lt.s32.totalorder %v14721_v32, %v14686_v25  ;;  %vm17235_vm8 = vcmp.ge.s32.totalorder %v14639_v12, 0  ;;  %v4264_v25 = vld [vmem:[#allocation31 + $0x18] sm:$0xff] }
 0x315   :  { %vm14842_vm13 = vmand %vm1229_vm5, %vm17231_vm14  ;;  %vm17236_vm14 = vcmp.lt.s32.totalorder %v14639_v12, 16 }
 0x316   :  { %v17233_v51 = vsel %vm14842_vm13, 4294967295, %v17232_v51  ;;  %11505 = vmatpush3.msk.msra.mxu0 %vm14842_vm13, %v17050_v27  ;;  %vm1126_vm4 = vmand %vm1118_vm6, %vm1122_vm2  ;;  %2922 = vperm.xlu0 %12835, %v2603_v50   ;;  %vm17240_vm6 = vcmp.ge.s32.totalorder %v14721_v32, 0  ;;  %v982_v50 = vld [vmem:[#allocation81 + $0x8] sm:$0xff] }
 0x317   :  { %17234 = vst [vmem:[#allocation165_spill] sm:$0xff] %v17233_v51  ;;  %11506 = vmatprep.subr.mxu0 %v17047_v1  ;;  %vm1131_vm5 = vmand %vm1126_vm4, %vm17235_vm8  ;;  %2917 = vperm.xlu1 %12836, %v2602_v52   ;;  %vm17242_vm4 = vcmp.lt.s32.totalorder %v14721_v32, 16  ;;  %v983_v52 = vld [vmem:[#allocation81 + $0x10] sm:$0xff]  ;;  %v3701_v1 = vld [vmem:[#allocation24 + $0x10] sm:$0xff] }
 0x318   :  { %vm14858_vm0 = vmand %vm1131_vm5, %vm17236_vm14 }
 0x319   :  { %v17238_v53 = vsel %vm14858_vm0, 4294967295, %v17237_v53  ;;  %11496 = vmatpush3.msk.msra.mxu1 %vm14858_vm0, %v17050_v27  ;;  %vm1223_vm2 = vmand %vm1215_vm3, %vm1219_vm12 }
 0x31a   :  { %17239 = vst [vmem:[#allocation166_spill] sm:$0xff] %v17238_v53  ;;  %vm1228_vm13 = vmand %vm1223_vm2, %vm17240_vm6  ;;  %11498 = vmatmul.mubr.msk.f32.vlgmr.msra.gmra.mxu1 %vm17241_vm11, %v14734_v34  ;;  %3038 = vperm.xlu0 %12835, %v2610_v54   ;;  %v984_v54 = vld [vmem:[#allocation81 + $0x18] sm:$0xff] }
 0x31b   :  { %vm14871_vm8 = vmand %vm1228_vm13, %vm17242_vm4  ;;  %3043 = vperm.xlu1 %12836, %v2611_v56   ;;  %v985_v56 = vld [vmem:[#allocation81 + $0x20] sm:$0xff]  ;;  %vm1441_vm13 = vcmp.ge.s32.totalorder %v14614_v3, 8 }
 0x31c   :  { %v17244_v55 = vsel %vm14871_vm8, 4294967295, %v17243_v55  ;;  %11507 = vmatpush3.msk.msra.mxu0 %vm14871_vm8, %v17050_v27  ;;  %vm17246_vm3 = vmmov %vm17241_vm11  ;;  %vm1331_vm11 = vcmask 195584  }
 0x31d   :  { %17245 = vst [vmem:[#allocation167_spill] sm:$0xff] %v17244_v55  ;;  %11509 = vmatmul.mubr.msk.f32.vlgmr.msra.gmra.mxu0 %vm17246_vm3, %v14734_v34  ;;  %v961_v34 = vld [vmem:[#allocation76] sm:$0xff]  ;;  %11517 = vmatprep.mubr.msk.f32.mxu1 %vm1331_vm11, %v990_v49 }
 0x31e   :  { %3048 = vperm.xlu0 %12835, %v2612_v57   ;;  %v986_v57 = vld [vmem:[#allocation81 + $0x28] sm:$0xff] }
 0x31f   :  { %3053 = vperm.xlu1 %12836, %v2613_v58   ;;  %v987_v58 = vld [vmem:[#allocation81 + $0x30] sm:$0xff] }
 0x322   :  { %3588 = vperm.xlu0 %12835, %v3161_v59   ;;  %v988_v59 = vld [vmem:[#allocation81 + $0x38] sm:$0xff] }
 0x323   :  { %3593 = vperm.xlu1 %12836, %v3162_v60   ;;  %v6143_v60 = vld [vmem:[#allocation37] sm:$0xff] }
 0x326   :  { %3598 = vperm.xlu0 %12835, %v3163_v61   ;;  %v6144_v61 = vld [vmem:[#allocation37 + $0x8] sm:$0xff] }
 0x327   :  { %3603 = vperm.xlu1 %12836, %v3164_v62   ;;  %v6145_v62 = vld [vmem:[#allocation37 + $0x10] sm:$0xff] }
 0x32a   :  { %4024 = vperm.xlu0 %12835, %v3698_v63   ;;  %v6146_v63 = vld [vmem:[#allocation37 + $0x18] sm:$0xff] }
 0x32b   :  { %4019 = vperm.xlu1 %12836, %v3697_v0   ;;  %v6542_v0 = vld [vmem:[#allocation40 + $0x18] sm:$0xff] }
 0x32e   :  { %4014 = vperm.xlu0 %12835, %v3696_v9   ;;  %v6541_v9 = vld [vmem:[#allocation40 + $0x10] sm:$0xff] }
 0x32f   :  { %4009 = vperm.xlu1 %12836, %v3695_v10   ;;  %v6540_v10 = vld [vmem:[#allocation40 + $0x8] sm:$0xff] }
 0x332   :  { %4130 = vperm.xlu0 %12835, %v3703_v11   ;;  %v6539_v11 = vld [vmem:[#allocation40] sm:$0xff] }
 0x333   :  { %4135 = vperm.xlu1 %12836, %v3704_v13   ;;  %v6547_v13 = vld [vmem:[#allocation43] sm:$0xff] }
 0x336   :  { %4140 = vperm.xlu0 %12835, %v3705_v14   ;;  %v6548_v14 = vld [vmem:[#allocation43 + $0x8] sm:$0xff] }
 0x337   :  { %4145 = vperm.xlu1 %12836, %v3706_v15   ;;  %v6549_v15 = vld [vmem:[#allocation43 + $0x10] sm:$0xff] }
 0x33a   :  { %4571 = vperm.xlu0 %12835, %v4256_v16   ;;  %v6550_v16 = vld [vmem:[#allocation43 + $0x18] sm:$0xff] }
 0x33b   :  { %4566 = vperm.xlu1 %12836, %v4255_v18   ;;  %v7071_v18 = vld [vmem:[#allocation46 + $0x18] sm:$0xff] }
 0x33e   :  { %4561 = vperm.xlu0 %12835, %v4254_v19   ;;  %v7070_v19 = vld [vmem:[#allocation46 + $0x10] sm:$0xff] }
 0x33f   :  { %4556 = vperm.xlu1 %12836, %v4253_v20   ;;  %v7069_v20 = vld [vmem:[#allocation46 + $0x8] sm:$0xff] }
 0x342   :  { %4677 = vperm.xlu0 %12835, %v4261_v21   ;;  %v7068_v21 = vld [vmem:[#allocation46] sm:$0xff] }
 0x343   :  { %4682 = vperm.xlu1 %12836, %v4262_v22   ;;  %v7076_v22 = vld [vmem:[#allocation49] sm:$0xff] }
 0x346   :  { %4687 = vperm.xlu0 %12835, %v4263_v23   ;;  %v7077_v23 = vld [vmem:[#allocation49 + $0x8] sm:$0xff] }
 0x347   :  { %4692 = vperm.xlu1 %12836, %v4264_v25   ;;  %v7078_v25 = vld [vmem:[#allocation49 + $0x10] sm:$0xff] }
 0x34a   :  { %5088 = vperm.xlu0 %12835, %v4803_v26   ;;  %v7079_v26 = vld [vmem:[#allocation49 + $0x18] sm:$0xff] }
 0x34b   :  { %5083 = vperm.xlu1 %12836, %v4802_v28   ;;  %v7597_v28 = vld [vmem:[#allocation52] sm:$0xff] }
 0x34e   :  { %5078 = vperm.xlu0 %12835, %v4801_v30   ;;  %v7598_v30 = vld [vmem:[#allocation52 + $0x8] sm:$0xff] }
 0x34f   :  { %5073 = vperm.xlu1 %12836, %v4800_v33   ;;  %v7599_v33 = vld [vmem:[#allocation52 + $0x10] sm:$0xff] }
 0x352   :  { %5327 = vperm.xlu0 %12835, %v961_v34   ;;  %v7600_v34 = vld [vmem:[#allocation52 + $0x18] sm:$0xff] }
 0x353   :  { %5332 = vperm.xlu1 %12836, %v962_v36   ;;  %v8014_v36 = vld [vmem:[#allocation55 + $0x18] sm:$0xff] }
 0x356   :  { %5337 = vperm.xlu0 %12835, %v963_v37   ;;  %v8013_v37 = vld [vmem:[#allocation55 + $0x10] sm:$0xff] }
 0x357   :  { %5342 = vperm.xlu1 %12836, %v964_v39   ;;  %v8012_v39 = vld [vmem:[#allocation55 + $0x8] sm:$0xff] }
 0x35a   :  { %5347 = vperm.xlu0 %12835, %v965_v40   ;;  %v8011_v40 = vld [vmem:[#allocation55] sm:$0xff] }
 0x35b   :  { %5352 = vperm.xlu1 %12836, %v966_v42   ;;  %v8019_v42 = vld [vmem:[#allocation58] sm:$0xff] }
 0x35e   :  { %5357 = vperm.xlu0 %12835, %v967_v44  }
 0x35f   :  { %5362 = vperm.xlu1 %12836, %v968_v46   ;;  %v8020_v46 = vld [vmem:[#allocation58 + $0x8] sm:$0xff] }
 0x362   :  { %5809 = vperm.xlu0 %12835, %v981_v47   ;;  %v8021_v47 = vld [vmem:[#allocation58 + $0x10] sm:$0xff] }
 0x363   :  { %5814 = vperm.xlu1 %12836, %v982_v50   ;;  %v8022_v50 = vld [vmem:[#allocation58 + $0x18] sm:$0xff] }
 0x366   :  { %5819 = vperm.xlu0 %12835, %v983_v52   ;;  %v8543_v52 = vld [vmem:[#allocation61 + $0x18] sm:$0xff] }
 0x367   :  { %5824 = vperm.xlu1 %12836, %v984_v54  }
 0x36a   :  { %5829 = vperm.xlu0 %12835, %v985_v56   ;;  %v8542_v56 = vld [vmem:[#allocation61 + $0x10] sm:$0xff] }
 0x36b   :  { %5834 = vperm.xlu1 %12836, %v986_v57  }
 0x36d   :  { %v14882_v44 = vpop.permute.xlu0 %1313  ;;  %v14884_v49 = vpop.permute.xlu1 %1323 }
 0x36e   :  { %5839 = vperm.xlu0 %12835, %v987_v58   ;;  %v8541_v58 = vld [vmem:[#allocation61 + $0x8] sm:$0xff] }
 0x36f   :  { %5844 = vperm.xlu1 %12836, %v988_v59  }
 0x371   :  { %v14886_v54 = vpop.permute.xlu0 %1318  ;;  %v14888_v57 = vpop.permute.xlu1 %1328 }
 0x372   :  { %6416 = vperm.xlu0 %12835, %v6143_v60   ;;  %v8540_v60 = vld [vmem:[#allocation61] sm:$0xff] }
 0x373   :  { %6421 = vperm.xlu1 %12836, %v6144_v61   ;;  %v8548_v61 = vld [vmem:[#allocation64] sm:$0xff] }
 0x375   :  { %v14890_v59 = vpop.permute.xlu0 %1916 }
 0x376   :  { %6426 = vperm.xlu0 %12835, %v6145_v62   ;;  %v14892_v62 = vpop.permute.xlu1 %1921 }
 0x377   :  { %6431 = vperm.xlu1 %12836, %v6146_v63   ;;  %v8549_v63 = vld [vmem:[#allocation64 + $0x8] sm:$0xff] }
 0x37a   :  { %6839 = vperm.xlu0 %12835, %v6542_v0   ;;  %v8550_v0 = vld [vmem:[#allocation64 + $0x10] sm:$0xff] }
 0x37b   :  { %6834 = vperm.xlu1 %12836, %v6541_v9   ;;  %v14894_v9 = vpop.permute.xlu0 %1926 }
 0x37e   :  { %6829 = vperm.xlu0 %12835, %v6540_v10   ;;  %v8551_v10 = vld [vmem:[#allocation64 + $0x18] sm:$0xff] }
 0x37f   :  { %6824 = vperm.xlu1 %12836, %v6539_v11   ;;  %v14896_v11 = vpop.permute.xlu1 %1931 }
 0x382   :  { %6945 = vperm.xlu0 %12835, %v6547_v13   ;;  %v9069_v13 = vld [vmem:[#allocation67] sm:$0xff] }
 0x383   :  { %6950 = vperm.xlu1 %12836, %v6548_v14   ;;  %v14898_v14 = vpop.permute.xlu0 %2372 }
 0x386   :  { %6955 = vperm.xlu0 %12835, %v6549_v15   ;;  %v9070_v15 = vld [vmem:[#allocation67 + $0x8] sm:$0xff] }
 0x387   :  { %6960 = vperm.xlu1 %12836, %v6550_v16   ;;  %v9071_v16 = vld [vmem:[#allocation67 + $0x10] sm:$0xff] }
 0x38a   :  { %7368 = vperm.xlu0 %12835, %v7071_v18  }
 0x38b   :  { %7363 = vperm.xlu1 %12836, %v7070_v19   ;;  %v14900_v19 = vpop.permute.xlu1 %2367 }
 0x38e   :  { %7358 = vperm.xlu0 %12835, %v7069_v20  }
 0x38f   :  { %7353 = vperm.xlu1 %12836, %v7068_v21   ;;  %v9072_v21 = vld [vmem:[#allocation67 + $0x18] sm:$0xff] }
 0x392   :  { %7474 = vperm.xlu0 %12835, %v7076_v22   ;;  %v9504_v22 = vld [vmem:[#allocation70] sm:$0xff] }
 0x393   :  { %7479 = vperm.xlu1 %12836, %v7077_v23   ;;  %v14902_v23 = vpop.permute.xlu0 %2362 }
 0x396   :  { %7484 = vperm.xlu0 %12835, %v7078_v25   ;;  %v9505_v25 = vld [vmem:[#allocation70 + $0x8] sm:$0xff] }
 0x397   :  { %7489 = vperm.xlu1 %12836, %v7079_v26   ;;  %v14904_v26 = vpop.permute.xlu1 %2357 }
 0x39a   :  { %7892 = vperm.xlu0 %12835, %v7597_v28   ;;  %v9506_v28 = vld [vmem:[#allocation70 + $0x10] sm:$0xff] }
 0x39b   :  { %7897 = vperm.xlu1 %12836, %v7598_v30   ;;  %v14906_v30 = vpop.permute.xlu0 %2479 }
 0x39e   :  { %7902 = vperm.xlu0 %12835, %v7599_v33   ;;  %v9507_v33 = vld [vmem:[#allocation70 + $0x18] sm:$0xff] }
 0x39f   :  { %7907 = vperm.xlu1 %12836, %v7600_v34   ;;  %v14908_v34 = vpop.permute.xlu1 %2484 }
 0x3a2   :  { %8311 = vperm.xlu0 %12835, %v8014_v36  }
 0x3a3   :  { %8306 = vperm.xlu1 %12836, %v8013_v37  }
 0x3a6   :  { %8301 = vperm.xlu0 %12835, %v8012_v39  }
 0x3a7   :  { %8296 = vperm.xlu1 %12836, %v8011_v40  }
 0x3aa   :  { %8417 = vperm.xlu0 %12835, %v8019_v42   ;;  %v991_v42 = vld [vmem:[%s17247_s26 + $0x8] sm:$0xff] }
 0x3ab   :  { %8422 = vperm.xlu1 %12836, %v8020_v46   ;;  %v992_v46 = vld [vmem:[%s17247_s26 + $0x10] sm:$0xff] }
 0x3ae   :  { %8427 = vperm.xlu0 %12835, %v8021_v47   ;;  %v993_v47 = vld [vmem:[%s17247_s26 + $0x18] sm:$0xff] }
 0x3af   :  { %8432 = vperm.xlu1 %12836, %v8022_v50   ;;  %v14918_v50 = vsel %vm1441_vm13, 1, %v14102_v4 }
 0x3b2   :  { %8840 = vperm.xlu0 %12835, %v8543_v52   ;;  %v14921_v52 = vmul.u32 8, %v14918_v50 }
 0x3b3   :  { %8835 = vperm.xlu1 %12836, %v8542_v56  }
 0x3b4   :  { %v14925_v56 = vsub.s32 %v14614_v3, %v14921_v52 }
 0x3b6   :  { %8830 = vperm.xlu0 %12835, %v8541_v58   ;;  %17248 = vst [vmem:[#allocation168_spill] sm:$0xff] %v14925_v56  ;;  %v1445_v58 = vmul.u32 16, %v14918_v50 }
 0x3b7   :  { %8825 = vperm.xlu1 %12836, %v8540_v60  }
 0x3b8   :  { %v14929_v60 = vsub.s32 %v14623_v5, %v1445_v58 }
 0x3ba   :  { %8946 = vperm.xlu0 %12835, %v8548_v61   ;;  %v14932_v61 = vmul.u32 2, %v14925_v56 }
 0x3bb   :  { %8951 = vperm.xlu1 %12836, %v8549_v63  }
 0x3bc   :  { %v14935_v63 = vadd.s32 4294967295, %v14932_v61  ;;  %vm1582_vm6 = vcmp.le.s32.totalorder %v14929_v60, %v14932_v61  ;;  %vm17001_vm13 = vcmp.ge.s32.totalorder %v14932_v61, 0 }
 0x3be   :  { %8956 = vperm.xlu0 %12835, %v8550_v0   ;;  %v14938_v0 = vadd.s32 1, %v14929_v60  ;;  %vm1455_vm12 = vcmp.le.s32.totalorder %v14929_v60, %v14935_v63  ;;  %vm16996_vm2 = vcmp.ge.s32.totalorder %v14935_v63, 0 }
 0x3bf   :  { %8961 = vperm.xlu1 %12836, %v8551_v10   ;;  %v14941_v10 = vsub.s32 %v14627_v6, %v1445_v58 }
 0x3c0   :  { %vm1463_vm5 = vcmp.lt.s32.totalorder %v14935_v63, %v14938_v0  ;;  %vm1586_vm4 = vcmp.lt.s32.totalorder %v14932_v61, %v14938_v0 }
 0x3c1   :  { %vm1467_vm14 = vmand %vm1455_vm12, %vm1463_vm5  ;;  %vm17000_vm5 = vcmp.lt.s32.totalorder %v14932_v61, 16  ;;  %vm1454_vm0 = vcmp.le.s32.totalorder %v14941_v10, %v14935_v63 }
 0x3c2   :  { %9385 = vperm.xlu0 %12835, %v9069_v13   ;;  %v14953_v13 = vadd.s32 1, %v14941_v10  ;;  %vm1472_vm3 = vmand %vm1467_vm14, %vm16996_vm2 }
 0x3c3   :  { %9390 = vperm.xlu1 %12836, %v9070_v15   ;;  %v14960_v15 = vsub.s32 %v14630_v7, %v1445_v58  ;;  %vm1590_vm8 = vmand %vm1582_vm6, %vm1586_vm4  ;;  %vm1581_vm4 = vcmp.le.s32.totalorder %v14941_v10, %v14932_v61 }
 0x3c4   :  { %vm1462_vm14 = vcmp.lt.s32.totalorder %v14935_v63, %v14953_v13  ;;  %vm1595_vm2 = vmand %vm1590_vm8, %vm17001_vm13  ;;  %vm17249_vm8 = vcmp.ge.s32.totalorder %v14935_v63, 0 }
 0x3c5   :  { %v1114_v18 = vpop.f32.mrf.mxu0  ;;  %vm1600_vm9 = vmand %vm1595_vm2, %vm17000_vm5 }
 0x3c6   :  { %9395 = vperm.xlu0 %12835, %v9071_v16   ;;  %v14976_v16 = vadd.s32 1, %v14960_v15  ;;  %11537 = vmatprep.subr.msk.mxu0 %vm1600_vm9, %v17050_v27  ;;  %vm1466_vm6 = vmand %vm1454_vm0, %vm1462_vm14 }
 0x3c7   :  { %v11488_v20 = vpop.f32.mrf.mxu0  ;;  %9400 = vperm.xlu1 %12836, %v9072_v21   ;;  %11538 = vmatpush3.msk.msra.mxu0 %vm1600_vm9, %v17050_v27  ;;  %v14995_v21 = vadd.s32 2, %v14932_v61  ;;  %vm1453_vm9 = vcmp.le.s32.totalorder %v14960_v15, %v14935_v63 }
 0x3c8   :  { %v14990_v20 = vadd.s32 1, %v14932_v61  ;;  %vm1461_vm14 = vcmp.lt.s32.totalorder %v14935_v63, %v14976_v16 }
 0x3ca   :  { %9777 = vperm.xlu0 %12835, %v9504_v22  }
 0x3cb   :  { %9782 = vperm.xlu1 %12836, %v9505_v25  }
 0x3ce   :  { %9787 = vperm.xlu0 %12835, %v9506_v28  }
 0x3cf   :  { %9792 = vperm.xlu1 %12836, %v9507_v33  }
 0x3da   :  { %v1210_v36 = vpop.f32.mrf.mxu1 }
 0x3dc   :  { %v11499_v37 = vpop.f32.mrf.mxu1 }
 0x3dd   :  { %v1307_v39 = vpop.f32.mrf.mxu0  ;;  %v17273_v37 = vmov 0 }
 0x3de   :  { %11511 = vmatprep.subr.mxu1 %v1307_v39 }
 0x3df   :  { %v11510_v40 = vpop.f32.mrf.mxu0  ;;  %11512 = vmatpush3.msra.mxu1 %v1307_v39  ;;  %v17278_v39 = vmov 0 }
 0x3e0   :  { %11513 = vmatprep.subr.mxu1 %v1210_v36 }
 0x3e1   :  { %11514 = vmatpush3.msra.mxu1 %v1210_v36 }
 0x3e2   :  { %11515 = vmatprep.subr.mxu1 %v1114_v18 }
 0x3e3   :  { %11516 = vmatpush3.msra.mxu1 %v1114_v18  ;;  %v14987_v18 = vsub.s32 %v14612_v2, %v1445_v58 }
 0x3e4   :  { %11518 = vmatmul.mubr.msk.f32.vlgmr.msra.gmra.mxu1 %vm1331_vm11, %v991_v42 }
 0x3e5   :  { %11520 = vmatprep.mubr.msk.f32.mxu1 %vm1331_vm11, %v992_v46  ;;  %v15016_v22 = vadd.s32 1, %v14987_v18 }
 0x3e8   :  { %11521 = vmatmul.mubr.msk.f32.gmra.mxu1 %vm1331_vm11, %v993_v47  ;;  %vm16999_vm11 = vcmp.lt.s32.totalorder %v14935_v63, 16 }
 0x3e9   :  { %vm1477_vm12 = vmand %vm1472_vm3, %vm16999_vm11  ;;  %vm1585_vm3 = vcmp.lt.s32.totalorder %v14932_v61, %v14953_v13 }
 0x3ea   :  { %11523 = vmatprep.subr.msk.mxu1 %vm1477_vm12, %v17050_v27  ;;  %vm1589_vm2 = vmand %vm1581_vm4, %vm1585_vm3  ;;  %vm1452_vm3 = vcmp.le.s32.totalorder %v14987_v18, %v14935_v63 }
 0x3eb   :  { %11524 = vmatpush3.msk.msra.mxu1 %vm1477_vm12, %v17050_v27  ;;  %vm1471_vm12 = vmand %vm1466_vm6, %vm17249_vm8 }
 0x3ec   :  { %vm1476_vm0 = vmand %vm1471_vm12, %vm16999_vm11 }
 0x3ed   :  { %11525 = vmatprep.subr.msk.mxu1 %vm1476_vm0, %v17050_v27  ;;  %vm1594_vm12 = vmand %vm1589_vm2, %vm17001_vm13  ;;  %vm1580_vm2 = vcmp.le.s32.totalorder %v14960_v15, %v14932_v61 }
 0x3ee   :  { %11526 = vmatpush3.msk.msra.mxu1 %vm1476_vm0, %v17050_v27  ;;  %vm1599_vm11 = vmand %vm1594_vm12, %vm17000_vm5  ;;  %vm1584_vm0 = vcmp.lt.s32.totalorder %v14932_v61, %v14976_v16  ;;  %vm17251_vm5 = vcmp.lt.s32.totalorder %v14935_v63, 16 }
 0x3ef   :  { %11539 = vmatprep.subr.msk.mxu0 %vm1599_vm11, %v17050_v27  ;;  %vm1465_vm6 = vmand %vm1453_vm9, %vm1461_vm14  ;;  %vm17254_vm9 = vcmp.ge.s32.totalorder %v14935_v63, 0 }
 0x3f0   :  { %11540 = vmatpush3.msk.msra.mxu0 %vm1599_vm11, %v17050_v27  ;;  %vm17250_vm12 = vmmov %vm17249_vm8  ;;  %vm1460_vm11 = vcmp.lt.s32.totalorder %v14935_v63, %v15016_v22 }
 0x3f1   :  { %vm1470_vm8 = vmand %vm1465_vm6, %vm17250_vm12  ;;  %vm17252_vm6 = vcmp.ge.s32.totalorder %v14932_v61, 0 }
 0x3f2   :  { %vm1475_vm13 = vmand %vm1470_vm8, %vm17251_vm5 }
 0x3f3   :  { %11527 = vmatprep.subr.msk.mxu1 %vm1475_vm13, %v17050_v27  ;;  %vm1588_vm4 = vmand %vm1580_vm2, %vm1584_vm0  ;;  %vm17253_vm0 = vcmp.lt.s32.totalorder %v14932_v61, 16 }
 0x3f4   :  { %vm1593_vm12 = vmand %vm1588_vm4, %vm17252_vm6  ;;  %11528 = vmatpush3.msk.msra.mxu1 %vm1475_vm13, %v17050_v27  ;;  %vm1579_vm13 = vcmp.le.s32.totalorder %v14987_v18, %v14932_v61  ;;  %vm1583_vm6 = vcmp.lt.s32.totalorder %v14932_v61, %v15016_v22 }
 0x3f5   :  { %vm1598_vm14 = vmand %vm1593_vm12, %vm17253_vm0  ;;  %vm17255_vm0 = vcmp.ge.s32.totalorder %v14932_v61, 0 }
 0x3f6   :  { %11541 = vmatprep.subr.msk.mxu0 %vm1598_vm14, %v17050_v27  ;;  %vm1464_vm4 = vmand %vm1452_vm3, %vm1460_vm11  ;;  %vm1694_vm3 = vcmp.le.s32.totalorder %v14929_v60, %v14990_v20  ;;  %vm1698_vm11 = vcmp.lt.s32.totalorder %v14990_v20, %v14938_v0 }
 0x3f7   :  { %11542 = vmatpush3.msk.msra.mxu0 %vm1598_vm14, %v17050_v27  ;;  %vm1469_vm8 = vmand %vm1464_vm4, %vm17254_vm9  ;;  %vm1703_vm14 = vcmp.ge.s32.totalorder %v14990_v20, 0  ;;  %vm17256_vm9 = vcmp.lt.s32.totalorder %v14932_v61, 16 }
 0x3f8   :  { %vm1474_vm2 = vmand %vm1469_vm8, %vm17251_vm5  ;;  %vm17007_vm5 = vcmp.lt.s32.totalorder %v14990_v20, 16 }
 0x3f9   :  { %11529 = vmatprep.subr.msk.mxu1 %vm1474_vm2, %v17050_v27  ;;  %vm1587_vm12 = vmand %vm1579_vm13, %vm1583_vm6  ;;  %vm1806_vm13 = vcmp.le.s32.totalorder %v14929_v60, %v14995_v21  ;;  %vm1810_vm6 = vcmp.lt.s32.totalorder %v14995_v21, %v14938_v0 }
 0x3fa   :  { %vm1592_vm1 = vmand %vm1587_vm12, %vm17255_vm0  ;;  %11530 = vmatpush3.msk.msra.mxu1 %vm1474_vm2, %v17050_v27  ;;  %vm1815_vm12 = vcmp.ge.s32.totalorder %v14995_v21, 0 }
 0x3fb   :  { %vm1597_vm4 = vmand %vm1592_vm1, %vm17256_vm9 }
 0x3fc   :  { %11543 = vmatprep.subr.msk.mxu0 %vm1597_vm4, %v17050_v27  ;;  %vm1702_vm8 = vmand %vm1694_vm3, %vm1698_vm11  ;;  %vm17004_vm3 = vcmp.lt.s32.totalorder %v14995_v21, 16 }
 0x3fd   :  { %11544 = vmatpush3.msk.msra.mxu0 %vm1597_vm4, %v17050_v27  ;;  %vm1707_vm2 = vmand %vm1702_vm8, %vm1703_vm14  ;;  %vm17261_vm4 = vcmp.lt.s32.totalorder %v14990_v20, %v14953_v13  ;;  %vm17262_vm8 = vcmp.le.s32.totalorder %v14941_v10, %v14990_v20 }
 0x3fe   :  { %vm15087_vm1 = vmand %vm1707_vm2, %vm17007_vm5 }
 0x3ff   :  { %11551 = vmatprep.subr.msk.mxu1 %vm15087_vm1, %v17050_v27  ;;  %vm1814_vm11 = vmand %vm1806_vm13, %vm1810_vm6 }
 0x400   :  { %vm1819_vm0 = vmand %vm1814_vm11, %vm1815_vm12  ;;  %vm17265_vm11 = vcmp.lt.s32.totalorder %v14995_v21, %v14953_v13 }
 0x401   :  { %vm15099_vm9 = vmand %vm1819_vm0, %vm17004_vm3  ;;  %vm17266_vm0 = vcmp.le.s32.totalorder %v14941_v10, %v14995_v21 }
 0x402   :  { %11565 = vmatprep.subr.msk.mxu0 %vm15099_vm9, %v17050_v27  ;;  %vm1701_vm13 = vmand %vm17262_vm8, %vm17261_vm4  ;;  %vm17267_vm4 = vcmp.lt.s32.totalorder %v14995_v21, 16 }
 0x403   :  { %vm1706_vm6 = vmand %vm1701_vm13, %vm1703_vm14  ;;  %vm17270_vm13 = vcmp.lt.s32.totalorder %v14990_v20, %v14976_v16 }
 0x404   :  { %vm15116_vm2 = vmand %vm1706_vm6, %vm17007_vm5  ;;  %vm17271_vm6 = vcmp.le.s32.totalorder %v14960_v15, %v14990_v20 }
 0x405   :  { %vm1813_vm3 = vmand %vm17266_vm0, %vm17265_vm11  ;;  %vm17272_vm11 = vcmp.lt.s32.totalorder %v14990_v20, 16 }
 0x406   :  { %vm1818_vm7 = vmand %vm1813_vm3, %vm1815_vm12  ;;  %vm17276_vm3 = vcmp.le.s32.totalorder %v14960_v15, %v14995_v21 }
 0x407   :  { %vm15130_vm8 = vmand %vm1818_vm7, %vm17267_vm4  ;;  %vm17275_vm7 = vcmp.lt.s32.totalorder %v14995_v21, %v14976_v16 }
 0x408   :  { %vm1700_vm5 = vmand %vm17271_vm6, %vm17270_vm13  ;;  %vm17277_vm13 = vcmp.lt.s32.totalorder %v14995_v21, 16 }
 0x409   :  { %vm1705_vm15 = vmand %vm1700_vm5, %vm1703_vm14  ;;  %vm17281_vm5 = vcmp.le.s32.totalorder %v14987_v18, %v14990_v20 }
 0x40a   :  { %vm15144_vm0 = vmand %vm1705_vm15, %vm17272_vm11  ;;  %vm17280_vm15 = vcmp.lt.s32.totalorder %v14990_v20, %v15016_v22 }
 0x40b   :  { %v17274_v37 = vsel %vm15144_vm0, 4294967295, %v17273_v37  ;;  %vm1812_vm4 = vmand %vm17276_vm3, %vm17275_vm7  ;;  %vm17282_vm7 = vcmp.lt.s32.totalorder %v14990_v20, 16 }
 0x40c   :  { %vm1817_vm10 = vmand %vm1812_vm4, %vm1815_vm12  ;;  %vm17286_vm4 = vcmp.le.s32.totalorder %v14987_v18, %v14995_v21 }
 0x40d   :  { %vm15158_vm6 = vmand %vm1817_vm10, %vm17277_vm13  ;;  %vm17285_vm10 = vcmp.lt.s32.totalorder %v14995_v21, %v15016_v22 }
 0x40e   :  { %v17279_v39 = vsel %vm15158_vm6, 4294967295, %v17278_v39  ;;  %vm1699_vm11 = vmand %vm17281_vm5, %vm17280_vm15  ;;  %vm17287_vm15 = vcmp.lt.s32.totalorder %v14995_v21, 16 }
 0x40f   :  { %vm1704_vm0 = vmand %vm1699_vm11, %vm1703_vm14  ;;  %vm17290_vm14 = vcmask 261120  }
 0x410   :  { %vm15172_vm3 = vmand %vm1704_vm0, %vm17282_vm7 }
 0x411   :  { %vm1811_vm13 = vmand %vm17286_vm4, %vm17285_vm10  ;;  %vm17298_vm10 = vnez %v17274_v37  ;;  %vm17299_vm4 = vnez %v17279_v39 }
 0x412   :  { %vm1816_vm6 = vmand %vm1811_vm13, %vm1815_vm12 }
 0x413   :  { %vm15186_vm5 = vmand %vm1816_vm6, %vm17287_vm15 }
 0x414   :  { %vm17291_vm12 = vmmov %vm17290_vm14 }
 0x415   :  { %vm17292_vm0 = vmmov %vm17291_vm12 }
 0x416   :  { %vm17293_vm6 = vmmov %vm17292_vm0 }
 0x417   :  { %vm17294_vm11 = vmmov %vm17292_vm0 }
 0x418   :  { %vm17295_vm7 = vmmov %vm17292_vm0 }
 0x419   :  { %vm17302_vm13 = vmmov %vm17292_vm0 }
 0x41a   :  { %vm17303_vm15 = vmmov %vm17292_vm0 }
 0x4a4   :  { %v11519_v46 = vpop.f32.mrf.mxu1 }
 0x4a5   :  { %v1416_v47 = vadd.f32 %v11519_v46, %v14886_v54 }
 0x4a6   :  { %v1410_v58 = vpop.f32.mrf.mxu1 }
 0x4a7   :  { %v1411_v60 = vadd.f32 %v1410_v58, %v14882_v44  ;;  %v1430_v0 = vmax.f32 %v1416_v47, 0.0  ;;  %v1434_v58 = vld [vmem:[#allocation2 + $0x8] sm:$0xff] }
 0x4a8   :  { %v11522_v61 = vpop.f32.mrf.mxu1 }
 0x4a9   :  { %v1429_v63 = vmax.f32 %v1411_v60, 0.0  ;;  %v1426_v13 = vadd.f32 %v11522_v61, %v14888_v57  ;;  %v1435_v60 = vld [vmem:[#allocation2 + $0x10] sm:$0xff]  ;;  %v1436_v61 = vld [vmem:[#allocation2 + $0x18] sm:$0xff] }
 0x4aa   :  { %v1420_v10 = vpop.f32.mrf.mxu1 }
 0x4ab   :  { %v1421_v15 = vadd.f32 %v1420_v10, %v14884_v49  ;;  %11531 = vmatprep.mubr.msk.f32.mxu1 %vm17290_vm14, %v1429_v63  ;;  %11545 = vmatprep.mubr.msk.f32.mxu0 %vm17291_vm12, %v1429_v63  ;;  %v1432_v44 = vmax.f32 %v1426_v13, 0.0  ;;  %vm17304_vm14 = vmmov %vm17292_vm0  ;;  %v1433_v49 = vld [vmem:[#allocation2] sm:$0xff]  ;;  %v15264_v13 = vsub.s32 %v14612_v2, %v14921_v52 }
 0x4ac   :  { %11532 = vmatmul.mubr.msk.f32.vlgmr.msra.gmra.mxu1 %vm17292_vm0, %v1430_v0  ;;  %11546 = vmatmul.mubr.msk.f32.vlgmr.msra.gmra.mxu0 %vm17293_vm6, %v1430_v0  ;;  %vm17305_vm12 = vmmov %vm17292_vm0 }
 0x4ad   :  { %v1431_v54 = vmax.f32 %v1421_v15, 0.0  ;;  %11552 = vmatpush3.msk.msra.mxu1 %vm15087_vm1, %v17050_v27  ;;  %11566 = vmatpush3.msk.msra.mxu0 %vm15099_vm9, %v17050_v27  ;;  %vm17296_vm1 = vmmov %vm17292_vm0  ;;  %v15271_v15 = vadd.s32 1, %v15264_v13 }
 0x4ae   :  { %11553 = vmatprep.subr.msk.mxu1 %vm15116_vm2, %v17050_v27  ;;  %11567 = vmatprep.subr.msk.mxu0 %vm15130_vm8, %v17050_v27  ;;  %vm17297_vm9 = vmmov %vm17292_vm0 }
 0x4af   :  { %11534 = vmatprep.mubr.msk.f32.mxu1 %vm17294_vm11, %v1431_v54  ;;  %11548 = vmatprep.mubr.msk.f32.mxu0 %vm17295_vm7, %v1431_v54  ;;  %vm17306_vm6 = vmmov %vm17292_vm0 }
 0x4b0   :  { %11554 = vmatpush3.msk.msra.mxu1 %vm15116_vm2, %v17050_v27  ;;  %11568 = vmatpush3.msk.msra.mxu0 %vm15130_vm8, %v17050_v27  ;;  %vm17300_vm2 = vmmov %vm17292_vm0 }
 0x4b1   :  { %11535 = vmatmul.mubr.msk.f32.gmra.mxu1 %vm17296_vm1, %v1432_v44  ;;  %11549 = vmatmul.mubr.msk.f32.gmra.mxu0 %vm17297_vm9, %v1432_v44  ;;  %vm17301_vm8 = vmmov %vm17292_vm0 }
 0x4b2   :  { %11555 = vmatprep.subr.msk.mxu1 %vm17298_vm10, %v17050_v27  ;;  %11569 = vmatprep.subr.msk.mxu0 %vm17299_vm4, %v17050_v27 }
 0x4b3   :  { %11556 = vmatpush3.msk.msra.mxu1 %vm17298_vm10, %v17050_v27  ;;  %11559 = vmatprep.mubr.msk.f32.mxu1 %vm17300_vm2, %v1429_v63 }
 0x4b4   :  { %11570 = vmatpush3.msk.msra.mxu0 %vm17299_vm4, %v17050_v27  ;;  %11573 = vmatprep.mubr.msk.f32.mxu0 %vm17301_vm8, %v1429_v63  ;;  %v15254_v63 = vsub.s32 %v14630_v7, %v14921_v52  ;;  %v17308_v52 = vmov 0 }
 0x4b5   :  { %11557 = vmatprep.subr.msk.mxu1 %vm15172_vm3, %v17050_v27  ;;  %11571 = vmatprep.subr.msk.mxu0 %vm15186_vm5, %v17050_v27 }
 0x4b6   :  { %11558 = vmatpush3.msk.msra.mxu1 %vm15172_vm3, %v17050_v27  ;;  %11572 = vmatpush3.msk.msra.mxu0 %vm15186_vm5, %v17050_v27  ;;  %v15260_v10 = vadd.s32 1, %v15254_v63 }
 0x4b7   :  { %11560 = vmatmul.mubr.msk.f32.vlgmr.msra.gmra.mxu1 %vm17302_vm13, %v1430_v0  ;;  %11574 = vmatmul.mubr.msk.f32.vlgmr.msra.gmra.mxu0 %vm17303_vm15, %v1430_v0  ;;  %v15257_v0 = vadd.s32 4294967295, %v14925_v56 }
 0x4b8   :  { %11562 = vmatprep.mubr.msk.f32.mxu1 %vm17304_vm14, %v1431_v54  ;;  %11576 = vmatprep.mubr.msk.f32.mxu0 %vm17305_vm12, %v1431_v54  ;;  %v17311_v54 = vmov 0  ;;  %vm2157_vm14 = vcmp.le.s32.totalorder %v15254_v63, %v14925_v56  ;;  %vm2159_vm12 = vcmp.lt.s32.totalorder %v14925_v56, %v15260_v10 }
 0x4b9   :  { %17307 = vst [vmem:[#allocation169_spill] sm:$0xff] %v15257_v0  ;;  %vm2043_vm3 = vcmp.le.s32.totalorder %v15254_v63, %v15257_v0  ;;  %vm2047_vm5 = vcmp.lt.s32.totalorder %v15257_v0, %v15260_v10  ;;  %vm17019_vm7 = vcmp.ge.s32.totalorder %v15257_v0, 0  ;;  %vm17018_vm9 = vcmp.lt.s32.totalorder %v15257_v0, 8 }
 0x4ba   :  { %vm2049_vm11 = vmand %vm2043_vm3, %vm2047_vm5  ;;  %vm2042_vm10 = vcmp.le.s32.totalorder %v15264_v13, %v15257_v0  ;;  %vm2046_vm4 = vcmp.lt.s32.totalorder %v15257_v0, %v15271_v15  ;;  %vm17015_vm3 = vcmp.lt.s32.totalorder %v14925_v56, 8 }
 0x4bb   :  { %11563 = vmatmul.mubr.msk.f32.gmra.mxu1 %vm17292_vm0, %v1432_v44  ;;  %11577 = vmatmul.mubr.msk.f32.gmra.mxu0 %vm17306_vm6, %v1432_v44  ;;  %vm2052_vm1 = vmand %vm2049_vm11, %vm17019_vm7  ;;  %vm17014_vm6 = vcmp.ge.s32.totalorder %v14925_v56, 0  ;;  %v17314_v44 = vmov 0 }
 0x4bc   :  { %11611 = vmatprep.mubr.f32.mxu1 %v1433_v49  ;;  %vm15283_vm2 = vmand %vm2052_vm1, %vm17018_vm9  ;;  %v15325_v49 = vadd.s32 1, %v14925_v56  ;;  %vm2156_vm1 = vcmp.le.s32.totalorder %v15264_v13, %v14925_v56 }
 0x4bd   :  { %v17309_v52 = vsel %vm15283_vm2, 4294967295, %v17308_v52  ;;  %11617 = vmatprep.subr.msk.mxu0 %vm15283_vm2, %v17050_v27  ;;  %vm2048_vm8 = vmand %vm2042_vm10, %vm2046_vm4  ;;  %vm2158_vm10 = vcmp.lt.s32.totalorder %v14925_v56, %v15271_v15 }
 0x4be   :  { %17310 = vst [vmem:[#allocation170_spill] sm:$0xff] %v17309_v52  ;;  %11618 = vmatpush3.msk.msra.mxu0 %vm15283_vm2, %v17050_v27  ;;  %vm2051_vm13 = vmand %vm2048_vm8, %vm17019_vm7  ;;  %vm2257_vm4 = vcmp.le.s32.totalorder %v15254_v63, %v15325_v49  ;;  %vm2259_vm8 = vcmp.lt.s32.totalorder %v15325_v49, %v15260_v10 }
 0x4bf   :  { %vm15297_vm15 = vmand %vm2051_vm13, %vm17018_vm9  ;;  %17317 = vst [vmem:[#allocation173_spill] sm:$0xff] %v15325_v49 }
 0x4c0   :  { %v17312_v54 = vsel %vm15297_vm15, 4294967295, %v17311_v54  ;;  %11619 = vmatprep.subr.msk.mxu0 %vm15297_vm15, %v17050_v27  ;;  %vm2161_vm0 = vmand %vm2157_vm14, %vm2159_vm12  ;;  %vm17017_vm12 = vcmp.ge.s32.totalorder %v15325_v49, 0 }
 0x4c1   :  { %17313 = vst [vmem:[#allocation171_spill] sm:$0xff] %v17312_v54  ;;  %11620 = vmatpush3.msk.msra.mxu0 %vm15297_vm15, %v17050_v27  ;;  %vm2164_vm5 = vmand %vm2161_vm0, %vm17014_vm6  ;;  %vm17021_vm0 = vcmask 130048  }
 0x4c2   :  { %vm15317_vm11 = vmand %vm2164_vm5, %vm17015_vm3 }
 0x4c3   :  { %v17315_v44 = vsel %vm15317_vm11, 4294967295, %v17314_v44  ;;  %11627 = vmatprep.subr.msk.mxu0 %vm15317_vm11, %v17050_v27  ;;  %vm2160_vm13 = vmand %vm2156_vm1, %vm2158_vm10  ;;  %vm17016_vm10 = vcmp.lt.s32.totalorder %v15325_v49, 8 }
 0x4c4   :  { %17316 = vst [vmem:[#allocation172_spill] sm:$0xff] %v17315_v44  ;;  %vm2261_vm14 = vmand %vm2257_vm4, %vm2259_vm8  ;;  %vm2256_vm4 = vcmp.le.s32.totalorder %v15264_v13, %v15325_v49  ;;  %vm2258_vm8 = vcmp.lt.s32.totalorder %v15325_v49, %v15271_v15 }
 0x4c5   :  { %vm2163_vm5 = vmand %vm2160_vm13, %vm17014_vm6 }
 0x4c6   :  { %vm2264_vm1 = vmand %vm2261_vm14, %vm17017_vm12 }
 0x4c7   :  { %vm15362_vm13 = vmand %vm2163_vm5, %vm17015_vm3 }
 0x4c8   :  { %vm15369_vm14 = vmand %vm2264_vm1, %vm17016_vm10 }
 0x4c9   :  { %vm2260_vm6 = vmand %vm2256_vm4, %vm2258_vm8  ;;  %vm17327_vm4 = vcmask 261120  }
 0x4ca   :  { %vm2263_vm5 = vmand %vm2260_vm6, %vm17017_vm12  ;;  %vm17020_vm6 = vcmask 785408  }
 0x4cb   :  { %vm15394_vm1 = vmand %vm2263_vm5, %vm17016_vm10 }
 0x4cc   :  { %vm17328_vm8 = vmmov %vm17327_vm4 }
 0x4cd   :  { %vm17329_vm5 = vmmov %vm17327_vm4 }
 0x56c   :  { %v11533_v57 = vpop.f32.mrf.mxu1  ;;  %v11547_v16 = vpop.f32.mrf.mxu0 }
 0x56e   :  { %v1560_v18 = vpop.f32.mrf.mxu1  ;;  %v1671_v20 = vpop.f32.mrf.mxu0 }
 0x571   :  { %v11536_v21 = vpop.f32.mrf.mxu1  ;;  %v11550_v22 = vpop.f32.mrf.mxu0 }
 0x573   :  { %v1681_v25 = vpop.f32.mrf.mxu0  ;;  %v1570_v28 = vpop.f32.mrf.mxu1 }
 0x577   :  { %v11575_v33 = vpop.f32.mrf.mxu0  ;;  %v11561_v36 = vpop.f32.mrf.mxu1 }
 0x579   :  { %v1895_v37 = vpop.f32.mrf.mxu0  ;;  %v1783_v40 = vpop.f32.mrf.mxu1 }
 0x57b   :  { %v11578_v39 = vpop.f32.mrf.mxu0  ;;  %v11564_v46 = vpop.f32.mrf.mxu1 }
 0x57c   :  { %11579 = vmatprep.subr.mxu1 %v11578_v39 }
 0x57d   :  { %v1905_v42 = vpop.f32.mrf.mxu0  ;;  %11580 = vmatpush3.msra.mxu1 %v11578_v39  ;;  %v1793_v47 = vpop.f32.mrf.mxu1  ;;  %v2019_v39 = vld [vmem:[#allocation6] sm:$0xff] }
 0x57e   :  { %11581 = vmatprep.subr.mxu1 %v1905_v42 }
 0x57f   :  { %11582 = vmatpush3.msra.mxu1 %v1905_v42 }
 0x580   :  { %11583 = vmatprep.subr.mxu1 %v11575_v33 }
 0x581   :  { %11584 = vmatpush3.msra.mxu1 %v11575_v33  ;;  %v17318_v33 = vmov 0 }
 0x582   :  { %11585 = vmatprep.subr.mxu1 %v1895_v37  ;;  %v17319_v33 = vsel %vm15362_vm13, 4294967295, %v17318_v33 }
 0x583   :  { %11586 = vmatpush3.msra.mxu1 %v1895_v37  ;;  %17320 = vst [vmem:[#allocation174_spill] sm:$0xff] %v17319_v33  ;;  %v17324_v37 = vmov 0 }
 0x584   :  { %11587 = vmatprep.subr.mxu1 %v11564_v46  ;;  %v17325_v37 = vsel %vm15394_vm1, 4294967295, %v17324_v37 }
 0x585   :  { %11588 = vmatpush3.msra.mxu1 %v11564_v46  ;;  %17326 = vst [vmem:[#allocation176_spill] sm:$0xff] %v17325_v37 }
 0x586   :  { %11589 = vmatprep.subr.mxu1 %v1793_v47 }
 0x587   :  { %11590 = vmatpush3.msra.mxu1 %v1793_v47 }
 0x588   :  { %11591 = vmatprep.subr.mxu1 %v11561_v36 }
 0x589   :  { %11592 = vmatpush3.msra.mxu1 %v11561_v36 }
 0x58a   :  { %11593 = vmatprep.subr.mxu1 %v1783_v40 }
 0x58b   :  { %11594 = vmatpush3.msra.mxu1 %v1783_v40 }
 0x58c   :  { %11595 = vmatprep.subr.mxu1 %v11550_v22 }
 0x58d   :  { %11596 = vmatpush3.msra.mxu1 %v11550_v22 }
 0x58e   :  { %11597 = vmatprep.subr.mxu1 %v1681_v25 }
 0x58f   :  { %11598 = vmatpush3.msra.mxu1 %v1681_v25 }
 0x590   :  { %11599 = vmatprep.subr.mxu1 %v11547_v16 }
 0x591   :  { %11600 = vmatpush3.msra.mxu1 %v11547_v16 }
 0x592   :  { %11601 = vmatprep.subr.mxu1 %v1671_v20 }
 0x593   :  { %11602 = vmatpush3.msra.mxu1 %v1671_v20 }
 0x594   :  { %11603 = vmatprep.subr.mxu1 %v11536_v21 }
 0x595   :  { %11604 = vmatpush3.msra.mxu1 %v11536_v21 }
 0x596   :  { %11605 = vmatprep.subr.mxu1 %v1570_v28 }
 0x597   :  { %11606 = vmatpush3.msra.mxu1 %v1570_v28 }
 0x598   :  { %11607 = vmatprep.subr.mxu1 %v11533_v57 }
 0x599   :  { %11608 = vmatpush3.msra.mxu1 %v11533_v57 }
 0x59a   :  { %11609 = vmatprep.subr.mxu1 %v1560_v18 }
 0x59b   :  { %11610 = vmatpush3.msra.mxu1 %v1560_v18 }
 0x59c   :  { %11612 = vmatmul.mubr.f32.vlgmr.msra.gmra.mxu1 %v1434_v58 }
 0x59d   :  { %11614 = vmatprep.mubr.f32.mxu1 %v1435_v60 }
 0x5a0   :  { %11615 = vmatmul.mubr.f32.gmra.mxu1 %v1436_v61 }
 0x65c   :  { %v11613_v57 = vpop.f32.mrf.mxu1 }
 0x65d   :  { %v15336_v16 = vadd.f32 %v11613_v57, %v14892_v62 }
 0x65e   :  { %v2000_v18 = vpop.f32.mrf.mxu1 }
 0x65f   :  { %v15340_v20 = vadd.f32 %v2000_v18, %v14890_v59  ;;  %v2036_v62 = vmax.f32 %v15336_v16, 0.0 }
 0x660   :  { %v11616_v21 = vpop.f32.mrf.mxu1 }
 0x661   :  { %v2035_v22 = vmax.f32 %v15340_v20, 0.0  ;;  %v15350_v25 = vadd.f32 %v11616_v21, %v14896_v11  ;;  %v17321_v11 = vmov 0 }
 0x662   :  { %v2010_v28 = vpop.f32.mrf.mxu1  ;;  %v17322_v11 = vsel %vm15369_vm14, 4294967295, %v17321_v11 }
 0x663   :  { %v15357_v59 = vadd.f32 %v2010_v28, %v14894_v9  ;;  %11621 = vmatprep.mubr.msk.f32.mxu0 %vm17021_vm0, %v2035_v22  ;;  %17323 = vst [vmem:[#allocation175_spill] sm:$0xff] %v17322_v11  ;;  %v2038_v9 = vmax.f32 %v15350_v25, 0.0  ;;  %v2020_v28 = vld [vmem:[#allocation6 + $0x8] sm:$0xff] }
 0x664   :  { %11622 = vmatmul.mubr.msk.f32.vlgmr.msra.gmra.mxu0 %vm17021_vm0, %v2036_v62 }
 0x665   :  { %v2037_v36 = vmax.f32 %v15357_v59, 0.0  ;;  %11628 = vmatpush3.msk.msra.mxu0 %vm15317_vm11, %v17050_v27 }
 0x666   :  { %11629 = vmatprep.subr.msk.mxu0 %vm15362_vm13, %v17050_v27 }
 0x667   :  { %11624 = vmatprep.mubr.msk.f32.mxu0 %vm17021_vm0, %v2037_v36  ;;  %11630 = vmatpush3.msk.msra.mxu0 %vm15362_vm13, %v17050_v27 }
 0x668   :  { %11625 = vmatmul.mubr.msk.f32.gmra.mxu0 %vm17021_vm0, %v2038_v9  ;;  %11637 = vmatprep.subr.msk.mxu0 %vm15369_vm14, %v17050_v27 }
 0x669   :  { %11631 = vmatprep.mubr.msk.f32.mxu0 %vm17021_vm0, %v2035_v22 }
 0x66c   :  { %11632 = vmatmul.mubr.msk.f32.vlgmr.msra.gmra.mxu0 %vm17021_vm0, %v2036_v62 }
 0x66d   :  { %11634 = vmatprep.mubr.msk.f32.mxu0 %vm17021_vm0, %v2037_v36  ;;  %11638 = vmatpush3.msk.msra.mxu0 %vm15369_vm14, %v17050_v27 }
 0x66e   :  { %11639 = vmatprep.subr.msk.mxu0 %vm15394_vm1, %v17050_v27 }
 0x66f   :  { %11640 = vmatpush3.msk.msra.mxu0 %vm15394_vm1, %v17050_v27 }
 0x670   :  { %11635 = vmatmul.mubr.msk.f32.gmra.mxu0 %vm17021_vm0, %v2038_v9 }
 0x671   :  { %11641 = vmatprep.mubr.msk.f32.mxu0 %vm17021_vm0, %v2035_v22 }
 0x674   :  { %11642 = vmatmul.mubr.msk.f32.vlgmr.msra.gmra.mxu0 %vm17021_vm0, %v2036_v62 }
 0x675   :  { %11644 = vmatprep.mubr.msk.f32.mxu0 %vm17021_vm0, %v2037_v36  ;;  %v2021_v36 = vld [vmem:[#allocation6 + $0x10] sm:$0xff] }
 0x678   :  { %11645 = vmatmul.mubr.msk.f32.gmra.mxu0 %vm17021_vm0, %v2038_v9  ;;  %v2022_v9 = vld [vmem:[#allocation6 + $0x18] sm:$0xff] }
 0x679   :  { %11671 = vmatprep.mubr.msk.f32.mxu0 %vm17020_vm6, %v2019_v39  ;;  %v2027_v39 = vld [vmem:[#allocation9] sm:$0xff] }
 0x67a   :  { %11685 = vmatprep.mubr.msk.f32.mxu1 %vm17327_vm4, %v2027_v39 }
 0x724   :  { %v11623_v40 = vpop.f32.mrf.mxu0 }
 0x726   :  { %v2137_v42 = vpop.f32.mrf.mxu0 }
 0x728   :  { %v11626_v46 = vpop.f32.mrf.mxu0 }
 0x72a   :  { %v2147_v47 = vpop.f32.mrf.mxu0 }
 0x72c   :  { %v11633_v58 = vpop.f32.mrf.mxu0 }
 0x72e   :  { %v2236_v60 = vpop.f32.mrf.mxu0 }
 0x730   :  { %v11636_v61 = vpop.f32.mrf.mxu0 }
 0x732   :  { %v2246_v57 = vpop.f32.mrf.mxu0 }
 0x734   :  { %v11643_v18 = vpop.f32.mrf.mxu0 }
 0x736   :  { %v2336_v21 = vpop.f32.mrf.mxu0 }
 0x738   :  { %v11646_v22 = vpop.f32.mrf.mxu0 }
 0x739   :  { %11647 = vmatprep.subr.mxu0 %v11646_v22 }
 0x73a   :  { %v2346_v62 = vpop.f32.mrf.mxu0  ;;  %11648 = vmatpush3.msra.mxu0 %v11646_v22 }
 0x73b   :  { %11649 = vmatprep.subr.mxu0 %v2346_v62 }
 0x73c   :  { %11650 = vmatpush3.msra.mxu0 %v2346_v62 }
 0x73d   :  { %11651 = vmatprep.subr.mxu0 %v11643_v18 }
 0x73e   :  { %11652 = vmatpush3.msra.mxu0 %v11643_v18 }
 0x73f   :  { %11653 = vmatprep.subr.mxu0 %v2336_v21 }
 0x740   :  { %11654 = vmatpush3.msra.mxu0 %v2336_v21 }
 0x741   :  { %11655 = vmatprep.subr.mxu0 %v11636_v61 }
 0x742   :  { %11656 = vmatpush3.msra.mxu0 %v11636_v61 }
 0x743   :  { %11657 = vmatprep.subr.mxu0 %v2246_v57 }
 0x744   :  { %11658 = vmatpush3.msra.mxu0 %v2246_v57 }
 0x745   :  { %11659 = vmatprep.subr.mxu0 %v11633_v58 }
 0x746   :  { %11660 = vmatpush3.msra.mxu0 %v11633_v58 }
 0x747   :  { %11661 = vmatprep.subr.mxu0 %v2236_v60 }
 0x748   :  { %11662 = vmatpush3.msra.mxu0 %v2236_v60 }
 0x749   :  { %11663 = vmatprep.subr.mxu0 %v11626_v46 }
 0x74a   :  { %11664 = vmatpush3.msra.mxu0 %v11626_v46 }
 0x74b   :  { %11665 = vmatprep.subr.mxu0 %v2147_v47 }
 0x74c   :  { %11666 = vmatpush3.msra.mxu0 %v2147_v47 }
 0x74d   :  { %11667 = vmatprep.subr.mxu0 %v11623_v40 }
 0x74e   :  { %11668 = vmatpush3.msra.mxu0 %v11623_v40 }
 0x74f   :  { %11669 = vmatprep.subr.mxu0 %v2137_v42 }
 0x750   :  { %11670 = vmatpush3.msra.mxu0 %v2137_v42 }
 0x751   :  { %11672 = vmatmul.mubr.msk.f32.vlgmr.msra.gmra.mxu0 %vm17020_vm6, %v2020_v28  ;;  %v2028_v28 = vld [vmem:[#allocation9 + $0x8] sm:$0xff] }
 0x752   :  { %11674 = vmatprep.mubr.msk.f32.mxu0 %vm17020_vm6, %v2021_v36  ;;  %v17330_v36 = vmov 0 }
 0x755   :  { %11675 = vmatmul.mubr.msk.f32.gmra.mxu0 %vm17020_vm6, %v2022_v9 }
 0x811   :  { %v11673_v58 = vpop.f32.mrf.mxu0 }
 0x812   :  { %v2460_v61 = vadd.f32 %v11673_v58, %v14902_v23  ;;  %v2618_v23 = vadd.s32 4294967293, %v14925_v56 }
 0x813   :  { %v2454_v46 = vpop.f32.mrf.mxu0 }
 0x814   :  { %v2455_v18 = vadd.f32 %v2454_v46, %v14904_v26  ;;  %v2474_v22 = vmax.f32 %v2460_v61, 0.0  ;;  %v2815_v26 = vadd.s32 3, %v14925_v56  ;;  %vm2620_vm3 = vcmp.le.s32.totalorder %v15254_v63, %v2618_v23  ;;  %v2495_v46 = vpop.permute.xlu1 %2494 }
 0x815   :  { %v11676_v60 = vpop.f32.mrf.mxu0  ;;  %vm2622_vm10 = vcmp.lt.s32.totalorder %v2618_v23, %v15260_v10  ;;  %vm2625_vm9 = vcmp.ge.s32.totalorder %v2618_v23, 0  ;;  %vm2621_vm2 = vcmp.lt.s32.totalorder %v2618_v23, %v15271_v15 }
 0x816   :  { %v2470_v47 = vadd.f32 %v11676_v60, %v14898_v14  ;;  %v2473_v62 = vmax.f32 %v2455_v18, 0.0  ;;  %v2029_v14 = vld [vmem:[#allocation9 + $0x10] sm:$0xff]  ;;  %vm2624_vm12 = vmand %vm2620_vm3, %vm2622_vm10  ;;  %vm2817_vm7 = vcmp.le.s32.totalorder %v15254_v63, %v2815_v26  ;;  %vm2819_vm6 = vcmp.lt.s32.totalorder %v2815_v26, %v15260_v10 }
 0x817   :  { %v2464_v40 = vpop.f32.mrf.mxu0  ;;  %vm2822_vm0 = vcmp.ge.s32.totalorder %v2815_v26, 0  ;;  %vm2825_vm15 = vcmp.lt.s32.totalorder %v2815_v26, 8  ;;  %vm2821_vm3 = vmand %vm2817_vm7, %vm2819_vm6  ;;  %vm2619_vm10 = vcmp.le.s32.totalorder %v15264_v13, %v2618_v23  ;;  %v17333_v63 = vmov 0 }
 0x818   :  { %v2476_v57 = vmax.f32 %v2470_v47, 0.0  ;;  %v2465_v42 = vadd.f32 %v2464_v40, %v14900_v19  ;;  %v2030_v19 = vld [vmem:[#allocation9 + $0x18] sm:$0xff]  ;;  %vm2824_vm1 = vmand %vm2821_vm3, %vm2822_vm0  ;;  %vm2816_vm6 = vcmp.le.s32.totalorder %v15264_v13, %v2815_v26  ;;  %v17336_v10 = vmov 0 }
 0x819   :  { %vm2623_vm7 = vmand %vm2619_vm10, %vm2621_vm2  ;;  %v17339_v13 = vmov 0 }
 0x81a   :  { %v2475_v21 = vmax.f32 %v2465_v42, 0.0  ;;  %11677 = vmatprep.subr.mxu1 %v2476_v57  ;;  %vm2626_vm3 = vmand %vm2623_vm7, %vm2625_vm9 }
 0x81b   :  { %11678 = vmatpush3.msra.mxu1 %v2476_v57  ;;  %v2490_v57 = vpop.permute.xlu0 %2489 }
 0x81c   :  { %11679 = vmatprep.subr.mxu1 %v2475_v21 }
 0x81d   :  { %11680 = vmatpush3.msra.mxu1 %v2475_v21 }
 0x81e   :  { %11681 = vmatprep.subr.mxu1 %v2474_v22 }
 0x81f   :  { %11682 = vmatpush3.msra.mxu1 %v2474_v22 }
 0x820   :  { %11683 = vmatprep.subr.mxu1 %v2473_v62 }
 0x821   :  { %11684 = vmatpush3.msra.mxu1 %v2473_v62 }
 0x822   :  { %11686 = vmatmul.mubr.msk.f32.vlgmr.msra.gmra.mxu1 %vm17328_vm8, %v2028_v28  ;;  %vm2627_vm8 = vmand %vm2624_vm12, %vm2625_vm9  ;;  %vm17342_vm9 = vcmask 130048  }
 0x823   :  { %11688 = vmatprep.mubr.msk.f32.mxu1 %vm17329_vm5, %v2029_v14  ;;  %vm2628_vm5 = vcmp.lt.s32.totalorder %v2618_v23, 8  ;;  %vm15448_vm12 = vmand %vm2824_vm1, %vm2825_vm15 }
 0x824   :  { %v17334_v63 = vsel %vm15448_vm12, 4294967295, %v17333_v63  ;;  %11711 = vmatprep.subr.msk.mxu0 %vm15448_vm12, %v17050_v27  ;;  %vm15462_vm1 = vmand %vm2626_vm3, %vm2628_vm5 }
 0x825   :  { %17335 = vst [vmem:[#allocation178_spill] sm:$0xff] %v17334_v63  ;;  %11712 = vmatpush3.msk.msra.mxu0 %vm15448_vm12, %v17050_v27  ;;  %v17337_v10 = vsel %vm15462_vm1, 4294967295, %v17336_v10 }
 0x826   :  { %11689 = vmatmul.mubr.msk.f32.gmra.mxu1 %vm17327_vm4, %v2030_v19  ;;  %vm15434_vm4 = vmand %vm2627_vm8, %vm2628_vm5  ;;  %vm2818_vm8 = vcmp.lt.s32.totalorder %v2815_v26, %v15271_v15  ;;  %17338 = vst [vmem:[#allocation179_spill] sm:$0xff] %v17337_v10 }
 0x827   :  { %v17331_v36 = vsel %vm15434_vm4, 4294967295, %v17330_v36  ;;  %11691 = vmatprep.subr.msk.mxu1 %vm15434_vm4, %v17050_v27  ;;  %vm2820_vm2 = vmand %vm2816_vm6, %vm2818_vm8 }
 0x828   :  { %17332 = vst [vmem:[#allocation177_spill] sm:$0xff] %v17331_v36  ;;  %11692 = vmatpush3.msk.msra.mxu1 %vm15434_vm4, %v17050_v27  ;;  %vm2823_vm10 = vmand %vm2820_vm2, %vm2822_vm0 }
 0x829   :  { %11693 = vmatprep.subr.msk.mxu1 %vm15462_vm1, %v17050_v27  ;;  %vm15474_vm14 = vmand %vm2823_vm10, %vm2825_vm15 }
 0x82a   :  { %11694 = vmatpush3.msk.msra.mxu1 %vm15462_vm1, %v17050_v27  ;;  %v17340_v13 = vsel %vm15474_vm14, 4294967295, %v17339_v13  ;;  %11713 = vmatprep.subr.msk.mxu0 %vm15474_vm14, %v17050_v27  ;;  %vm17343_vm15 = vmmov %vm17342_vm9 }
 0x82b   :  { %17341 = vst [vmem:[#allocation180_spill] sm:$0xff] %v17340_v13  ;;  %11701 = vmatprep.subr.msk.mxu1 %vm15317_vm11, %v17050_v27  ;;  %11714 = vmatpush3.msk.msra.mxu0 %vm15474_vm14, %v17050_v27  ;;  %vm17344_vm0 = vmmov %vm17342_vm9 }
 0x82c   :  { %vm17345_vm5 = vmmov %vm17344_vm0 }
 0x82d   :  { %vm17346_vm7 = vmmov %vm17344_vm0 }
 0x82e   :  { %vm17347_vm6 = vmmov %vm17344_vm0 }
 0x82f   :  { %vm17348_vm8 = vmmov %vm17344_vm0 }
 0x830   :  { %vm17349_vm3 = vmmov %vm17344_vm0 }
 0x831   :  { %vm17350_vm2 = vmmov %vm17344_vm0 }
 0x832   :  { %vm17351_vm10 = vmmov %vm17344_vm0 }
 0x8e2   :  { %v11687_v15 = vpop.f32.mrf.mxu1 }
 0x8e3   :  { %v2581_v9 = vadd.f32 %v11687_v15, %v14908_v34 }
 0x8e4   :  { %v2575_v39 = vpop.f32.mrf.mxu1 }
 0x8e5   :  { %v2576_v58 = vadd.f32 %v2575_v39, %v14906_v30  ;;  %v15490_v60 = vadd.f32 %v2581_v9, %v15336_v16 }
 0x8e6   :  { %v11690_v47 = vpop.f32.mrf.mxu1 }
 0x8e7   :  { %v15493_v40 = vadd.f32 %v2576_v58, %v15340_v20  ;;  %v2591_v61 = vadd.f32 %v11690_v47, %v2495_v46  ;;  %v2615_v22 = vmax.f32 %v15490_v60, 0.0  ;;  %v2599_v47 = vld [vmem:[#allocation12 + $0x8] sm:$0xff] }
 0x8e8   :  { %v2585_v42 = vpop.f32.mrf.mxu1 }
 0x8e9   :  { %v2614_v18 = vmax.f32 %v15493_v40, 0.0  ;;  %v2586_v21 = vadd.f32 %v2585_v42, %v2490_v57  ;;  %v15498_v34 = vadd.f32 %v2591_v61, %v15350_v25  ;;  %v2598_v25 = vld [vmem:[#allocation12] sm:$0xff]  ;;  %v2600_v61 = vld [vmem:[#allocation12 + $0x10] sm:$0xff]  ;;  %v2601_v57 = vld [vmem:[#allocation12 + $0x18] sm:$0xff] }
 0x8ea   :  { %v2606_v42 = vld [vmem:[#allocation15] sm:$0xff] }
 0x8eb   :  { %v15501_v30 = vadd.f32 %v2586_v21, %v15357_v59  ;;  %11695 = vmatprep.mubr.msk.f32.mxu1 %vm17342_vm9, %v2614_v18  ;;  %11715 = vmatprep.mubr.msk.f32.mxu0 %vm17343_vm15, %v2614_v18  ;;  %v2617_v20 = vmax.f32 %v15498_v34, 0.0  ;;  %vm17352_vm9 = vmmov %vm17344_vm0  ;;  %v2933_v21 = vpop.permute.xlu0 %2932 }
 0x8ec   :  { %11696 = vmatmul.mubr.msk.f32.vlgmr.msra.gmra.mxu1 %vm17344_vm0, %v2615_v22  ;;  %11716 = vmatmul.mubr.msk.f32.vlgmr.msra.gmra.mxu0 %vm17345_vm5, %v2615_v22  ;;  %vm17353_vm15 = vmmov %vm17344_vm0  ;;  %vm17354_vm0 = vcmask 785408  }
 0x8ed   :  { %v2616_v16 = vmax.f32 %v15501_v30, 0.0  ;;  %11702 = vmatpush3.msk.msra.mxu1 %vm15317_vm11, %v17050_v27  ;;  %vm17355_vm5 = vmmov %vm17354_vm0 }
 0x8ee   :  { %11703 = vmatprep.subr.msk.mxu1 %vm15362_vm13, %v17050_v27 }
 0x8ef   :  { %11698 = vmatprep.mubr.msk.f32.mxu1 %vm17346_vm7, %v2616_v16  ;;  %11718 = vmatprep.mubr.msk.f32.mxu0 %vm17347_vm6, %v2616_v16  ;;  %vm17356_vm7 = vmmov %vm17354_vm0 }
 0x8f0   :  { %11699 = vmatmul.mubr.msk.f32.gmra.mxu1 %vm17348_vm8, %v2617_v20  ;;  %11719 = vmatmul.mubr.msk.f32.gmra.mxu0 %vm17349_vm3, %v2617_v20  ;;  %vm17357_vm6 = vmmov %vm17354_vm0  ;;  %vm17358_vm8 = vcmask 261120  }
 0x8f1   :  { %11704 = vmatpush3.msk.msra.mxu1 %vm15362_vm13, %v17050_v27  ;;  %11705 = vmatprep.mubr.msk.f32.mxu1 %vm17350_vm2, %v2614_v18  ;;  %v2608_v18 = vld [vmem:[#allocation15 + $0x10] sm:$0xff]  ;;  %vm17359_vm3 = vmmov %vm17358_vm8 }
 0x8f2   :  { %11759 = vmatprep.mubr.msk.f32.mxu0 %vm17358_vm8, %v2606_v42  ;;  %vm17360_vm2 = vmmov %vm17359_vm3 }
 0x8f4   :  { %11706 = vmatmul.mubr.msk.f32.vlgmr.msra.gmra.mxu1 %vm17351_vm10, %v2615_v22  ;;  %vm17361_vm10 = vmmov %vm17360_vm2 }
 0x8f5   :  { %11708 = vmatprep.mubr.msk.f32.mxu1 %vm17352_vm9, %v2616_v16  ;;  %v2928_v16 = vpop.permute.xlu1 %2927  ;;  %vm3165_vm9 = vcmp.ge.s32.totalorder %v14614_v3, 4 }
 0x8f8   :  { %11709 = vmatmul.mubr.msk.f32.gmra.mxu1 %vm17353_vm15, %v2617_v20 }
 0x8f9   :  { %11745 = vmatprep.mubr.msk.f32.mxu1 %vm17354_vm0, %v2598_v25 }
 0x9ac   :  { %v11697_v59 = vpop.f32.mrf.mxu1  ;;  %v11717_v62 = vpop.f32.mrf.mxu0 }
 0x9ae   :  { %v2711_v28 = vpop.f32.mrf.mxu1  ;;  %v2896_v14 = vpop.f32.mrf.mxu0 }
 0x9b0   :  { %v11700_v19 = vpop.f32.mrf.mxu1  ;;  %v11720_v23 = vpop.f32.mrf.mxu0 }
 0x9b1   :  { %11721 = vmatprep.subr.mxu1 %v11720_v23 }
 0x9b2   :  { %v2721_v26 = vpop.f32.mrf.mxu1  ;;  %v2906_v15 = vpop.f32.mrf.mxu0  ;;  %11722 = vmatpush3.msra.mxu1 %v11720_v23 }
 0x9b3   :  { %11723 = vmatprep.subr.mxu1 %v2906_v15 }
 0x9b4   :  { %v11707_v9 = vpop.f32.mrf.mxu1  ;;  %11724 = vmatpush3.msra.mxu1 %v2906_v15 }
 0x9b5   :  { %11725 = vmatprep.subr.mxu1 %v11717_v62 }
 0x9b6   :  { %v2796_v39 = vpop.f32.mrf.mxu1  ;;  %11726 = vmatpush3.msra.mxu1 %v11717_v62  ;;  %v2923_v62 = vpop.permute.xlu0 %2922 }
 0x9b7   :  { %11727 = vmatprep.subr.mxu1 %v2896_v14 }
 0x9b8   :  { %v11710_v58 = vpop.f32.mrf.mxu1  ;;  %11728 = vmatpush3.msra.mxu1 %v2896_v14 }
 0x9b9   :  { %11729 = vmatprep.subr.mxu1 %v11710_v58 }
 0x9ba   :  { %v2806_v46 = vpop.f32.mrf.mxu1  ;;  %11730 = vmatpush3.msra.mxu1 %v11710_v58 }
 0x9bb   :  { %11731 = vmatprep.subr.mxu1 %v2806_v46 }
 0x9bc   :  { %11732 = vmatpush3.msra.mxu1 %v2806_v46  ;;  %v2607_v46 = vld [vmem:[#allocation15 + $0x8] sm:$0xff] }
 0x9bd   :  { %11733 = vmatprep.subr.mxu1 %v11707_v9 }
 0x9be   :  { %11734 = vmatpush3.msra.mxu1 %v11707_v9 }
 0x9bf   :  { %11735 = vmatprep.subr.mxu1 %v2796_v39 }
 0x9c0   :  { %11736 = vmatpush3.msra.mxu1 %v2796_v39 }
 0x9c1   :  { %11737 = vmatprep.subr.mxu1 %v11700_v19 }
 0x9c2   :  { %11738 = vmatpush3.msra.mxu1 %v11700_v19 }
 0x9c3   :  { %11739 = vmatprep.subr.mxu1 %v2721_v26 }
 0x9c4   :  { %11740 = vmatpush3.msra.mxu1 %v2721_v26  ;;  %v2918_v26 = vpop.permute.xlu1 %2917 }
 0x9c5   :  { %11741 = vmatprep.subr.mxu1 %v11697_v59 }
 0x9c6   :  { %11742 = vmatpush3.msra.mxu1 %v11697_v59 }
 0x9c7   :  { %11743 = vmatprep.subr.mxu1 %v2711_v28 }
 0x9c8   :  { %11744 = vmatpush3.msra.mxu1 %v2711_v28 }
 0x9c9   :  { %11746 = vmatmul.mubr.msk.f32.vlgmr.msra.gmra.mxu1 %vm17355_vm5, %v2599_v47  ;;  %v2609_v47 = vld [vmem:[#allocation15 + $0x18] sm:$0xff] }
 0x9ca   :  { %11748 = vmatprep.mubr.msk.f32.mxu1 %vm17356_vm7, %v2600_v61  ;;  %v15536_v61 = vsel %vm3165_vm9, 1, %v14102_v4 }
 0x9cd   :  { %11749 = vmatmul.mubr.msk.f32.gmra.mxu1 %vm17357_vm6, %v2601_v57  ;;  %v3167_v57 = vmul.u32 4, %v15536_v61 }
 0x9ce   :  { %11762 = vmatprep.mubr.msk.f32.mxu1 %vm17359_vm3, %v2608_v18  ;;  %v3169_v18 = vmul.u32 8, %v15536_v61  ;;  %v7064_v61 = vld [vmem:[#allocation45] sm:$0xff] }
 0x9cf   :  { %v15542_v42 = vsub.s32 %v14614_v3, %v3167_v57 }
 0xa89   :  { %v11747_v22 = vpop.f32.mrf.mxu1 }
 0xa8a   :  { %v3019_v14 = vadd.f32 %v11747_v22, %v2923_v62  ;;  %v3172_v22 = vmul.u32 2, %v15542_v42  ;;  %v17366_v62 = vmov 0 }
 0xa8b   :  { %v3013_v20 = vpop.f32.mrf.mxu1 }
 0xa8c   :  { %v3014_v15 = vadd.f32 %v3013_v20, %v2918_v26  ;;  %v3033_v39 = vmax.f32 %v3019_v14, 0.0  ;;  %v3039_v26 = vpop.permute.xlu0 %3038 }
 0xa8d   :  { %v11750_v25 = vpop.f32.mrf.mxu1 }
 0xa8e   :  { %v3029_v59 = vadd.f32 %v11750_v25, %v2933_v21  ;;  %v3032_v58 = vmax.f32 %v3014_v15, 0.0  ;;  %v3171_v21 = vsub.s32 %v14630_v7, %v3169_v18  ;;  %v3386_v25 = vadd.s32 1, %v3172_v22  ;;  %v3044_v15 = vpop.permute.xlu1 %3043 }
 0xa8f   :  { %v3023_v28 = vpop.f32.mrf.mxu1 }
 0xa90   :  { %v3035_v19 = vmax.f32 %v3029_v59, 0.0  ;;  %v3024_v23 = vadd.f32 %v3023_v28, %v2928_v16  ;;  %v3173_v16 = vadd.s32 4294967295, %v3172_v22  ;;  %v3177_v20 = vadd.s32 1, %v3171_v21 }
 0xa91   :  { %v3170_v59 = vsub.s32 %v14612_v2, %v3169_v18  ;;  %vm3388_vm6 = vcmp.le.s32.totalorder %v3171_v21, %v3386_v25  ;;  %vm17045_vm14 = vcmp.lt.s32.totalorder %v3386_v25, 8  ;;  %v3486_v28 = vadd.s32 2, %v3172_v22 }
 0xa92   :  { %v3034_v9 = vmax.f32 %v3024_v23, 0.0  ;;  %11751 = vmatprep.subr.mxu0 %v3035_v19  ;;  %12710 = vmatprep.subr.mxu1 %v3035_v19  ;;  %vm3175_vm15 = vcmp.le.s32.totalorder %v3171_v21, %v3173_v16  ;;  %vm3179_vm0 = vcmp.lt.s32.totalorder %v3173_v16, %v3177_v20  ;;  %vm17040_vm7 = vcmp.ge.s32.totalorder %v3173_v16, 0 }
 0xa93   :  { %11752 = vmatpush3.msra.mxu0 %v3035_v19  ;;  %12714 = vmatpush3.msra.mxu1 %v3035_v19  ;;  %vm3181_vm5 = vmand %vm3175_vm15, %vm3179_vm0  ;;  %vm3390_vm8 = vcmp.lt.s32.totalorder %v3386_v25, %v3177_v20  ;;  %v3176_v4 = vadd.s32 1, %v3170_v59  ;;  %vm3174_vm13 = vcmp.le.s32.totalorder %v3170_v59, %v3173_v16  ;;  %vm17363_vm4 = vcmp.lt.s32.totalorder %v3173_v16, 8 }
 0xa94   :  { %11753 = vmatprep.subr.mxu0 %v3034_v9  ;;  %12711 = vmatprep.subr.mxu1 %v3034_v9  ;;  %vm3184_vm3 = vmand %vm3181_vm5, %vm17040_vm7  ;;  %vm3387_vm5 = vcmp.le.s32.totalorder %v3170_v59, %v3386_v25 }
 0xa95   :  { %11754 = vmatpush3.msra.mxu0 %v3034_v9  ;;  %12715 = vmatpush3.msra.mxu1 %v3034_v9  ;;  %vm3392_vm12 = vmand %vm3388_vm6, %vm3390_vm8  ;;  %vm3178_vm11 = vcmp.lt.s32.totalorder %v3173_v16, %v3176_v4  ;;  %vm3389_vm7 = vcmp.lt.s32.totalorder %v3386_v25, %v3176_v4 }
 0xa96   :  { %11755 = vmatprep.subr.mxu0 %v3033_v39  ;;  %12712 = vmatprep.subr.mxu1 %v3033_v39  ;;  %vm3180_vm0 = vmand %vm3174_vm13, %vm3178_vm11  ;;  %vm3287_vm11 = vcmp.le.s32.totalorder %v3170_v59, %v3172_v22  ;;  %vm3289_vm13 = vcmp.lt.s32.totalorder %v3172_v22, %v3176_v4 }
 0xa97   :  { %11756 = vmatpush3.msra.mxu0 %v3033_v39  ;;  %12716 = vmatpush3.msra.mxu1 %v3033_v39  ;;  %vm3391_vm8 = vmand %vm3387_vm5, %vm3389_vm7 }
 0xa98   :  { %11757 = vmatprep.subr.mxu0 %v3032_v58  ;;  %12713 = vmatprep.subr.mxu1 %v3032_v58  ;;  %vm3291_vm7 = vmand %vm3287_vm11, %vm3289_vm13 }
 0xa99   :  { %11758 = vmatpush3.msra.mxu0 %v3032_v58  ;;  %12717 = vmatpush3.msra.mxu1 %v3032_v58  ;;  %v3049_v58 = vpop.permute.xlu0 %3048 }
 0xa9a   :  { %11760 = vmatmul.mubr.msk.f32.vlgmr.msra.gmra.mxu0 %vm17360_vm2, %v2607_v46  ;;  %11763 = vmatmul.mubr.msk.f32.vlgmr.msra.gmra.mxu1 %vm17361_vm10, %v2609_v47  ;;  %vm17041_vm2 = vcmp.lt.s32.totalorder %v3173_v16, 8  ;;  %vm17044_vm10 = vcmp.ge.s32.totalorder %v3386_v25, 0 }
 0xa9b   :  { %vm3187_vm9 = vmand %vm3184_vm3, %vm17041_vm2  ;;  %vm17362_vm3 = vcmp.ge.s32.totalorder %v3173_v16, 0  ;;  %v3054_v16 = vpop.permute.xlu1 %3053 }
 0xa9c   :  { %11765 = vmatprep.subr.msk.mxu0 %vm3187_vm9, %v17050_v27  ;;  %vm3395_vm1 = vmand %vm3392_vm12, %vm17044_vm10  ;;  %vm3288_vm10 = vcmp.le.s32.totalorder %v3171_v21, %v3172_v22  ;;  %vm3290_vm12 = vcmp.lt.s32.totalorder %v3172_v22, %v3177_v20 }
 0xa9d   :  { %11766 = vmatpush3.msk.msra.mxu0 %vm3187_vm9, %v17050_v27  ;;  %vm3398_vm15 = vmand %vm3395_vm1, %vm17045_vm14  ;;  %vm17364_vm9 = vcmp.ge.s32.totalorder %v3386_v25, 0  ;;  %vm3293_vm14 = vcmp.ge.s32.totalorder %v3172_v22, 0 }
 0xa9e   :  { %11785 = vmatprep.subr.msk.mxu1 %vm3398_vm15, %v17050_v27  ;;  %vm3183_vm2 = vmand %vm3180_vm0, %vm17362_vm3  ;;  %vm3296_vm3 = vcmp.lt.s32.totalorder %v3172_v22, 8 }
 0xa9f   :  { %11786 = vmatpush3.msk.msra.mxu1 %vm3398_vm15, %v17050_v27  ;;  %vm3186_vm6 = vmand %vm3183_vm2, %vm17363_vm4  ;;  %vm17365_vm15 = vcmp.lt.s32.totalorder %v3386_v25, 8 }
 0xaa0   :  { %11767 = vmatprep.subr.msk.mxu0 %vm3186_vm6, %v17050_v27  ;;  %vm3394_vm1 = vmand %vm3391_vm8, %vm17364_vm9  ;;  %vm3488_vm8 = vcmp.le.s32.totalorder %v3171_v21, %v3486_v28  ;;  %vm3490_vm9 = vcmp.lt.s32.totalorder %v3486_v28, %v3177_v20 }
 0xaa1   :  { %11768 = vmatpush3.msk.msra.mxu0 %vm3186_vm6, %v17050_v27  ;;  %vm3397_vm0 = vmand %vm3394_vm1, %vm17365_vm15  ;;  %vm3493_vm1 = vcmp.ge.s32.totalorder %v3486_v28, 0 }
 0xaa2   :  { %11787 = vmatprep.subr.msk.mxu1 %vm3397_vm0, %v17050_v27  ;;  %vm3292_vm2 = vmand %vm3288_vm10, %vm3290_vm12  ;;  %vm3496_vm10 = vcmp.lt.s32.totalorder %v3486_v28, 8 }
 0xaa3   :  { %11788 = vmatpush3.msk.msra.mxu1 %vm3397_vm0, %v17050_v27  ;;  %vm3295_vm4 = vmand %vm3292_vm2, %vm3293_vm14  ;;  %vm3487_vm0 = vcmp.le.s32.totalorder %v3170_v59, %v3486_v28  ;;  %vm3489_vm2 = vcmp.lt.s32.totalorder %v3486_v28, %v3176_v4 }
 0xaa4   :  { %vm15564_vm5 = vmand %vm3295_vm4, %vm3296_vm3 }
 0xaa5   :  { %v17367_v62 = vsel %vm15564_vm5, 4294967295, %v17366_v62  ;;  %11775 = vmatprep.subr.msk.mxu0 %vm15564_vm5, %v17050_v27  ;;  %vm3294_vm6 = vmand %vm3291_vm7, %vm3293_vm14  ;;  %vm17374_vm14 = vcmask 130048  }
 0xaa6   :  { %vm15571_vm15 = vmand %vm3294_vm6, %vm3296_vm3 }
 0xaa7   :  { %vm3492_vm12 = vmand %vm3488_vm8, %vm3490_vm9 }
 0xaa8   :  { %vm3495_vm4 = vmand %vm3492_vm12, %vm3493_vm1 }
 0xaa9   :  { %vm15575_vm5 = vmand %vm3495_vm4, %vm3496_vm10 }
 0xaaa   :  { %vm3491_vm11 = vmand %vm3487_vm0, %vm3489_vm2 }
 0xaab   :  { %vm3494_vm13 = vmand %vm3491_vm11, %vm3493_vm1  ;;  %vm17379_vm1 = vnez %v17367_v62 }
 0xaac   :  { %vm15579_vm7 = vmand %vm3494_vm13, %vm3496_vm10 }
 0xaad   :  { %vm17375_vm3 = vmmov %vm17374_vm14 }
 0xaae   :  { %vm17376_vm6 = vmmov %vm17375_vm3 }
 0xaaf   :  { %vm17377_vm8 = vmmov %vm17375_vm3 }
 0xab0   :  { %vm17378_vm9 = vmmov %vm17375_vm3 }
 0xab1   :  { %vm17380_vm10 = vmmov %vm17375_vm3 }
 0xab2   :  { %vm17381_vm12 = vmmov %vm17375_vm3 }
 0xab3   :  { %vm17382_vm0 = vmmov %vm17375_vm3 }
 0xab4   :  { %vm17383_vm2 = vmmov %vm17382_vm0 }
 0xab5   :  { %vm17384_vm4 = vmmov %vm17382_vm0 }
 0xab6   :  { %vm17385_vm11 = vmmov %vm17382_vm0 }
 0xab7   :  { %vm17387_vm13 = vmmov %vm17382_vm0 }
 0xb5a   :  { %v11761_v9 = vpop.f32.mrf.mxu0  ;;  %v11764_v39 = vpop.f32.mrf.mxu1 }
 0xb5b   :  { %v3140_v46 = vadd.f32 %v11761_v9, %v3044_v15  ;;  %v3150_v59 = vadd.f32 %v11764_v39, %v3054_v16  ;;  %v3159_v16 = vld [vmem:[#allocation18 + $0x10] sm:$0xff] }
 0xb5c   :  { %v3134_v47 = vpop.f32.mrf.mxu0  ;;  %v3144_v18 = vpop.f32.mrf.mxu1 }
 0xb5d   :  { %v3135_v21 = vadd.f32 %v3134_v47, %v3039_v26  ;;  %v3145_v22 = vadd.f32 %v3144_v18, %v3049_v58  ;;  %v3154_v25 = vadd.f32 %v3140_v46, %v15490_v60  ;;  %v3157_v60 = vld [vmem:[#allocation18] sm:$0xff] }
 0xb5f   :  { %v3153_v20 = vadd.f32 %v3135_v21, %v15493_v40  ;;  %v3155_v4 = vadd.f32 %v3145_v22, %v15501_v30  ;;  %v3156_v40 = vadd.f32 %v3150_v59, %v15498_v34  ;;  %v3158_v22 = vld [vmem:[#allocation18 + $0x8] sm:$0xff]  ;;  %v3712_v59 = vadd.s32 4294967295, %v15542_v42 }
 0xb61   :  { %11769 = vmatprep.mubr.msk.f32.mxu0 %vm17374_vm14, %v3153_v20  ;;  %11789 = vmatprep.mubr.msk.f32.mxu1 %vm17375_vm3, %v3153_v20  ;;  %vm17388_vm14 = vmmov %vm17382_vm0 }
 0xb62   :  { %11770 = vmatmul.mubr.msk.f32.vlgmr.msra.gmra.mxu0 %vm17376_vm6, %v3154_v25  ;;  %11790 = vmatmul.mubr.msk.f32.vlgmr.msra.gmra.mxu1 %vm17377_vm8, %v3154_v25  ;;  %vm17389_vm3 = vmmov %vm17382_vm0  ;;  %vm3717_vm8 = vcmp.ge.s32.totalorder %v3712_v59, 0 }
 0xb63   :  { %11772 = vmatprep.mubr.msk.f32.mxu0 %vm17378_vm9, %v3155_v4  ;;  %11776 = vmatpush3.msk.msra.mxu0 %vm17379_vm1, %v17050_v27  ;;  %vm17390_vm6 = vmmov %vm17382_vm0  ;;  %vm3719_vm9 = vcmp.lt.s32.totalorder %v3712_v59, 4 }
 0xb64   :  { %11792 = vmatprep.mubr.msk.f32.mxu1 %vm17380_vm10, %v3155_v4  ;;  %11777 = vmatprep.subr.msk.mxu0 %vm15571_vm15, %v17050_v27 }
 0xb65   :  { %11778 = vmatpush3.msk.msra.mxu0 %vm15571_vm15, %v17050_v27  ;;  %vm17386_vm15 = vmmov %vm17382_vm0 }
 0xb66   :  { %11773 = vmatmul.mubr.msk.f32.gmra.mxu0 %vm17381_vm12, %v3156_v40  ;;  %11793 = vmatmul.mubr.msk.f32.gmra.mxu1 %vm17382_vm0, %v3156_v40 }
 0xb67   :  { %11779 = vmatprep.mubr.msk.f32.mxu0 %vm17383_vm2, %v3153_v20  ;;  %11795 = vmatprep.subr.msk.mxu0 %vm15575_vm5, %v17050_v27 }
 0xb68   :  { %11837 = vmatprep.mubr.f32.mxu1 %v3157_v60  ;;  %v3594_v60 = vpop.permute.xlu1 %3593 }
 0xb6a   :  { %11780 = vmatmul.mubr.msk.f32.vlgmr.msra.gmra.mxu0 %vm17384_vm4, %v3154_v25  ;;  %vm3823_vm4 = vcmp.ge.s32.totalorder %v15542_v42, 0 }
 0xb6b   :  { %11782 = vmatprep.mubr.msk.f32.mxu0 %vm17385_vm11, %v3155_v4  ;;  %11796 = vmatpush3.msk.msra.mxu0 %vm15575_vm5, %v17050_v27  ;;  %vm3825_vm11 = vcmp.lt.s32.totalorder %v15542_v42, 4 }
 0xb6c   :  { %11797 = vmatprep.subr.msk.mxu0 %vm15579_vm7, %v17050_v27 }
 0xb6d   :  { %11798 = vmatpush3.msk.msra.mxu0 %vm15579_vm7, %v17050_v27 }
 0xb6e   :  { %11783 = vmatmul.mubr.msk.f32.gmra.mxu0 %vm17386_vm15, %v3156_v40 }
 0xb6f   :  { %11799 = vmatprep.mubr.msk.f32.mxu0 %vm17387_vm13, %v3153_v20  ;;  %v3160_v20 = vld [vmem:[#allocation18 + $0x18] sm:$0xff] }
 0xb72   :  { %11800 = vmatmul.mubr.msk.f32.vlgmr.msra.gmra.mxu0 %vm17388_vm14, %v3154_v25  ;;  %v15627_v25 = vsub.s32 %v14612_v2, %v3167_v57  ;;  %v3913_v57 = vadd.s32 1, %v15542_v42 }
 0xb73   :  { %11802 = vmatprep.mubr.msk.f32.mxu0 %vm17389_vm3, %v3155_v4 }
 0xb74   :  { %v15631_v4 = vadd.s32 1, %v15627_v25  ;;  %vm3713_vm5 = vcmp.le.s32.totalorder %v15627_v25, %v3712_v59  ;;  %vm3820_vm0 = vcmp.le.s32.totalorder %v15627_v25, %v15542_v42  ;;  %vm3914_vm3 = vcmp.le.s32.totalorder %v15627_v25, %v3913_v57 }
 0xb76   :  { %11803 = vmatmul.mubr.msk.f32.gmra.mxu0 %vm17390_vm6, %v3156_v40  ;;  %vm3715_vm7 = vcmp.lt.s32.totalorder %v3712_v59, %v15631_v4  ;;  %vm3821_vm2 = vcmp.lt.s32.totalorder %v15542_v42, %v15631_v4  ;;  %vm3915_vm6 = vcmp.lt.s32.totalorder %v3913_v57, %v15631_v4 }
 0xb77   :  { %vm3716_vm1 = vmand %vm3713_vm5, %vm3715_vm7  ;;  %vm3917_vm7 = vcmp.ge.s32.totalorder %v3913_v57, 0 }
 0xb78   :  { %vm3718_vm10 = vmand %vm3716_vm1, %vm3717_vm8  ;;  %vm17049_vm8 = vcmask 64512   ;;  %vm3919_vm1 = vcmp.lt.s32.totalorder %v3913_v57, 4 }
 0xb79   :  { %vm15635_vm12 = vmand %vm3718_vm10, %vm3719_vm9 }
 0xb7a   :  { %11843 = vmatprep.subr.msk.mxu0 %vm15635_vm12, %v17050_v27  ;;  %vm3822_vm15 = vmand %vm3820_vm0, %vm3821_vm2  ;;  %vm17397_vm0 = vcmask 785408  }
 0xb7b   :  { %11844 = vmatpush3.msk.msra.mxu0 %vm15635_vm12, %v17050_v27  ;;  %vm3824_vm13 = vmand %vm3822_vm15, %vm3823_vm4  ;;  %vm17401_vm15 = vcmask 261120  }
 0xb7c   :  { %vm15651_vm14 = vmand %vm3824_vm13, %vm3825_vm11 }
 0xb7d   :  { %11851 = vmatprep.subr.msk.mxu0 %vm15651_vm14, %v17050_v27  ;;  %vm3916_vm5 = vmand %vm3914_vm3, %vm3915_vm6 }
 0xb7e   :  { %vm3918_vm9 = vmand %vm3916_vm5, %vm3917_vm7 }
 0xb7f   :  { %vm15672_vm10 = vmand %vm3918_vm9, %vm3919_vm1 }
 0xb80   :  { %vm17398_vm2 = vmmov %vm17397_vm0 }
 0xb81   :  { %vm17399_vm4 = vmmov %vm17397_vm0 }
 0xb82   :  { %vm17400_vm11 = vmmov %vm17397_vm0 }
 0xb83   :  { %vm17402_vm13 = vmmov %vm17401_vm15 }
 0xb84   :  { %vm17403_vm3 = vmmov %vm17402_vm13 }
 0xb85   :  { %vm17404_vm6 = vmmov %vm17403_vm3 }
 0xc22   :  { %v11771_v34 = vpop.f32.mrf.mxu0  ;;  %v11791_v9 = vpop.f32.mrf.mxu1 }
 0xc24   :  { %v3268_v30 = vpop.f32.mrf.mxu0  ;;  %v3467_v46 = vpop.f32.mrf.mxu1 }
 0xc26   :  { %v11774_v62 = vpop.f32.mrf.mxu0  ;;  %v11794_v18 = vpop.f32.mrf.mxu1 }
 0xc28   :  { %v3278_v28 = vpop.f32.mrf.mxu0  ;;  %v3477_v21 = vpop.f32.mrf.mxu1 }
 0xc2a   :  { %v11781_v14 = vpop.f32.mrf.mxu0 }
 0xc2c   :  { %v3367_v19 = vpop.f32.mrf.mxu0 }
 0xc2e   :  { %v11784_v23 = vpop.f32.mrf.mxu0 }
 0xc30   :  { %v3377_v26 = vpop.f32.mrf.mxu0 }
 0xc32   :  { %v11801_v15 = vpop.f32.mrf.mxu0 }
 0xc34   :  { %v3567_v39 = vpop.f32.mrf.mxu0 }
 0xc36   :  { %v11804_v58 = vpop.f32.mrf.mxu0 }
 0xc37   :  { %11805 = vmatprep.subr.mxu1 %v11804_v58 }
 0xc38   :  { %v3577_v47 = vpop.f32.mrf.mxu0  ;;  %11806 = vmatpush3.msra.mxu1 %v11804_v58 }
 0xc39   :  { %11807 = vmatprep.subr.mxu1 %v3577_v47 }
 0xc3a   :  { %11808 = vmatpush3.msra.mxu1 %v3577_v47 }
 0xc3b   :  { %11809 = vmatprep.subr.mxu1 %v11801_v15 }
 0xc3c   :  { %11810 = vmatpush3.msra.mxu1 %v11801_v15 }
 0xc3d   :  { %11811 = vmatprep.subr.mxu1 %v3567_v39 }
 0xc3e   :  { %11812 = vmatpush3.msra.mxu1 %v3567_v39 }
 0xc3f   :  { %11813 = vmatprep.subr.mxu1 %v11794_v18 }
 0xc40   :  { %11814 = vmatpush3.msra.mxu1 %v11794_v18 }
 0xc41   :  { %11815 = vmatprep.subr.mxu1 %v3477_v21 }
 0xc42   :  { %11816 = vmatpush3.msra.mxu1 %v3477_v21 }
 0xc43   :  { %11817 = vmatprep.subr.mxu1 %v11791_v9 }
 0xc44   :  { %11818 = vmatpush3.msra.mxu1 %v11791_v9 }
 0xc45   :  { %11819 = vmatprep.subr.mxu1 %v3467_v46 }
 0xc46   :  { %11820 = vmatpush3.msra.mxu1 %v3467_v46 }
 0xc47   :  { %11821 = vmatprep.subr.mxu1 %v11784_v23 }
 0xc48   :  { %11822 = vmatpush3.msra.mxu1 %v11784_v23  ;;  %v3604_v23 = vpop.permute.xlu1 %3603 }
 0xc49   :  { %11823 = vmatprep.subr.mxu1 %v3377_v26 }
 0xc4a   :  { %11824 = vmatpush3.msra.mxu1 %v3377_v26 }
 0xc4b   :  { %11825 = vmatprep.subr.mxu1 %v11781_v14 }
 0xc4c   :  { %11826 = vmatpush3.msra.mxu1 %v11781_v14 }
 0xc4d   :  { %11827 = vmatprep.subr.mxu1 %v3367_v19 }
 0xc4e   :  { %11828 = vmatpush3.msra.mxu1 %v3367_v19 }
 0xc4f   :  { %11829 = vmatprep.subr.mxu1 %v11774_v62 }
 0xc50   :  { %11830 = vmatpush3.msra.mxu1 %v11774_v62 }
 0xc51   :  { %11831 = vmatprep.subr.mxu1 %v3278_v28 }
 0xc52   :  { %11832 = vmatpush3.msra.mxu1 %v3278_v28 }
 0xc53   :  { %11833 = vmatprep.subr.mxu1 %v11771_v34 }
 0xc54   :  { %11834 = vmatpush3.msra.mxu1 %v11771_v34  ;;  %v3589_v34 = vpop.permute.xlu0 %3588 }
 0xc55   :  { %11835 = vmatprep.subr.mxu1 %v3268_v30 }
 0xc56   :  { %11836 = vmatpush3.msra.mxu1 %v3268_v30 }
 0xc57   :  { %11838 = vmatmul.mubr.f32.vlgmr.msra.gmra.mxu1 %v3158_v22  ;;  %v3691_v22 = vld [vmem:[#allocation21] sm:$0xff] }
 0xc58   :  { %11840 = vmatprep.mubr.f32.mxu1 %v3159_v16  ;;  %v3599_v15 = vpop.permute.xlu0 %3598 }
 0xc5b   :  { %11841 = vmatmul.mubr.f32.gmra.mxu1 %v3160_v20 }
 0xd17   :  { %v11839_v30 = vpop.f32.mrf.mxu1 }
 0xd18   :  { %v15661_v62 = vadd.f32 %v11839_v30, %v3594_v60 }
 0xd19   :  { %v3672_v28 = vpop.f32.mrf.mxu1 }
 0xd1a   :  { %v15663_v14 = vadd.f32 %v3672_v28, %v3589_v34  ;;  %v3708_v9 = vmax.f32 %v15661_v62, 0.0 }
 0xd1b   :  { %v11842_v19 = vpop.f32.mrf.mxu1 }
 0xd1c   :  { %v3707_v26 = vmax.f32 %v15663_v14, 0.0  ;;  %v15667_v39 = vadd.f32 %v11842_v19, %v3604_v23 }
 0xd1d   :  { %v3682_v58 = vpop.f32.mrf.mxu1 }
 0xd1e   :  { %v15669_v46 = vadd.f32 %v3682_v58, %v3599_v15  ;;  %11845 = vmatprep.mubr.msk.f32.mxu0 %vm17049_vm8, %v3707_v26  ;;  %v3710_v21 = vmax.f32 %v15667_v39, 0.0  ;;  %v3693_v58 = vld [vmem:[#allocation21 + $0x10] sm:$0xff] }
 0xd1f   :  { %11846 = vmatmul.mubr.msk.f32.vlgmr.msra.gmra.mxu0 %vm17049_vm8, %v3708_v9 }
 0xd20   :  { %v3709_v18 = vmax.f32 %v15669_v46, 0.0  ;;  %11852 = vmatpush3.msk.msra.mxu0 %vm15651_vm14, %v17050_v27 }
 0xd21   :  { %11859 = vmatprep.subr.msk.mxu0 %vm15672_vm10, %v17050_v27 }
 0xd22   :  { %11848 = vmatprep.mubr.msk.f32.mxu0 %vm17049_vm8, %v3709_v18 }
 0xd23   :  { %11849 = vmatmul.mubr.msk.f32.gmra.mxu0 %vm17049_vm8, %v3710_v21 }
 0xd24   :  { %11853 = vmatprep.mubr.msk.f32.mxu0 %vm17049_vm8, %v3707_v26 }
 0xd27   :  { %11854 = vmatmul.mubr.msk.f32.vlgmr.msra.gmra.mxu0 %vm17049_vm8, %v3708_v9 }
 0xd28   :  { %11856 = vmatprep.mubr.msk.f32.mxu0 %vm17049_vm8, %v3709_v18  ;;  %11860 = vmatpush3.msk.msra.mxu0 %vm15672_vm10, %v17050_v27 }
 0xd2b   :  { %11857 = vmatmul.mubr.msk.f32.gmra.mxu0 %vm17049_vm8, %v3710_v21 }
 0xd2c   :  { %11861 = vmatprep.mubr.msk.f32.mxu0 %vm17049_vm8, %v3707_v26 }
 0xd2f   :  { %11862 = vmatmul.mubr.msk.f32.vlgmr.msra.gmra.mxu0 %vm17049_vm8, %v3708_v9  ;;  %v3692_v9 = vld [vmem:[#allocation21 + $0x8] sm:$0xff] }
 0xd30   :  { %11864 = vmatprep.mubr.msk.f32.mxu0 %vm17049_vm8, %v3709_v18  ;;  %v3694_v18 = vld [vmem:[#allocation21 + $0x18] sm:$0xff] }
 0xd33   :  { %11865 = vmatmul.mubr.msk.f32.gmra.mxu0 %vm17049_vm8, %v3710_v21  ;;  %v3699_v21 = vld [vmem:[#allocation24] sm:$0xff] }
 0xd34   :  { %11891 = vmatprep.mubr.msk.f32.mxu0 %vm17397_vm0, %v3691_v22  ;;  %11905 = vmatprep.mubr.msk.f32.mxu1 %vm17401_vm15, %v3699_v21  ;;  %v4025_v22 = vpop.permute.xlu0 %4024  ;;  %v3700_v21 = vld [vmem:[#allocation24 + $0x8] sm:$0xff] }
 0xddf   :  { %v11847_v16 = vpop.f32.mrf.mxu0 }
 0xde1   :  { %v3801_v20 = vpop.f32.mrf.mxu0 }
 0xde3   :  { %v11850_v59 = vpop.f32.mrf.mxu0 }
 0xde5   :  { %v3811_v57 = vpop.f32.mrf.mxu0 }
 0xde7   :  { %v11855_v60 = vpop.f32.mrf.mxu0 }
 0xde9   :  { %v3894_v34 = vpop.f32.mrf.mxu0 }
 0xdeb   :  { %v11858_v30 = vpop.f32.mrf.mxu0 }
 0xded   :  { %v3904_v28 = vpop.f32.mrf.mxu0 }
 0xdef   :  { %v11863_v19 = vpop.f32.mrf.mxu0 }
 0xdf1   :  { %v3988_v23 = vpop.f32.mrf.mxu0 }
 0xdf3   :  { %v11866_v26 = vpop.f32.mrf.mxu0 }
 0xdf4   :  { %11867 = vmatprep.subr.mxu0 %v11866_v26 }
 0xdf5   :  { %v3998_v15 = vpop.f32.mrf.mxu0  ;;  %11868 = vmatpush3.msra.mxu0 %v11866_v26 }
 0xdf6   :  { %11869 = vmatprep.subr.mxu0 %v3998_v15 }
 0xdf7   :  { %11870 = vmatpush3.msra.mxu0 %v3998_v15 }
 0xdf8   :  { %11871 = vmatprep.subr.mxu0 %v11863_v19 }
 0xdf9   :  { %11872 = vmatpush3.msra.mxu0 %v11863_v19 }
 0xdfa   :  { %11873 = vmatprep.subr.mxu0 %v3988_v23 }
 0xdfb   :  { %11874 = vmatpush3.msra.mxu0 %v3988_v23 }
 0xdfc   :  { %11875 = vmatprep.subr.mxu0 %v11858_v30 }
 0xdfd   :  { %11876 = vmatpush3.msra.mxu0 %v11858_v30  ;;  %v4015_v30 = vpop.permute.xlu0 %4014 }
 0xdfe   :  { %11877 = vmatprep.subr.mxu0 %v3904_v28 }
 0xdff   :  { %11878 = vmatpush3.msra.mxu0 %v3904_v28 }
 0xe00   :  { %11879 = vmatprep.subr.mxu0 %v11855_v60 }
 0xe01   :  { %11880 = vmatpush3.msra.mxu0 %v11855_v60  ;;  %v4020_v60 = vpop.permute.xlu1 %4019 }
 0xe02   :  { %11881 = vmatprep.subr.mxu0 %v3894_v34 }
 0xe03   :  { %11882 = vmatpush3.msra.mxu0 %v3894_v34 }
 0xe04   :  { %11883 = vmatprep.subr.mxu0 %v11850_v59 }
 0xe05   :  { %11884 = vmatpush3.msra.mxu0 %v11850_v59  ;;  %v4010_v26 = vpop.permute.xlu1 %4009 }
 0xe06   :  { %11885 = vmatprep.subr.mxu0 %v3811_v57 }
 0xe07   :  { %11886 = vmatpush3.msra.mxu0 %v3811_v57 }
 0xe08   :  { %11887 = vmatprep.subr.mxu0 %v11847_v16 }
 0xe09   :  { %11888 = vmatpush3.msra.mxu0 %v11847_v16 }
 0xe0a   :  { %11889 = vmatprep.subr.mxu0 %v3801_v20 }
 0xe0b   :  { %11890 = vmatpush3.msra.mxu0 %v3801_v20 }
 0xe0c   :  { %11892 = vmatmul.mubr.msk.f32.vlgmr.msra.gmra.mxu0 %vm17398_vm2, %v3692_v9 }
 0xe0d   :  { %11894 = vmatprep.mubr.msk.f32.mxu0 %vm17399_vm4, %v3693_v58 }
 0xe10   :  { %11895 = vmatmul.mubr.msk.f32.gmra.mxu0 %vm17400_vm11, %v3694_v18 }
 0xecc   :  { %v11893_v59 = vpop.f32.mrf.mxu0 }
 0xecd   :  { %v4111_v19 = vadd.f32 %v11893_v59, %v4015_v30  ;;  %v4269_v59 = vadd.s32 4294967293, %v15542_v42 }
 0xece   :  { %v4105_v57 = vpop.f32.mrf.mxu0 }
 0xecf   :  { %v4106_v15 = vadd.f32 %v4105_v57, %v4010_v26  ;;  %v4125_v58 = vmax.f32 %v4111_v19, 0.0  ;;  %vm4270_vm5 = vcmp.le.s32.totalorder %v15627_v25, %v4269_v59  ;;  %vm4271_vm7 = vcmp.lt.s32.totalorder %v4269_v59, %v15631_v4 }
 0xed0   :  { %v11896_v34 = vpop.f32.mrf.mxu0  ;;  %vm4272_vm9 = vmand %vm4270_vm5, %vm4271_vm7  ;;  %vm4273_vm1 = vcmp.ge.s32.totalorder %v4269_v59, 0  ;;  %vm4275_vm11 = vcmp.lt.s32.totalorder %v4269_v59, 4 }
 0xed1   :  { %v4121_v16 = vadd.f32 %v11896_v34, %v4025_v22  ;;  %v4124_v18 = vmax.f32 %v4106_v15, 0.0  ;;  %v3702_v22 = vld [vmem:[#allocation24 + $0x18] sm:$0xff]  ;;  %vm4274_vm4 = vmand %vm4272_vm9, %vm4273_vm1 }
 0xed2   :  { %v4115_v28 = vpop.f32.mrf.mxu0 }
 0xed3   :  { %v4127_v20 = vmax.f32 %v4121_v16, 0.0  ;;  %v4116_v23 = vadd.f32 %v4115_v28, %v4020_v60  ;;  %v4460_v60 = vadd.s32 3, %v15542_v42 }
 0xed5   :  { %v4126_v9 = vmax.f32 %v4116_v23, 0.0  ;;  %11897 = vmatprep.subr.mxu1 %v4127_v20  ;;  %vm4461_vm0 = vcmp.le.s32.totalorder %v15627_v25, %v4460_v60  ;;  %vm4462_vm2 = vcmp.lt.s32.totalorder %v4460_v60, %v15631_v4  ;;  %vm4464_vm15 = vcmp.ge.s32.totalorder %v4460_v60, 0  ;;  %v4136_v25 = vpop.permute.xlu1 %4135  ;;  %v4131_v4 = vpop.permute.xlu0 %4130 }
 0xed6   :  { %11898 = vmatpush3.msra.mxu1 %v4127_v20 }
 0xed7   :  { %11899 = vmatprep.subr.mxu1 %v4126_v9 }
 0xed8   :  { %11900 = vmatpush3.msra.mxu1 %v4126_v9 }
 0xed9   :  { %11901 = vmatprep.subr.mxu1 %v4125_v58  ;;  %v4146_v28 = vpop.permute.xlu1 %4145  ;;  %v4141_v15 = vpop.permute.xlu0 %4140 }
 0xeda   :  { %11902 = vmatpush3.msra.mxu1 %v4125_v58 }
 0xedb   :  { %11903 = vmatprep.subr.mxu1 %v4124_v18 }
 0xedc   :  { %11904 = vmatpush3.msra.mxu1 %v4124_v18 }
 0xedd   :  { %11906 = vmatmul.mubr.msk.f32.vlgmr.msra.gmra.mxu1 %vm17402_vm13, %v3700_v21  ;;  %vm15712_vm13 = vmand %vm4274_vm4, %vm4275_vm11 }
 0xede   :  { %11908 = vmatprep.mubr.msk.f32.mxu1 %vm17403_vm3, %v3701_v1  ;;  %vm4466_vm3 = vcmp.lt.s32.totalorder %v4460_v60, 4  ;;  %11911 = vmatprep.subr.msk.mxu1 %vm15712_vm13, %v17050_v27 }
 0xedf   :  { %11912 = vmatpush3.msk.msra.mxu1 %vm15712_vm13, %v17050_v27 }
 0xee0   :  { %11919 = vmatprep.subr.msk.mxu1 %vm15651_vm14, %v17050_v27 }
 0xee1   :  { %11909 = vmatmul.mubr.msk.f32.gmra.mxu1 %vm17404_vm6, %v3702_v22  ;;  %vm4463_vm6 = vmand %vm4461_vm0, %vm4462_vm2 }
 0xee2   :  { %vm4465_vm8 = vmand %vm4463_vm6, %vm4464_vm15 }
 0xee3   :  { %vm15722_vm5 = vmand %vm4465_vm8, %vm4466_vm3  ;;  %vm17409_vm8 = vcmask 64512  }
 0xee4   :  { %11927 = vmatprep.subr.msk.mxu0 %vm15722_vm5, %v17050_v27  ;;  %vm17410_vm7 = vmmov %vm17409_vm8 }
 0xee5   :  { %11928 = vmatpush3.msk.msra.mxu0 %vm15722_vm5, %v17050_v27  ;;  %vm17411_vm9 = vmmov %vm17410_vm7 }
 0xee6   :  { %vm17412_vm1 = vmmov %vm17410_vm7 }
 0xee7   :  { %vm17413_vm0 = vmmov %vm17412_vm1 }
 0xee8   :  { %vm17414_vm2 = vmmov %vm17413_vm0 }
 0xee9   :  { %vm17415_vm4 = vmmov %vm17413_vm0 }
 0xeea   :  { %vm17416_vm11 = vmmov %vm17413_vm0 }
 0xeeb   :  { %vm17417_vm15 = vmmov %vm17413_vm0 }
 0xeec   :  { %vm17418_vm3 = vmmov %vm17413_vm0 }
 0xeed   :  { %vm17419_vm6 = vmmov %vm17413_vm0 }
 0xf9d   :  { %v11907_v57 = vpop.f32.mrf.mxu1 }
 0xf9e   :  { %v4232_v34 = vadd.f32 %v11907_v57, %v4136_v25 }
 0xf9f   :  { %v4226_v16 = vpop.f32.mrf.mxu1 }
 0xfa0   :  { %v4227_v30 = vadd.f32 %v4226_v16, %v4131_v4  ;;  %v15736_v19 = vadd.f32 %v4232_v34, %v15661_v62 }
 0xfa1   :  { %v11910_v20 = vpop.f32.mrf.mxu1 }
 0xfa2   :  { %v15739_v23 = vadd.f32 %v4227_v30, %v15663_v14  ;;  %v4242_v26 = vadd.f32 %v11910_v20, %v4146_v28  ;;  %v4266_v21 = vmax.f32 %v15736_v19, 0.0 }
 0xfa3   :  { %v4236_v9 = vpop.f32.mrf.mxu1 }
 0xfa4   :  { %v4265_v58 = vmax.f32 %v15739_v23, 0.0  ;;  %v4237_v18 = vadd.f32 %v4236_v9, %v4141_v15  ;;  %v15744_v22 = vadd.f32 %v4242_v26, %v15667_v39  ;;  %v4249_v39 = vld [vmem:[#allocation27] sm:$0xff]  ;;  %v4250_v9 = vld [vmem:[#allocation27 + $0x8] sm:$0xff] }
 0xfa6   :  { %v15747_v59 = vadd.f32 %v4237_v18, %v15669_v46  ;;  %11913 = vmatprep.mubr.msk.f32.mxu1 %vm17409_vm8, %v4265_v58  ;;  %11929 = vmatprep.mubr.msk.f32.mxu0 %vm17410_vm7, %v4265_v58  ;;  %v4268_v14 = vmax.f32 %v15744_v22, 0.0  ;;  %vm17420_vm8 = vmmov %vm17413_vm0  ;;  %vm17421_vm7 = vcmask 785408   ;;  %v4252_v18 = vld [vmem:[#allocation27 + $0x18] sm:$0xff] }
 0xfa7   :  { %11914 = vmatmul.mubr.msk.f32.vlgmr.msra.gmra.mxu1 %vm17411_vm9, %v4266_v21  ;;  %11930 = vmatmul.mubr.msk.f32.vlgmr.msra.gmra.mxu0 %vm17412_vm1, %v4266_v21  ;;  %vm17422_vm9 = vmmov %vm17421_vm7 }
 0xfa8   :  { %v4267_v62 = vmax.f32 %v15747_v59, 0.0  ;;  %11920 = vmatpush3.msk.msra.mxu1 %vm15651_vm14, %v17050_v27  ;;  %vm17423_vm1 = vmmov %vm17421_vm7 }
 0xfaa   :  { %11916 = vmatprep.mubr.msk.f32.mxu1 %vm17413_vm0, %v4267_v62  ;;  %11932 = vmatprep.mubr.msk.f32.mxu0 %vm17414_vm2, %v4267_v62  ;;  %vm17424_vm0 = vmmov %vm17423_vm1  ;;  %vm17425_vm2 = vcmask 261120  }
 0xfab   :  { %11917 = vmatmul.mubr.msk.f32.gmra.mxu1 %vm17415_vm4, %v4268_v14  ;;  %11933 = vmatmul.mubr.msk.f32.gmra.mxu0 %vm17416_vm11, %v4268_v14  ;;  %vm17426_vm4 = vmmov %vm17425_vm2 }
 0xfac   :  { %11921 = vmatprep.mubr.msk.f32.mxu1 %vm17417_vm15, %v4265_v58  ;;  %v4251_v58 = vld [vmem:[#allocation27 + $0x10] sm:$0xff]  ;;  %vm17427_vm11 = vmmov %vm17425_vm2 }
 0xfad   :  { %vm17428_vm15 = vmmov %vm17425_vm2 }
 0xfaf   :  { %11922 = vmatmul.mubr.msk.f32.vlgmr.msra.gmra.mxu1 %vm17418_vm3, %v4266_v21  ;;  %v4257_v21 = vld [vmem:[#allocation30] sm:$0xff] }
 0xfb0   :  { %11924 = vmatprep.mubr.msk.f32.mxu1 %vm17419_vm6, %v4267_v62  ;;  %11973 = vmatprep.mubr.msk.f32.mxu0 %vm17425_vm2, %v4257_v21  ;;  %v4572_v62 = vpop.permute.xlu0 %4571  ;;  %v4260_v21 = vld [vmem:[#allocation30 + $0x18] sm:$0xff]  ;;  %vm17429_vm6 = vmmov %vm17418_vm3 }
 0xfb3   :  { %11925 = vmatmul.mubr.msk.f32.gmra.mxu1 %vm17420_vm8, %v4268_v14  ;;  %vm17430_vm8 = vmmov %vm17418_vm3 }
 0xfb4   :  { %11959 = vmatprep.mubr.msk.f32.mxu1 %vm17421_vm7, %v4249_v39  ;;  %v4567_v39 = vpop.permute.xlu1 %4566  ;;  %vm17431_vm7 = vmmov %vm17418_vm3 }
0x1067   :  { %v11915_v46 = vpop.f32.mrf.mxu1  ;;  %v11931_v60 = vpop.f32.mrf.mxu0 }
0x1069   :  { %v4356_v25 = vpop.f32.mrf.mxu1  ;;  %v4535_v4 = vpop.f32.mrf.mxu0 }
0x106b   :  { %v11918_v57 = vpop.f32.mrf.mxu1  ;;  %v11934_v34 = vpop.f32.mrf.mxu0 }
0x106c   :  { %11935 = vmatprep.subr.mxu1 %v11934_v34 }
0x106d   :  { %v4366_v16 = vpop.f32.mrf.mxu1  ;;  %v4545_v30 = vpop.f32.mrf.mxu0  ;;  %11936 = vmatpush3.msra.mxu1 %v11934_v34 }
0x106e   :  { %11937 = vmatprep.subr.mxu1 %v4545_v30 }
0x106f   :  { %v11923_v28 = vpop.f32.mrf.mxu1  ;;  %11938 = vmatpush3.msra.mxu1 %v4545_v30 }
0x1070   :  { %11939 = vmatprep.subr.mxu1 %v11931_v60 }
0x1071   :  { %v4441_v20 = vpop.f32.mrf.mxu1  ;;  %11940 = vmatpush3.msra.mxu1 %v11931_v60 }
0x1072   :  { %11941 = vmatprep.subr.mxu1 %v4535_v4 }
0x1073   :  { %v11926_v26 = vpop.f32.mrf.mxu1  ;;  %11942 = vmatpush3.msra.mxu1 %v4535_v4  ;;  %v4562_v4 = vpop.permute.xlu0 %4561 }
0x1074   :  { %11943 = vmatprep.subr.mxu1 %v11926_v26 }
0x1075   :  { %v4451_v15 = vpop.f32.mrf.mxu1  ;;  %11944 = vmatpush3.msra.mxu1 %v11926_v26 }
0x1076   :  { %11945 = vmatprep.subr.mxu1 %v4451_v15 }
0x1077   :  { %11946 = vmatpush3.msra.mxu1 %v4451_v15 }
0x1078   :  { %11947 = vmatprep.subr.mxu1 %v11923_v28 }
0x1079   :  { %11948 = vmatpush3.msra.mxu1 %v11923_v28  ;;  %v4557_v28 = vpop.permute.xlu1 %4556 }
0x107a   :  { %11949 = vmatprep.subr.mxu1 %v4441_v20 }
0x107b   :  { %11950 = vmatpush3.msra.mxu1 %v4441_v20 }
0x107c   :  { %11951 = vmatprep.subr.mxu1 %v11918_v57 }
0x107d   :  { %11952 = vmatpush3.msra.mxu1 %v11918_v57 }
0x107e   :  { %11953 = vmatprep.subr.mxu1 %v4366_v16 }
0x107f   :  { %11954 = vmatpush3.msra.mxu1 %v4366_v16 }
0x1080   :  { %11955 = vmatprep.subr.mxu1 %v11915_v46 }
0x1081   :  { %11956 = vmatpush3.msra.mxu1 %v11915_v46 }
0x1082   :  { %11957 = vmatprep.subr.mxu1 %v4356_v25 }
0x1083   :  { %11958 = vmatpush3.msra.mxu1 %v4356_v25 }
0x1084   :  { %11960 = vmatmul.mubr.msk.f32.vlgmr.msra.gmra.mxu1 %vm17422_vm9, %v4250_v9  ;;  %11995 = vmatprep.subr.msk.mxu1 %vm15672_vm10, %v17050_v27  ;;  %vm17432_vm9 = vmmov %vm17418_vm3 }
0x1085   :  { %11962 = vmatprep.mubr.msk.f32.mxu1 %vm17423_vm1, %v4251_v58  ;;  %11996 = vmatpush3.msk.msra.mxu1 %vm15672_vm10, %v17050_v27  ;;  %v4258_v58 = vld [vmem:[#allocation30 + $0x8] sm:$0xff]  ;;  %vm17433_vm1 = vmmov %vm17418_vm3 }
0x1088   :  { %11963 = vmatmul.mubr.msk.f32.gmra.mxu1 %vm17424_vm0, %v4252_v18  ;;  %v4259_v18 = vld [vmem:[#allocation30 + $0x10] sm:$0xff]  ;;  %vm17434_vm0 = vmmov %vm17433_vm1 }
0x1089   :  { %vm17435_vm2 = vmmov %vm17434_vm0 }
0x1144   :  { %v11961_v14 = vpop.f32.mrf.mxu1 }
0x1145   :  { %v4658_v34 = vadd.f32 %v11961_v14, %v4562_v4  ;;  %v4678_v14 = vpop.permute.xlu0 %4677 }
0x1146   :  { %v4652_v46 = vpop.f32.mrf.mxu1 }
0x1147   :  { %v4653_v20 = vadd.f32 %v4652_v46, %v4557_v28  ;;  %v4672_v15 = vmax.f32 %v4658_v34, 0.0 }
0x1148   :  { %v11964_v60 = vpop.f32.mrf.mxu1 }
0x1149   :  { %v4668_v25 = vadd.f32 %v11964_v60, %v4572_v62  ;;  %v4671_v9 = vmax.f32 %v4653_v20, 0.0  ;;  %v4683_v62 = vpop.permute.xlu1 %4682 }
0x114a   :  { %v4662_v57 = vpop.f32.mrf.mxu1 }
0x114b   :  { %v4674_v16 = vmax.f32 %v4668_v25, 0.0  ;;  %v4663_v30 = vadd.f32 %v4662_v57, %v4567_v39 }
0x114d   :  { %v4673_v26 = vmax.f32 %v4663_v30, 0.0  ;;  %11965 = vmatprep.subr.mxu0 %v4674_v16  ;;  %v4693_v57 = vpop.permute.xlu1 %4692 }
0x114e   :  { %11966 = vmatpush3.msra.mxu0 %v4674_v16  ;;  %v4688_v16 = vpop.permute.xlu0 %4687 }
0x114f   :  { %11967 = vmatprep.subr.mxu0 %v4673_v26 }
0x1150   :  { %11968 = vmatpush3.msra.mxu0 %v4673_v26 }
0x1151   :  { %11969 = vmatprep.subr.mxu0 %v4672_v15 }
0x1152   :  { %11970 = vmatpush3.msra.mxu0 %v4672_v15 }
0x1153   :  { %11971 = vmatprep.subr.mxu0 %v4671_v9 }
0x1154   :  { %11972 = vmatpush3.msra.mxu0 %v4671_v9 }
0x1155   :  { %11974 = vmatmul.mubr.msk.f32.vlgmr.msra.gmra.mxu0 %vm17426_vm4, %v4258_v58  ;;  %11979 = vmatprep.subr.msk.mxu0 %vm15635_vm12, %v17050_v27  ;;  %vm17436_vm4 = vmmov %vm17434_vm0 }
0x1156   :  { %11976 = vmatprep.mubr.msk.f32.mxu0 %vm17427_vm11, %v4259_v18  ;;  %11980 = vmatpush3.msk.msra.mxu0 %vm15635_vm12, %v17050_v27  ;;  %vm17437_vm11 = vmmov %vm17434_vm0 }
0x1157   :  { %11987 = vmatprep.subr.msk.mxu0 %vm15651_vm14, %v17050_v27 }
0x1159   :  { %11977 = vmatmul.mubr.msk.f32.gmra.mxu0 %vm17428_vm15, %v4260_v21  ;;  %vm17438_vm15 = vmmov %vm17434_vm0 }
0x1215   :  { %v11975_v39 = vpop.f32.mrf.mxu0 }
0x1216   :  { %v4779_v46 = vadd.f32 %v11975_v39, %v4683_v62 }
0x1217   :  { %v4773_v60 = vpop.f32.mrf.mxu0 }
0x1218   :  { %v4774_v25 = vadd.f32 %v4773_v60, %v4678_v14  ;;  %v4793_v30 = vadd.f32 %v4779_v46, %v15736_v19  ;;  %v4796_v19 = vld [vmem:[#allocation33] sm:$0xff] }
0x1219   :  { %v11978_v4 = vpop.f32.mrf.mxu0 }
0x121a   :  { %v4792_v34 = vadd.f32 %v4774_v25, %v15739_v23  ;;  %v4789_v28 = vadd.f32 %v11978_v4, %v4693_v57  ;;  %v4797_v4 = vld [vmem:[#allocation33 + $0x8] sm:$0xff]  ;;  %v4798_v57 = vld [vmem:[#allocation33 + $0x10] sm:$0xff] }
0x121b   :  { %v4783_v20 = vpop.f32.mrf.mxu0 }
0x121c   :  { %v4784_v26 = vadd.f32 %v4783_v20, %v4688_v16  ;;  %11981 = vmatprep.mubr.msk.f32.mxu0 %vm17418_vm3, %v4792_v34  ;;  %11997 = vmatprep.mubr.msk.f32.mxu1 %vm17429_vm6, %v4792_v34  ;;  %v4795_v23 = vadd.f32 %v4789_v28, %v15744_v22  ;;  %vm17439_vm3 = vmmov %vm17434_vm0  ;;  %vm17440_vm6 = vcmask 785408   ;;  %v949_v16 = vld [vmem:[%s17441_s24] sm:$0xff]  ;;  %v5089_v28 = vpop.permute.xlu0 %5088 }
0x121d   :  { %11982 = vmatmul.mubr.msk.f32.vlgmr.msra.gmra.mxu0 %vm17430_vm8, %v4793_v30  ;;  %11998 = vmatmul.mubr.msk.f32.vlgmr.msra.gmra.mxu1 %vm17431_vm7, %v4793_v30  ;;  %vm17442_vm8 = vmmov %vm17440_vm6 }
0x121e   :  { %v4794_v15 = vadd.f32 %v4784_v26, %v15747_v59  ;;  %11988 = vmatpush3.msk.msra.mxu0 %vm15651_vm14, %v17050_v27  ;;  %vm17443_vm7 = vmmov %vm17440_vm6  ;;  %v5084_v26 = vpop.permute.xlu1 %5083 }
0x1220   :  { %11984 = vmatprep.mubr.msk.f32.mxu0 %vm17432_vm9, %v4794_v15  ;;  %12000 = vmatprep.mubr.msk.f32.mxu1 %vm17433_vm1, %v4794_v15  ;;  %vm17444_vm9 = vmmov %vm17440_vm6  ;;  %vm17445_vm1 = vcmask 261120  }
0x1221   :  { %11985 = vmatmul.mubr.msk.f32.gmra.mxu0 %vm17434_vm0, %v4795_v23  ;;  %12001 = vmatmul.mubr.msk.f32.gmra.mxu1 %vm17435_vm2, %v4795_v23  ;;  %vm17446_vm0 = vmmov %vm17445_vm1 }
0x1222   :  { %11989 = vmatprep.mubr.msk.f32.mxu0 %vm17436_vm4, %v4792_v34  ;;  %v4799_v34 = vld [vmem:[#allocation33 + $0x18] sm:$0xff]  ;;  %12041 = vmatprep.mubr.msk.f32.mxu1 %vm17445_vm1, %v949_v16  ;;  %vm17447_vm2 = vmmov %vm17446_vm0 }
0x1223   :  { %vm17448_vm4 = vmmov %vm17446_vm0 }
0x1225   :  { %11990 = vmatmul.mubr.msk.f32.vlgmr.msra.gmra.mxu0 %vm17437_vm11, %v4793_v30  ;;  %vm17449_vm11 = vmmov %vm17446_vm0 }
0x1226   :  { %11992 = vmatprep.mubr.msk.f32.mxu0 %vm17438_vm15, %v4794_v15  ;;  %vm17450_vm15 = vmmov %vm17446_vm0 }
0x1229   :  { %11993 = vmatmul.mubr.msk.f32.gmra.mxu0 %vm17439_vm3, %v4795_v23  ;;  %vm17451_vm3 = vmmov %vm17446_vm0 }
0x122a   :  { %12027 = vmatprep.mubr.msk.f32.mxu0 %vm17440_vm6, %v4796_v19  ;;  %vm17452_vm6 = vmmov %vm17446_vm0 }
0x12dd   :  { %v11983_v22 = vpop.f32.mrf.mxu0  ;;  %v11999_v59 = vpop.f32.mrf.mxu1 }
0x12df   :  { %v4882_v9 = vpop.f32.mrf.mxu0  ;;  %v5052_v58 = vpop.f32.mrf.mxu1 }
0x12e1   :  { %v11986_v18 = vpop.f32.mrf.mxu0  ;;  %v12002_v21 = vpop.f32.mrf.mxu1 }
0x12e2   :  { %12003 = vmatprep.subr.mxu0 %v12002_v21 }
0x12e3   :  { %v4892_v62 = vpop.f32.mrf.mxu0  ;;  %v5062_v14 = vpop.f32.mrf.mxu1  ;;  %12004 = vmatpush3.msra.mxu0 %v12002_v21  ;;  %v950_v21 = vld [vmem:[%s17441_s24 + $0x8] sm:$0xff] }
0x12e4   :  { %12005 = vmatprep.subr.mxu0 %v5062_v14 }
0x12e5   :  { %v11991_v39 = vpop.f32.mrf.mxu0  ;;  %12006 = vmatpush3.msra.mxu0 %v5062_v14  ;;  %v952_v14 = vld [vmem:[%s17441_s24 + $0x18] sm:$0xff] }
0x12e6   :  { %12007 = vmatprep.subr.mxu0 %v11999_v59 }
0x12e7   :  { %v4967_v46 = vpop.f32.mrf.mxu0  ;;  %12008 = vmatpush3.msra.mxu0 %v11999_v59  ;;  %v5079_v59 = vpop.permute.xlu0 %5078 }
0x12e8   :  { %12009 = vmatprep.subr.mxu0 %v5052_v58 }
0x12e9   :  { %v11994_v60 = vpop.f32.mrf.mxu0  ;;  %12010 = vmatpush3.msra.mxu0 %v5052_v58  ;;  %v5074_v58 = vpop.permute.xlu1 %5073 }
0x12ea   :  { %12011 = vmatprep.subr.mxu0 %v11994_v60 }
0x12eb   :  { %v4977_v25 = vpop.f32.mrf.mxu0  ;;  %12012 = vmatpush3.msra.mxu0 %v11994_v60  ;;  %v955_v60 = vld [vmem:[%s17441_s24 + $0x30] sm:$0xff] }
0x12ec   :  { %12013 = vmatprep.subr.mxu0 %v4977_v25 }
0x12ed   :  { %12014 = vmatpush3.msra.mxu0 %v4977_v25  ;;  %v956_v25 = vld [vmem:[%s17441_s24 + $0x38] sm:$0xff] }
0x12ee   :  { %12015 = vmatprep.subr.mxu0 %v11991_v39 }
0x12ef   :  { %12016 = vmatpush3.msra.mxu0 %v11991_v39  ;;  %v953_v39 = vld [vmem:[%s17441_s24 + $0x20] sm:$0xff] }
0x12f0   :  { %12017 = vmatprep.subr.mxu0 %v4967_v46 }
0x12f1   :  { %12018 = vmatpush3.msra.mxu0 %v4967_v46  ;;  %v954_v46 = vld [vmem:[%s17441_s24 + $0x28] sm:$0xff] }
0x12f2   :  { %12019 = vmatprep.subr.mxu0 %v11986_v18 }
0x12f3   :  { %12020 = vmatpush3.msra.mxu0 %v11986_v18 }
0x12f4   :  { %12021 = vmatprep.subr.mxu0 %v4892_v62 }
0x12f5   :  { %12022 = vmatpush3.msra.mxu0 %v4892_v62  ;;  %v951_v62 = vld [vmem:[%s17441_s24 + $0x10] sm:$0xff] }
0x12f6   :  { %12023 = vmatprep.subr.mxu0 %v11983_v22 }
0x12f7   :  { %12024 = vmatpush3.msra.mxu0 %v11983_v22 }
0x12f8   :  { %12025 = vmatprep.subr.mxu0 %v4882_v9 }
0x12f9   :  { %12026 = vmatpush3.msra.mxu0 %v4882_v9 }
0x12fa   :  { %12028 = vmatmul.mubr.msk.f32.vlgmr.msra.gmra.mxu0 %vm17442_vm8, %v4797_v4  ;;  %v957_v4 = vld [vmem:[#allocation75] sm:$0xff]  ;;  %vm17072_vm8 = vcmask 523264  }
0x12fb   :  { %12030 = vmatprep.mubr.msk.f32.mxu0 %vm17443_vm7, %v4798_v57  ;;  %v5333_v57 = vpop.permute.xlu1 %5332  ;;  %vm17453_vm7 = vcmask 64512  }
0x12fc   :  { %vm17455_vm1 = vmmov %vm17453_vm7 }
0x12fe   :  { %12031 = vmatmul.mubr.msk.f32.gmra.mxu0 %vm17444_vm9, %v4799_v34  ;;  %v5328_v34 = vpop.permute.xlu0 %5327  ;;  %vm17454_vm9 = vmmov %vm17453_vm7 }
0x13ba   :  { %v12029_v30 = vpop.f32.mrf.mxu0 }
0x13bb   :  { %v15820_v9 = vadd.f32 %v12029_v30, %v5079_v59  ;;  %v5343_v30 = vpop.permute.xlu1 %5342 }
0x13bc   :  { %v5169_v20 = vpop.f32.mrf.mxu0 }
0x13bd   :  { %v15824_v18 = vadd.f32 %v5169_v20, %v5074_v58  ;;  %v5338_v20 = vpop.permute.xlu0 %5337 }
0x13be   :  { %v12032_v15 = vpop.f32.mrf.mxu0 }
0x13bf   :  { %v15814_v23 = vadd.f32 %v12032_v15, %v5089_v28 }
0x13c0   :  { %v5179_v19 = vpop.f32.mrf.mxu0 }
0x13c1   :  { %v15816_v22 = vadd.f32 %v5179_v19, %v5084_v26  ;;  %12033 = vmatprep.subr.mxu1 %v15814_v23  ;;  %v5353_v19 = vpop.permute.xlu1 %5352 }
0x13c2   :  { %12034 = vmatpush3.msra.mxu1 %v15814_v23 }
0x13c3   :  { %12035 = vmatprep.subr.mxu1 %v15816_v22 }
0x13c4   :  { %12036 = vmatpush3.msra.mxu1 %v15816_v22 }
0x13c5   :  { %12037 = vmatprep.subr.mxu1 %v15820_v9  ;;  %v5363_v41 = vpop.permute.xlu1 %5362 }
0x13c6   :  { %12038 = vmatpush3.msra.mxu1 %v15820_v9 }
0x13c7   :  { %12039 = vmatprep.subr.mxu1 %v15824_v18 }
0x13c8   :  { %12040 = vmatpush3.msra.mxu1 %v15824_v18 }
0x13c9   :  { %12042 = vmatmul.mubr.msk.f32.vlgmr.msra.gmra.mxu1 %vm17446_vm0, %v950_v21  ;;  %vm17456_vm0 = vmmov %vm17455_vm1 }
0x13ca   :  { %12044 = vmatprep.mubr.msk.f32.mxu1 %vm17447_vm2, %v951_v62  ;;  %v5348_v62 = vpop.permute.xlu0 %5347  ;;  %vm17457_vm2 = vmmov %vm17456_vm0 }
0x13cd   :  { %12045 = vmatmul.mubr.msk.f32.gmra.mxu1 %vm17448_vm4, %v952_v14  ;;  %vm17458_vm4 = vmmov %vm17456_vm0 }
0x13ce   :  { %12047 = vmatprep.mubr.msk.f32.mxu1 %vm17449_vm11, %v953_v39  ;;  %v5358_v31 = vpop.permute.xlu0 %5357  ;;  %vm17459_vm11 = vmmov %vm17456_vm0 }
0x13d1   :  { %12048 = vmatmul.mubr.msk.f32.gmra.mxu1 %vm17450_vm15, %v954_v46  ;;  %vm17460_vm15 = vmmov %vm17456_vm0 }
0x13d2   :  { %12050 = vmatprep.mubr.msk.f32.mxu1 %vm17451_vm3, %v955_v60 }
0x13d5   :  { %12051 = vmatmul.mubr.msk.f32.gmra.mxu1 %vm17452_vm6, %v956_v25 }
0x13d6   :  { %12069 = vmatprep.mubr.msk.f32.mxu1 %vm17072_vm8, %v957_v4  ;;  %vm17462_vm8 = vmmov %vm17459_vm11 }
0x1489   :  { %v12043_v16 = vpop.f32.mrf.mxu1 }
0x148a   :  { %v5318_v14 = vmul.f32 2.0, %v12043_v16 }
0x148b   :  { %v5278_v28 = vpop.f32.mrf.mxu1 }
0x148c   :  { %v5317_v58 = vmul.f32 2.0, %v5278_v28  ;;  %v5366_v53 = vsub.f32 %v5333_v57, %v5318_v14 }
0x148d   :  { %v12046_v26 = vpop.f32.mrf.mxu1 }
0x148e   :  { %v5320_v39 = vmul.f32 2.0, %v12046_v26  ;;  %v5365_v4 = vsub.f32 %v5328_v34, %v5317_v58 }
0x148f   :  { %v5288_v15 = vpop.f32.mrf.mxu1 }
0x1490   :  { %v5319_v60 = vmul.f32 2.0, %v5288_v15  ;;  %v5368_v48 = vsub.f32 %v5343_v30, %v5320_v39  ;;  %v5373_v16 = vsel %vm17454_vm9, %v5365_v4, inf }
0x1491   :  { %v12049_v59 = vpop.f32.mrf.mxu1 }
0x1492   :  { %v5322_v21 = vmul.f32 2.0, %v12049_v59  ;;  %v5367_v38 = vsub.f32 %v5338_v20, %v5319_v60  ;;  %v5376_v57 = vsel %vm17458_vm4, %v5368_v48, inf }
0x1493   :  { %v5298_v46 = vpop.f32.mrf.mxu1 }
0x1494   :  { %v5321_v25 = vmul.f32 2.0, %v5298_v46  ;;  %v5370_v55 = vsub.f32 %v5353_v19, %v5322_v21  ;;  %v5375_v30 = vsel %vm17459_vm11, %v5367_v38, inf }
0x1495   :  { %v12052_v27 = vpop.f32.mrf.mxu1 }
0x1496   :  { %v5369_v51 = vsub.f32 %v5348_v62, %v5321_v25  ;;  %v5324_v45 = vmul.f32 2.0, %v12052_v27  ;;  %v5379_v26 = vsel %vm17455_vm1, %v5370_v55, inf  ;;  %v5374_v27 = vsel %vm17457_vm2, %v5366_v53, inf }
0x1497   :  { %v5308_v43 = vpop.f32.mrf.mxu1  ;;  %v5380_v58 = vmin.f32 %v5374_v27, %v5379_v26  ;;  %v5396_v25 = vadd.s32 48, %v14612_v2  ;;  %v15858_v26 = vcvt.s32.f32 %v14612_v2  ;;  %v15864_v27 = vcvt.s32.f32 %v14627_v6 }
0x1498   :  { %v5377_v35 = vsel %vm17453_vm7, %v5369_v51, inf  ;;  %v5372_v28 = vsub.f32 %v5363_v41, %v5324_v45  ;;  %v5323_v59 = vmul.f32 2.0, %v5308_v43 }
0x1499   :  { %v5378_v19 = vmin.f32 %v5373_v16, %v5377_v35  ;;  %v5395_v35 = vadd.s32 40, %v14612_v2 }
0x149a   :  { %v5383_v15 = vsel %vm17456_vm0, %v5372_v28, inf  ;;  %v5371_v34 = vsub.f32 %v5358_v31, %v5323_v59  ;;  %v5394_v31 = vadd.s32 32, %v14612_v2  ;;  %v5397_v59 = vadd.s32 56, %v14612_v2 }
0x149b   :  { %v5384_v41 = vmin.f32 %v5376_v57, %v5383_v15  ;;  %v5385_v45 = vmin.f32 %v5378_v19, %v5380_v58  ;;  %v15861_v19 = vcvt.s32.f32 %v14630_v7  ;;  %v15867_v57 = vcvt.s32.f32 %v14623_v5 }
0x149c   :  { %v5381_v20 = vsel %vm17460_vm15, %v5371_v34, inf  ;;  %v15873_v58 = vcvt.s32.f32 %v5396_v25  ;;  %vm17461_vm15 = vmmov %vm17459_vm11 }
0x149d   :  { %v5382_v43 = vmin.f32 %v5375_v30, %v5381_v20  ;;  %v15869_v30 = vcvt.s32.f32 %v5394_v31  ;;  %v15871_v20 = vcvt.s32.f32 %v5395_v35 }
0x149f   :  { %v5386_v21 = vmin.f32 %v5382_v43, %v5384_v41  ;;  %v15875_v41 = vcvt.s32.f32 %v5397_v59 }
0x14a1   :  { %v5387_v62 = vmin.f32 %v5385_v45, %v5386_v21 }
0x14a3   :  { %v5388_v14 = vrot.slane %v5387_v62, 4 }
0x14a5   :  { %v5389_v39 = vmin.f32 %v5387_v62, %v5388_v14 }
0x14a7   :  { %v5390_v46 = vrot.slane %v5389_v39, 2 }
0x14a9   :  { %v5391_v60 = vmin.f32 %v5389_v39, %v5390_v46 }
0x14ab   :  { %v5392_v16 = vrot.slane %v5391_v60, 1 }
0x14ad   :  { %v5393_v15 = vmin.f32 %v5391_v60, %v5392_v16 }
0x14af   :  { %vm5406_vm3 = vcmp.le.f32.partialorder %v5365_v4, %v5393_v15  ;;  %vm5407_vm6 = vcmp.le.f32.partialorder %v5366_v53, %v5393_v15  ;;  %vm5408_vm7 = vcmp.le.f32.partialorder %v5367_v38, %v5393_v15  ;;  %vm5409_vm9 = vcmp.le.f32.partialorder %v5368_v48, %v5393_v15 }
0x14b0   :  { %vm5410_vm1 = vcmp.le.f32.partialorder %v5369_v51, %v5393_v15  ;;  %vm5411_vm0 = vcmp.le.f32.partialorder %v5370_v55, %v5393_v15  ;;  %vm5412_vm2 = vcmp.le.f32.partialorder %v5371_v34, %v5393_v15  ;;  %vm5413_vm4 = vcmp.le.f32.partialorder %v5372_v28, %v5393_v15 }
0x14b1   :  { %v5414_v6 = vsel %vm5406_vm3, %v15858_v26, 64.0  ;;  %v5415_v5 = vsel %vm5407_vm6, %v15861_v19, 64.0  ;;  %v5416_v43 = vsel %vm5408_vm7, %v15864_v27, 64.0  ;;  %v5417_v45 = vsel %vm5409_vm9, %v15867_v57, 64.0  ;;  %vm17463_vm3 = vmmov %vm17462_vm8 }
0x14b2   :  { %v5418_v21 = vsel %vm5410_vm1, %v15869_v30, 64.0  ;;  %v5419_v62 = vsel %vm5411_vm0, %v15871_v20, 64.0  ;;  %v5420_v53 = vsel %vm5412_vm2, %v15873_v58, 64.0  ;;  %v5421_v38 = vsel %vm5413_vm4, %v15875_v41, 64.0  ;;  %vm17464_vm6 = vmmov %vm17463_vm3 }
0x14b3   :  { %v5422_v48 = vsel %vm17459_vm11, %v5414_v6, inf  ;;  %v5423_v51 = vsel %vm17461_vm15, %v5415_v5, inf  ;;  %v5424_v55 = vsel %vm17462_vm8, %v5416_v43, inf  ;;  %v5425_v4 = vsel %vm17463_vm3, %v5417_v45, inf  ;;  %vm17465_vm7 = vmmov %vm17463_vm3 }
0x14b4   :  { %v5426_v28 = vsel %vm17464_vm6, %v5418_v21, inf  ;;  %v5428_v34 = vsel %vm17465_vm7, %v5419_v62, inf  ;;  %vm17466_vm9 = vmmov %vm17463_vm3  ;;  %v17468_v21 = vmov 1.0   ;;  %v17469_v62 = vmov 0.0  }
0x14b5   :  { %v5430_v14 = vsel %vm17466_vm9, %v5420_v53, inf  ;;  %vm17467_vm1 = vmmov %vm17463_vm3  ;;  %v5427_v46 = vmin.f32 %v5422_v48, %v5426_v28  ;;  %v5429_v60 = vmin.f32 %v5423_v51, %v5428_v34 }
0x14b6   :  { %v5432_v39 = vsel %vm17467_vm1, %v5421_v38, inf  ;;  %v5431_v31 = vmin.f32 %v5424_v55, %v5430_v14  ;;  %vm17470_vm11 = vmmov %vm17467_vm1 }
0x14b7   :  { %v5433_v35 = vmin.f32 %v5425_v4, %v5432_v39  ;;  %v5434_v25 = vmin.f32 %v5427_v46, %v5429_v60  ;;  %vm17471_vm15 = vmmov %vm17467_vm1  ;;  %v958_v46 = vld [vmem:[#allocation75 + $0x8] sm:$0xff] }
0x14b9   :  { %v5435_v59 = vmin.f32 %v5431_v31, %v5433_v35  ;;  %v959_v31 = vld [vmem:[#allocation75 + $0x10] sm:$0xff] }
0x14bb   :  { %v5436_v16 = vmin.f32 %v5434_v25, %v5435_v59  ;;  %v960_v25 = vld [vmem:[#allocation75 + $0x18] sm:$0xff] }
0x14bd   :  { %v5437_v15 = vrot.slane %v5436_v16, 4 }
0x14bf   :  { %v5438_v6 = vmin.f32 %v5436_v16, %v5437_v15 }
0x14c1   :  { %v5439_v5 = vrot.slane %v5438_v6, 2 }
0x14c3   :  { %v5440_v43 = vmin.f32 %v5438_v6, %v5439_v5  ;;  %v969_v5 = vld [vmem:[#allocation78] sm:$0xff] }
0x14c5   :  { %v5441_v45 = vrot.slane %v5440_v43, 1 }
0x14c7   :  { %v5442_v29 = vmin.f32 %v5440_v43, %v5441_v45 }
0x14c9   :  { %vm5450_vm8 = vcmp.eq.f32.partialorder %v15875_v41, %v5442_v29  ;;  %vm5444_vm0 = vcmp.eq.f32.partialorder %v15861_v19, %v5442_v29  ;;  %vm5443_vm2 = vcmp.eq.f32.partialorder %v15858_v26, %v5442_v29  ;;  %vm5449_vm4 = vcmp.eq.f32.partialorder %v15873_v58, %v5442_v29 }
0x14ca   :  { %12053 = vmatprep.subr.msk.mxu1 %vm5450_vm8, %v17468_v21  ;;  %v5452_v53 = vsel %vm5444_vm0, 1.0, %v17469_v62  ;;  %v5451_v38 = vsel %vm5443_vm2, 1.0, %v17469_v62  ;;  %vm5445_vm3 = vcmp.eq.f32.partialorder %v15864_v27, %v5442_v29  ;;  %vm5448_vm6 = vcmp.eq.f32.partialorder %v15871_v20, %v5442_v29 }
0x14cb   :  { %12054 = vmatpush3.msk.msra.mxu1 %vm5450_vm8, %v17468_v21  ;;  %v5587_v48 = vsel %vm17470_vm11, %v5452_v53, 0.0  ;;  %v5584_v51 = vsel %vm17471_vm15, %v5451_v38, 0.0  ;;  %v5453_v55 = vsel %vm5445_vm3, 1.0, %v17469_v62  ;;  %vm5446_vm7 = vcmp.eq.f32.partialorder %v15867_v57, %v5442_v29  ;;  %vm17472_vm11 = vmmov %vm17467_vm1 }
0x14cc   :  { %12055 = vmatprep.subr.msk.mxu1 %vm5449_vm4, %v17468_v21  ;;  %5588 = vadd.xlane.f32.xlu1 %v5587_v48  ;;  %vm5447_vm9 = vcmp.eq.f32.partialorder %v15869_v30, %v5442_v29  ;;  %v5590_v4 = vsel %vm17467_vm1, %v5453_v55, 0.0  ;;  %v5454_v28 = vsel %vm5446_vm7, 1.0, %v17469_v62  ;;  %vm17473_vm15 = vmmov %vm17467_vm1  ;;  %v5456_v60 = vsel %vm5448_vm6, 1.0, %v17469_v62 }
0x14cd   :  { %5585 = vadd.xlane.f32.xlu0 %v5584_v51  ;;  %12056 = vmatpush3.msk.msra.mxu1 %vm5449_vm4, %v17468_v21  ;;  %v5593_v34 = vsel %vm17472_vm11, %v5454_v28, 0.0  ;;  %v5455_v14 = vsel %vm5447_vm9, 1.0, %v17469_v62  ;;  %v5457_v59 = vsel %vm5449_vm4, 1.0, %v17469_v62  ;;  %v5458_v15 = vsel %vm5450_vm8, 1.0, %v17469_v62 }
0x14ce   :  { %12057 = vmatprep.subr.msk.mxu1 %vm5448_vm6, %v17468_v21  ;;  %v5596_v39 = vsel %vm17473_vm15, %v5455_v14, 0.0 }
0x14cf   :  { %12058 = vmatpush3.msk.msra.mxu1 %vm5448_vm6, %v17468_v21 }
0x14d0   :  { %12059 = vmatprep.subr.msk.mxu1 %vm5447_vm9, %v17468_v21  ;;  %5591 = vadd.xlane.f32.xlu1 %v5590_v4 }
0x14d1   :  { %12060 = vmatpush3.msk.msra.mxu1 %vm5447_vm9, %v17468_v21 }
0x14d2   :  { %12061 = vmatprep.subr.msk.mxu1 %vm5446_vm7, %v17468_v21 }
0x14d3   :  { %12062 = vmatpush3.msk.msra.mxu1 %vm5446_vm7, %v17468_v21 }
0x14d4   :  { %12063 = vmatprep.subr.msk.mxu1 %vm5445_vm3, %v17468_v21  ;;  %5594 = vadd.xlane.f32.xlu1 %v5593_v34 }
0x14d5   :  { %12064 = vmatpush3.msk.msra.mxu1 %vm5445_vm3, %v17468_v21  ;;  %vm17474_vm3 = vcmask 523264  }
0x14d6   :  { %12065 = vmatprep.subr.msk.mxu1 %vm5444_vm0, %v17468_v21  ;;  %vm17476_vm7 = vmmov %vm17474_vm3 }
0x14d7   :  { %12066 = vmatpush3.msk.msra.mxu1 %vm5444_vm0, %v17468_v21  ;;  %vm17475_vm0 = vmmov %vm17467_vm1  ;;  %vm17480_vm1 = vcmask 261120  }
0x14d8   :  { %5597 = vadd.xlane.f32.xlu1 %v5596_v39  ;;  %12067 = vmatprep.subr.msk.mxu1 %vm5443_vm2, %v17468_v21  ;;  %v5599_v35 = vsel %vm17475_vm0, %v5456_v60, 0.0  ;;  %vm17478_vm6 = vmmov %vm17475_vm0  ;;  %v970_v39 = vld [vmem:[#allocation78 + $0x8] sm:$0xff]  ;;  %v971_v60 = vld [vmem:[#allocation78 + $0x10] sm:$0xff] }
0x14d9   :  { %12068 = vmatpush3.msk.msra.mxu1 %vm5443_vm2, %v17468_v21  ;;  %vm17477_vm2 = vmmov %vm17474_vm3  ;;  %v5602_v16 = vsel %vm17478_vm6, %v5457_v59, 0.0  ;;  %12083 = vmatprep.mubr.msk.f32.mxu0 %vm17480_vm1, %v969_v5 }
0x14da   :  { %12070 = vmatmul.mubr.msk.f32.vlgmr.msra.gmra.mxu1 %vm17474_vm3, %v958_v46  ;;  %12125 = vmatprep.subr.msk.mxu1 %vm15651_vm14, %v17468_v21  ;;  %vm17479_vm9 = vmmov %vm17475_vm0 }
0x14db   :  { %12072 = vmatprep.mubr.msk.f32.mxu1 %vm17476_vm7, %v959_v31  ;;  %12126 = vmatpush3.msk.msra.mxu1 %vm15651_vm14, %v17468_v21  ;;  %v5605_v6 = vsel %vm17479_vm9, %v5458_v15, 0.0  ;;  %vm17481_vm8 = vmmov %vm17475_vm0 }
0x14dc   :  { %5600 = vadd.xlane.f32.xlu1 %v5599_v35  ;;  %vm17482_vm4 = vmmov %vm17475_vm0 }
0x14dd   :  { %vm17483_vm11 = vmmov %vm17475_vm0 }
0x14de   :  { %12073 = vmatmul.mubr.msk.f32.gmra.mxu1 %vm17477_vm2, %v960_v25  ;;  %vm17484_vm15 = vmmov %vm17475_vm0  ;;  %v972_v25 = vld [vmem:[#allocation78 + $0x18] sm:$0xff] }
0x14df   :  { %vm17485_vm3 = vmmov %vm17480_vm1 }
0x14e0   :  { %5603 = vadd.xlane.f32.xlu1 %v5602_v16  ;;  %vm17486_vm0 = vmmov %vm17480_vm1  ;;  %v973_v16 = vld [vmem:[#allocation78 + $0x20] sm:$0xff] }
0x14e1   :  { %vm17487_vm7 = vmmov %vm17486_vm0 }
0x14e2   :  { %vm17488_vm2 = vmmov %vm17486_vm0 }
0x14e3   :  { %vm17489_vm6 = vmmov %vm17486_vm0 }
0x14e4   :  { %5606 = vadd.xlane.f32.xlu1 %v5605_v6  ;;  %v974_v6 = vld [vmem:[#allocation78 + $0x28] sm:$0xff]  ;;  %vm17490_vm9 = vmmov %vm17486_vm0 }
0x14e5   :  { %vm17491_vm1 = vmmov %vm17486_vm0 }
0x159a   :  { %v15979_v43 = vpop.f32.mrf.mxu1 }
0x159b   :  { %v15983_v45 = vsub.f32 %v15820_v9, %v15979_v43 }
0x159c   :  { %v15985_v53 = vpop.f32.mrf.mxu1 }
0x159d   :  { %v15989_v38 = vsub.f32 %v15824_v18, %v15985_v53  ;;  %v5562_v48 = vmul.f32 %v15983_v45, %v15983_v45 }
0x159e   :  { %v15991_v29 = vpop.f32.mrf.mxu1 }
0x159f   :  { %v5561_v51 = vmul.f32 %v15989_v38, %v15989_v38  ;;  %v15999_v55 = vsub.f32 %v15814_v23, %v15991_v29  ;;  %v5566_v28 = vsel %vm17482_vm4, %v5562_v48, 0.0  ;;  %v975_v48 = vld [vmem:[#allocation78 + $0x30] sm:$0xff] }
0x15a0   :  { %v16001_v9 = vpop.f32.mrf.mxu1 }
0x15a1   :  { %v5565_v4 = vsel %vm17481_vm8, %v5561_v51, 0.0  ;;  %v16006_v18 = vsub.f32 %v15816_v22, %v16001_v9  ;;  %12075 = vmatprep.subr.mxu0 %v15999_v55  ;;  %v5564_v34 = vmul.f32 %v15999_v55, %v15999_v55  ;;  %vm17492_vm8 = vmmov %vm17482_vm4  ;;  %vm17493_vm4 = vcmask 523264  }
0x15a2   :  { %12076 = vmatpush3.msra.mxu0 %v15999_v55  ;;  %v5567_v14 = vadd.f32 %v5566_v28, %v5565_v4  ;;  %v976_v4 = vld [vmem:[#allocation78 + $0x38] sm:$0xff] }
0x15a3   :  { %v5563_v23 = vmul.f32 %v16006_v18, %v16006_v18  ;;  %12077 = vmatprep.subr.mxu0 %v16006_v18  ;;  %v5570_v31 = vsel %vm17484_vm15, %v5564_v34, 0.0  ;;  %vm17495_vm15 = vmmov %vm17492_vm8 }
0x15a4   :  { %12078 = vmatpush3.msra.mxu0 %v16006_v18 }
0x15a5   :  { %v5568_v22 = vsel %vm17483_vm11, %v5563_v23, 0.0  ;;  %12079 = vmatprep.subr.mxu0 %v15983_v45  ;;  %vm17494_vm11 = vmmov %vm17492_vm8 }
0x15a6   :  { %12080 = vmatpush3.msra.mxu0 %v15983_v45  ;;  %v5569_v46 = vadd.f32 %v5568_v22, %v5567_v14  ;;  %v9897_v14 = vld [vmem:[#allocation73] sm:$0xff]  ;;  %v977_v22 = vld [vmem:[#allocation79] sm:$0xff] }
0x15a7   :  { %12081 = vmatprep.subr.mxu0 %v15989_v38 }
0x15a8   :  { %12082 = vmatpush3.msra.mxu0 %v15989_v38  ;;  %v5571_v35 = vadd.f32 %v5570_v31, %v5569_v46  ;;  %v5810_v46 = vpop.permute.xlu0 %5809 }
0x15a9   :  { %12084 = vmatmul.mubr.msk.f32.vlgmr.msra.gmra.mxu0 %vm17485_vm3, %v970_v39  ;;  %v5815_v39 = vpop.permute.xlu1 %5814  ;;  %vm17496_vm3 = vmmov %vm17492_vm8 }
0x15aa   :  { %12086 = vmatprep.mubr.msk.f32.mxu0 %vm17486_vm0, %v971_v60  ;;  %v5572_v59 = vrot.slane %v5571_v35, 4  ;;  %vm17497_vm0 = vmmov %vm17496_vm3 }
0x15ac   :  { %v5573_v15 = vadd.f32 %v5572_v59, %v5571_v35 }
0x15ad   :  { %12087 = vmatmul.mubr.msk.f32.gmra.mxu0 %vm17487_vm7, %v972_v25  ;;  %v5825_v31 = vpop.permute.xlu1 %5824  ;;  %v5820_v25 = vpop.permute.xlu0 %5819  ;;  %vm17498_vm7 = vmmov %vm17497_vm0 }
0x15ae   :  { %12089 = vmatprep.mubr.msk.f32.mxu0 %vm17488_vm2, %v973_v16  ;;  %v5574_v5 = vrot.slane %v5573_v15, 2  ;;  %vm17499_vm2 = vmmov %vm17497_vm0 }
0x15b0   :  { %v5575_v51 = vadd.f32 %v5574_v5, %v5573_v15 }
0x15b1   :  { %12090 = vmatmul.mubr.msk.f32.gmra.mxu0 %vm17489_vm6, %v974_v6  ;;  %v5835_v15 = vpop.permute.xlu1 %5834  ;;  %vm17500_vm6 = vmmov %vm17497_vm0 }
0x15b2   :  { %12092 = vmatprep.mubr.msk.f32.mxu0 %vm17490_vm9, %v975_v48  ;;  %v5576_v28 = vrot.slane %v5575_v51, 1  ;;  %vm17501_vm9 = vmmov %vm17497_vm0 }
0x15b4   :  { %v5577_v34 = vadd.f32 %v5576_v28, %v5575_v51  ;;  %v5830_v51 = vpop.permute.xlu0 %5829 }
0x15b5   :  { %12093 = vmatmul.mubr.msk.f32.gmra.mxu0 %vm17491_vm1, %v976_v4  ;;  %v5845_v7 = vpop.permute.xlu1 %5844 }
0x15b6   :  { %v5578_v23 = vsel %vm17492_vm8, %v5577_v34, 0.0  ;;  %12111 = vmatprep.mubr.msk.f32.mxu0 %vm17493_vm4, %v977_v22 }
0x15b7   :  { %5579 = vadd.xlane.f32.xlu1 %v5578_v23 }
0x15b8   :  { %v5840_v13 = vpop.permute.xlu0 %5839 }
0x15c8   :  { %10167 = vperm.xlu1 %12836, %v9897_v14  }
0x1669   :  { %v12085_v60 = vpop.f32.mrf.mxu0 }
0x166a   :  { %v5800_v4 = vmul.f32 2.0, %v12085_v60 }
0x166b   :  { %v5760_v35 = vpop.f32.mrf.mxu0 }
0x166c   :  { %v5799_v5 = vmul.f32 2.0, %v5760_v35  ;;  %v5848_v8 = vsub.f32 %v5815_v39, %v5800_v4 }
0x166d   :  { %v12088_v59 = vpop.f32.mrf.mxu0 }
0x166e   :  { %v5802_v28 = vmul.f32 2.0, %v12088_v59  ;;  %v5847_v22 = vsub.f32 %v5810_v46, %v5799_v5 }
0x166f   :  { %v5770_v16 = vpop.f32.mrf.mxu0 }
0x1670   :  { %v5801_v23 = vmul.f32 2.0, %v5770_v16  ;;  %v5850_v54 = vsub.f32 %v5825_v31, %v5802_v28  ;;  %v5855_v60 = vsel %vm17495_vm15, %v5847_v22, inf }
0x1671   :  { %v12091_v6 = vpop.f32.mrf.mxu0 }
0x1672   :  { %v5804_v48 = vmul.f32 2.0, %v12091_v6  ;;  %v5849_v37 = vsub.f32 %v5820_v25, %v5801_v23  ;;  %v5858_v39 = vsel %vm17499_vm2, %v5850_v54, inf }
0x1673   :  { %v5780_v34 = vpop.f32.mrf.mxu0 }
0x1674   :  { %v5803_v14 = vmul.f32 2.0, %v5780_v34  ;;  %v5852_v12 = vsub.f32 %v5835_v15, %v5804_v48  ;;  %v5857_v31 = vsel %vm17500_vm6, %v5849_v37, inf  ;;  %vm17502_vm6 = vmmov %vm17499_vm2 }
0x1675   :  { %v12094_v24 = vpop.f32.mrf.mxu0 }
0x1676   :  { %v5851_v32 = vsub.f32 %v5830_v51, %v5803_v14  ;;  %v5806_v17 = vmul.f32 2.0, %v12094_v24  ;;  %v5861_v59 = vsel %vm17496_vm3, %v5852_v12, inf  ;;  %v5856_v24 = vsel %vm17498_vm7, %v5848_v8, inf }
0x1677   :  { %v5790_v52 = vpop.f32.mrf.mxu0  ;;  %v5862_v5 = vmin.f32 %v5856_v24, %v5861_v59 }
0x1678   :  { %v5859_v11 = vsel %vm17494_vm11, %v5851_v32, inf  ;;  %v5854_v35 = vsub.f32 %v5845_v7, %v5806_v17  ;;  %v5805_v6 = vmul.f32 2.0, %v5790_v52 }
0x1679   :  { %v5860_v15 = vmin.f32 %v5855_v60, %v5859_v11 }
0x167a   :  { %v5865_v16 = vsel %vm17497_vm0, %v5854_v35, inf  ;;  %v5853_v46 = vsub.f32 %v5840_v13, %v5805_v6 }
0x167b   :  { %v5866_v7 = vmin.f32 %v5858_v39, %v5865_v16  ;;  %v5867_v52 = vmin.f32 %v5860_v15, %v5862_v5 }
0x167c   :  { %v5863_v25 = vsel %vm17501_vm9, %v5853_v46, inf  ;;  %vm17503_vm9 = vmmov %vm17499_vm2 }
0x167d   :  { %v5864_v17 = vmin.f32 %v5857_v31, %v5863_v25 }
0x167f   :  { %v5868_v48 = vmin.f32 %v5864_v17, %v5866_v7 }
0x1681   :  { %v5869_v51 = vmin.f32 %v5867_v52, %v5868_v48 }
0x1683   :  { %v5870_v4 = vrot.slane %v5869_v51, 4 }
0x1685   :  { %v5871_v28 = vmin.f32 %v5869_v51, %v5870_v4 }
0x1687   :  { %v5872_v34 = vrot.slane %v5871_v28, 2 }
0x1689   :  { %v5873_v23 = vmin.f32 %v5871_v28, %v5872_v34 }
0x168b   :  { %v5874_v13 = vrot.slane %v5873_v23, 1 }
0x168d   :  { %v5875_v11 = vmin.f32 %v5873_v23, %v5874_v13 }
0x168f   :  { %vm5876_vm1 = vcmp.le.f32.partialorder %v5847_v22, %v5875_v11  ;;  %vm5877_vm8 = vcmp.le.f32.partialorder %v5848_v8, %v5875_v11  ;;  %vm5878_vm4 = vcmp.le.f32.partialorder %v5849_v37, %v5875_v11  ;;  %vm5879_vm11 = vcmp.le.f32.partialorder %v5850_v54, %v5875_v11 }
0x1690   :  { %vm5880_vm15 = vcmp.le.f32.partialorder %v5851_v32, %v5875_v11  ;;  %vm5881_vm3 = vcmp.le.f32.partialorder %v5852_v12, %v5875_v11  ;;  %vm5882_vm0 = vcmp.le.f32.partialorder %v5853_v46, %v5875_v11  ;;  %vm5883_vm7 = vcmp.le.f32.partialorder %v5854_v35, %v5875_v11 }
0x1691   :  { %v5884_v14 = vsel %vm5876_vm1, %v15858_v26, 64.0  ;;  %v5885_v6 = vsel %vm5877_vm8, %v15861_v19, 64.0  ;;  %v5886_v60 = vsel %vm5878_vm4, %v15864_v27, 64.0  ;;  %v5887_v59 = vsel %vm5879_vm11, %v15867_v57, 64.0  ;;  %vm17504_vm1 = vmmov %vm17499_vm2 }
0x1692   :  { %v5888_v16 = vsel %vm5880_vm15, %v15869_v30, 64.0  ;;  %v5889_v15 = vsel %vm5881_vm3, %v15871_v20, 64.0  ;;  %v5890_v8 = vsel %vm5882_vm0, %v15873_v58, 64.0  ;;  %v5891_v54 = vsel %vm5883_vm7, %v15875_v41, 64.0  ;;  %vm17505_vm8 = vmmov %vm17504_vm1 }
0x1693   :  { %v5892_v12 = vsel %vm17499_vm2, %v5884_v14, inf  ;;  %v5893_v32 = vsel %vm17502_vm6, %v5885_v6, inf  ;;  %v5894_v37 = vsel %vm17503_vm9, %v5886_v60, inf  ;;  %v5895_v22 = vsel %vm17504_vm1, %v5887_v59, inf  ;;  %vm17506_vm4 = vmmov %vm17504_vm1 }
0x1694   :  { %v5896_v35 = vsel %vm17505_vm8, %v5888_v16, inf  ;;  %v5898_v46 = vsel %vm17506_vm4, %v5889_v15, inf  ;;  %vm17507_vm11 = vmmov %vm17504_vm1 }
0x1695   :  { %v5900_v24 = vsel %vm17507_vm11, %v5890_v8, inf  ;;  %vm17508_vm15 = vmmov %vm17504_vm1  ;;  %v5897_v31 = vmin.f32 %v5892_v12, %v5896_v35  ;;  %v5899_v25 = vmin.f32 %v5893_v32, %v5898_v46  ;;  %v978_v8 = vld [vmem:[#allocation79 + $0x8] sm:$0xff]  ;;  %v980_v12 = vld [vmem:[#allocation79 + $0x18] sm:$0xff]  ;;  %v16150_v35 = vpop.permute.xlu0 %6416 }
0x1696   :  { %v5902_v39 = vsel %vm17508_vm15, %v5891_v54, inf  ;;  %v5901_v5 = vmin.f32 %v5894_v37, %v5900_v24  ;;  %vm17509_vm6 = vmmov %vm17504_vm1  ;;  %v979_v54 = vld [vmem:[#allocation79 + $0x10] sm:$0xff]  ;;  %v16154_v24 = vpop.permute.xlu1 %6421 }
0x1697   :  { %v5903_v7 = vmin.f32 %v5895_v22, %v5902_v39  ;;  %v5904_v17 = vmin.f32 %v5897_v31, %v5899_v25  ;;  %vm17510_vm15 = vmmov %vm17506_vm4 }
0x1699   :  { %v5905_v52 = vmin.f32 %v5901_v5, %v5903_v7  ;;  %v16152_v46 = vpop.permute.xlu0 %6426 }
0x169b   :  { %v5906_v48 = vmin.f32 %v5904_v17, %v5905_v52 }
0x169d   :  { %v5907_v51 = vrot.slane %v5906_v48, 4  ;;  %v16156_v39 = vpop.permute.xlu0 %6839 }
0x169f   :  { %v5908_v4 = vmin.f32 %v5906_v48, %v5907_v51 }
0x16a1   :  { %v5909_v28 = vrot.slane %v5908_v4, 2  ;;  %v16160_v31 = vpop.permute.xlu0 %6829 }
0x16a3   :  { %v5910_v34 = vmin.f32 %v5908_v4, %v5909_v28 }
0x16a5   :  { %v5911_v23 = vrot.slane %v5910_v34, 1  ;;  %v16164_v5 = vpop.permute.xlu0 %6945 }
0x16a7   :  { %v5912_v13 = vmin.f32 %v5910_v34, %v5911_v23 }
0x16a9   :  { %vm5920_vm3 = vcmp.eq.f32.partialorder %v15875_v41, %v5912_v13  ;;  %vm5913_vm0 = vcmp.eq.f32.partialorder %v15858_v26, %v5912_v13  ;;  %vm5914_vm7 = vcmp.eq.f32.partialorder %v15861_v19, %v5912_v13  ;;  %vm5919_vm2 = vcmp.eq.f32.partialorder %v15873_v58, %v5912_v13  ;;  %v16158_v58 = vpop.permute.xlu1 %6431  ;;  %v16168_v7 = vpop.permute.xlu0 %6955 }
0x16aa   :  { %12095 = vmatprep.subr.msk.mxu0 %vm5920_vm3, %v17468_v21  ;;  %v5921_v11 = vsel %vm5913_vm0, 1.0, %v17469_v62  ;;  %v5922_v6 = vsel %vm5914_vm7, 1.0, %v17469_v62  ;;  %vm5918_vm9 = vcmp.eq.f32.partialorder %v15871_v20, %v5912_v13  ;;  %vm5915_vm1 = vcmp.eq.f32.partialorder %v15864_v27, %v5912_v13 }
0x16ab   :  { %12096 = vmatpush3.msk.msra.mxu0 %vm5920_vm3, %v17468_v21  ;;  %v6052_v14 = vsel %vm17509_vm6, %v5921_v11, 0.0  ;;  %vm5917_vm8 = vcmp.eq.f32.partialorder %v15869_v30, %v5912_v13  ;;  %v6055_v60 = vsel %vm17506_vm4, %v5922_v6, 0.0  ;;  %v5923_v59 = vsel %vm5915_vm1, 1.0, %v17469_v62  ;;  %vm17511_vm6 = vmmov %vm17506_vm4 }
0x16ac   :  { %12097 = vmatprep.subr.msk.mxu0 %vm5919_vm2, %v17468_v21  ;;  %6053 = vadd.xlane.f32.xlu0 %v6052_v14  ;;  %vm5916_vm11 = vcmp.eq.f32.partialorder %v15867_v57, %v5912_v13  ;;  %v6058_v16 = vsel %vm17510_vm15, %v5923_v59, 0.0  ;;  %v5925_v27 = vsel %vm5917_vm8, 1.0, %v17469_v62  ;;  %v5926_v26 = vsel %vm5918_vm9, 1.0, %v17469_v62 }
0x16ad   :  { %12098 = vmatpush3.msk.msra.mxu0 %vm5919_vm2, %v17468_v21  ;;  %v5924_v15 = vsel %vm5916_vm11, 1.0, %v17469_v62  ;;  %v5927_v32 = vsel %vm5919_vm2, 1.0, %v17469_v62  ;;  %v5928_v20 = vsel %vm5920_vm3, 1.0, %v17469_v62  ;;  %v16162_v25 = vpop.permute.xlu1 %6834  ;;  %v16172_v52 = vpop.permute.xlu0 %7368  ;;  %vm17541_vm3 = vmmov %vm17511_vm6 }
0x16ae   :  { %12099 = vmatprep.subr.msk.mxu0 %vm5918_vm9, %v17468_v21  ;;  %v6061_v57 = vsel %vm17511_vm6, %v5924_v15, 0.0  ;;  %vm17542_vm2 = vmmov %vm17541_vm3 }
0x16af   :  { %12100 = vmatpush3.msk.msra.mxu0 %vm5918_vm9, %v17468_v21  ;;  %vm17518_vm9 = vmmov %vm17511_vm6 }
0x16b0   :  { %12101 = vmatprep.subr.msk.mxu0 %vm5917_vm8, %v17468_v21  ;;  %6056 = vadd.xlane.f32.xlu0 %v6055_v60  ;;  %v6073_v22 = vsel %vm17518_vm9, %v5928_v20, 0.0  ;;  %vm17543_vm15 = vmmov %vm17542_vm2 }
0x16b1   :  { %12102 = vmatpush3.msk.msra.mxu0 %vm5917_vm8, %v17468_v21  ;;  %vm17516_vm8 = vmmov %vm17511_vm6  ;;  %v16166_v41 = vpop.permute.xlu1 %6824  ;;  %v16176_v51 = vpop.permute.xlu0 %7358 }
0x16b2   :  { %12103 = vmatprep.subr.msk.mxu0 %vm5916_vm11, %v17468_v21  ;;  %v6067_v30 = vsel %vm17516_vm8, %v5926_v26, 0.0 }
0x16b3   :  { %12104 = vmatpush3.msk.msra.mxu0 %vm5916_vm11, %v17468_v21  ;;  %vm17517_vm11 = vmmov %vm17511_vm6 }
0x16b4   :  { %12105 = vmatprep.subr.msk.mxu0 %vm5915_vm1, %v17468_v21  ;;  %6059 = vadd.xlane.f32.xlu0 %v6058_v16  ;;  %v6070_v37 = vsel %vm17517_vm11, %v5927_v32, 0.0  ;;  %vm17544_vm6 = vmmov %vm17542_vm2 }
0x16b5   :  { %12106 = vmatpush3.msk.msra.mxu0 %vm5915_vm1, %v17468_v21  ;;  %vm17512_vm1 = vcmask 523264   ;;  %v16170_v17 = vpop.permute.xlu1 %6950  ;;  %v16180_v28 = vpop.permute.xlu0 %7474 }
0x16b6   :  { %12107 = vmatprep.subr.msk.mxu0 %vm5914_vm7, %v17468_v21  ;;  %17519 = vst [vmem:[#allocation181_spill] sm:$0xff] %v16180_v28 }
0x16b7   :  { %12108 = vmatpush3.msk.msra.mxu0 %vm5914_vm7, %v17468_v21  ;;  %vm17513_vm7 = vmmov %vm17506_vm4 }
0x16b8   :  { %12109 = vmatprep.subr.msk.mxu0 %vm5913_vm0, %v17468_v21  ;;  %6062 = vadd.xlane.f32.xlu0 %v6061_v57  ;;  %v6064_v19 = vsel %vm17513_vm7, %v5925_v27, 0.0  ;;  %vm17514_vm4 = vmmov %vm17512_vm1 }
0x16b9   :  { %12110 = vmatpush3.msk.msra.mxu0 %vm5913_vm0, %v17468_v21  ;;  %vm17515_vm0 = vmmov %vm17512_vm1  ;;  %v16174_v48 = vpop.permute.xlu1 %6960  ;;  %v16184_v23 = vpop.permute.xlu0 %7484 }
0x16ba   :  { %12112 = vmatmul.mubr.msk.f32.vlgmr.msra.gmra.mxu0 %vm17512_vm1, %v978_v8  ;;  %12117 = vmatprep.subr.msk.mxu0 %vm15635_vm12, %v17468_v21  ;;  %17520 = vst [vmem:[#allocation182_spill] sm:$0xff] %v16184_v23  ;;  %vm17545_vm1 = vmmov %vm17542_vm2 }
0x16bb   :  { %12114 = vmatprep.mubr.msk.f32.mxu0 %vm17514_vm4, %v979_v54  ;;  %12118 = vmatpush3.msk.msra.mxu0 %vm15635_vm12, %v17468_v21  ;;  %vm17546_vm7 = vmmov %vm17545_vm1 }
0x16bc   :  { %6065 = vadd.xlane.f32.xlu0 %v6064_v19  ;;  %12133 = vmatprep.subr.msk.mxu0 %vm15672_vm10, %v17468_v21  ;;  %vm17547_vm4 = vmmov %vm17545_vm1 }
0x16bd   :  { %v16178_v4 = vpop.permute.xlu1 %7363  ;;  %v16188_v11 = vpop.permute.xlu0 %7892 }
0x16be   :  { %12115 = vmatmul.mubr.msk.f32.gmra.mxu0 %vm17515_vm0, %v980_v12  ;;  %17522 = vst [vmem:[#allocation184_spill] sm:$0xff] %v16188_v11  ;;  %vm17548_vm0 = vmmov %vm17545_vm1 }
0x16bf   :  { %vm17551_vm8 = vmmov %vm17548_vm0 }
0x16c0   :  { %6068 = vadd.xlane.f32.xlu0 %v6067_v30  ;;  %vm17552_vm11 = vmmov %vm17548_vm0 }
0x16c1   :  { %v16182_v34 = vpop.permute.xlu1 %7353  ;;  %v16192_v6 = vpop.permute.xlu0 %7902  ;;  %vm17553_vm9 = vmmov %vm17548_vm0 }
0x16c2   :  { %17524 = vst [vmem:[#allocation186_spill] sm:$0xff] %v16192_v6 }
0x16c4   :  { %6071 = vadd.xlane.f32.xlu0 %v6070_v37 }
0x16c5   :  { %v16186_v13 = vpop.permute.xlu1 %7479  ;;  %v16196_v59 = vpop.permute.xlu0 %8311 }
0x16c6   :  { %17521 = vst [vmem:[#allocation183_spill] sm:$0xff] %v16186_v13  ;;  %17526 = vst [vmem:[#allocation188_spill] sm:$0xff] %v16196_v59 }
0x16c8   :  { %6074 = vadd.xlane.f32.xlu0 %v6073_v22 }
0x16c9   :  { %v16190_v14 = vpop.permute.xlu1 %7489  ;;  %v16200_v15 = vpop.permute.xlu0 %8301 }
0x16ca   :  { %17523 = vst [vmem:[#allocation185_spill] sm:$0xff] %v16190_v14  ;;  %17528 = vst [vmem:[#allocation190_spill] sm:$0xff] %v16200_v15 }
0x16cd   :  { %v16194_v60 = vpop.permute.xlu1 %7897  ;;  %v16204_v8 = vpop.permute.xlu0 %8417 }
0x16ce   :  { %17525 = vst [vmem:[#allocation187_spill] sm:$0xff] %v16194_v60  ;;  %17530 = vst [vmem:[#allocation192_spill] sm:$0xff] %v16204_v8 }
0x16d1   :  { %v16198_v16 = vpop.permute.xlu1 %7907  ;;  %v16208_v54 = vpop.permute.xlu0 %8427 }
0x16d2   :  { %17527 = vst [vmem:[#allocation189_spill] sm:$0xff] %v16198_v16  ;;  %17532 = vst [vmem:[#allocation194_spill] sm:$0xff] %v16208_v54 }
0x16d5   :  { %v16202_v57 = vpop.permute.xlu1 %8306  ;;  %v16212_v12 = vpop.permute.xlu0 %8840 }
0x16d6   :  { %17529 = vst [vmem:[#allocation191_spill] sm:$0xff] %v16202_v57  ;;  %17534 = vst [vmem:[#allocation196_spill] sm:$0xff] %v16212_v12 }
0x16d9   :  { %v16206_v27 = vpop.permute.xlu1 %8296  ;;  %v16216_v30 = vpop.permute.xlu0 %8830 }
0x16da   :  { %17531 = vst [vmem:[#allocation193_spill] sm:$0xff] %v16206_v27  ;;  %17536 = vst [vmem:[#allocation198_spill] sm:$0xff] %v16216_v30 }
0x16dd   :  { %v16210_v19 = vpop.permute.xlu1 %8422  ;;  %v16220_v37 = vpop.permute.xlu0 %8946 }
0x16de   :  { %17533 = vst [vmem:[#allocation195_spill] sm:$0xff] %v16210_v19  ;;  %17538 = vst [vmem:[#allocation200_spill] sm:$0xff] %v16220_v37 }
0x16e1   :  { %v16214_v26 = vpop.permute.xlu1 %8432  ;;  %v16227_v27 = vpop.permute.xlu0 %8956 }
0x16e2   :  { %17535 = vst [vmem:[#allocation197_spill] sm:$0xff] %v16214_v26  ;;  %17540 = vst [vmem:[#allocation202_spill] sm:$0xff] %v16227_v27 }
0x16e5   :  { %v16218_v32 = vpop.permute.xlu1 %8835 }
0x16e6   :  { %17537 = vst [vmem:[#allocation199_spill] sm:$0xff] %v16218_v32 }
0x16e9   :  { %v16223_v8 = vpop.permute.xlu1 %8825 }
0x16ea   :  { %17539 = vst [vmem:[#allocation201_spill] sm:$0xff] %v16223_v8 }
0x177a   :  { %v12113_v20 = vpop.f32.mrf.mxu0 }
0x177b   :  { %v6027_v22 = vsub.f32 %v15983_v45, %v12113_v20  ;;  %v6134_v12 = vadd.f32 %v12113_v20, %v15979_v43 }
0x177c   :  { %v6007_v62 = vpop.f32.mrf.mxu0 }
0x177d   :  { %v6026_v54 = vsub.f32 %v15989_v38, %v6007_v62  ;;  %v6133_v19 = vadd.f32 %v6007_v62, %v15985_v53  ;;  %v6031_v30 = vmul.f32 %v6027_v22, %v6027_v22 }
0x177e   :  { %v12116_v26 = vpop.f32.mrf.mxu0 }
0x177f   :  { %v6030_v57 = vmul.f32 %v6026_v54, %v6026_v54  ;;  %v6029_v32 = vsub.f32 %v15999_v55, %v12116_v26  ;;  %12119 = vmatprep.mubr.msk.f32.mxu0 %vm17541_vm3, %v6133_v19  ;;  %12127 = vmatprep.mubr.msk.f32.mxu1 %vm17542_vm2, %v6133_v19  ;;  %v6136_v38 = vadd.f32 %v12116_v26, %v15991_v29  ;;  %v6035_v55 = vsel %vm17546_vm7, %v6031_v30, 0.0  ;;  %vm17554_vm3 = vmmov %vm17548_vm0 }
0x1780   :  { %v6017_v45 = vpop.f32.mrf.mxu0  ;;  %12120 = vmatmul.mubr.msk.f32.vlgmr.msra.gmra.mxu0 %vm17543_vm15, %v6134_v12  ;;  %12128 = vmatmul.mubr.msk.f32.vlgmr.msra.gmra.mxu1 %vm17544_vm6, %v6134_v12  ;;  %vm17555_vm2 = vmmov %vm17548_vm0  ;;  %vm17568_vm7 = vcmask 785408  }
0x1781   :  { %v6034_v62 = vsel %vm17545_vm1, %v6030_v57, 0.0  ;;  %v6028_v53 = vsub.f32 %v16006_v18, %v6017_v45  ;;  %v6135_v43 = vadd.f32 %v6017_v45, %v16001_v9  ;;  %12134 = vmatpush3.msk.msra.mxu0 %vm15672_vm10, %v17468_v21  ;;  %v6033_v54 = vmul.f32 %v6029_v32, %v6029_v32  ;;  %v16248_v18 = vpop.permute.xlu1 %8951  ;;  %v16250_v9 = vpop.permute.xlu0 %9385  ;;  %vm17556_vm15 = vmmov %vm17548_vm0 }
0x1782   :  { %12171 = vmatprep.subr.msk.mxu0 %vm15712_vm13, %v17468_v21  ;;  %17549 = vst [vmem:[#allocation203_spill] sm:$0xff] %v16248_v18  ;;  %17550 = vst [vmem:[#allocation204_spill] sm:$0xff] %v16250_v9  ;;  %v6036_v57 = vadd.f32 %v6035_v55, %v6034_v62 }
0x1783   :  { %v6032_v20 = vmul.f32 %v6028_v53, %v6028_v53  ;;  %12122 = vmatprep.mubr.msk.f32.mxu0 %vm17547_vm4, %v6135_v43  ;;  %12130 = vmatprep.mubr.msk.f32.mxu1 %vm17548_vm0, %v6135_v43  ;;  %v6039_v30 = vsel %vm17555_vm2, %v6033_v54, 0.0  ;;  %vm17557_vm6 = vmmov %vm17548_vm0  ;;  %vm10244_vm4 = vcmp.eq.s32.totalorder %v14614_v3, 0 }
0x1784   :  { %12123 = vmatmul.mubr.msk.f32.gmra.mxu0 %vm17551_vm8, %v6136_v38  ;;  %12131 = vmatmul.mubr.msk.f32.gmra.mxu1 %vm17552_vm11, %v6136_v38  ;;  %vm17560_vm1 = vmmov %vm17548_vm0 }
0x1785   :  { %v6037_v29 = vsel %vm17553_vm9, %v6032_v20, 0.0  ;;  %12135 = vmatprep.mubr.msk.f32.mxu0 %vm17554_vm3, %v6133_v19  ;;  %v16262_v22 = vpop.permute.xlu1 %8961  ;;  %v16264_v45 = vpop.permute.xlu0 %9395  ;;  %vm17569_vm8 = vmmov %vm17568_vm7 }
0x1786   :  { %v6038_v26 = vadd.f32 %v6037_v29, %v6036_v57  ;;  %17558 = vst [vmem:[#allocation205_spill] sm:$0xff] %v16262_v22  ;;  %17559 = vst [vmem:[#allocation206_spill] sm:$0xff] %v16264_v45 }
0x1787   :  { %vm17570_vm11 = vmmov %vm17568_vm7 }
0x1788   :  { %v6040_v32 = vadd.f32 %v6039_v30, %v6038_v26  ;;  %12136 = vmatmul.mubr.msk.f32.vlgmr.msra.gmra.mxu0 %vm17556_vm15, %v6134_v12  ;;  %vm17571_vm9 = vmmov %vm17568_vm7 }
0x1789   :  { %12138 = vmatprep.mubr.msk.f32.mxu0 %vm17557_vm6, %v6135_v43  ;;  %12172 = vmatpush3.msk.msra.mxu0 %vm15712_vm13, %v17468_v21  ;;  %v16270_v12 = vpop.permute.xlu1 %9390  ;;  %v16272_v43 = vpop.permute.xlu0 %9777  ;;  %vm17565_vm13 = vmmov %vm17548_vm0  ;;  %vm10246_vm0 = vcmask 8192  }
0x178a   :  { %v6041_v62 = vrot.slane %v6040_v32, 4  ;;  %12179 = vmatprep.subr.msk.mxu0 %vm15651_vm14, %v17468_v21  ;;  %17561 = vst [vmem:[#allocation207_spill] sm:$0xff] %v16270_v12  ;;  %17562 = vst [vmem:[#allocation208_spill] sm:$0xff] %v16272_v43 }
0x178b   :  { %vm17572_vm3 = vmmov %vm17560_vm1 }
0x178c   :  { %12139 = vmatmul.mubr.msk.f32.gmra.mxu0 %vm17560_vm1, %v6136_v38  ;;  %v6042_v19 = vadd.f32 %v6041_v62, %v6040_v32  ;;  %vm17573_vm2 = vmmov %vm17560_vm1 }
0x178d   :  { %v16274_v20 = vpop.permute.xlu1 %9400  ;;  %v16276_v57 = vpop.permute.xlu0 %9787  ;;  %vm17574_vm15 = vmmov %vm17560_vm1 }
0x178e   :  { %v6043_v53 = vrot.slane %v6042_v19, 2  ;;  %17563 = vst [vmem:[#allocation209_spill] sm:$0xff] %v16274_v20  ;;  %17564 = vst [vmem:[#allocation210_spill] sm:$0xff] %v16276_v57 }
0x178f   :  { %vm17575_vm6 = vmmov %vm17560_vm1 }
0x1790   :  { %v6044_v55 = vadd.f32 %v6043_v53, %v6042_v19 }
0x1791   :  { %v5586_v26 = vpop.xlane.xlu0 %5585  ;;  %v16279_v30 = vpop.permute.xlu1 %9782 }
0x1792   :  { %v6045_v1 = vrot.slane %v6044_v55, 1  ;;  %17566 = vst [vmem:[#allocation211_spill] sm:$0xff] %v16279_v30  ;;  %v16285_v57 = vmul.f32 0.125, %v5586_v26 }
0x1794   :  { %v6046_v54 = vadd.f32 %v6045_v1, %v6044_v55  ;;  %v5617_v22 = vadd.f32 1e-10, %v16285_v57 }
0x1795   :  { %v6054_v38 = vpop.xlane.xlu0 %6053  ;;  %v16281_v32 = vpop.permute.xlu1 %9792 }
0x1796   :  { %v6047_v29 = vsel %vm17565_vm13, %v6046_v54, 0.0  ;;  %17567 = vst [vmem:[#allocation212_spill] sm:$0xff] %v16281_v32  ;;  %v16289_v30 = vmul.f32 0.125, %v6054_v38  ;;  %vm17576_vm13 = vmmov %vm17560_vm1 }
0x1797   :  { %6048 = vadd.xlane.f32.xlu0 %v6047_v29 }
0x1799   :  { %v6057_v62 = vpop.xlane.xlu0 %6056  ;;  %v5589_v45 = vpop.xlane.xlu1 %5588 }
0x179a   :  { %v16283_v9 = vmul.f32 0.125, %v5589_v45  ;;  %v16287_v29 = vmul.f32 0.125, %v6057_v62  ;;  %v6084_v62 = vadd.f32 1e-10, %v16289_v30 }
0x179c   :  { %v5618_v32 = vadd.f32 1e-10, %v16283_v9  ;;  %v6085_v8 = vadd.f32 1e-10, %v16287_v29 }
0x179d   :  { %v6060_v12 = vpop.xlane.xlu0 %6059  ;;  %v5592_v43 = vpop.xlane.xlu1 %5591 }
0x179e   :  { %v16292_v27 = vmul.f32 0.125, %v6060_v12  ;;  %v16295_v37 = vmul.f32 0.125, %v5592_v43  ;;  %12837 = vlog2.f32 %v5618_v32 }
0x179f   :  { %12839 = vlog2.f32 %v5617_v22 }
0x17a0   :  { %v6086_v38 = vadd.f32 1e-10, %v16292_v27  ;;  %v5619_v12 = vadd.f32 1e-10, %v16295_v37  ;;  %12841 = vlog2.f32 %v6085_v8 }
0x17a1   :  { %v6063_v19 = vpop.xlane.xlu0 %6062  ;;  %v5595_v53 = vpop.xlane.xlu1 %5594  ;;  %12843 = vlog2.f32 %v6084_v62 }
0x17a2   :  { %v16298_v45 = vmul.f32 0.125, %v6063_v19  ;;  %v16300_v26 = vmul.f32 0.125, %v5595_v53  ;;  %12845 = vlog2.f32 %v6086_v38 }
0x17a3   :  { %12847 = vlog2.f32 %v5619_v12 }
0x17a4   :  { %v6087_v63 = vadd.f32 1e-10, %v16298_v45  ;;  %v5620_v53 = vadd.f32 1e-10, %v16300_v26 }
0x17a5   :  { %v6066_v55 = vpop.xlane.xlu0 %6065  ;;  %v5598_v1 = vpop.xlane.xlu1 %5597 }
0x17a6   :  { %v16304_v59 = vmul.f32 0.125, %v6066_v55  ;;  %v16307_v43 = vmul.f32 0.125, %v5598_v1  ;;  %12849 = vlog2.f32 %v6087_v63 }
0x17a7   :  { %12851 = vlog2.f32 %v5620_v53 }
0x17a8   :  { %v6088_v55 = vadd.f32 1e-10, %v16304_v59  ;;  %v5621_v22 = vadd.f32 1e-10, %v16307_v43 }
0x17a9   :  { %v6069_v20 = vpop.xlane.xlu0 %6068  ;;  %v5601_v54 = vpop.xlane.xlu1 %5600 }
0x17aa   :  { %v16310_v19 = vmul.f32 0.125, %v6069_v20  ;;  %v16313_v33 = vmul.f32 0.125, %v5601_v54  ;;  %12853 = vlog2.f32 %v6088_v55 }
0x17ab   :  { %12855 = vlog2.f32 %v5621_v22  ;;  %v12838_v12 = vpop.eup %12837 }
0x17ac   :  { %v6089_v20 = vadd.f32 1e-10, %v16310_v19  ;;  %v5622_v54 = vadd.f32 1e-10, %v16313_v33  ;;  %v12840_v53 = vpop.eup %12839  ;;  %v5628_v44 = vmul.f32 0.6931472, %v12838_v12 }
0x17ad   :  { %v6072_v18 = vpop.xlane.xlu0 %6071  ;;  %v5604_v15 = vpop.xlane.xlu1 %5603  ;;  %v5626_v10 = vmul.f32 0.6931472, %v12840_v53 }
0x17ae   :  { %v16316_v6 = vmul.f32 0.125, %v6072_v18  ;;  %v16319_v1 = vmul.f32 0.125, %v5604_v15  ;;  %12857 = vlog2.f32 %v6089_v20 }
0x17af   :  { %12859 = vlog2.f32 %v5622_v54 }
0x17b0   :  { %v6090_v18 = vadd.f32 1e-10, %v16316_v6  ;;  %v5623_v38 = vadd.f32 1e-10, %v16319_v1 }
0x17b1   :  { %v6075_v32 = vpop.xlane.xlu0 %6074  ;;  %v5607_v8 = vpop.xlane.xlu1 %5606 }
0x17b2   :  { %v16322_v16 = vmul.f32 0.125, %v6075_v32  ;;  %v16325_v62 = vmul.f32 0.125, %v5607_v8  ;;  %12861 = vlog2.f32 %v6090_v18  ;;  %v12842_v32 = vpop.eup %12841 }
0x17b3   :  { %12863 = vlog2.f32 %v5623_v38  ;;  %v12844_v8 = vpop.eup %12843  ;;  %v6095_v60 = vmul.f32 0.6931472, %v12842_v32 }
0x17b4   :  { %v6091_v15 = vadd.f32 1e-10, %v16322_v16  ;;  %v5624_v63 = vadd.f32 1e-10, %v16325_v62  ;;  %v12846_v55 = vpop.eup %12845  ;;  %v6093_v23 = vmul.f32 0.6931472, %v12844_v8 }
0x17b5   :  { %v12848_v11 = vpop.eup %12847  ;;  %v6097_v14 = vmul.f32 0.6931472, %v12846_v55  ;;  %v6109_v18 = vmul.f32 %v6095_v60, %v16287_v29 }
0x17b6   :  { %12865 = vlog2.f32 %v6091_v15  ;;  %v12850_v22 = vpop.eup %12849  ;;  %v5630_v28 = vmul.f32 0.6931472, %v12848_v11  ;;  %v5642_v15 = vmul.f32 %v5628_v44, %v16283_v9  ;;  %v6108_v32 = vmul.f32 %v6093_v23, %v16289_v30 }
0x17b7   :  { %12867 = vlog2.f32 %v5624_v63  ;;  %v12852_v20 = vpop.eup %12851  ;;  %v6099_v38 = vmul.f32 0.6931472, %v12850_v22  ;;  %v5641_v63 = vmul.f32 %v5626_v10, %v16285_v57  ;;  %v6110_v12 = vmul.f32 %v6097_v14, %v16292_v27 }
0x17b8   :  { %v12854_v54 = vpop.eup %12853  ;;  %v5632_v56 = vmul.f32 0.6931472, %v12852_v20  ;;  %v5643_v55 = vmul.f32 %v5630_v28, %v16295_v37  ;;  %v6116_v2 = vadd.f32 %v6109_v18, %v6108_v32 }
0x17b9   :  { %v12856_v13 = vpop.eup %12855  ;;  %v6101_v53 = vmul.f32 0.6931472, %v12854_v54  ;;  %v6111_v60 = vmul.f32 %v6099_v38, %v16298_v45  ;;  %v5649_v44 = vadd.f32 %v5642_v15, %v5641_v63 }
0x17ba   :  { %v5634_v11 = vmul.f32 0.6931472, %v12856_v13  ;;  %v5644_v10 = vmul.f32 %v5632_v56, %v16300_v26  ;;  %v6117_v57 = vadd.f32 %v6116_v2, %v6110_v12 }
0x17bb   :  { %v12858_v36 = vpop.eup %12857  ;;  %v6112_v23 = vmul.f32 %v6101_v53, %v16304_v59  ;;  %v5650_v27 = vadd.f32 %v5649_v44, %v5643_v55 }
0x17bc   :  { %v12860_v49 = vpop.eup %12859  ;;  %v6103_v29 = vmul.f32 0.6931472, %v12858_v36  ;;  %v5645_v20 = vmul.f32 %v5634_v11, %v16307_v43  ;;  %v6118_v13 = vadd.f32 %v6117_v57, %v6111_v60  ;;  %v6139_v36 = vld [vmem:[#allocation36] sm:$0xff] }
0x17bd   :  { %v5636_v9 = vmul.f32 0.6931472, %v12860_v49  ;;  %v5651_v45 = vadd.f32 %v5650_v27, %v5644_v10  ;;  %12165 = vmatprep.mubr.msk.f32.mxu1 %vm17568_vm7, %v6139_v36  ;;  %vm17577_vm7 = vmmov %vm17560_vm1 }
0x17be   :  { %v6113_v37 = vmul.f32 %v6103_v29, %v16310_v19  ;;  %v6119_v56 = vadd.f32 %v6118_v13, %v6112_v23 }
0x17bf   :  { %v12862_v8 = vpop.eup %12861  ;;  %v5646_v18 = vmul.f32 %v5636_v9, %v16313_v33  ;;  %v5652_v49 = vadd.f32 %v5651_v45, %v5645_v20 }
0x17c0   :  { %v12864_v0 = vpop.eup %12863  ;;  %v6105_v30 = vmul.f32 0.6931472, %v12862_v8  ;;  %v6120_v26 = vadd.f32 %v6119_v56, %v6113_v37 }
0x17c1   :  { %v5638_v28 = vmul.f32 0.6931472, %v12864_v0  ;;  %v5653_v43 = vadd.f32 %v5652_v49, %v5646_v18 }
0x17c2   :  { %v6114_v2 = vmul.f32 %v6105_v30, %v16316_v6 }
0x17c3   :  { %v12866_v22 = vpop.eup %12865  ;;  %v5647_v59 = vmul.f32 %v5638_v28, %v16319_v1 }
0x17c4   :  { %v12868_v14 = vpop.eup %12867  ;;  %v6107_v54 = vmul.f32 0.6931472, %v12866_v22  ;;  %v6121_v15 = vadd.f32 %v6120_v26, %v6114_v2 }
0x17c5   :  { %v5640_v38 = vmul.f32 0.6931472, %v12868_v14  ;;  %v5654_v63 = vadd.f32 %v5653_v43, %v5647_v59  ;;  %v5580_v14 = vpop.xlane.xlu1 %5579 }
0x17c6   :  { %v6115_v0 = vmul.f32 %v6107_v54, %v16322_v16  ;;  %v5582_v28 = vmul.f32 0.00390625, %v5580_v14 }
0x17c7   :  { %v5648_v19 = vmul.f32 %v5640_v38, %v16325_v62 }
0x17c8   :  { %v6122_v32 = vadd.f32 %v6121_v15, %v6115_v0  ;;  %v6140_v15 = vld [vmem:[#allocation36 + $0x8] sm:$0xff] }
0x17c9   :  { %v5655_v12 = vadd.f32 %v5654_v63, %v5648_v19  ;;  %v6141_v63 = vld [vmem:[#allocation36 + $0x10] sm:$0xff] }
0x17ca   :  { %v6123_v33 = vrot.slane %v6122_v32, 4 }
0x17cb   :  { %v5656_v53 = vrot.slane %v5655_v12, 4 }
0x17cc   :  { %v6124_v8 = vadd.f32 %v6123_v33, %v6122_v32  ;;  %v6142_v32 = vld [vmem:[#allocation36 + $0x18] sm:$0xff] }
0x17cd   :  { %v5657_v55 = vadd.f32 %v5656_v53, %v5655_v12 }
0x17ce   :  { %v6125_v6 = vrot.slane %v6124_v8, 2 }
0x17cf   :  { %v5658_v11 = vrot.slane %v5657_v55, 2 }
0x17d0   :  { %v6126_v60 = vadd.f32 %v6125_v6, %v6124_v8 }
0x17d1   :  { %v5659_v29 = vadd.f32 %v5658_v11, %v5657_v55 }
0x17d2   :  { %v6127_v22 = vrot.slane %v6126_v60, 1 }
0x17d3   :  { %v5660_v1 = vrot.slane %v5659_v29, 1 }
0x17d4   :  { %v6128_v44 = vadd.f32 %v6127_v22, %v6126_v60 }
0x17d5   :  { %v5661_v10 = vadd.f32 %v5660_v1, %v5659_v29 }
0x17d6   :  { %v6129_v16 = vsub.f32 0.0, %v6128_v44 }
0x17d7   :  { %v5662_v9 = vsub.f32 0.0, %v5661_v10  ;;  %v6535_v10 = vld [vmem:[#allocation39] sm:$0xff] }
0x17d8   :  { %v6130_v57 = vmul.f32 1.442695, %v6129_v16 }
0x17d9   :  { %v5663_v62 = vmul.f32 1.442695, %v5662_v9 }
0x17da   :  { %12869 = vpow2.f32 %v6130_v57 }
0x17db   :  { %12871 = vpow2.f32 %v5663_v62 }
0x17e7   :  { %v12870_v23 = vpop.eup %12869 }
0x17e8   :  { %v12872_v30 = vpop.eup %12871 }
0x17e9   :  { %v6132_v27 = vadd.f32 %v12872_v30, %v12870_v23 }
0x17eb   :  { %v6138_v37 = vmul.f32 0.5, %v6132_v27 }
0x1820   :  { %v6049_v20 = vpop.xlane.xlu0 %6048 }
0x1821   :  { %v6050_v13 = vmul.f32 0.00390625, %v6049_v20 }
0x1823   :  { %v6051_v54 = vadd.f32 %v6050_v13, %v5582_v28 }
0x1825   :  { %v10245_v45 = vsel %vm10244_vm4, %v6051_v54, %v6138_v37  ;;  %vm17578_vm4 = vmmov %vm17560_vm1  ;;  %v6536_v37 = vld [vmem:[#allocation39 + $0x8] sm:$0xff]  ;;  %v6537_v54 = vld [vmem:[#allocation39 + $0x10] sm:$0xff] }
0x1826   :  { %10247 = vst.msk [vmem:[%s14402_s17] sm:$0x1] %vm10246_vm0, %v10245_v45  ;;  %vm17579_vm0 = vmmov %vm17560_vm1  ;;  %v6538_v45 = vld [vmem:[#allocation39 + $0x18] sm:$0xff] }
0x1840   :  { %v12121_v36 = vpop.f32.mrf.mxu0  ;;  %v12129_v49 = vpop.f32.mrf.mxu1 }
0x1842   :  { %v6225_v18 = vpop.f32.mrf.mxu0  ;;  %v6310_v0 = vpop.f32.mrf.mxu1 }
0x1844   :  { %v12124_v38 = vpop.f32.mrf.mxu0  ;;  %v12132_v3 = vpop.f32.mrf.mxu1 }
0x1846   :  { %v6235_v56 = vpop.f32.mrf.mxu0  ;;  %v6320_v19 = vpop.f32.mrf.mxu1 }
0x1848   :  { %v12137_v2 = vpop.f32.mrf.mxu0 }
0x184a   :  { %v6395_v59 = vpop.f32.mrf.mxu0 }
0x184c   :  { %v12140_v26 = vpop.f32.mrf.mxu0 }
0x184d   :  { %12141 = vmatprep.subr.mxu1 %v12140_v26 }
0x184e   :  { %v6405_v43 = vpop.f32.mrf.mxu0  ;;  %12142 = vmatpush3.msra.mxu1 %v12140_v26 }
0x184f   :  { %12143 = vmatprep.subr.mxu1 %v6405_v43 }
0x1850   :  { %12144 = vmatpush3.msra.mxu1 %v6405_v43 }
0x1851   :  { %12145 = vmatprep.subr.mxu1 %v12137_v2 }
0x1852   :  { %12146 = vmatpush3.msra.mxu1 %v12137_v2 }
0x1853   :  { %12147 = vmatprep.subr.mxu1 %v6395_v59 }
0x1854   :  { %12148 = vmatpush3.msra.mxu1 %v6395_v59 }
0x1855   :  { %12149 = vmatprep.subr.mxu1 %v12132_v3 }
0x1856   :  { %12150 = vmatpush3.msra.mxu1 %v12132_v3 }
0x1857   :  { %12151 = vmatprep.subr.mxu1 %v6320_v19 }
0x1858   :  { %12152 = vmatpush3.msra.mxu1 %v6320_v19 }
0x1859   :  { %12153 = vmatprep.subr.mxu1 %v12129_v49 }
0x185a   :  { %12154 = vmatpush3.msra.mxu1 %v12129_v49 }
0x185b   :  { %12155 = vmatprep.subr.mxu1 %v6310_v0 }
0x185c   :  { %12156 = vmatpush3.msra.mxu1 %v6310_v0 }
0x185d   :  { %12157 = vmatprep.subr.mxu1 %v12124_v38 }
0x185e   :  { %12158 = vmatpush3.msra.mxu1 %v12124_v38 }
0x185f   :  { %12159 = vmatprep.subr.mxu1 %v6235_v56 }
0x1860   :  { %12160 = vmatpush3.msra.mxu1 %v6235_v56 }
0x1861   :  { %12161 = vmatprep.subr.mxu1 %v12121_v36 }
0x1862   :  { %12162 = vmatpush3.msra.mxu1 %v12121_v36  ;;  %v6543_v36 = vld [vmem:[#allocation42] sm:$0xff] }
0x1863   :  { %12163 = vmatprep.subr.mxu1 %v6225_v18 }
0x1864   :  { %12164 = vmatpush3.msra.mxu1 %v6225_v18 }
0x1865   :  { %12166 = vmatmul.mubr.msk.f32.vlgmr.msra.gmra.mxu1 %vm17569_vm8, %v6140_v15  ;;  %vm17580_vm8 = vmmov %vm17579_vm0  ;;  %v6544_v15 = vld [vmem:[#allocation42 + $0x8] sm:$0xff] }
0x1866   :  { %12168 = vmatprep.mubr.msk.f32.mxu1 %vm17570_vm11, %v6141_v63  ;;  %vm17581_vm11 = vmmov %vm17579_vm0 }
0x1869   :  { %12169 = vmatmul.mubr.msk.f32.gmra.mxu1 %vm17571_vm9, %v6142_v32  ;;  %vm17582_vm9 = vmmov %vm17579_vm0 }
0x1925   :  { %v12167_v12 = vpop.f32.mrf.mxu1 }
0x1926   :  { %v16354_v33 = vadd.f32 %v12167_v12, %v16154_v24 }
0x1927   :  { %v6512_v53 = vpop.f32.mrf.mxu1 }
0x1928   :  { %v16357_v8 = vadd.f32 %v6512_v53, %v16150_v35  ;;  %v6532_v55 = vmax.f32 %v16354_v33, 0.0 }
0x1929   :  { %v12170_v6 = vpop.f32.mrf.mxu1 }
0x192a   :  { %v6531_v11 = vmax.f32 %v16357_v8, 0.0  ;;  %v16362_v60 = vadd.f32 %v12170_v6, %v16158_v58  ;;  %v6552_v24 = vmax.f32 %v6532_v55, 0.0 }
0x192b   :  { %v6522_v29 = vpop.f32.mrf.mxu1 }
0x192c   :  { %v6551_v22 = vmax.f32 %v6531_v11, 0.0  ;;  %v16367_v1 = vadd.f32 %v6522_v29, %v16152_v46  ;;  %v6534_v35 = vmax.f32 %v16362_v60, 0.0 }
0x192e   :  { %v6533_v44 = vmax.f32 %v16367_v1, 0.0  ;;  %12173 = vmatprep.mubr.msk.f32.mxu0 %vm17572_vm3, %v6551_v22  ;;  %v6554_v46 = vmax.f32 %v6534_v35, 0.0  ;;  %vm17583_vm3 = vcmask 785408  }
0x192f   :  { %12174 = vmatmul.mubr.msk.f32.vlgmr.msra.gmra.mxu0 %vm17573_vm2, %v6552_v24  ;;  %12219 = vmatprep.mubr.msk.f32.mxu1 %vm17583_vm3, %v6535_v10  ;;  %vm17585_vm2 = vmmov %vm17583_vm3 }
0x1930   :  { %v6553_v58 = vmax.f32 %v6533_v44, 0.0  ;;  %12180 = vmatpush3.msk.msra.mxu0 %vm15651_vm14, %v17468_v21 }
0x1931   :  { %12187 = vmatprep.subr.msk.mxu0 %vm15722_vm5, %v17468_v21 }
0x1932   :  { %12176 = vmatprep.mubr.msk.f32.mxu0 %vm17574_vm15, %v6553_v58  ;;  %vm17586_vm15 = vmmov %vm17585_vm2 }
0x1933   :  { %12177 = vmatmul.mubr.msk.f32.gmra.mxu0 %vm17575_vm6, %v6554_v46  ;;  %vm17587_vm6 = vcmask 261120  }
0x1934   :  { %12181 = vmatprep.mubr.msk.f32.mxu0 %vm17560_vm1, %v6551_v22  ;;  %vm17589_vm1 = vmmov %vm17587_vm6 }
0x1937   :  { %12182 = vmatmul.mubr.msk.f32.vlgmr.msra.gmra.mxu0 %vm17576_vm13, %v6552_v24  ;;  %vm17590_vm13 = vmmov %vm17589_vm1 }
0x1938   :  { %12184 = vmatprep.mubr.msk.f32.mxu0 %vm17577_vm7, %v6553_v58  ;;  %12188 = vmatpush3.msk.msra.mxu0 %vm15722_vm5, %v17468_v21  ;;  %vm17584_vm5 = vmmov %vm17583_vm3 }
0x1939   :  { %vm17592_vm7 = vmmov %vm17579_vm0 }
0x193a   :  { %vm17597_vm3 = vmmov %vm17579_vm0 }
0x193b   :  { %12185 = vmatmul.mubr.msk.f32.gmra.mxu0 %vm17578_vm4, %v6554_v46  ;;  %vm17593_vm4 = vmmov %vm17579_vm0 }
0x193c   :  { %12189 = vmatprep.mubr.msk.f32.mxu0 %vm17579_vm0, %v6551_v22 }
0x193f   :  { %12190 = vmatmul.mubr.msk.f32.vlgmr.msra.gmra.mxu0 %vm17580_vm8, %v6552_v24  ;;  %vm17594_vm8 = vmmov %vm17579_vm0 }
0x1940   :  { %12192 = vmatprep.mubr.msk.f32.mxu0 %vm17581_vm11, %v6553_v58  ;;  %vm17595_vm11 = vmmov %vm17579_vm0 }
0x1943   :  { %12193 = vmatmul.mubr.msk.f32.gmra.mxu0 %vm17582_vm9, %v6554_v46  ;;  %vm17596_vm9 = vmmov %vm17579_vm0 }
0x1944   :  { %12233 = vmatprep.mubr.msk.f32.mxu0 %vm17587_vm6, %v6543_v36 }
0x19ef   :  { %v12175_v16 = vpop.f32.mrf.mxu0 }
0x19f1   :  { %v6633_v9 = vpop.f32.mrf.mxu0 }
0x19f3   :  { %v12178_v57 = vpop.f32.mrf.mxu0 }
0x19f5   :  { %v6643_v62 = vpop.f32.mrf.mxu0 }
0x19f7   :  { %v12183_v23 = vpop.f32.mrf.mxu0 }
0x19f9   :  { %v6718_v42 = vpop.f32.mrf.mxu0 }
0x19fb   :  { %v12186_v30 = vpop.f32.mrf.mxu0 }
0x19fd   :  { %v6728_v14 = vpop.f32.mrf.mxu0 }
0x19ff   :  { %v12191_v27 = vpop.f32.mrf.mxu0 }
0x1a01   :  { %v6803_v20 = vpop.f32.mrf.mxu0 }
0x1a03   :  { %v12194_v28 = vpop.f32.mrf.mxu0 }
0x1a04   :  { %12195 = vmatprep.subr.mxu1 %v12194_v28 }
0x1a05   :  { %v6813_v13 = vpop.f32.mrf.mxu0  ;;  %12196 = vmatpush3.msra.mxu1 %v12194_v28 }
0x1a06   :  { %12197 = vmatprep.subr.mxu1 %v6813_v13 }
0x1a07   :  { %12198 = vmatpush3.msra.mxu1 %v6813_v13 }
0x1a08   :  { %12199 = vmatprep.subr.mxu1 %v12191_v27 }
0x1a09   :  { %12200 = vmatpush3.msra.mxu1 %v12191_v27 }
0x1a0a   :  { %12201 = vmatprep.subr.mxu1 %v6803_v20 }
0x1a0b   :  { %12202 = vmatpush3.msra.mxu1 %v6803_v20 }
0x1a0c   :  { %12203 = vmatprep.subr.mxu1 %v12186_v30 }
0x1a0d   :  { %12204 = vmatpush3.msra.mxu1 %v12186_v30 }
0x1a0e   :  { %12205 = vmatprep.subr.mxu1 %v6728_v14 }
0x1a0f   :  { %12206 = vmatpush3.msra.mxu1 %v6728_v14 }
0x1a10   :  { %12207 = vmatprep.subr.mxu1 %v12183_v23 }
0x1a11   :  { %12208 = vmatpush3.msra.mxu1 %v12183_v23  ;;  %v7067_v23 = vld [vmem:[#allocation45 + $0x18] sm:$0xff] }
0x1a12   :  { %12209 = vmatprep.subr.mxu1 %v6718_v42 }
0x1a13   :  { %12210 = vmatpush3.msra.mxu1 %v6718_v42  ;;  %v7072_v42 = vld [vmem:[#allocation48] sm:$0xff] }
0x1a14   :  { %12211 = vmatprep.subr.mxu1 %v12178_v57 }
0x1a15   :  { %12212 = vmatpush3.msra.mxu1 %v12178_v57  ;;  %v7065_v57 = vld [vmem:[#allocation45 + $0x8] sm:$0xff] }
0x1a16   :  { %12213 = vmatprep.subr.mxu1 %v6643_v62 }
0x1a17   :  { %12214 = vmatpush3.msra.mxu1 %v6643_v62  ;;  %v7066_v62 = vld [vmem:[#allocation45 + $0x10] sm:$0xff] }
0x1a18   :  { %12215 = vmatprep.subr.mxu1 %v12175_v16 }
0x1a19   :  { %12216 = vmatpush3.msra.mxu1 %v12175_v16 }
0x1a1a   :  { %12217 = vmatprep.subr.mxu1 %v6633_v9 }
0x1a1b   :  { %12218 = vmatpush3.msra.mxu1 %v6633_v9 }
0x1a1c   :  { %12220 = vmatmul.mubr.msk.f32.vlgmr.msra.gmra.mxu1 %vm17584_vm5, %v6536_v37  ;;  %12255 = vmatprep.subr.msk.mxu1 %vm15672_vm10, %v17468_v21  ;;  %vm17598_vm5 = vmmov %vm17579_vm0 }
0x1a1d   :  { %12222 = vmatprep.mubr.msk.f32.mxu1 %vm17585_vm2, %v6537_v54  ;;  %12256 = vmatpush3.msk.msra.mxu1 %vm15672_vm10, %v17468_v21  ;;  %vm17588_vm10 = vmmov %vm17587_vm6 }
0x1a1e   :  { %vm17599_vm2 = vmmov %vm17579_vm0 }
0x1a1f   :  { %vm17601_vm6 = vmmov %vm17579_vm0 }
0x1a20   :  { %12223 = vmatmul.mubr.msk.f32.gmra.mxu1 %vm17586_vm15, %v6538_v45  ;;  %vm17600_vm15 = vmmov %vm17579_vm0 }
0x1adc   :  { %v12221_v18 = vpop.f32.mrf.mxu1 }
0x1add   :  { %v6926_v59 = vadd.f32 %v12221_v18, %v16160_v31  ;;  %v6546_v31 = vld [vmem:[#allocation42 + $0x18] sm:$0xff] }
0x1ade   :  { %v6920_v38 = vpop.f32.mrf.mxu1 }
0x1adf   :  { %v6921_v43 = vadd.f32 %v6920_v38, %v16166_v41  ;;  %v6940_v3 = vmax.f32 %v6926_v59, 0.0  ;;  %v17611_v59 = vld [vmem:[#allocation169_spill] sm:$0xff] }
0x1ae0   :  { %v12224_v56 = vpop.f32.mrf.mxu1 }
0x1ae1   :  { %v6936_v2 = vadd.f32 %v12224_v56, %v16156_v39  ;;  %v6939_v19 = vmax.f32 %v6921_v43, 0.0  ;;  %v6545_v39 = vld [vmem:[#allocation42 + $0x10] sm:$0xff]  ;;  %v7073_v56 = vld [vmem:[#allocation48 + $0x8] sm:$0xff] }
0x1ae2   :  { %v6930_v49 = vpop.f32.mrf.mxu1 }
0x1ae3   :  { %v6942_v26 = vmax.f32 %v6936_v2, 0.0  ;;  %v6931_v0 = vadd.f32 %v6930_v49, %v16162_v25 }
0x1ae5   :  { %v6941_v47 = vmax.f32 %v6931_v0, 0.0  ;;  %12225 = vmatprep.subr.mxu0 %v6942_v26  ;;  %v17612_v0 = vld [vmem:[#allocation173_spill] sm:$0xff] }
0x1ae6   :  { %12226 = vmatpush3.msra.mxu0 %v6942_v26 }
0x1ae7   :  { %12227 = vmatprep.subr.mxu0 %v6941_v47 }
0x1ae8   :  { %12228 = vmatpush3.msra.mxu0 %v6941_v47  ;;  %v17622_v47 = vld [vmem:[#allocation177_spill] sm:$0xff] }
0x1ae9   :  { %12229 = vmatprep.subr.mxu0 %v6940_v3 }
0x1aea   :  { %12230 = vmatpush3.msra.mxu0 %v6940_v3 }
0x1aeb   :  { %12231 = vmatprep.subr.mxu0 %v6939_v19 }
0x1aec   :  { %12232 = vmatpush3.msra.mxu0 %v6939_v19  ;;  %v17624_v19 = vld [vmem:[#allocation183_spill] sm:$0xff] }
0x1aed   :  { %12234 = vmatmul.mubr.msk.f32.vlgmr.msra.gmra.mxu0 %vm17588_vm10, %v6544_v15  ;;  %12239 = vmatprep.subr.msk.mxu0 %vm15635_vm12, %v17468_v21 }
0x1aee   :  { %12236 = vmatprep.mubr.msk.f32.mxu0 %vm17589_vm1, %v6545_v39  ;;  %12240 = vmatpush3.msk.msra.mxu0 %vm15635_vm12, %v17468_v21  ;;  %vm17591_vm12 = vmmov %vm17579_vm0 }
0x1aef   :  { %12247 = vmatprep.subr.msk.mxu0 %vm15651_vm14, %v17468_v21 }
0x1af1   :  { %12237 = vmatmul.mubr.msk.f32.gmra.mxu0 %vm17590_vm13, %v6546_v31  ;;  %v17625_v31 = vld [vmem:[#allocation181_spill] sm:$0xff] }
0x1bad   :  { %v12235_v25 = vpop.f32.mrf.mxu0 }
0x1bae   :  { %v7047_v41 = vadd.f32 %v12235_v25, %v16170_v17 }
0x1baf   :  { %v7041_v63 = vpop.f32.mrf.mxu0 }
0x1bb0   :  { %v7042_v32 = vadd.f32 %v7041_v63, %v16164_v5  ;;  %v16429_v12 = vadd.f32 %v7047_v41, %v6532_v55 }
0x1bb1   :  { %v12238_v53 = vpop.f32.mrf.mxu0 }
0x1bb2   :  { %v16433_v40 = vadd.f32 %v7042_v32, %v6531_v11  ;;  %v7057_v6 = vadd.f32 %v12238_v53, %v16174_v48  ;;  %v7081_v17 = vmax.f32 %v16429_v12, 0.0  ;;  %v17626_v53 = vld [vmem:[#allocation185_spill] sm:$0xff] }
0x1bb3   :  { %v7051_v29 = vpop.f32.mrf.mxu0 }
0x1bb4   :  { %v7080_v22 = vmax.f32 %v16433_v40, 0.0  ;;  %v7052_v24 = vadd.f32 %v7051_v29, %v16168_v7  ;;  %v16441_v5 = vadd.f32 %v7057_v6, %v6534_v35 }
0x1bb6   :  { %v16445_v33 = vadd.f32 %v7052_v24, %v6533_v44  ;;  %12241 = vmatprep.mubr.msk.f32.mxu0 %vm17591_vm12, %v7080_v22  ;;  %12257 = vmatprep.mubr.msk.f32.mxu1 %vm17592_vm7, %v7080_v22  ;;  %v7083_v48 = vmax.f32 %v16441_v5, 0.0  ;;  %vm17606_vm12 = vcmask 261120  }
0x1bb7   :  { %12242 = vmatmul.mubr.msk.f32.vlgmr.msra.gmra.mxu0 %vm17593_vm4, %v7081_v17  ;;  %12258 = vmatmul.mubr.msk.f32.vlgmr.msra.gmra.mxu1 %vm17579_vm0, %v7081_v17  ;;  %vm17607_vm7 = vmmov %vm17606_vm12 }
0x1bb8   :  { %v7082_v7 = vmax.f32 %v16445_v33, 0.0  ;;  %12248 = vmatpush3.msk.msra.mxu0 %vm15651_vm14, %v17468_v21  ;;  %vm17602_vm14 = vcmask 785408   ;;  %vm17608_vm4 = vmmov %vm17607_vm7 }
0x1bb9   :  { %vm17603_vm10 = vmmov %vm17602_vm14 }
0x1bba   :  { %12244 = vmatprep.mubr.msk.f32.mxu0 %vm17594_vm8, %v7082_v7  ;;  %12260 = vmatprep.mubr.msk.f32.mxu1 %vm17595_vm11, %v7082_v7  ;;  %vm17604_vm1 = vmmov %vm17603_vm10 }
0x1bbb   :  { %12245 = vmatmul.mubr.msk.f32.gmra.mxu0 %vm17596_vm9, %v7083_v48  ;;  %12261 = vmatmul.mubr.msk.f32.gmra.mxu1 %vm17597_vm3, %v7083_v48  ;;  %vm17605_vm13 = vmmov %vm17604_vm1 }
0x1bbc   :  { %12249 = vmatprep.mubr.msk.f32.mxu0 %vm17598_vm5, %v7080_v22  ;;  %12301 = vmatprep.mubr.msk.f32.mxu1 %vm17606_vm12, %v7072_v42  ;;  %vm17609_vm0 = vmmov %vm17608_vm4  ;;  %vm17616_vm12 = vcmp.ge.s32.totalorder %v17612_v0, 0  ;;  %v17627_v22 = vld [vmem:[#allocation182_spill] sm:$0xff] }
0x1bbf   :  { %12250 = vmatmul.mubr.msk.f32.vlgmr.msra.gmra.mxu0 %vm17599_vm2, %v7081_v17  ;;  %vm17613_vm2 = vcmp.ge.s32.totalorder %v17611_v59, 0 }
0x1bc0   :  { %12252 = vmatprep.mubr.msk.f32.mxu0 %vm17600_vm15, %v7082_v7 }
0x1bc3   :  { %12253 = vmatmul.mubr.msk.f32.gmra.mxu0 %vm17601_vm6, %v7083_v48  ;;  %vm17614_vm6 = vcmp.lt.s32.totalorder %v17611_v59, 8 }
0x1bc4   :  { %12287 = vmatprep.mubr.msk.f32.mxu0 %vm17602_vm14, %v7064_v61 }
0x1c77   :  { %v12243_v8 = vpop.f32.mrf.mxu0  ;;  %v12259_v55 = vpop.f32.mrf.mxu1 }
0x1c79   :  { %v7162_v11 = vpop.f32.mrf.mxu0  ;;  %v7332_v60 = vpop.f32.mrf.mxu1 }
0x1c7b   :  { %v12246_v1 = vpop.f32.mrf.mxu0  ;;  %v12262_v35 = vpop.f32.mrf.mxu1 }
0x1c7c   :  { %12263 = vmatprep.subr.mxu0 %v12262_v35 }
0x1c7d   :  { %v7172_v44 = vpop.f32.mrf.mxu0  ;;  %v7342_v58 = vpop.f32.mrf.mxu1  ;;  %12264 = vmatpush3.msra.mxu0 %v12262_v35 }
0x1c7e   :  { %12265 = vmatprep.subr.mxu0 %v7342_v58 }
0x1c7f   :  { %v12251_v46 = vpop.f32.mrf.mxu0  ;;  %12266 = vmatpush3.msra.mxu0 %v7342_v58 }
0x1c80   :  { %12267 = vmatprep.subr.mxu0 %v12259_v55 }
0x1c81   :  { %v7247_v10 = vpop.f32.mrf.mxu0  ;;  %12268 = vmatpush3.msra.mxu0 %v12259_v55 }
0x1c82   :  { %12269 = vmatprep.subr.mxu0 %v7332_v60 }
0x1c83   :  { %v12254_v16 = vpop.f32.mrf.mxu0  ;;  %12270 = vmatpush3.msra.mxu0 %v7332_v60 }
0x1c84   :  { %12271 = vmatprep.subr.mxu0 %v12254_v16 }
0x1c85   :  { %v7257_v9 = vpop.f32.mrf.mxu0  ;;  %12272 = vmatpush3.msra.mxu0 %v12254_v16  ;;  %v7595_v16 = vld [vmem:[#allocation51 + $0x10] sm:$0xff] }
0x1c86   :  { %12273 = vmatprep.subr.mxu0 %v7257_v9 }
0x1c87   :  { %12274 = vmatpush3.msra.mxu0 %v7257_v9  ;;  %v7596_v9 = vld [vmem:[#allocation51 + $0x18] sm:$0xff] }
0x1c88   :  { %12275 = vmatprep.subr.mxu0 %v12251_v46 }
0x1c89   :  { %12276 = vmatpush3.msra.mxu0 %v12251_v46 }
0x1c8a   :  { %12277 = vmatprep.subr.mxu0 %v7247_v10 }
0x1c8b   :  { %12278 = vmatpush3.msra.mxu0 %v7247_v10  ;;  %v7594_v10 = vld [vmem:[#allocation51 + $0x8] sm:$0xff] }
0x1c8c   :  { %12279 = vmatprep.subr.mxu0 %v12246_v1 }
0x1c8d   :  { %12280 = vmatpush3.msra.mxu0 %v12246_v1 }
0x1c8e   :  { %12281 = vmatprep.subr.mxu0 %v7172_v44 }
0x1c8f   :  { %12282 = vmatpush3.msra.mxu0 %v7172_v44 }
0x1c90   :  { %12283 = vmatprep.subr.mxu0 %v12243_v8 }
0x1c91   :  { %12284 = vmatpush3.msra.mxu0 %v12243_v8 }
0x1c92   :  { %12285 = vmatprep.subr.mxu0 %v7162_v11 }
0x1c93   :  { %12286 = vmatpush3.msra.mxu0 %v7162_v11 }
0x1c94   :  { %12288 = vmatmul.mubr.msk.f32.vlgmr.msra.gmra.mxu0 %vm17603_vm10, %v7065_v57 }
0x1c95   :  { %12290 = vmatprep.mubr.msk.f32.mxu0 %vm17604_vm1, %v7066_v62  ;;  %v17648_v62 = vld [vmem:[#allocation187_spill] sm:$0xff] }
0x1c98   :  { %12291 = vmatmul.mubr.msk.f32.gmra.mxu0 %vm17605_vm13, %v7067_v23 }
0x1d54   :  { %v12289_v30 = vpop.f32.mrf.mxu0 }
0x1d55   :  { %v7455_v13 = vadd.f32 %v12289_v30, %v16176_v51  ;;  %v7075_v51 = vld [vmem:[#allocation48 + $0x18] sm:$0xff]  ;;  %v17649_v30 = vld [vmem:[#allocation184_spill] sm:$0xff] }
0x1d56   :  { %v7449_v14 = vpop.f32.mrf.mxu0 }
0x1d57   :  { %v7450_v45 = vadd.f32 %v7449_v14, %v16182_v34  ;;  %v7469_v18 = vmax.f32 %v7455_v13, 0.0  ;;  %v17610_v34 = vld [vmem:[#allocation150_spill] sm:$0xff]  ;;  %v17650_v13 = vld [vmem:[#allocation189_spill] sm:$0xff] }
0x1d58   :  { %v12292_v27 = vpop.f32.mrf.mxu0 }
0x1d59   :  { %v7465_v20 = vadd.f32 %v12292_v27, %v16172_v52  ;;  %v7468_v38 = vmax.f32 %v7450_v45, 0.0  ;;  %v7074_v52 = vld [vmem:[#allocation48 + $0x10] sm:$0xff] }
0x1d5a   :  { %v7459_v28 = vpop.f32.mrf.mxu0  ;;  %v17651_v45 = vld [vmem:[#allocation186_spill] sm:$0xff] }
0x1d5b   :  { %v7471_v37 = vmax.f32 %v7465_v20, 0.0  ;;  %v7460_v54 = vadd.f32 %v7459_v28, %v16178_v4  ;;  %v7601_v4 = vmul.u32 4, %v14918_v50  ;;  %v17615_v50 = vld [vmem:[#allocation168_spill] sm:$0xff] }
0x1d5d   :  { %v7470_v36 = vmax.f32 %v7460_v54, 0.0  ;;  %12293 = vmatprep.subr.mxu1 %v7471_v37  ;;  %v7602_v2 = vsub.s32 %v17610_v34, %v7601_v4  ;;  %v8007_v4 = vld [vmem:[#allocation54] sm:$0xff] }
0x1d5e   :  { %12294 = vmatpush3.msra.mxu1 %v7471_v37 }
0x1d5f   :  { %12295 = vmatprep.subr.mxu1 %v7470_v36  ;;  %v7603_v49 = vmul.u32 2, %v7602_v2 }
0x1d60   :  { %12296 = vmatpush3.msra.mxu1 %v7470_v36 }
0x1d61   :  { %12297 = vmatprep.subr.mxu1 %v7469_v18  ;;  %vm7604_vm8 = vcmp.le.s32.totalorder %v7603_v49, %v17611_v59  ;;  %v7605_v26 = vadd.s32 2, %v7603_v49  ;;  %vm7799_vm3 = vcmp.le.s32.totalorder %v7603_v49, %v17612_v0  ;;  %vm7708_vm1 = vcmp.le.s32.totalorder %v7603_v49, %v17615_v50 }
0x1d62   :  { %12298 = vmatpush3.msra.mxu1 %v7469_v18 }
0x1d63   :  { %12299 = vmatprep.subr.mxu1 %v7468_v38  ;;  %vm7606_vm11 = vcmp.lt.s32.totalorder %v17611_v59, %v7605_v26  ;;  %vm7800_vm5 = vcmp.lt.s32.totalorder %v17612_v0, %v7605_v26  ;;  %vm7709_vm13 = vcmp.lt.s32.totalorder %v17615_v50, %v7605_v26 }
0x1d64   :  { %12300 = vmatpush3.msra.mxu1 %v7468_v38  ;;  %vm7607_vm9 = vmand %vm7604_vm8, %vm7606_vm11  ;;  %vm17618_vm11 = vcmp.ge.s32.totalorder %v17615_v50, 0 }
0x1d65   :  { %12302 = vmatmul.mubr.msk.f32.vlgmr.msra.gmra.mxu1 %vm17607_vm7, %v7073_v56  ;;  %vm7608_vm15 = vmand %vm7607_vm9, %vm17613_vm2  ;;  %vm17623_vm2 = vnez %v17622_v47  ;;  %v17654_v56 = vld [vmem:[#allocation174_spill] sm:$0xff] }
0x1d66   :  { %12304 = vmatprep.mubr.msk.f32.mxu1 %vm17608_vm4, %v7074_v52  ;;  %vm7609_vm14 = vmand %vm7608_vm15, %vm17614_vm6  ;;  %vm17617_vm4 = vcmp.lt.s32.totalorder %v17612_v0, 8  ;;  %vm17628_vm15 = vcmask 64512   ;;  %v17658_v52 = vld [vmem:[#allocation178_spill] sm:$0xff] }
0x1d67   :  { %12307 = vmatprep.subr.msk.mxu1 %vm7609_vm14, %v17468_v21  ;;  %vm7801_vm10 = vmand %vm7799_vm3, %vm7800_vm5  ;;  %vm17619_vm3 = vcmp.lt.s32.totalorder %v17615_v50, 8 }
0x1d68   :  { %vm7802_vm7 = vmand %vm7801_vm10, %vm17616_vm12  ;;  %12308 = vmatpush3.msk.msra.mxu1 %vm7609_vm14, %v17468_v21 }
0x1d69   :  { %12305 = vmatmul.mubr.msk.f32.gmra.mxu1 %vm17609_vm0, %v7075_v51  ;;  %vm7803_vm0 = vmand %vm7802_vm7, %vm17617_vm4  ;;  %v17663_v51 = vld [vmem:[#allocation180_spill] sm:$0xff] }
0x1d6a   :  { %12323 = vmatprep.subr.msk.mxu0 %vm7803_vm0, %v17468_v21  ;;  %vm7710_vm8 = vmand %vm7708_vm1, %vm7709_vm13 }
0x1d6b   :  { %12324 = vmatpush3.msk.msra.mxu0 %vm7803_vm0, %v17468_v21  ;;  %vm7711_vm9 = vmand %vm7710_vm8, %vm17618_vm11 }
0x1d6c   :  { %vm16500_vm5 = vmand %vm7711_vm9, %vm17619_vm3  ;;  %12361 = vmatprep.subr.msk.mxu0 %vm17623_vm2, %v17468_v21 }
0x1d6d   :  { %12315 = vmatprep.subr.msk.mxu1 %vm16500_vm5, %v17468_v21  ;;  %vm17629_vm6 = vmmov %vm17628_vm15 }
0x1d6e   :  { %vm17630_vm14 = vmmov %vm17629_vm6 }
0x1d6f   :  { %vm17631_vm10 = vmmov %vm17629_vm6 }
0x1d70   :  { %vm17634_vm13 = vmmov %vm17629_vm6 }
0x1d71   :  { %vm17635_vm12 = vmmov %vm17629_vm6 }
0x1d72   :  { %vm17636_vm7 = vmmov %vm17629_vm6 }
0x1d73   :  { %vm17637_vm4 = vmmov %vm17629_vm6 }
0x1d74   :  { %vm17638_vm0 = vmmov %vm17637_vm4 }
0x1d75   :  { %vm17641_vm11 = vmmov %vm17638_vm0 }
0x1d76   :  { %vm17642_vm9 = vmmov %vm17638_vm0 }
0x1d77   :  { %vm17643_vm3 = vmmov %vm17638_vm0 }
0x1e25   :  { %v12303_v3 = vpop.f32.mrf.mxu1 }
0x1e26   :  { %v7576_v15 = vadd.f32 %v12303_v3, %v17624_v19 }
0x1e27   :  { %v7570_v39 = vpop.f32.mrf.mxu1 }
0x1e28   :  { %v7571_v25 = vadd.f32 %v7570_v39, %v17625_v31  ;;  %v7590_v32 = vadd.f32 %v7576_v15, %v16429_v12  ;;  %v8008_v31 = vld [vmem:[#allocation54 + $0x8] sm:$0xff] }
0x1e29   :  { %v12306_v41 = vpop.f32.mrf.mxu1 }
0x1e2a   :  { %v7589_v63 = vadd.f32 %v7571_v25, %v16433_v40  ;;  %v7586_v6 = vadd.f32 %v12306_v41, %v17626_v53  ;;  %v17632_v40 = vld [vmem:[#allocation179_spill] sm:$0xff]  ;;  %v8009_v25 = vld [vmem:[#allocation54 + $0x10] sm:$0xff]  ;;  %v8015_v53 = vld [vmem:[#allocation57] sm:$0xff] }
0x1e2b   :  { %v7580_v29 = vpop.f32.mrf.mxu1  ;;  %vm17633_vm1 = vnez %v17632_v40  ;;  %v17672_v41 = vld [vmem:[#allocation175_spill] sm:$0xff]  ;;  %v17680_v40 = vld [vmem:[#allocation190_spill] sm:$0xff] }
0x1e2c   :  { %v7581_v24 = vadd.f32 %v7580_v29, %v17627_v22  ;;  %12309 = vmatprep.mubr.msk.f32.mxu1 %vm17628_vm15, %v7589_v63  ;;  %12325 = vmatprep.mubr.msk.f32.mxu0 %vm17629_vm6, %v7589_v63  ;;  %v7592_v12 = vadd.f32 %v7586_v6, %v16441_v5  ;;  %v17639_v5 = vld [vmem:[#allocation172_spill] sm:$0xff] }
0x1e2d   :  { %12310 = vmatmul.mubr.msk.f32.vlgmr.msra.gmra.mxu1 %vm17630_vm14, %v7590_v32  ;;  %12326 = vmatmul.mubr.msk.f32.vlgmr.msra.gmra.mxu0 %vm17631_vm10, %v7590_v32  ;;  %vm17640_vm8 = vnez %v17639_v5  ;;  %vm17652_vm14 = vcmask 130048   ;;  %v8536_v5 = vld [vmem:[#allocation60] sm:$0xff] }
0x1e2e   :  { %v7591_v17 = vadd.f32 %v7581_v24, %v16445_v33  ;;  %12316 = vmatpush3.msk.msra.mxu1 %vm16500_vm5, %v17468_v21  ;;  %12362 = vmatpush3.msk.msra.mxu0 %vm17623_vm2, %v17468_v21  ;;  %v7593_v33 = vld [vmem:[#allocation51] sm:$0xff]  ;;  %vm17644_vm5 = vcmask 785408   ;;  %vm17653_vm10 = vmmov %vm17652_vm14 }
0x1e2f   :  { %12363 = vmatprep.subr.msk.mxu0 %vm17633_vm1, %v17468_v21  ;;  %vm17645_vm2 = vmmov %vm17644_vm5  ;;  %v17679_v24 = vld [vmem:[#allocation188_spill] sm:$0xff] }
0x1e30   :  { %12312 = vmatprep.mubr.msk.f32.mxu1 %vm17634_vm13, %v7591_v17  ;;  %12328 = vmatprep.mubr.msk.f32.mxu0 %vm17635_vm12, %v7591_v17  ;;  %vm17646_vm15 = vmmov %vm17645_vm2 }
0x1e31   :  { %12313 = vmatmul.mubr.msk.f32.gmra.mxu1 %vm17636_vm7, %v7592_v12  ;;  %12329 = vmatmul.mubr.msk.f32.gmra.mxu0 %vm17637_vm4, %v7592_v12  ;;  %vm17647_vm6 = vmmov %vm17645_vm2  ;;  %vm17659_vm7 = vnez %v17658_v52 }
0x1e32   :  { %12317 = vmatprep.mubr.msk.f32.mxu1 %vm17638_vm0, %v7589_v63  ;;  %12364 = vmatpush3.msk.msra.mxu0 %vm17633_vm1, %v17468_v21  ;;  %vm17655_vm1 = vnez %v17654_v56  ;;  %vm17656_vm13 = vmmov %vm17653_vm10  ;;  %v8010_v63 = vld [vmem:[#allocation54 + $0x18] sm:$0xff] }
0x1e33   :  { %12371 = vmatprep.subr.msk.mxu0 %vm17640_vm8, %v17468_v21  ;;  %vm17657_vm12 = vmmov %vm17653_vm10 }
0x1e34   :  { %vm17660_vm4 = vmmov %vm17653_vm10 }
0x1e35   :  { %12318 = vmatmul.mubr.msk.f32.vlgmr.msra.gmra.mxu1 %vm17641_vm11, %v7590_v32  ;;  %vm17661_vm0 = vmmov %vm17660_vm4  ;;  %v17675_v32 = vld [vmem:[#allocation176_spill] sm:$0xff] }
0x1e36   :  { %12320 = vmatprep.mubr.msk.f32.mxu1 %vm17642_vm9, %v7591_v17  ;;  %vm17662_vm11 = vmmov %vm17661_vm0  ;;  %vm17664_vm9 = vnez %v17663_v51 }
0x1e39   :  { %12321 = vmatmul.mubr.msk.f32.gmra.mxu1 %vm17643_vm3, %v7592_v12  ;;  %vm17665_vm3 = vmmov %vm17661_vm0 }
0x1e3a   :  { %12355 = vmatprep.mubr.msk.f32.mxu1 %vm17644_vm5, %v7593_v33  ;;  %vm17666_vm5 = vmmov %vm17661_vm0 }
0x1eed   :  { %v12311_v7 = vpop.f32.mrf.mxu1  ;;  %v12327_v48 = vpop.f32.mrf.mxu0 }
0x1eef   :  { %v7689_v61 = vpop.f32.mrf.mxu1  ;;  %v7871_v8 = vpop.f32.mrf.mxu0 }
0x1ef1   :  { %v12314_v55 = vpop.f32.mrf.mxu1  ;;  %v12330_v11 = vpop.f32.mrf.mxu0 }
0x1ef2   :  { %12331 = vmatprep.subr.mxu1 %v12330_v11 }
0x1ef3   :  { %v7699_v60 = vpop.f32.mrf.mxu1  ;;  %v7881_v1 = vpop.f32.mrf.mxu0  ;;  %12332 = vmatpush3.msra.mxu1 %v12330_v11 }
0x1ef4   :  { %12333 = vmatprep.subr.mxu1 %v7881_v1 }
0x1ef5   :  { %v12319_v35 = vpop.f32.mrf.mxu1  ;;  %12334 = vmatpush3.msra.mxu1 %v7881_v1 }
0x1ef6   :  { %12335 = vmatprep.subr.mxu1 %v12327_v48 }
0x1ef7   :  { %v7780_v44 = vpop.f32.mrf.mxu1  ;;  %12336 = vmatpush3.msra.mxu1 %v12327_v48  ;;  %v17681_v48 = vld [vmem:[#allocation191_spill] sm:$0xff] }
0x1ef8   :  { %12337 = vmatprep.subr.mxu1 %v7871_v8 }
0x1ef9   :  { %v12322_v58 = vpop.f32.mrf.mxu1  ;;  %12338 = vmatpush3.msra.mxu1 %v7871_v8  ;;  %v17682_v8 = vld [vmem:[#allocation193_spill] sm:$0xff] }
0x1efa   :  { %12339 = vmatprep.subr.mxu1 %v12322_v58 }
0x1efb   :  { %v7790_v46 = vpop.f32.mrf.mxu1  ;;  %12340 = vmatpush3.msra.mxu1 %v12322_v58  ;;  %v17684_v58 = vld [vmem:[#allocation170_spill] sm:$0xff] }
0x1efc   :  { %12341 = vmatprep.subr.mxu1 %v7790_v46 }
0x1efd   :  { %12342 = vmatpush3.msra.mxu1 %v7790_v46  ;;  %v8018_v46 = vld [vmem:[#allocation57 + $0x18] sm:$0xff] }
0x1efe   :  { %12343 = vmatprep.subr.mxu1 %v12319_v35 }
0x1eff   :  { %12344 = vmatpush3.msra.mxu1 %v12319_v35  ;;  %v8016_v35 = vld [vmem:[#allocation57 + $0x8] sm:$0xff] }
0x1f00   :  { %12345 = vmatprep.subr.mxu1 %v7780_v44 }
0x1f01   :  { %12346 = vmatpush3.msra.mxu1 %v7780_v44  ;;  %v8017_v44 = vld [vmem:[#allocation57 + $0x10] sm:$0xff] }
0x1f02   :  { %12347 = vmatprep.subr.mxu1 %v12314_v55 }
0x1f03   :  { %12348 = vmatpush3.msra.mxu1 %v12314_v55 }
0x1f04   :  { %12349 = vmatprep.subr.mxu1 %v7699_v60 }
0x1f05   :  { %12350 = vmatpush3.msra.mxu1 %v7699_v60 }
0x1f06   :  { %12351 = vmatprep.subr.mxu1 %v12311_v7 }
0x1f07   :  { %12352 = vmatpush3.msra.mxu1 %v12311_v7 }
0x1f08   :  { %12353 = vmatprep.subr.mxu1 %v7689_v61 }
0x1f09   :  { %12354 = vmatpush3.msra.mxu1 %v7689_v61 }
0x1f0a   :  { %12356 = vmatmul.mubr.msk.f32.vlgmr.msra.gmra.mxu1 %vm17645_vm2, %v7594_v10  ;;  %vm17667_vm2 = vmmov %vm17661_vm0  ;;  %v17687_v10 = vld [vmem:[#allocation171_spill] sm:$0xff] }
0x1f0b   :  { %12358 = vmatprep.mubr.msk.f32.mxu1 %vm17646_vm15, %v7595_v16  ;;  %vm17668_vm15 = vmmov %vm17661_vm0 }
0x1f0e   :  { %12359 = vmatmul.mubr.msk.f32.gmra.mxu1 %vm17647_vm6, %v7596_v9  ;;  %vm17669_vm6 = vmmov %vm17661_vm0  ;;  %v17690_v9 = vld [vmem:[#allocation195_spill] sm:$0xff] }
0x1fca   :  { %v12357_v57 = vpop.f32.mrf.mxu1 }
0x1fcb   :  { %v16550_v23 = vadd.f32 %v12357_v57, %v17648_v62 }
0x1fcc   :  { %v7988_v42 = vpop.f32.mrf.mxu1 }
0x1fcd   :  { %v16553_v14 = vadd.f32 %v7988_v42, %v17649_v30  ;;  %v8024_v28 = vmax.f32 %v16550_v23, 0.0  ;;  %v17691_v42 = vld [vmem:[#allocation192_spill] sm:$0xff] }
0x1fce   :  { %v12360_v27 = vpop.f32.mrf.mxu1 }
0x1fcf   :  { %v8023_v20 = vmax.f32 %v16553_v14, 0.0  ;;  %v16558_v37 = vadd.f32 %v12360_v27, %v17650_v13  ;;  %v17692_v13 = vld [vmem:[#allocation197_spill] sm:$0xff] }
0x1fd0   :  { %v7998_v54 = vpop.f32.mrf.mxu1 }
0x1fd1   :  { %v16561_v36 = vadd.f32 %v7998_v54, %v17651_v45  ;;  %12365 = vmatprep.mubr.msk.f32.mxu0 %vm17652_vm14, %v8023_v20  ;;  %v8026_v38 = vmax.f32 %v16558_v37, 0.0  ;;  %vm17670_vm14 = vcmask 785408  }
0x1fd2   :  { %12366 = vmatmul.mubr.msk.f32.vlgmr.msra.gmra.mxu0 %vm17653_vm10, %v8024_v28  ;;  %12415 = vmatprep.mubr.msk.f32.mxu1 %vm17670_vm14, %v8007_v4  ;;  %vm17671_vm10 = vmmov %vm17670_vm14 }
0x1fd3   :  { %v8025_v18 = vmax.f32 %v16561_v36, 0.0  ;;  %12372 = vmatpush3.msk.msra.mxu0 %vm17640_vm8, %v17468_v21  ;;  %vm17695_vm14 = vmmov %vm17669_vm6 }
0x1fd4   :  { %12373 = vmatprep.subr.msk.mxu0 %vm17655_vm1, %v17468_v21 }
0x1fd5   :  { %12368 = vmatprep.mubr.msk.f32.mxu0 %vm17656_vm13, %v8025_v18  ;;  %12374 = vmatpush3.msk.msra.mxu0 %vm17655_vm1, %v17468_v21  ;;  %vm17673_vm13 = vnez %v17672_v41 }
0x1fd6   :  { %12369 = vmatmul.mubr.msk.f32.gmra.mxu0 %vm17657_vm12, %v8026_v38  ;;  %12381 = vmatprep.subr.msk.mxu0 %vm17659_vm7, %v17468_v21  ;;  %vm17674_vm12 = vmmov %vm17671_vm10 }
0x1fd7   :  { %12375 = vmatprep.mubr.msk.f32.mxu0 %vm17660_vm4, %v8023_v20  ;;  %vm17677_vm4 = vmmov %vm17671_vm10 }
0x1fda   :  { %12376 = vmatmul.mubr.msk.f32.vlgmr.msra.gmra.mxu0 %vm17661_vm0, %v8024_v28  ;;  %vm17678_vm0 = vcmask 261120  }
0x1fdb   :  { %12378 = vmatprep.mubr.msk.f32.mxu0 %vm17662_vm11, %v8025_v18  ;;  %12382 = vmatpush3.msk.msra.mxu0 %vm17659_vm7, %v17468_v21  ;;  %vm17676_vm7 = vnez %v17675_v32  ;;  %vm17683_vm11 = vmmov %vm17678_vm0 }
0x1fdc   :  { %12383 = vmatprep.subr.msk.mxu0 %vm17664_vm9, %v17468_v21 }
0x1fdd   :  { %12384 = vmatpush3.msk.msra.mxu0 %vm17664_vm9, %v17468_v21  ;;  %vm17685_vm9 = vnez %v17684_v58 }
0x1fde   :  { %12379 = vmatmul.mubr.msk.f32.gmra.mxu0 %vm17665_vm3, %v8026_v38  ;;  %vm17686_vm3 = vmmov %vm17678_vm0 }
0x1fdf   :  { %12385 = vmatprep.mubr.msk.f32.mxu0 %vm17666_vm5, %v8023_v20  ;;  %vm17688_vm5 = vnez %v17687_v10 }
0x1fe2   :  { %12386 = vmatmul.mubr.msk.f32.vlgmr.msra.gmra.mxu0 %vm17667_vm2, %v8024_v28  ;;  %vm17689_vm2 = vmmov %vm17678_vm0 }
0x1fe3   :  { %12388 = vmatprep.mubr.msk.f32.mxu0 %vm17668_vm15, %v8025_v18  ;;  %vm17694_vm15 = vmmov %vm17669_vm6 }
0x1fe6   :  { %12389 = vmatmul.mubr.msk.f32.gmra.mxu0 %vm17669_vm6, %v8026_v38  ;;  %v17693_v38 = vld [vmem:[#allocation194_spill] sm:$0xff] }
0x1fe7   :  { %12429 = vmatprep.mubr.msk.f32.mxu0 %vm17678_vm0, %v8015_v53  ;;  %v17710_v53 = vld [vmem:[#allocation196_spill] sm:$0xff] }
0x2092   :  { %v12367_v2 = vpop.f32.mrf.mxu0 }
0x2094   :  { %v8105_v49 = vpop.f32.mrf.mxu0 }
0x2096   :  { %v12370_v59 = vpop.f32.mrf.mxu0 }
0x2098   :  { %v8115_v26 = vpop.f32.mrf.mxu0 }
0x209a   :  { %v12377_v0 = vpop.f32.mrf.mxu0 }
0x209c   :  { %v8190_v50 = vpop.f32.mrf.mxu0 }
0x209e   :  { %v12380_v43 = vpop.f32.mrf.mxu0 }
0x20a0   :  { %v8200_v47 = vpop.f32.mrf.mxu0 }
0x20a2   :  { %v12387_v3 = vpop.f32.mrf.mxu0 }
0x20a4   :  { %v8275_v19 = vpop.f32.mrf.mxu0 }
0x20a6   :  { %v12390_v15 = vpop.f32.mrf.mxu0 }
0x20a7   :  { %12391 = vmatprep.subr.mxu1 %v12390_v15 }
0x20a8   :  { %v8285_v39 = vpop.f32.mrf.mxu0  ;;  %12392 = vmatpush3.msra.mxu1 %v12390_v15  ;;  %v8537_v15 = vld [vmem:[#allocation60 + $0x8] sm:$0xff] }
0x20a9   :  { %12393 = vmatprep.subr.mxu1 %v8285_v39 }
0x20aa   :  { %12394 = vmatpush3.msra.mxu1 %v8285_v39  ;;  %v8538_v39 = vld [vmem:[#allocation60 + $0x10] sm:$0xff] }
0x20ab   :  { %12395 = vmatprep.subr.mxu1 %v12387_v3 }
0x20ac   :  { %12396 = vmatpush3.msra.mxu1 %v12387_v3 }
0x20ad   :  { %12397 = vmatprep.subr.mxu1 %v8275_v19 }
0x20ae   :  { %12398 = vmatpush3.msra.mxu1 %v8275_v19 }
0x20af   :  { %12399 = vmatprep.subr.mxu1 %v12380_v43 }
0x20b0   :  { %12400 = vmatpush3.msra.mxu1 %v12380_v43 }
0x20b1   :  { %12401 = vmatprep.subr.mxu1 %v8200_v47 }
0x20b2   :  { %12402 = vmatpush3.msra.mxu1 %v8200_v47 }
0x20b3   :  { %12403 = vmatprep.subr.mxu1 %v12377_v0 }
0x20b4   :  { %12404 = vmatpush3.msra.mxu1 %v12377_v0 }
0x20b5   :  { %12405 = vmatprep.subr.mxu1 %v8190_v50 }
0x20b6   :  { %12406 = vmatpush3.msra.mxu1 %v8190_v50 }
0x20b7   :  { %12407 = vmatprep.subr.mxu1 %v12370_v59 }
0x20b8   :  { %12408 = vmatpush3.msra.mxu1 %v12370_v59 }
0x20b9   :  { %12409 = vmatprep.subr.mxu1 %v8115_v26 }
0x20ba   :  { %12410 = vmatpush3.msra.mxu1 %v8115_v26 }
0x20bb   :  { %12411 = vmatprep.subr.mxu1 %v12367_v2 }
0x20bc   :  { %12412 = vmatpush3.msra.mxu1 %v12367_v2 }
0x20bd   :  { %12413 = vmatprep.subr.mxu1 %v8105_v49 }
0x20be   :  { %12414 = vmatpush3.msra.mxu1 %v8105_v49 }
0x20bf   :  { %12416 = vmatmul.mubr.msk.f32.vlgmr.msra.gmra.mxu1 %vm17671_vm10, %v8008_v31  ;;  %12455 = vmatprep.subr.msk.mxu1 %vm17673_vm13, %v17468_v21  ;;  %vm17696_vm10 = vmmov %vm17669_vm6  ;;  %v8539_v31 = vld [vmem:[#allocation60 + $0x18] sm:$0xff] }
0x20c0   :  { %12418 = vmatprep.mubr.msk.f32.mxu1 %vm17674_vm12, %v8009_v25  ;;  %12456 = vmatpush3.msk.msra.mxu1 %vm17673_vm13, %v17468_v21  ;;  %vm17697_vm13 = vmmov %vm17669_vm6  ;;  %v8544_v25 = vld [vmem:[#allocation63] sm:$0xff] }
0x20c1   :  { %12457 = vmatprep.subr.msk.mxu1 %vm17676_vm7, %v17468_v21  ;;  %vm17698_vm12 = vmmov %vm17669_vm6 }
0x20c2   :  { %12458 = vmatpush3.msk.msra.mxu1 %vm17676_vm7, %v17468_v21  ;;  %vm17699_vm7 = vmmov %vm17669_vm6 }
0x20c3   :  { %12419 = vmatmul.mubr.msk.f32.gmra.mxu1 %vm17677_vm4, %v8010_v63  ;;  %vm17700_vm4 = vmmov %vm17669_vm6 }
0x20c4   :  { %vm17701_vm0 = vmmov %vm17700_vm4 }
0x217f   :  { %v12417_v6 = vpop.f32.mrf.mxu1 }
0x2180   :  { %v8398_v33 = vadd.f32 %v12417_v6, %v17680_v40 }
0x2181   :  { %v8392_v29 = vpop.f32.mrf.mxu1 }
0x2182   :  { %v8393_v55 = vadd.f32 %v8392_v29, %v17682_v8  ;;  %v8412_v60 = vmax.f32 %v8398_v33, 0.0  ;;  %v17713_v33 = vld [vmem:[#allocation201_spill] sm:$0xff] }
0x2183   :  { %v12420_v22 = vpop.f32.mrf.mxu1 }
0x2184   :  { %v8408_v17 = vadd.f32 %v12420_v22, %v17679_v24  ;;  %v8411_v1 = vmax.f32 %v8393_v55, 0.0  ;;  %v17711_v22 = vld [vmem:[#allocation198_spill] sm:$0xff]  ;;  %v8545_v55 = vld [vmem:[#allocation63 + $0x8] sm:$0xff] }
0x2185   :  { %v8402_v12 = vpop.f32.mrf.mxu1 }
0x2186   :  { %v8414_v7 = vmax.f32 %v8408_v17, 0.0  ;;  %v8403_v61 = vadd.f32 %v8402_v12, %v17681_v48  ;;  %v17712_v12 = vld [vmem:[#allocation199_spill] sm:$0xff] }
0x2188   :  { %v8413_v11 = vmax.f32 %v8403_v61, 0.0  ;;  %12421 = vmatprep.subr.mxu0 %v8414_v7 }
0x2189   :  { %12422 = vmatpush3.msra.mxu0 %v8414_v7 }
0x218a   :  { %12423 = vmatprep.subr.mxu0 %v8413_v11 }
0x218b   :  { %12424 = vmatpush3.msra.mxu0 %v8413_v11  ;;  %v8546_v11 = vld [vmem:[#allocation63 + $0x10] sm:$0xff] }
0x218c   :  { %12425 = vmatprep.subr.mxu0 %v8412_v60 }
0x218d   :  { %12426 = vmatpush3.msra.mxu0 %v8412_v60  ;;  %v8547_v60 = vld [vmem:[#allocation63 + $0x18] sm:$0xff] }
0x218e   :  { %12427 = vmatprep.subr.mxu0 %v8411_v1 }
0x218f   :  { %12428 = vmatpush3.msra.mxu0 %v8411_v1  ;;  %v17717_v1 = vld [vmem:[#allocation152_spill] sm:$0xff] }
0x2190   :  { %12430 = vmatmul.mubr.msk.f32.vlgmr.msra.gmra.mxu0 %vm17683_vm11, %v8016_v35  ;;  %12435 = vmatprep.subr.msk.mxu0 %vm17685_vm9, %v17468_v21  ;;  %vm17703_vm11 = vmmov %vm17701_vm0  ;;  %v9073_v35 = vmul.u32 8, %v17717_v1  ;;  %v17776_v1 = vld [vmem:[#allocation164_spill] sm:$0xff] }
0x2191   :  { %12432 = vmatprep.mubr.msk.f32.mxu0 %vm17686_vm3, %v8017_v44  ;;  %12436 = vmatpush3.msk.msra.mxu0 %vm17685_vm9, %v17468_v21  ;;  %vm17704_vm9 = vmmov %vm17701_vm0  ;;  %vm17705_vm3 = vcmask 785408   ;;  %v17718_v44 = vld [vmem:[#allocation151_spill] sm:$0xff] }
0x2192   :  { %12437 = vmatprep.subr.msk.mxu0 %vm17688_vm5, %v17468_v21  ;;  %v9075_v58 = vsub.s32 %v17718_v44, %v9073_v35  ;;  %v9074_v10 = vsub.s32 %v17610_v34, %v9073_v35  ;;  %v17727_v34 = vld [vmem:[#allocation153_spill] sm:$0xff]  ;;  %v17779_v35 = vld [vmem:[#allocation166_spill] sm:$0xff] }
0x2193   :  { %12438 = vmatpush3.msk.msra.mxu0 %vm17688_vm5, %v17468_v21  ;;  %v17782_v44 = vld [vmem:[#allocation161_spill] sm:$0xff] }
0x2194   :  { %12433 = vmatmul.mubr.msk.f32.gmra.mxu0 %vm17689_vm2, %v8018_v46  ;;  %12445 = vmatprep.subr.msk.mxu0 %vm17640_vm8, %v17468_v21  ;;  %v9077_v46 = vmul.u32 2, %v9075_v58  ;;  %v17785_v58 = vld [vmem:[#allocation163_spill] sm:$0xff] }
0x2250   :  { %v12431_v16 = vpop.f32.mrf.mxu0 }
0x2251   :  { %v8519_v57 = vadd.f32 %v12431_v16, %v17690_v9  ;;  %v9081_v16 = vadd.s32 2, %v9077_v46  ;;  %v9076_v9 = vmul.u32 2, %v9074_v10  ;;  %v17791_v10 = vld [vmem:[#allocation167_spill] sm:$0xff] }
0x2252   :  { %v8513_v62 = vpop.f32.mrf.mxu0 }
0x2253   :  { %v8514_v30 = vadd.f32 %v8513_v62, %v17691_v42  ;;  %v16640_v27 = vadd.f32 %v8519_v57, %v16550_v23  ;;  %v17719_v57 = vld [vmem:[#allocation154_spill] sm:$0xff]  ;;  %v9080_v62 = vadd.s32 2, %v9076_v9 }
0x2254   :  { %v12434_v20 = vpop.f32.mrf.mxu0  ;;  %v17720_v42 = vld [vmem:[#allocation158_spill] sm:$0xff] }
0x2255   :  { %v16643_v28 = vadd.f32 %v8514_v30, %v16553_v14  ;;  %v8529_v54 = vadd.f32 %v12434_v20, %v17692_v13  ;;  %v8553_v51 = vmax.f32 %v16640_v27, 0.0  ;;  %v17734_v20 = vld [vmem:[#allocation155_spill] sm:$0xff] }
0x2256   :  { %v8523_v45 = vpop.f32.mrf.mxu0 }
0x2257   :  { %v8552_v18 = vmax.f32 %v16643_v28, 0.0  ;;  %v8524_v52 = vadd.f32 %v8523_v45, %v17693_v38  ;;  %v16650_v4 = vadd.f32 %v8529_v54, %v16558_v37  ;;  %v17736_v54 = vld [vmem:[#allocation203_spill] sm:$0xff]  ;;  %v17737_v38 = vld [vmem:[#allocation200_spill] sm:$0xff] }
0x2259   :  { %v16653_v2 = vadd.f32 %v8524_v52, %v16561_v36  ;;  %12439 = vmatprep.mubr.msk.f32.mxu0 %vm17694_vm15, %v8552_v18  ;;  %12459 = vmatprep.mubr.msk.f32.mxu1 %vm17669_vm6, %v8552_v18  ;;  %v8555_v14 = vmax.f32 %v16650_v4, 0.0  ;;  %vm17709_vm15 = vcmask 261120  }
0x225a   :  { %12440 = vmatmul.mubr.msk.f32.vlgmr.msra.gmra.mxu0 %vm17695_vm14, %v8553_v51  ;;  %12460 = vmatmul.mubr.msk.f32.vlgmr.msra.gmra.mxu1 %vm17696_vm10, %v8553_v51  ;;  %vm17714_vm6 = vmmov %vm17709_vm15 }
0x225b   :  { %v8554_v23 = vmax.f32 %v16653_v2, 0.0  ;;  %12446 = vmatpush3.msk.msra.mxu0 %vm17640_vm8, %v17468_v21  ;;  %vm17702_vm8 = vmmov %vm17701_vm0 }
0x225c   :  { %12447 = vmatprep.subr.msk.mxu0 %vm17655_vm1, %v17468_v21  ;;  %vm17715_vm14 = vmmov %vm17714_vm6 }
0x225d   :  { %12442 = vmatprep.mubr.msk.f32.mxu0 %vm17697_vm13, %v8554_v23  ;;  %12462 = vmatprep.mubr.msk.f32.mxu1 %vm17698_vm12, %v8554_v23  ;;  %vm17716_vm10 = vmmov %vm17714_vm6  ;;  %vm9079_vm13 = vcmp.le.s32.totalorder %v9077_v46, %v17719_v57  ;;  %vm9083_vm12 = vcmp.lt.s32.totalorder %v17719_v57, %v9081_v16 }
0x225e   :  { %12443 = vmatmul.mubr.msk.f32.gmra.mxu0 %vm17699_vm7, %v8555_v14  ;;  %12463 = vmatmul.mubr.msk.f32.gmra.mxu1 %vm17700_vm4, %v8555_v14  ;;  %vm9085_vm7 = vmand %vm9079_vm13, %vm9083_vm12  ;;  %vm9287_vm4 = vcmp.le.s32.totalorder %v9077_v46, %v17720_v42  ;;  %vm9286_vm12 = vcmp.le.s32.totalorder %v9076_v9, %v17720_v42 }
0x225f   :  { %12448 = vmatpush3.msk.msra.mxu0 %vm17655_vm1, %v17468_v21  ;;  %12449 = vmatprep.mubr.msk.f32.mxu0 %vm17701_vm0, %v8552_v18  ;;  %vm17706_vm1 = vmmov %vm17705_vm3  ;;  %vm9289_vm0 = vcmp.lt.s32.totalorder %v17720_v42, %v9081_v16 }
0x2260   :  { %vm17707_vm5 = vmmov %vm17706_vm1  ;;  %12503 = vmatprep.mubr.msk.f32.mxu1 %vm17709_vm15, %v8544_v25  ;;  %vm17723_vm15 = vcmp.ge.s32.totalorder %v17720_v42, 0 }
0x2261   :  { %vm17708_vm2 = vmmov %vm17706_vm1 }
0x2262   :  { %12450 = vmatmul.mubr.msk.f32.vlgmr.msra.gmra.mxu0 %vm17702_vm8, %v8553_v51  ;;  %vm17721_vm8 = vcmp.ge.s32.totalorder %v17719_v57, 0 }
0x2263   :  { %12452 = vmatprep.mubr.msk.f32.mxu0 %vm17703_vm11, %v8554_v23  ;;  %vm9087_vm11 = vmand %vm9085_vm7, %vm17721_vm8  ;;  %vm9288_vm7 = vcmp.lt.s32.totalorder %v17720_v42, %v9080_v62 }
0x2266   :  { %12453 = vmatmul.mubr.msk.f32.gmra.mxu0 %vm17704_vm9, %v8555_v14  ;;  %vm17722_vm9 = vcmp.lt.s32.totalorder %v17719_v57, 16 }
0x2267   :  { %12489 = vmatprep.mubr.msk.f32.mxu0 %vm17705_vm3, %v8536_v5  ;;  %vm9089_vm3 = vmand %vm9087_vm11, %vm17722_vm9  ;;  %v17739_v5 = vld [vmem:[#allocation205_spill] sm:$0xff] }
0x231a   :  { %v12441_v37 = vpop.f32.mrf.mxu0  ;;  %v12461_v36 = vpop.f32.mrf.mxu1 }
0x231c   :  { %v8634_v49 = vpop.f32.mrf.mxu0  ;;  %v8804_v59 = vpop.f32.mrf.mxu1 }
0x231e   :  { %v12444_v26 = vpop.f32.mrf.mxu0  ;;  %v12464_v0 = vpop.f32.mrf.mxu1 }
0x231f   :  { %12465 = vmatprep.subr.mxu0 %v12464_v0 }
0x2320   :  { %v8644_v56 = vpop.f32.mrf.mxu0  ;;  %v8814_v50 = vpop.f32.mrf.mxu1  ;;  %12466 = vmatpush3.msra.mxu0 %v12464_v0  ;;  %v17759_v0 = vld [vmem:[#allocation160_spill] sm:$0xff] }
0x2321   :  { %12467 = vmatprep.subr.mxu0 %v8814_v50 }
0x2322   :  { %v12451_v43 = vpop.f32.mrf.mxu0  ;;  %12468 = vmatpush3.msra.mxu0 %v8814_v50 }
0x2323   :  { %12469 = vmatprep.subr.mxu0 %v12461_v36 }
0x2324   :  { %v8719_v47 = vpop.f32.mrf.mxu0  ;;  %12470 = vmatpush3.msra.mxu0 %v12461_v36 }
0x2325   :  { %12471 = vmatprep.subr.mxu0 %v8804_v59 }
0x2326   :  { %v12454_v3 = vpop.f32.mrf.mxu0  ;;  %12472 = vmatpush3.msra.mxu0 %v8804_v59 }
0x2327   :  { %12473 = vmatprep.subr.mxu0 %v12454_v3 }
0x2328   :  { %v8729_v19 = vpop.f32.mrf.mxu0  ;;  %12474 = vmatpush3.msra.mxu0 %v12454_v3 }
0x2329   :  { %12475 = vmatprep.subr.mxu0 %v8729_v19 }
0x232a   :  { %12476 = vmatpush3.msra.mxu0 %v8729_v19 }
0x232b   :  { %12477 = vmatprep.subr.mxu0 %v12451_v43 }
0x232c   :  { %12478 = vmatpush3.msra.mxu0 %v12451_v43 }
0x232d   :  { %12479 = vmatprep.subr.mxu0 %v8719_v47 }
0x232e   :  { %12480 = vmatpush3.msra.mxu0 %v8719_v47 }
0x232f   :  { %12481 = vmatprep.subr.mxu0 %v12444_v26 }
0x2330   :  { %12482 = vmatpush3.msra.mxu0 %v12444_v26  ;;  %v17746_v26 = vld [vmem:[#allocation156_spill] sm:$0xff] }
0x2331   :  { %12483 = vmatprep.subr.mxu0 %v8644_v56 }
0x2332   :  { %12484 = vmatpush3.msra.mxu0 %v8644_v56  ;;  %v9065_v56 = vld [vmem:[#allocation66] sm:$0xff] }
0x2333   :  { %12485 = vmatprep.subr.mxu0 %v12441_v37 }
0x2334   :  { %12486 = vmatpush3.msra.mxu0 %v12441_v37 }
0x2335   :  { %12487 = vmatprep.subr.mxu0 %v8634_v49 }
0x2336   :  { %12488 = vmatpush3.msra.mxu0 %v8634_v49  ;;  %v17740_v49 = vld [vmem:[#allocation202_spill] sm:$0xff] }
0x2337   :  { %12490 = vmatmul.mubr.msk.f32.vlgmr.msra.gmra.mxu0 %vm17706_vm1, %v8537_v15  ;;  %vm9291_vm1 = vmand %vm9287_vm4, %vm9289_vm0 }
0x2338   :  { %12492 = vmatprep.mubr.msk.f32.mxu0 %vm17707_vm5, %v8538_v39  ;;  %vm9078_vm5 = vcmp.le.s32.totalorder %v9076_v9, %v17719_v57  ;;  %vm17725_vm4 = vmmov %vm17721_vm8 }
0x2339   :  { %vm17726_vm8 = vmmov %vm17722_vm9 }
0x233a   :  { %vm9290_vm9 = vmand %vm9286_vm12, %vm9288_vm7  ;;  %vm17730_vm12 = vcmp.ge.s32.totalorder %v17727_v34, 0 }
0x233b   :  { %12493 = vmatmul.mubr.msk.f32.gmra.mxu0 %vm17708_vm2, %v8539_v31  ;;  %vm9082_vm2 = vcmp.lt.s32.totalorder %v17719_v57, %v9080_v62 }
0x233c   :  { %vm9084_vm13 = vmand %vm9078_vm5, %vm9082_vm2 }
0x233d   :  { %vm9086_vm0 = vmand %vm9084_vm13, %vm17725_vm4  ;;  %vm9191_vm13 = vcmp.lt.s32.totalorder %v17727_v34, %v9080_v62  ;;  %vm17731_vm4 = vcmp.lt.s32.totalorder %v17727_v34, 16 }
0x233e   :  { %vm9088_vm11 = vmand %vm9086_vm0, %vm17726_vm8  ;;  %vm17735_vm8 = vnez %v17734_v20 }
0x233f   :  { %vm17728_vm5 = vmmov %vm17723_vm15 }
0x2340   :  { %vm9292_vm2 = vmand %vm9290_vm9, %vm17728_vm5 }
0x2341   :  { %vm17738_vm9 = vmmov %vm17730_vm12 }
0x23f7   :  { %v12491_v41 = vpop.f32.mrf.mxu0 }
0x23f8   :  { %v8927_v24 = vadd.f32 %v12491_v41, %v17711_v22 }
0x23f9   :  { %v8921_v63 = vpop.f32.mrf.mxu0 }
0x23fa   :  { %v8922_v7 = vadd.f32 %v8921_v63, %v17713_v33  ;;  %v8941_v61 = vmax.f32 %v8927_v24, 0.0 }
0x23fb   :  { %v12494_v32 = vpop.f32.mrf.mxu0 }
0x23fc   :  { %v8937_v6 = vadd.f32 %v12494_v32, %v17710_v53  ;;  %v8940_v8 = vmax.f32 %v8922_v7, 0.0  ;;  %v9066_v53 = vld [vmem:[#allocation66 + $0x8] sm:$0xff] }
0x23fd   :  { %v8931_v29 = vpop.f32.mrf.mxu0 }
0x23fe   :  { %v8943_v17 = vmax.f32 %v8937_v6, 0.0  ;;  %v8932_v40 = vadd.f32 %v8931_v29, %v17712_v12  ;;  %v9067_v6 = vld [vmem:[#allocation66 + $0x10] sm:$0xff]  ;;  %v9068_v29 = vld [vmem:[#allocation66 + $0x18] sm:$0xff] }
0x2400   :  { %v8942_v48 = vmax.f32 %v8932_v40, 0.0  ;;  %12495 = vmatprep.subr.mxu1 %v8943_v17  ;;  %v17767_v40 = vld [vmem:[#allocation207_spill] sm:$0xff] }
0x2401   :  { %12496 = vmatpush3.msra.mxu1 %v8943_v17  ;;  %v17766_v17 = vld [vmem:[#allocation204_spill] sm:$0xff] }
0x2402   :  { %12497 = vmatprep.subr.mxu1 %v8942_v48 }
0x2403   :  { %12498 = vmatpush3.msra.mxu1 %v8942_v48 }
0x2404   :  { %12499 = vmatprep.subr.mxu1 %v8941_v61 }
0x2405   :  { %12500 = vmatpush3.msra.mxu1 %v8941_v61  ;;  %v17770_v61 = vld [vmem:[#allocation206_spill] sm:$0xff] }
0x2406   :  { %12501 = vmatprep.subr.mxu1 %v8940_v8 }
0x2407   :  { %12502 = vmatpush3.msra.mxu1 %v8940_v8 }
0x2408   :  { %12504 = vmatmul.mubr.msk.f32.vlgmr.msra.gmra.mxu1 %vm17714_vm6, %v8545_v55  ;;  %12509 = vmatprep.subr.msk.mxu1 %vm9089_vm3, %v17468_v21  ;;  %vm9293_vm6 = vmand %vm9291_vm1, %vm17723_vm15  ;;  %vm9192_vm1 = vcmp.lt.s32.totalorder %v17727_v34, %v9081_v16  ;;  %v17771_v55 = vld [vmem:[#allocation209_spill] sm:$0xff]  ;;  %v9500_v16 = vld [vmem:[#allocation69] sm:$0xff] }
0x2409   :  { %12506 = vmatprep.mubr.msk.f32.mxu1 %vm17715_vm14, %v8546_v11  ;;  %12510 = vmatpush3.msk.msra.mxu1 %vm9089_vm3, %v17468_v21  ;;  %vm17724_vm14 = vcmp.lt.s32.totalorder %v17720_v42, 16  ;;  %vm9190_vm3 = vcmp.le.s32.totalorder %v9077_v46, %v17727_v34  ;;  %v17788_v46 = vld [vmem:[#allocation165_spill] sm:$0xff] }
0x240a   :  { %12511 = vmatprep.subr.msk.mxu1 %vm9088_vm11, %v17468_v21  ;;  %vm17729_vm15 = vmmov %vm17724_vm14 }
0x240b   :  { %12512 = vmatpush3.msk.msra.mxu1 %vm9088_vm11, %v17468_v21 }
0x240c   :  { %12507 = vmatmul.mubr.msk.f32.gmra.mxu1 %vm17716_vm10, %v8547_v60  ;;  %vm9295_vm10 = vmand %vm9293_vm6, %vm17724_vm14  ;;  %v17772_v60 = vld [vmem:[#allocation162_spill] sm:$0xff] }
0x240d   :  { %12529 = vmatprep.subr.msk.mxu0 %vm9295_vm10, %v17468_v21  ;;  %vm9294_vm6 = vmand %vm9292_vm2, %vm17729_vm15 }
0x240e   :  { %12530 = vmatpush3.msk.msra.mxu0 %vm9295_vm10, %v17468_v21  ;;  %vm9194_vm14 = vmand %vm9190_vm3, %vm9192_vm1  ;;  %vm9189_vm10 = vcmp.le.s32.totalorder %v9076_v9, %v17727_v34  ;;  %vm17741_vm1 = vcmask 130048  }
0x240f   :  { %12531 = vmatprep.subr.msk.mxu0 %vm9294_vm6, %v17468_v21  ;;  %vm9196_vm7 = vmand %vm9194_vm14, %vm17730_vm12 }
0x2410   :  { %12532 = vmatpush3.msk.msra.mxu0 %vm9294_vm6, %v17468_v21  ;;  %vm16733_vm0 = vmand %vm9196_vm7, %vm17731_vm4 }
0x2411   :  { %12569 = vmatprep.subr.msk.mxu0 %vm17735_vm8, %v17468_v21  ;;  %12519 = vmatprep.subr.msk.mxu1 %vm16733_vm0, %v17468_v21  ;;  %vm9193_vm11 = vmand %vm9189_vm10, %vm9191_vm13  ;;  %vm17747_vm10 = vnez %v17746_v26 }
0x2412   :  { %vm9195_vm3 = vmand %vm9193_vm11, %vm17738_vm9 }
0x2413   :  { %vm17742_vm5 = vmmov %vm17741_vm1 }
0x2414   :  { %vm17743_vm2 = vmmov %vm17731_vm4 }
0x2415   :  { %vm9197_vm15 = vmand %vm9195_vm3, %vm17743_vm2 }
0x2416   :  { %vm17744_vm6 = vmmov %vm17741_vm1 }
0x2417   :  { %vm17745_vm14 = vmmov %vm17741_vm1 }
0x2418   :  { %vm17748_vm13 = vmmov %vm17741_vm1 }
0x2419   :  { %vm17749_vm12 = vmmov %vm17741_vm1 }
0x241a   :  { %vm17750_vm7 = vmmov %vm17741_vm1 }
0x241b   :  { %vm17751_vm4 = vmmov %vm17741_vm1 }
0x24c8   :  { %v12505_v13 = vpop.f32.mrf.mxu1 }
0x24c9   :  { %v9048_v45 = vadd.f32 %v12505_v13, %v17736_v54 }
0x24ca   :  { %v9042_v18 = vpop.f32.mrf.mxu1 }
0x24cb   :  { %v9043_v52 = vadd.f32 %v9042_v18, %v17737_v38  ;;  %v9062_v14 = vadd.f32 %v9048_v45, %v16640_v27 }
0x24cc   :  { %v12508_v51 = vpop.f32.mrf.mxu1 }
0x24cd   :  { %v9061_v23 = vadd.f32 %v9043_v52, %v16643_v28  ;;  %v9058_v37 = vadd.f32 %v12508_v51, %v17739_v5  ;;  %v9501_v52 = vld [vmem:[#allocation69 + $0x8] sm:$0xff]  ;;  %v9502_v51 = vld [vmem:[#allocation69 + $0x10] sm:$0xff] }
0x24ce   :  { %v9052_v36 = vpop.f32.mrf.mxu1 }
0x24cf   :  { %v9053_v59 = vadd.f32 %v9052_v36, %v17740_v49  ;;  %12513 = vmatprep.mubr.msk.f32.mxu1 %vm17741_vm1, %v9061_v23  ;;  %12533 = vmatprep.mubr.msk.f32.mxu0 %vm17742_vm5, %v9061_v23  ;;  %v9064_v27 = vadd.f32 %v9058_v37, %v16650_v4  ;;  %v17753_v4 = vld [vmem:[#allocation157_spill] sm:$0xff]  ;;  %vm17760_vm5 = vnez %v17759_v0  ;;  %v17801_v37 = vld [vmem:[#allocation211_spill] sm:$0xff] }
0x24d0   :  { %12514 = vmatmul.mubr.msk.f32.vlgmr.msra.gmra.mxu1 %vm17744_vm6, %v9062_v14  ;;  %12534 = vmatmul.mubr.msk.f32.vlgmr.msra.gmra.mxu0 %vm17745_vm14, %v9062_v14  ;;  %vm17754_vm11 = vnez %v17753_v4 }
0x24d1   :  { %v9063_v28 = vadd.f32 %v9053_v59, %v16653_v2  ;;  %12520 = vmatpush3.msk.msra.mxu1 %vm16733_vm0, %v17468_v21  ;;  %12570 = vmatpush3.msk.msra.mxu0 %vm17735_vm8, %v17468_v21  ;;  %vm17752_vm0 = vmmov %vm17741_vm1  ;;  %v17757_v2 = vld [vmem:[#allocation159_spill] sm:$0xff]  ;;  %v17802_v59 = vld [vmem:[#allocation208_spill] sm:$0xff] }
0x24d2   :  { %12521 = vmatprep.subr.msk.mxu1 %vm9197_vm15, %v17468_v21  ;;  %12571 = vmatprep.subr.msk.mxu0 %vm17747_vm10, %v17468_v21  ;;  %vm17755_vm9 = vmmov %vm17752_vm0  ;;  %vm17758_vm1 = vnez %v17757_v2  ;;  %v17803_v2 = vld [vmem:[#allocation212_spill] sm:$0xff] }
0x24d3   :  { %12516 = vmatprep.mubr.msk.f32.mxu1 %vm17748_vm13, %v9063_v28  ;;  %12536 = vmatprep.mubr.msk.f32.mxu0 %vm17749_vm12, %v9063_v28  ;;  %vm17756_vm3 = vmmov %vm17752_vm0  ;;  %vm17768_vm12 = vcmask 261120  }
0x24d4   :  { %12517 = vmatmul.mubr.msk.f32.gmra.mxu1 %vm17750_vm7, %v9064_v27  ;;  %12537 = vmatmul.mubr.msk.f32.gmra.mxu0 %vm17751_vm4, %v9064_v27  ;;  %vm17761_vm2 = vmmov %vm17752_vm0  ;;  %vm17773_vm4 = vnez %v17772_v60 }
0x24d5   :  { %12522 = vmatpush3.msk.msra.mxu1 %vm9197_vm15, %v17468_v21  ;;  %12523 = vmatprep.mubr.msk.f32.mxu1 %vm17752_vm0, %v9061_v23  ;;  %vm17762_vm15 = vcmask 785408   ;;  %vm17769_vm7 = vmmov %vm17768_vm12  ;;  %v17797_v23 = vmov 0.0  }
0x24d6   :  { %12572 = vmatpush3.msk.msra.mxu0 %vm17747_vm10, %v17468_v21  ;;  %vm17763_vm6 = vmmov %vm17762_vm15 }
0x24d7   :  { %12573 = vmatprep.subr.msk.mxu0 %vm17754_vm11, %v17468_v21  ;;  %vm17764_vm14 = vmmov %vm17763_vm6 }
0x24d8   :  { %12524 = vmatmul.mubr.msk.f32.vlgmr.msra.gmra.mxu1 %vm17755_vm9, %v9062_v14  ;;  %12574 = vmatpush3.msk.msra.mxu0 %vm17754_vm11, %v17468_v21  ;;  %vm17765_vm13 = vmmov %vm17763_vm6  ;;  %v9503_v14 = vld [vmem:[#allocation69 + $0x18] sm:$0xff] }
0x24d9   :  { %12526 = vmatprep.mubr.msk.f32.mxu1 %vm17756_vm3, %v9063_v28  ;;  %12575 = vmatprep.subr.msk.mxu0 %vm17758_vm1, %v17468_v21  ;;  %vm17774_vm0 = vmmov %vm17769_vm7  ;;  %vm17777_vm3 = vnez %v17776_v1 }
0x24da   :  { %12576 = vmatpush3.msk.msra.mxu0 %vm17758_vm1, %v17468_v21  ;;  %vm17775_vm9 = vmmov %vm17774_vm0 }
0x24db   :  { %12583 = vmatprep.subr.msk.mxu0 %vm17760_vm5, %v17468_v21 }
0x24dc   :  { %12527 = vmatmul.mubr.msk.f32.gmra.mxu1 %vm17761_vm2, %v9064_v27  ;;  %vm17778_vm2 = vmmov %vm17774_vm0 }
0x24dd   :  { %12563 = vmatprep.mubr.msk.f32.mxu1 %vm17762_vm15, %v9065_v56  ;;  %vm17780_vm15 = vnez %v17779_v35 }
0x2590   :  { %v12515_v50 = vpop.f32.mrf.mxu1  ;;  %v12535_v43 = vpop.f32.mrf.mxu0 }
0x2592   :  { %v9170_v47 = vpop.f32.mrf.mxu1  ;;  %v9364_v3 = vpop.f32.mrf.mxu0 }
0x2594   :  { %v12518_v19 = vpop.f32.mrf.mxu1  ;;  %v12538_v15 = vpop.f32.mrf.mxu0 }
0x2595   :  { %12539 = vmatprep.subr.mxu1 %v12538_v15 }
0x2596   :  { %v9180_v39 = vpop.f32.mrf.mxu1  ;;  %v9374_v31 = vpop.f32.mrf.mxu0  ;;  %12540 = vmatpush3.msra.mxu1 %v12538_v15 }
0x2597   :  { %12541 = vmatprep.subr.mxu1 %v9374_v31 }
0x2598   :  { %v12525_v25 = vpop.f32.mrf.mxu1  ;;  %12542 = vmatpush3.msra.mxu1 %v9374_v31 }
0x2599   :  { %12543 = vmatprep.subr.mxu1 %v12535_v43 }
0x259a   :  { %v9267_v41 = vpop.f32.mrf.mxu1  ;;  %12544 = vmatpush3.msra.mxu1 %v12535_v43  ;;  %v17804_v43 = vld [vmem:[#allocation210_spill] sm:$0xff] }
0x259b   :  { %12545 = vmatprep.subr.mxu1 %v9364_v3 }
0x259c   :  { %v12528_v63 = vpop.f32.mrf.mxu1  ;;  %12546 = vmatpush3.msra.mxu1 %v9364_v3 }
0x259d   :  { %12547 = vmatprep.subr.mxu1 %v12528_v63 }
0x259e   :  { %v9277_v32 = vpop.f32.mrf.mxu1  ;;  %12548 = vmatpush3.msra.mxu1 %v12528_v63 }
0x259f   :  { %12549 = vmatprep.subr.mxu1 %v9277_v32 }
0x25a0   :  { %12550 = vmatpush3.msra.mxu1 %v9277_v32 }
0x25a1   :  { %12551 = vmatprep.subr.mxu1 %v12525_v25 }
0x25a2   :  { %12552 = vmatpush3.msra.mxu1 %v12525_v25 }
0x25a3   :  { %12553 = vmatprep.subr.mxu1 %v9267_v41 }
0x25a4   :  { %12554 = vmatpush3.msra.mxu1 %v9267_v41 }
0x25a5   :  { %12555 = vmatprep.subr.mxu1 %v12518_v19 }
0x25a6   :  { %12556 = vmatpush3.msra.mxu1 %v12518_v19 }
0x25a7   :  { %12557 = vmatprep.subr.mxu1 %v9180_v39 }
0x25a8   :  { %12558 = vmatpush3.msra.mxu1 %v9180_v39 }
0x25a9   :  { %12559 = vmatprep.subr.mxu1 %v12515_v50 }
0x25aa   :  { %12560 = vmatpush3.msra.mxu1 %v12515_v50 }
0x25ab   :  { %12561 = vmatprep.subr.mxu1 %v9170_v47 }
0x25ac   :  { %12562 = vmatpush3.msra.mxu1 %v9170_v47 }
0x25ad   :  { %12564 = vmatmul.mubr.msk.f32.vlgmr.msra.gmra.mxu1 %vm17763_vm6, %v9066_v53  ;;  %vm17781_vm6 = vmmov %vm17774_vm0 }
0x25ae   :  { %12566 = vmatprep.mubr.msk.f32.mxu1 %vm17764_vm14, %v9067_v6  ;;  %vm17783_vm14 = vnez %v17782_v44 }
0x25b1   :  { %12567 = vmatmul.mubr.msk.f32.gmra.mxu1 %vm17765_vm13, %v9068_v29  ;;  %vm17784_vm13 = vmmov %vm17774_vm0 }
0x266d   :  { %v12565_v22 = vpop.f32.mrf.mxu1 }
0x266e   :  { %v9487_v33 = vadd.f32 %v12565_v22, %v17767_v40 }
0x266f   :  { %v9481_v24 = vpop.f32.mrf.mxu1 }
0x2670   :  { %v9482_v12 = vadd.f32 %v9481_v24, %v17766_v17  ;;  %v10168_v24 = vpop.permute.xlu1 %10167 }
0x2671   :  { %v12568_v7 = vpop.f32.mrf.mxu1 }
0x2672   :  { %12577 = vmatprep.mubr.msk.f32.mxu0 %vm17768_vm12, %v9482_v12  ;;  %v9497_v11 = vadd.f32 %v12568_v7, %v17771_v55  ;;  %vm17786_vm12 = vnez %v17785_v58 }
0x2673   :  { %v9491_v48 = vpop.f32.mrf.mxu1  ;;  %12578 = vmatmul.mubr.msk.f32.vlgmr.msra.gmra.mxu0 %vm17769_vm7, %v9487_v33  ;;  %vm17787_vm7 = vmmov %vm17774_vm0 }
0x2674   :  { %v9492_v8 = vadd.f32 %v9491_v48, %v17770_v61  ;;  %12584 = vmatpush3.msk.msra.mxu0 %vm17760_vm5, %v17468_v21 }
0x2675   :  { %12585 = vmatprep.subr.msk.mxu0 %vm17773_vm4, %v17468_v21 }
0x2676   :  { %12580 = vmatprep.mubr.msk.f32.mxu0 %vm17774_vm0, %v9492_v8  ;;  %12586 = vmatpush3.msk.msra.mxu0 %vm17773_vm4, %v17468_v21  ;;  %vm17789_vm0 = vnez %v17788_v46 }
0x2677   :  { %12581 = vmatmul.mubr.msk.f32.gmra.mxu0 %vm17775_vm9, %v9497_v11  ;;  %12587 = vmatprep.subr.msk.mxu0 %vm17777_vm3, %v17468_v21  ;;  %vm17790_vm9 = vmmov %vm17778_vm2 }
0x2678   :  { %12588 = vmatpush3.msk.msra.mxu0 %vm17777_vm3, %v17468_v21  ;;  %12591 = vmatprep.mubr.msk.f32.mxu0 %vm17778_vm2, %v9482_v12  ;;  %vm17792_vm2 = vnez %v17791_v10 }
0x2679   :  { %12589 = vmatprep.subr.msk.mxu0 %vm17780_vm15, %v17468_v21 }
0x267a   :  { %12590 = vmatpush3.msk.msra.mxu0 %vm17780_vm15, %v17468_v21 }
0x267b   :  { %12592 = vmatmul.mubr.msk.f32.vlgmr.msra.gmra.mxu0 %vm17781_vm6, %v9487_v33  ;;  %12597 = vmatprep.subr.msk.mxu0 %vm17783_vm14, %v17468_v21 }
0x267c   :  { %12594 = vmatprep.mubr.msk.f32.mxu0 %vm17784_vm13, %v9492_v8  ;;  %12598 = vmatpush3.msk.msra.mxu0 %vm17783_vm14, %v17468_v21  ;;  %vm17793_vm13 = vmmov %vm17781_vm6 }
0x267d   :  { %12599 = vmatprep.subr.msk.mxu0 %vm17786_vm12, %v17468_v21 }
0x267e   :  { %12600 = vmatpush3.msk.msra.mxu0 %vm17786_vm12, %v17468_v21 }
0x267f   :  { %12595 = vmatmul.mubr.msk.f32.gmra.mxu0 %vm17787_vm7, %v9497_v11  ;;  %12601 = vmatprep.subr.msk.mxu0 %vm17789_vm0, %v17468_v21  ;;  %vm17794_vm7 = vmmov %vm17781_vm6 }
0x2680   :  { %12602 = vmatpush3.msk.msra.mxu0 %vm17789_vm0, %v17468_v21  ;;  %12605 = vmatprep.mubr.msk.f32.mxu0 %vm17790_vm9, %v9482_v12  ;;  %vm17800_vm9 = vmmov 0  }
0x2681   :  { %12603 = vmatprep.subr.msk.mxu0 %vm17792_vm2, %v17468_v21 }
0x2682   :  { %12604 = vmatpush3.msk.msra.mxu0 %vm17792_vm2, %v17468_v21 }
0x2683   :  { %12606 = vmatmul.mubr.msk.f32.vlgmr.msra.gmra.mxu0 %vm17781_vm6, %v9487_v33  ;;  %12641 = vmatprep.subr.msk.mxu0 %vm17735_vm8, %v17468_v21 }
0x2684   :  { %12608 = vmatprep.mubr.msk.f32.mxu0 %vm17793_vm13, %v9492_v8  ;;  %12642 = vmatpush3.msk.msra.mxu0 %vm17735_vm8, %v17468_v21  ;;  %vm17795_vm8 = vcmask 785408   ;;  %vm17805_vm13 = vmmov %vm17781_vm6 }
0x2685   :  { %12643 = vmatprep.subr.msk.mxu0 %vm17747_vm10, %v17468_v21  ;;  %12635 = vmatprep.mubr.msk.f32.mxu1 %vm17795_vm8, %v9500_v16 }
0x2686   :  { %12644 = vmatpush3.msk.msra.mxu0 %vm17747_vm10, %v17468_v21  ;;  %vm17796_vm10 = vmmov %vm17795_vm8 }
0x2687   :  { %12609 = vmatmul.mubr.msk.f32.gmra.mxu0 %vm17794_vm7, %v9497_v11  ;;  %12645 = vmatprep.subr.msk.mxu0 %vm17754_vm11, %v17468_v21  ;;  %vm17806_vm7 = vmmov %vm17781_vm6 }
0x2688   :  { %12646 = vmatpush3.msk.msra.mxu0 %vm17754_vm11, %v17468_v21  ;;  %vm17798_vm11 = vmmov %vm17795_vm8 }
0x2689   :  { %12647 = vmatprep.subr.msk.mxu0 %vm17758_vm1, %v17468_v21 }
0x268a   :  { %12648 = vmatpush3.msk.msra.mxu0 %vm17758_vm1, %v17468_v21  ;;  %vm17799_vm1 = vmmov %vm17795_vm8 }
0x268b   :  { %12655 = vmatprep.subr.msk.mxu0 %vm17760_vm5, %v17468_v21  ;;  %vm17807_vm8 = vmmov %vm17781_vm6 }
0x2733   :  { %v12579_v9 = vpop.f32.mrf.mxu0 }
0x2735   :  { %v9586_v57 = vpop.f32.mrf.mxu0 }
0x2737   :  { %v12582_v62 = vpop.f32.mrf.mxu0 }
0x2739   :  { %v9596_v42 = vpop.f32.mrf.mxu0 }
0x273b   :  { %v12593_v34 = vpop.f32.mrf.mxu0 }
0x273d   :  { %v9671_v30 = vpop.f32.mrf.mxu0 }
0x273f   :  { %v12596_v20 = vpop.f32.mrf.mxu0 }
0x2741   :  { %v9681_v13 = vpop.f32.mrf.mxu0 }
0x2743   :  { %v12607_v54 = vpop.f32.mrf.mxu0 }
0x2745   :  { %v9756_v45 = vpop.f32.mrf.mxu0 }
0x2747   :  { %v12610_v18 = vpop.f32.mrf.mxu0 }
0x2748   :  { %12611 = vmatprep.subr.mxu1 %v12610_v18 }
0x2749   :  { %v9766_v38 = vpop.f32.mrf.mxu0  ;;  %12612 = vmatpush3.msra.mxu1 %v12610_v18 }
0x274a   :  { %12613 = vmatprep.subr.mxu1 %v9766_v38 }
0x274b   :  { %12614 = vmatpush3.msra.mxu1 %v9766_v38 }
0x274c   :  { %12615 = vmatprep.subr.mxu1 %v12607_v54 }
0x274d   :  { %12616 = vmatpush3.msra.mxu1 %v12607_v54 }
0x274e   :  { %12617 = vmatprep.subr.mxu1 %v9756_v45 }
0x274f   :  { %12618 = vmatpush3.msra.mxu1 %v9756_v45 }
0x2750   :  { %12619 = vmatprep.subr.mxu1 %v12596_v20 }
0x2751   :  { %12620 = vmatpush3.msra.mxu1 %v12596_v20 }
0x2752   :  { %12621 = vmatprep.subr.mxu1 %v9681_v13 }
0x2753   :  { %12622 = vmatpush3.msra.mxu1 %v9681_v13 }
0x2754   :  { %12623 = vmatprep.subr.mxu1 %v12593_v34 }
0x2755   :  { %12624 = vmatpush3.msra.mxu1 %v12593_v34 }
0x2756   :  { %12625 = vmatprep.subr.mxu1 %v9671_v30 }
0x2757   :  { %12626 = vmatpush3.msra.mxu1 %v9671_v30 }
0x2758   :  { %12627 = vmatprep.subr.mxu1 %v12582_v62 }
0x2759   :  { %12628 = vmatpush3.msra.mxu1 %v12582_v62 }
0x275a   :  { %12629 = vmatprep.subr.mxu1 %v9596_v42 }
0x275b   :  { %12630 = vmatpush3.msra.mxu1 %v9596_v42 }
0x275c   :  { %12631 = vmatprep.subr.mxu1 %v12579_v9 }
0x275d   :  { %12632 = vmatpush3.msra.mxu1 %v12579_v9 }
0x275e   :  { %12633 = vmatprep.subr.mxu1 %v9586_v57 }
0x275f   :  { %12634 = vmatpush3.msra.mxu1 %v9586_v57 }
0x2760   :  { %12636 = vmatmul.mubr.msk.f32.vlgmr.msra.gmra.mxu1 %vm17796_vm10, %v9501_v52  ;;  %12683 = vmatprep.subr.mxu1 %v17797_v23 }
0x2761   :  { %12638 = vmatprep.mubr.msk.f32.mxu1 %vm17798_vm11, %v9502_v51 }
0x2764   :  { %12639 = vmatmul.mubr.msk.f32.gmra.mxu1 %vm17799_vm1, %v9503_v14 }
0x2765   :  { %12707 = vmatprep.mubr.msk.f32.mxu1 %vm17800_vm9, %v17797_v23 }
0x2820   :  { %v12637_v5 = vpop.f32.mrf.mxu1 }
0x2821   :  { %v9879_v36 = vadd.f32 %v12637_v5, %v17801_v37 }
0x2822   :  { %v9873_v49 = vpop.f32.mrf.mxu1 }
0x2823   :  { %v9874_v28 = vadd.f32 %v9873_v49, %v17802_v59  ;;  %v9893_v4 = vmax.f32 %v9879_v36, 0.0 }
0x2824   :  { %v12640_v27 = vpop.f32.mrf.mxu1 }
0x2825   :  { %v9892_v26 = vmax.f32 %v9874_v28, 0.0  ;;  %v9889_v56 = vadd.f32 %v12640_v27, %v17803_v2 }
0x2826   :  { %v9883_v50 = vpop.f32.mrf.mxu1 }
0x2827   :  { %v9884_v47 = vadd.f32 %v9883_v50, %v17804_v43  ;;  %12649 = vmatprep.mubr.msk.f32.mxu0 %vm17781_vm6, %v9892_v26  ;;  %v9895_v19 = vmax.f32 %v9889_v56, 0.0 }
0x2828   :  { %12650 = vmatmul.mubr.msk.f32.vlgmr.msra.gmra.mxu0 %vm17805_vm13, %v9893_v4 }
0x2829   :  { %v9894_v3 = vmax.f32 %v9884_v47, 0.0  ;;  %12656 = vmatpush3.msk.msra.mxu0 %vm17760_vm5, %v17468_v21  ;;  %vm17808_vm5 = vmmov %vm17781_vm6 }
0x282a   :  { %12657 = vmatprep.subr.msk.mxu0 %vm17773_vm4, %v17468_v21 }
0x282b   :  { %12652 = vmatprep.mubr.msk.f32.mxu0 %vm17806_vm7, %v9894_v3  ;;  %12658 = vmatpush3.msk.msra.mxu0 %vm17773_vm4, %v17468_v21  ;;  %vm17809_vm4 = vmmov %vm17808_vm5 }
0x282c   :  { %12653 = vmatmul.mubr.msk.f32.gmra.mxu0 %vm17807_vm8, %v9895_v19  ;;  %12659 = vmatprep.subr.msk.mxu0 %vm17777_vm3, %v17468_v21  ;;  %vm17810_vm10 = vmmov %vm17809_vm4 }
0x282d   :  { %12660 = vmatpush3.msk.msra.mxu0 %vm17777_vm3, %v17468_v21  ;;  %12663 = vmatprep.mubr.msk.f32.mxu0 %vm17808_vm5, %v9892_v26  ;;  %vm17811_vm3 = vmmov %vm17809_vm4 }
0x282e   :  { %12661 = vmatprep.subr.msk.mxu0 %vm17780_vm15, %v17468_v21  ;;  %vm17815_vm11 = vmmov %vm17811_vm3 }
0x282f   :  { %12662 = vmatpush3.msk.msra.mxu0 %vm17780_vm15, %v17468_v21  ;;  %vm17812_vm15 = vmmov %vm17811_vm3 }
0x2830   :  { %12664 = vmatmul.mubr.msk.f32.vlgmr.msra.gmra.mxu0 %vm17809_vm4, %v9893_v4  ;;  %12669 = vmatprep.subr.msk.mxu0 %vm17783_vm14, %v17468_v21 }
0x2831   :  { %12666 = vmatprep.mubr.msk.f32.mxu0 %vm17810_vm10, %v9894_v3  ;;  %12670 = vmatpush3.msk.msra.mxu0 %vm17783_vm14, %v17468_v21  ;;  %vm17813_vm14 = vmmov %vm17811_vm3 }
0x2832   :  { %12671 = vmatprep.subr.msk.mxu0 %vm17786_vm12, %v17468_v21 }
0x2833   :  { %12672 = vmatpush3.msk.msra.mxu0 %vm17786_vm12, %v17468_v21  ;;  %vm17814_vm12 = vmmov %vm17811_vm3 }
0x2834   :  { %12667 = vmatmul.mubr.msk.f32.gmra.mxu0 %vm17811_vm3, %v9895_v19  ;;  %12673 = vmatprep.subr.msk.mxu0 %vm17789_vm0, %v17468_v21 }
0x2835   :  { %12674 = vmatpush3.msk.msra.mxu0 %vm17789_vm0, %v17468_v21  ;;  %12677 = vmatprep.mubr.msk.f32.mxu0 %vm17812_vm15, %v9892_v26  ;;  %vm17816_vm0 = vmmov %vm17799_vm1 }
0x2836   :  { %12675 = vmatprep.subr.msk.mxu0 %vm17792_vm2, %v17468_v21 }
0x2837   :  { %12676 = vmatpush3.msk.msra.mxu0 %vm17792_vm2, %v17468_v21  ;;  %v9896_v21 = vld [vmem:[#allocation72] sm:$0xff]  ;;  %vm17817_vm2 = vmmov %vm17811_vm3 }
0x2838   :  { %12678 = vmatmul.mubr.msk.f32.vlgmr.msra.gmra.mxu0 %vm17813_vm14, %v9893_v4 }
0x2839   :  { %12680 = vmatprep.mubr.msk.f32.mxu0 %vm17814_vm12, %v9894_v3 }
0x283c   :  { %12681 = vmatmul.mubr.msk.f32.gmra.mxu0 %vm17815_vm11, %v9895_v19 }
0x28e8   :  { %v12651_v0 = vpop.f32.mrf.mxu0 }
0x28ea   :  { %v9976_v15 = vpop.f32.mrf.mxu0 }
0x28ec   :  { %v12654_v39 = vpop.f32.mrf.mxu0 }
0x28ee   :  { %v9986_v31 = vpop.f32.mrf.mxu0 }
0x28f0   :  { %v12665_v25 = vpop.f32.mrf.mxu0 }
0x28f2   :  { %v10061_v41 = vpop.f32.mrf.mxu0 }
0x28f4   :  { %v12668_v63 = vpop.f32.mrf.mxu0 }
0x28f6   :  { %v10071_v32 = vpop.f32.mrf.mxu0 }
0x28f8   :  { %v12679_v53 = vpop.f32.mrf.mxu0 }
0x28fa   :  { %v10146_v6 = vpop.f32.mrf.mxu0 }
0x28fc   :  { %v12682_v29 = vpop.f32.mrf.mxu0 }
0x28fd   :  { %12684 = vmatpush3.msra.mxu1 %v12682_v29 }
0x28fe   :  { %v10156_v22 = vpop.f32.mrf.mxu0  ;;  %12685 = vmatprep.subr.mxu1 %v17797_v23 }
0x28ff   :  { %12686 = vmatpush3.msra.mxu1 %v10156_v22 }
0x2900   :  { %12687 = vmatprep.subr.mxu1 %v17797_v23 }
0x2901   :  { %12688 = vmatpush3.msra.mxu1 %v12679_v53 }
0x2902   :  { %12689 = vmatprep.subr.mxu1 %v17797_v23 }
0x2903   :  { %12690 = vmatpush3.msra.mxu1 %v10146_v6 }
0x2904   :  { %12691 = vmatprep.subr.mxu1 %v17797_v23 }
0x2905   :  { %12692 = vmatpush3.msra.mxu1 %v12668_v63 }
0x2906   :  { %12693 = vmatprep.subr.mxu1 %v17797_v23 }
0x2907   :  { %12694 = vmatpush3.msra.mxu1 %v10071_v32 }
0x2908   :  { %12695 = vmatprep.subr.mxu1 %v17797_v23 }
0x2909   :  { %12696 = vmatpush3.msra.mxu1 %v12665_v25 }
0x290a   :  { %12697 = vmatprep.subr.mxu1 %v17797_v23 }
0x290b   :  { %12698 = vmatpush3.msra.mxu1 %v10061_v41 }
0x290c   :  { %12699 = vmatprep.subr.mxu1 %v17797_v23 }
0x290d   :  { %12700 = vmatpush3.msra.mxu1 %v12654_v39 }
0x290e   :  { %12701 = vmatprep.subr.mxu1 %v17797_v23 }
0x290f   :  { %12702 = vmatpush3.msra.mxu1 %v9986_v31 }
0x2910   :  { %12703 = vmatprep.subr.mxu1 %v17797_v23 }
0x2911   :  { %12704 = vmatpush3.msra.mxu1 %v12651_v0 }
0x2912   :  { %12705 = vmatprep.subr.mxu1 %v17797_v23 }
0x2913   :  { %12706 = vmatpush3.msra.mxu1 %v9976_v15 }
0x2914   :  { %12708 = vmatmul.mubr.msk.f32.vlgmr.msra.gmra.mxu1 %vm17816_vm0, %v9896_v21 }
0x29d4   :  { %v10239_v17 = vpop.f32.mrf.mxu1 }
0x29d5   :  { %v10240_v12 = vadd.f32 %v10239_v17, %v10168_v24 }
0x29d6   :  { %v12709_v40 = vpop.f32.mrf.mxu1 }
0x29d7   :  { %10243 = vst.msk [vmem:[%s14397_s4] sm:$0xff] %vm17817_vm2, %v10240_v12 }
0x29d8   :  { %10256 = vsyncpa [#allocation3], 1 }
0x29d9   :  { %10257 = vsyncpa [#allocation5], 1 }
0x29da   :  { %10258 = vsyncpa [#allocation8], 1 }
0x29db   :  { %10259 = vsyncpa [#allocation11], 1 }
0x29dc   :  { %10260 = vsyncpa [#allocation14], 1 }
0x29dd   :  { %10261 = vsyncpa [#allocation17], 1 }
0x29de   :  { %10262 = vsyncpa [#allocation20], 1 }
0x29df   :  { %10263 = vsyncpa [#allocation23], 1 }
0x29e0   :  { %10264 = vsyncpa [#allocation26], 1 }
0x29e1   :  { %10265 = vsyncpa [#allocation29], 1 }
0x29e2   :  { %10266 = vsyncpa [#allocation32], 1 }
0x29e3   :  { %10267 = vsyncpa [#allocation35], 1 }
0x29e4   :  { %10268 = vsyncpa [#allocation38], 1 }
0x29e5   :  { %10269 = vsyncpa [#allocation41], 1 }
0x29e6   :  { %10270 = vsyncpa [#allocation44], 1 }
0x29e7   :  { %10271 = vsyncpa [#allocation47], 1 }
0x29e8   :  { %10272 = vsyncpa [#allocation50], 1 }
0x29e9   :  { %10273 = vsyncpa [#allocation53], 1 }
0x29ea   :  { %10274 = vsyncpa [#allocation56], 1 }
0x29eb   :  { %10275 = vsyncpa [#allocation59], 1 }
0x29ec   :  { %10276 = vsyncpa [#allocation62], 1 }
0x29ed   :  { %10277 = vsyncpa [#allocation65], 1 }
0x29ee   :  { %10278 = vsyncpa [#allocation68], 1 }
0x29ef   :  { %10279 = vsyncpa [#allocation71], 1 }
0x29f0   :  { %10280 = vsyncpa [#allocation74], 1 }
0x29f1   :  { %10281 = vsyncpa [#allocation77], 1 }
0x29f2   :  { %10282 = vsyncpa [#allocation80], 1 }

</bundles_post_ra>
